<compile_context>
chip_gen: v7x
topology: tpu7x:2x2x1
jax: 0.10.0
libtpu: 0.0.40
codegen_flags: <defaults>
</compile_context>

<pallas_src>
import functools

import jax
import jax.numpy as jnp
from jax.experimental import pallas as pl
from jax.experimental.pallas import tpu as pltpu


# ------------------------------------------------------------------
# Kernels
# ------------------------------------------------------------------

def _fused_upsample_conv_kernel(x_ref, h0_ref, h1_ref, w_ref, b_ref, o_ref,
                                xw_ref, col_ref, *, Dt, H, W, C, N):
    """One (batch, depth-block) grid step.

    x_ref  : (Dt, H+2, W+2, C) bf16   padded source, padded depths [d*Dt, d*Dt+Dt)
    h0_ref : (1,  H+2, W+2, C) bf16   halo plane, padded depth d*Dt+Dt
    h1_ref : (1,  H+2, W+2, C) bf16   halo plane, padded depth d*Dt+Dt+1
    w_ref  : (27*C, N) bf16           tap-regrouped weights, N = 8*Cout
    b_ref  : (1, N)    f32            bias tiled over the 8 output parities
    o_ref  : (Dt, H, W, N)            all 8 output parities for Dt source depths
    xw_ref : VMEM (Dt+2, H+2, W+2, C) bf16  depth window incl. halo
    col_ref: VMEM (Dt*H*W, 27*C) bf16       im2col staging tile
    """
    # Assemble the depth window with its 2-plane halo.
    xw_ref[0:Dt, :, :, :] = x_ref[...]
    xw_ref[Dt:Dt + 1, :, :, :] = h0_ref[...]
    xw_ref[Dt + 1:Dt + 2, :, :, :] = h1_ref[...]

    M = Dt * H * W
    t = 0
    for td in range(3):
        for th in range(3):
            for tw in range(3):
                slab = xw_ref[td:td + Dt, th:th + H, tw:tw + W, :]   # (Dt, H, W, C)
                col_ref[:, t * C:(t + 1) * C] = slab.reshape(M, C)
                t += 1

    # Single MXU contraction over K = 27*C, f32 accumulation, lane-dense store.
    acc = jnp.dot(col_ref[...], w_ref[...], preferred_element_type=jnp.float32)
    acc = acc + b_ref[...]
    o_ref[...] = acc.reshape(Dt, H, W, N).astype(o_ref.dtype)


def _nearest_upsample_kernel(x_ref, o_ref):
    """with_conv=False: 2x nearest upsample, lane-dense (last dim = 8*C) store."""
    x = x_ref[...]                                            # (Dt, H, W, C)
    o_ref[...] = jnp.concatenate([x] * 8, axis=-1).astype(o_ref.dtype)


# ------------------------------------------------------------------
# Forward pass
# ------------------------------------------------------------------

def _pick_depth_tile(D):
    for dt in (4, 2, 1):
        if D % dt == 0:
            return dt
    return 1


def upsample_forward(params, x, *, with_conv=True, out_dtype=jnp.float32):
    """x: (B, C, D, H, W) float32 (PyTorch NCDHW).  Returns (B, C, 2D, 2H, 2W)."""
    B, C, D, H, W = x.shape
    x_cl = jnp.transpose(x, (0, 2, 3, 4, 1))                   # (B, D, H, W, C)
    Dt = _pick_depth_tile(D)
    nd = D // Dt

    if not with_conv:
        N = 8 * C
        out5 = pl.pallas_call(
            _nearest_upsample_kernel,
            out_shape=jax.ShapeDtypeStruct((B, D, H, W, N), x.dtype),
            grid=(B, nd),
            in_specs=[pl.BlockSpec((None, Dt, H, W, C),
                                   lambda b, d: (b, d, 0, 0, 0))],
            out_specs=pl.BlockSpec((None, Dt, H, W, N),
                                   lambda b, d: (b, d, 0, 0, 0)),
            compiler_params=pltpu.CompilerParams(
                dimension_semantics=("parallel", "parallel")),
        )(x_cl)
        out = out5.reshape(B, D, H, W, 2, 2, 2, C)
        out = out.transpose(0, 7, 1, 4, 2, 5, 3, 6)            # (B,C,D,pd,H,ph,W,pw)
        return out.reshape(B, C, 2 * D, 2 * H, 2 * W)

    w = params["w"]                      # (Cout, Cin, 3, 3, 3), PyTorch Conv3d layout
    b = params["b"]                      # (Cout,)
    Cout = w.shape[0]
    N = 8 * Cout
    K = 27 * C

    # Tap regrouping: output parity p, conv tap k -> padded-source offset (p+k+1)//2.
    A = jnp.asarray([[[1.0 if ((p + k + 1) // 2) == t else 0.0 for t in range(3)]
                      for k in range(3)] for p in range(2)], dtype=jnp.float32)
    w_k = jnp.transpose(w, (2, 3, 4, 1, 0)).astype(jnp.float32)    # (3,3,3,Cin,Cout)
    # Wc[td,th,tw, ci, pd,ph,pw, co] = sum_k w[k,ci,co]*A[pd,kd,td]*A[ph,kh,th]*A[pw,kw,tw]
    Wc = jnp.einsum("abcio,pax,qby,rcz->xyzipqro", w_k, A, A, A)
    Wc = Wc.reshape(K, N).astype(jnp.bfloat16)                     # K index = t*C + ci
    bias8 = jnp.tile(b.astype(jnp.float32), 8).reshape(1, N)

    # Pad the *small* source once (D/H/W halos); bf16 for the MXU fast path.
    xp = jnp.pad(x_cl, ((0, 0), (1, 1), (1, 1), (1, 1), (0, 0))).astype(jnp.bfloat16)

    out_isz = jnp.dtype(out_dtype).itemsize
    vmem_need = (
        2 * Dt * (H + 2) * (W + 2) * C * 2          # main input block, double-buffered
        + 2 * 2 * (H + 2) * (W + 2) * C * 2         # two halo planes, double-buffered
        + 2 * Dt * H * W * N * out_isz              # output block, double-buffered
        + 2 * (K * N * 2 + N * 4)                   # weights + bias (resident)
        + (Dt + 2) * (H + 2) * (W + 2) * C * 2      # depth-window scratch
        + Dt * H * W * K * 2                        # im2col scratch
    )
    vmem_limit = int(min(64 * 2 ** 20, max(16 * 2 ** 20, 3 * vmem_need)))

    flops = 2 * B * D * H * W * K * N
    bytes_accessed = int(xp.size * 2 * (1 + 2 / Dt) + K * N * 2
                         + B * D * H * W * N * out_isz)

    kernel = functools.partial(_fused_upsample_conv_kernel,
                               Dt=Dt, H=H, W=W, C=C, N=N)
    out_sub = pl.pallas_call(
        kernel,
        out_shape=jax.ShapeDtypeStruct((B, D, H, W, N), out_dtype),
        grid=(B, nd),
        in_specs=[
            # Dt-deep window of the padded source (block index along depth).
            pl.BlockSpec((None, Dt, H + 2, W + 2, C),
                         lambda bi, di: (bi, di, 0, 0, 0)),
            # Two single-plane depth halos (block size 1 -> element offsets).
            pl.BlockSpec((None, 1, H + 2, W + 2, C),
                         lambda bi, di: (bi, di * Dt + Dt, 0, 0, 0)),
            pl.BlockSpec((None, 1, H + 2, W + 2, C),
                         lambda bi, di: (bi, di * Dt + Dt + 1, 0, 0, 0)),
            pl.BlockSpec((K, N), lambda bi, di: (0, 0)),
            pl.BlockSpec((1, N), lambda bi, di: (0, 0)),
        ],
        out_specs=pl.BlockSpec((None, Dt, H, W, N),
                               lambda bi, di: (bi, di, 0, 0, 0)),
        scratch_shapes=[
            pltpu.VMEM((Dt + 2, H + 2, W + 2, C), jnp.bfloat16),
            pltpu.VMEM((Dt * H * W, K), jnp.bfloat16),
        ],
        compiler_params=pltpu.CompilerParams(
            dimension_semantics=("parallel", "parallel"),
            vmem_limit_bytes=vmem_limit),
        cost_estimate=pl.CostEstimate(flops=flops, transcendentals=0,
                                      bytes_accessed=bytes_accessed),
    )(xp, xp, xp, Wc, bias8)

    # Un-interleave parities: (B, D, H, W, pd, ph, pw, Cout) -> (B, Cout, 2D, 2H, 2W).
    out = out_sub.reshape(B, D, H, W, 2, 2, 2, Cout)
    out = out.transpose(0, 7, 1, 4, 2, 5, 3, 6)
    return out.reshape(B, Cout, 2 * D, 2 * H, 2 * W).astype(x.dtype)


# ------------------------------------------------------------------
# Deterministic parameter construction
# ------------------------------------------------------------------

def init_upsample_params(key, in_channels, with_conv=True):
    if not with_conv:
        return {}
    kw, kb = jax.random.split(key)
    w = jax.random.normal(kw, (in_channels, in_channels, 3, 3, 3), jnp.float32) * 0.05
    b = jax.random.normal(kb, (in_channels,), jnp.float32) * 0.01
    return {"w": w, "b": b}


# ------------------------------------------------------------------

if __name__ == "__main__":
    key = jax.random.PRNGKey(0)
    kp, kx = jax.random.split(key)

    B, C, D, H, W = 2, 16, 8, 8, 8           # small shapes; in_channels=16 -> 8*C = 128 lanes
    params = init_upsample_params(kp, C, with_conv=True)
    x = jax.random.normal(kx, (B, C, D, H, W), jnp.float32)

    # --- with_conv=True: fused upsample + conv Pallas kernel ---
    fwd = jax.jit(functools.partial(upsample_forward, with_conv=True))
    out = fwd(params, x)
    jax.block_until_ready(out)
    assert out.shape == (B, C, 2 * D, 2 * H, 2 * W), out.shape
    assert bool(jnp.all(jnp.isfinite(out)))

    # Reference: materialized nearest upsample followed by an XLA 3-D conv (f32).
    x_up = jnp.repeat(jnp.repeat(jnp.repeat(x, 2, axis=2), 2, axis=3), 2, axis=4)
    ref = jax.lax.conv_general_dilated(
        x_up, params["w"], (1, 1, 1), ((1, 1), (1, 1), (1, 1)),
        dimension_numbers=("NCDHW", "OIDHW", "NCDHW"),
        precision=jax.lax.Precision.HIGHEST) + params["b"].reshape(1, -1, 1, 1, 1)
    max_err = float(jnp.max(jnp.abs(out - ref)))
    # bf16 activations/weights with f32 accumulation vs. an f32 reference.
    assert max_err < 4e-2, max_err

    # --- with_conv=False: pure nearest upsample kernel (exact) ---
    fwd_nc = jax.jit(functools.partial(upsample_forward, with_conv=False))
    out_nc = fwd_nc({}, x)
    jax.block_until_ready(out_nc)
    assert out_nc.shape == (B, C, 2 * D, 2 * H, 2 * W), out_nc.shape
    assert bool(jnp.all(out_nc == x_up))

    print("KERNEL_OK")
</pallas_src>

<mosaic_0001>
module attributes {stable_mosaic.version = 11 : i64} {
  func.func @_fused_upsample_conv_kernel(%arg0: i32, %arg1: i32, %arg2: memref<1x4x10x10x16xbf16, #tpu.memory_space<vmem>>, %arg3: memref<1x1x10x10x16xbf16, #tpu.memory_space<vmem>>, %arg4: memref<1x1x10x10x16xbf16, #tpu.memory_space<vmem>>, %arg5: memref<432x128xbf16, #tpu.memory_space<vmem>>, %arg6: memref<1x128xf32, #tpu.memory_space<vmem>>, %arg7: memref<1x4x8x8x128xf32, #tpu.memory_space<vmem>>, %arg8: memref<6x10x10x16xbf16, #tpu.memory_space<vmem>>, %arg9: memref<256x432xbf16, #tpu.memory_space<vmem>>) attributes {dimension_semantics = [#tpu.dimension_semantics<parallel>, #tpu.dimension_semantics<parallel>], iteration_bounds = array<i64: 2, 2>, scalar_prefetch = 0 : i64, scratch_operands = 2 : i64, tpu.core_type = #tpu.core_type<tc>, window_params = [{transform_indices = @transform_0, window_bounds = array<i64: 1, 4, 10, 10, 16>}, {transform_indices = @transform_1, window_bounds = array<i64: 1, 1, 10, 10, 16>}, {transform_indices = @transform_2, window_bounds = array<i64: 1, 1, 10, 10, 16>}, {pipeline_mode = #tpu.pipeline_mode<synchronous>, transform_indices = @transform_3, window_bounds = array<i64: 432, 128>}, {pipeline_mode = #tpu.pipeline_mode<synchronous>, transform_indices = @transform_4, window_bounds = array<i64: 1, 128>}, {transform_indices = @transform_5, window_bounds = array<i64: 1, 4, 8, 8, 128>}]} {
    %c0 = arith.constant 0 : index
    %c0_0 = arith.constant 0 : index
    %c0_1 = arith.constant 0 : index
    %c0_2 = arith.constant 0 : index
    %c0_3 = arith.constant 0 : index
    %0 = vector.load %arg2[%c0, %c0_0, %c0_1, %c0_2, %c0_3] : memref<1x4x10x10x16xbf16, #tpu.memory_space<vmem>>, vector<1x4x10x10x16xbf16>
    %1 = vector.shape_cast %0 : vector<1x4x10x10x16xbf16> to vector<4x10x10x16xbf16>
    %c0_4 = arith.constant 0 : index
    %c0_5 = arith.constant 0 : index
    %c0_6 = arith.constant 0 : index
    %c0_7 = arith.constant 0 : index
    %2 = vector.load %arg8[%c0_4, %c0_5, %c0_6, %c0_7] : memref<6x10x10x16xbf16, #tpu.memory_space<vmem>>, vector<4x10x10x16xbf16>
    tpu.vector_store %arg8[%c0_4, %c0_5, %c0_6, %c0_7], %1 {strides = array<i32>} : memref<6x10x10x16xbf16, #tpu.memory_space<vmem>>, vector<4x10x10x16xbf16>,
    %c0_8 = arith.constant 0 : index
    %c0_9 = arith.constant 0 : index
    %c0_10 = arith.constant 0 : index
    %c0_11 = arith.constant 0 : index
    %c0_12 = arith.constant 0 : index
    %3 = vector.load %arg3[%c0_8, %c0_9, %c0_10, %c0_11, %c0_12] : memref<1x1x10x10x16xbf16, #tpu.memory_space<vmem>>, vector<1x1x10x10x16xbf16>
    %4 = vector.shape_cast %3 : vector<1x1x10x10x16xbf16> to vector<1x10x10x16xbf16>
    %c4 = arith.constant 4 : index
    %c0_13 = arith.constant 0 : index
    %c0_14 = arith.constant 0 : index
    %c0_15 = arith.constant 0 : index
    %5 = vector.load %arg8[%c4, %c0_13, %c0_14, %c0_15] : memref<6x10x10x16xbf16, #tpu.memory_space<vmem>>, vector<1x10x10x16xbf16>
    tpu.vector_store %arg8[%c4, %c0_13, %c0_14, %c0_15], %4 {strides = array<i32>} : memref<6x10x10x16xbf16, #tpu.memory_space<vmem>>, vector<1x10x10x16xbf16>,
    %c0_16 = arith.constant 0 : index
    %c0_17 = arith.constant 0 : index
    %c0_18 = arith.constant 0 : index
    %c0_19 = arith.constant 0 : index
    %c0_20 = arith.constant 0 : index
    %6 = vector.load %arg4[%c0_16, %c0_17, %c0_18, %c0_19, %c0_20] : memref<1x1x10x10x16xbf16, #tpu.memory_space<vmem>>, vector<1x1x10x10x16xbf16>
    %7 = vector.shape_cast %6 : vector<1x1x10x10x16xbf16> to vector<1x10x10x16xbf16>
    %c5 = arith.constant 5 : index
    %c0_21 = arith.constant 0 : index
    %c0_22 = arith.constant 0 : index
    %c0_23 = arith.constant 0 : index
    %8 = vector.load %arg8[%c5, %c0_21, %c0_22, %c0_23] : memref<6x10x10x16xbf16, #tpu.memory_space<vmem>>, vector<1x10x10x16xbf16>
    tpu.vector_store %arg8[%c5, %c0_21, %c0_22, %c0_23], %7 {strides = array<i32>} : memref<6x10x10x16xbf16, #tpu.memory_space<vmem>>, vector<1x10x10x16xbf16>,
    %c0_24 = arith.constant 0 : index
    %c0_25 = arith.constant 0 : index
    %c0_26 = arith.constant 0 : index
    %c0_27 = arith.constant 0 : index
    %9 = vector.load %arg8[%c0_24, %c0_25, %c0_26, %c0_27] : memref<6x10x10x16xbf16, #tpu.memory_space<vmem>>, vector<4x8x8x16xbf16>
    %10 = vector.shape_cast %9 : vector<4x8x8x16xbf16> to vector<256x16xbf16>
    %c0_28 = arith.constant 0 : index
    %c0_29 = arith.constant 0 : index
    %11 = vector.load %arg9[%c0_28, %c0_29] : memref<256x432xbf16, #tpu.memory_space<vmem>>, vector<256x16xbf16>
    tpu.vector_store %arg9[%c0_28, %c0_29], %10 {strides = array<i32>} : memref<256x432xbf16, #tpu.memory_space<vmem>>, vector<256x16xbf16>,
    %c0_30 = arith.constant 0 : index
    %c0_31 = arith.constant 0 : index
    %c1 = arith.constant 1 : index
    %c0_32 = arith.constant 0 : index
    %12 = vector.load %arg8[%c0_30, %c0_31, %c1, %c0_32] : memref<6x10x10x16xbf16, #tpu.memory_space<vmem>>, vector<4x8x8x16xbf16>
    %13 = vector.shape_cast %12 : vector<4x8x8x16xbf16> to vector<256x16xbf16>
    %c0_33 = arith.constant 0 : index
    %c16 = arith.constant 16 : index
    %14 = vector.load %arg9[%c0_33, %c16] : memref<256x432xbf16, #tpu.memory_space<vmem>>, vector<256x16xbf16>
    tpu.vector_store %arg9[%c0_33, %c16], %13 {strides = array<i32>} : memref<256x432xbf16, #tpu.memory_space<vmem>>, vector<256x16xbf16>,
    %c0_34 = arith.constant 0 : index
    %c0_35 = arith.constant 0 : index
    %c2 = arith.constant 2 : index
    %c0_36 = arith.constant 0 : index
    %15 = vector.load %arg8[%c0_34, %c0_35, %c2, %c0_36] : memref<6x10x10x16xbf16, #tpu.memory_space<vmem>>, vector<4x8x8x16xbf16>
    %16 = vector.shape_cast %15 : vector<4x8x8x16xbf16> to vector<256x16xbf16>
    %c0_37 = arith.constant 0 : index
    %c32 = arith.constant 32 : index
    %17 = vector.load %arg9[%c0_37, %c32] : memref<256x432xbf16, #tpu.memory_space<vmem>>, vector<256x16xbf16>
    tpu.vector_store %arg9[%c0_37, %c32], %16 {strides = array<i32>} : memref<256x432xbf16, #tpu.memory_space<vmem>>, vector<256x16xbf16>,
    %c0_38 = arith.constant 0 : index
    %c1_39 = arith.constant 1 : index
    %c0_40 = arith.constant 0 : index
    %c0_41 = arith.constant 0 : index
    %18 = vector.load %arg8[%c0_38, %c1_39, %c0_40, %c0_41] : memref<6x10x10x16xbf16, #tpu.memory_space<vmem>>, vector<4x8x8x16xbf16>
    %19 = vector.shape_cast %18 : vector<4x8x8x16xbf16> to vector<256x16xbf16>
    %c0_42 = arith.constant 0 : index
    %c48 = arith.constant 48 : index
    %20 = vector.load %arg9[%c0_42, %c48] : memref<256x432xbf16, #tpu.memory_space<vmem>>, vector<256x16xbf16>
    tpu.vector_store %arg9[%c0_42, %c48], %19 {strides = array<i32>} : memref<256x432xbf16, #tpu.memory_space<vmem>>, vector<256x16xbf16>,
    %c0_43 = arith.constant 0 : index
    %c1_44 = arith.constant 1 : index
    %c1_45 = arith.constant 1 : index
    %c0_46 = arith.constant 0 : index
    %21 = vector.load %arg8[%c0_43, %c1_44, %c1_45, %c0_46] : memref<6x10x10x16xbf16, #tpu.memory_space<vmem>>, vector<4x8x8x16xbf16>
    %22 = vector.shape_cast %21 : vector<4x8x8x16xbf16> to vector<256x16xbf16>
    %c0_47 = arith.constant 0 : index
    %c64 = arith.constant 64 : index
    %23 = vector.load %arg9[%c0_47, %c64] : memref<256x432xbf16, #tpu.memory_space<vmem>>, vector<256x16xbf16>
    tpu.vector_store %arg9[%c0_47, %c64], %22 {strides = array<i32>} : memref<256x432xbf16, #tpu.memory_space<vmem>>, vector<256x16xbf16>,
    %c0_48 = arith.constant 0 : index
    %c1_49 = arith.constant 1 : index
    %c2_50 = arith.constant 2 : index
    %c0_51 = arith.constant 0 : index
    %24 = vector.load %arg8[%c0_48, %c1_49, %c2_50, %c0_51] : memref<6x10x10x16xbf16, #tpu.memory_space<vmem>>, vector<4x8x8x16xbf16>
    %25 = vector.shape_cast %24 : vector<4x8x8x16xbf16> to vector<256x16xbf16>
    %c0_52 = arith.constant 0 : index
    %c80 = arith.constant 80 : index
    %26 = vector.load %arg9[%c0_52, %c80] : memref<256x432xbf16, #tpu.memory_space<vmem>>, vector<256x16xbf16>
    tpu.vector_store %arg9[%c0_52, %c80], %25 {strides = array<i32>} : memref<256x432xbf16, #tpu.memory_space<vmem>>, vector<256x16xbf16>,
    %c0_53 = arith.constant 0 : index
    %c2_54 = arith.constant 2 : index
    %c0_55 = arith.constant 0 : index
    %c0_56 = arith.constant 0 : index
    %27 = vector.load %arg8[%c0_53, %c2_54, %c0_55, %c0_56] : memref<6x10x10x16xbf16, #tpu.memory_space<vmem>>, vector<4x8x8x16xbf16>
    %28 = vector.shape_cast %27 : vector<4x8x8x16xbf16> to vector<256x16xbf16>
    %c0_57 = arith.constant 0 : index
    %c96 = arith.constant 96 : index
    %29 = vector.load %arg9[%c0_57, %c96] : memref<256x432xbf16, #tpu.memory_space<vmem>>, vector<256x16xbf16>
    tpu.vector_store %arg9[%c0_57, %c96], %28 {strides = array<i32>} : memref<256x432xbf16, #tpu.memory_space<vmem>>, vector<256x16xbf16>,
    %c0_58 = arith.constant 0 : index
    %c2_59 = arith.constant 2 : index
    %c1_60 = arith.constant 1 : index
    %c0_61 = arith.constant 0 : index
    %30 = vector.load %arg8[%c0_58, %c2_59, %c1_60, %c0_61] : memref<6x10x10x16xbf16, #tpu.memory_space<vmem>>, vector<4x8x8x16xbf16>
    %31 = vector.shape_cast %30 : vector<4x8x8x16xbf16> to vector<256x16xbf16>
    %c0_62 = arith.constant 0 : index
    %c112 = arith.constant 112 : index
    %32 = vector.load %arg9[%c0_62, %c112] : memref<256x432xbf16, #tpu.memory_space<vmem>>, vector<256x16xbf16>
    tpu.vector_store %arg9[%c0_62, %c112], %31 {strides = array<i32>} : memref<256x432xbf16, #tpu.memory_space<vmem>>, vector<256x16xbf16>,
    %c0_63 = arith.constant 0 : index
    %c2_64 = arith.constant 2 : index
    %c2_65 = arith.constant 2 : index
    %c0_66 = arith.constant 0 : index
    %33 = vector.load %arg8[%c0_63, %c2_64, %c2_65, %c0_66] : memref<6x10x10x16xbf16, #tpu.memory_space<vmem>>, vector<4x8x8x16xbf16>
    %34 = vector.shape_cast %33 : vector<4x8x8x16xbf16> to vector<256x16xbf16>
    %c0_67 = arith.constant 0 : index
    %c128 = arith.constant 128 : index
    %35 = vector.load %arg9[%c0_67, %c128] : memref<256x432xbf16, #tpu.memory_space<vmem>>, vector<256x16xbf16>
    tpu.vector_store %arg9[%c0_67, %c128], %34 {strides = array<i32>} : memref<256x432xbf16, #tpu.memory_space<vmem>>, vector<256x16xbf16>,
    %c1_68 = arith.constant 1 : index
    %c0_69 = arith.constant 0 : index
    %c0_70 = arith.constant 0 : index
    %c0_71 = arith.constant 0 : index
    %36 = vector.load %arg8[%c1_68, %c0_69, %c0_70, %c0_71] : memref<6x10x10x16xbf16, #tpu.memory_space<vmem>>, vector<4x8x8x16xbf16>
    %37 = vector.shape_cast %36 : vector<4x8x8x16xbf16> to vector<256x16xbf16>
    %c0_72 = arith.constant 0 : index
    %c144 = arith.constant 144 : index
    %38 = vector.load %arg9[%c0_72, %c144] : memref<256x432xbf16, #tpu.memory_space<vmem>>, vector<256x16xbf16>
    tpu.vector_store %arg9[%c0_72, %c144], %37 {strides = array<i32>} : memref<256x432xbf16, #tpu.memory_space<vmem>>, vector<256x16xbf16>,
    %c1_73 = arith.constant 1 : index
    %c0_74 = arith.constant 0 : index
    %c1_75 = arith.constant 1 : index
    %c0_76 = arith.constant 0 : index
    %39 = vector.load %arg8[%c1_73, %c0_74, %c1_75, %c0_76] : memref<6x10x10x16xbf16, #tpu.memory_space<vmem>>, vector<4x8x8x16xbf16>
    %40 = vector.shape_cast %39 : vector<4x8x8x16xbf16> to vector<256x16xbf16>
    %c0_77 = arith.constant 0 : index
    %c160 = arith.constant 160 : index
    %41 = vector.load %arg9[%c0_77, %c160] : memref<256x432xbf16, #tpu.memory_space<vmem>>, vector<256x16xbf16>
    tpu.vector_store %arg9[%c0_77, %c160], %40 {strides = array<i32>} : memref<256x432xbf16, #tpu.memory_space<vmem>>, vector<256x16xbf16>,
    %c1_78 = arith.constant 1 : index
    %c0_79 = arith.constant 0 : index
    %c2_80 = arith.constant 2 : index
    %c0_81 = arith.constant 0 : index
    %42 = vector.load %arg8[%c1_78, %c0_79, %c2_80, %c0_81] : memref<6x10x10x16xbf16, #tpu.memory_space<vmem>>, vector<4x8x8x16xbf16>
    %43 = vector.shape_cast %42 : vector<4x8x8x16xbf16> to vector<256x16xbf16>
    %c0_82 = arith.constant 0 : index
    %c176 = arith.constant 176 : index
    %44 = vector.load %arg9[%c0_82, %c176] : memref<256x432xbf16, #tpu.memory_space<vmem>>, vector<256x16xbf16>
    tpu.vector_store %arg9[%c0_82, %c176], %43 {strides = array<i32>} : memref<256x432xbf16, #tpu.memory_space<vmem>>, vector<256x16xbf16>,
    %c1_83 = arith.constant 1 : index
    %c1_84 = arith.constant 1 : index
    %c0_85 = arith.constant 0 : index
    %c0_86 = arith.constant 0 : index
    %45 = vector.load %arg8[%c1_83, %c1_84, %c0_85, %c0_86] : memref<6x10x10x16xbf16, #tpu.memory_space<vmem>>, vector<4x8x8x16xbf16>
    %46 = vector.shape_cast %45 : vector<4x8x8x16xbf16> to vector<256x16xbf16>
    %c0_87 = arith.constant 0 : index
    %c192 = arith.constant 192 : index
    %47 = vector.load %arg9[%c0_87, %c192] : memref<256x432xbf16, #tpu.memory_space<vmem>>, vector<256x16xbf16>
    tpu.vector_store %arg9[%c0_87, %c192], %46 {strides = array<i32>} : memref<256x432xbf16, #tpu.memory_space<vmem>>, vector<256x16xbf16>,
    %c1_88 = arith.constant 1 : index
    %c1_89 = arith.constant 1 : index
    %c1_90 = arith.constant 1 : index
    %c0_91 = arith.constant 0 : index
    %48 = vector.load %arg8[%c1_88, %c1_89, %c1_90, %c0_91] : memref<6x10x10x16xbf16, #tpu.memory_space<vmem>>, vector<4x8x8x16xbf16>
    %49 = vector.shape_cast %48 : vector<4x8x8x16xbf16> to vector<256x16xbf16>
    %c0_92 = arith.constant 0 : index
    %c208 = arith.constant 208 : index
    %50 = vector.load %arg9[%c0_92, %c208] : memref<256x432xbf16, #tpu.memory_space<vmem>>, vector<256x16xbf16>
    tpu.vector_store %arg9[%c0_92, %c208], %49 {strides = array<i32>} : memref<256x432xbf16, #tpu.memory_space<vmem>>, vector<256x16xbf16>,
    %c1_93 = arith.constant 1 : index
    %c1_94 = arith.constant 1 : index
    %c2_95 = arith.constant 2 : index
    %c0_96 = arith.constant 0 : index
    %51 = vector.load %arg8[%c1_93, %c1_94, %c2_95, %c0_96] : memref<6x10x10x16xbf16, #tpu.memory_space<vmem>>, vector<4x8x8x16xbf16>
    %52 = vector.shape_cast %51 : vector<4x8x8x16xbf16> to vector<256x16xbf16>
    %c0_97 = arith.constant 0 : index
    %c224 = arith.constant 224 : index
    %53 = vector.load %arg9[%c0_97, %c224] : memref<256x432xbf16, #tpu.memory_space<vmem>>, vector<256x16xbf16>
    tpu.vector_store %arg9[%c0_97, %c224], %52 {strides = array<i32>} : memref<256x432xbf16, #tpu.memory_space<vmem>>, vector<256x16xbf16>,
    %c1_98 = arith.constant 1 : index
    %c2_99 = arith.constant 2 : index
    %c0_100 = arith.constant 0 : index
    %c0_101 = arith.constant 0 : index
    %54 = vector.load %arg8[%c1_98, %c2_99, %c0_100, %c0_101] : memref<6x10x10x16xbf16, #tpu.memory_space<vmem>>, vector<4x8x8x16xbf16>
    %55 = vector.shape_cast %54 : vector<4x8x8x16xbf16> to vector<256x16xbf16>
    %c0_102 = arith.constant 0 : index
    %c240 = arith.constant 240 : index
    %56 = vector.load %arg9[%c0_102, %c240] : memref<256x432xbf16, #tpu.memory_space<vmem>>, vector<256x16xbf16>
    tpu.vector_store %arg9[%c0_102, %c240], %55 {strides = array<i32>} : memref<256x432xbf16, #tpu.memory_space<vmem>>, vector<256x16xbf16>,
    %c1_103 = arith.constant 1 : index
    %c2_104 = arith.constant 2 : index
    %c1_105 = arith.constant 1 : index
    %c0_106 = arith.constant 0 : index
    %57 = vector.load %arg8[%c1_103, %c2_104, %c1_105, %c0_106] : memref<6x10x10x16xbf16, #tpu.memory_space<vmem>>, vector<4x8x8x16xbf16>
    %58 = vector.shape_cast %57 : vector<4x8x8x16xbf16> to vector<256x16xbf16>
    %c0_107 = arith.constant 0 : index
    %c256 = arith.constant 256 : index
    %59 = vector.load %arg9[%c0_107, %c256] : memref<256x432xbf16, #tpu.memory_space<vmem>>, vector<256x16xbf16>
    tpu.vector_store %arg9[%c0_107, %c256], %58 {strides = array<i32>} : memref<256x432xbf16, #tpu.memory_space<vmem>>, vector<256x16xbf16>,
    %c1_108 = arith.constant 1 : index
    %c2_109 = arith.constant 2 : index
    %c2_110 = arith.constant 2 : index
    %c0_111 = arith.constant 0 : index
    %60 = vector.load %arg8[%c1_108, %c2_109, %c2_110, %c0_111] : memref<6x10x10x16xbf16, #tpu.memory_space<vmem>>, vector<4x8x8x16xbf16>
    %61 = vector.shape_cast %60 : vector<4x8x8x16xbf16> to vector<256x16xbf16>
    %c0_112 = arith.constant 0 : index
    %c272 = arith.constant 272 : index
    %62 = vector.load %arg9[%c0_112, %c272] : memref<256x432xbf16, #tpu.memory_space<vmem>>, vector<256x16xbf16>
    tpu.vector_store %arg9[%c0_112, %c272], %61 {strides = array<i32>} : memref<256x432xbf16, #tpu.memory_space<vmem>>, vector<256x16xbf16>,
    %c2_113 = arith.constant 2 : index
    %c0_114 = arith.constant 0 : index
    %c0_115 = arith.constant 0 : index
    %c0_116 = arith.constant 0 : index
    %63 = vector.load %arg8[%c2_113, %c0_114, %c0_115, %c0_116] : memref<6x10x10x16xbf16, #tpu.memory_space<vmem>>, vector<4x8x8x16xbf16>
    %64 = vector.shape_cast %63 : vector<4x8x8x16xbf16> to vector<256x16xbf16>
    %c0_117 = arith.constant 0 : index
    %c288 = arith.constant 288 : index
    %65 = vector.load %arg9[%c0_117, %c288] : memref<256x432xbf16, #tpu.memory_space<vmem>>, vector<256x16xbf16>
    tpu.vector_store %arg9[%c0_117, %c288], %64 {strides = array<i32>} : memref<256x432xbf16, #tpu.memory_space<vmem>>, vector<256x16xbf16>,
    %c2_118 = arith.constant 2 : index
    %c0_119 = arith.constant 0 : index
    %c1_120 = arith.constant 1 : index
    %c0_121 = arith.constant 0 : index
    %66 = vector.load %arg8[%c2_118, %c0_119, %c1_120, %c0_121] : memref<6x10x10x16xbf16, #tpu.memory_space<vmem>>, vector<4x8x8x16xbf16>
    %67 = vector.shape_cast %66 : vector<4x8x8x16xbf16> to vector<256x16xbf16>
    %c0_122 = arith.constant 0 : index
    %c304 = arith.constant 304 : index
    %68 = vector.load %arg9[%c0_122, %c304] : memref<256x432xbf16, #tpu.memory_space<vmem>>, vector<256x16xbf16>
    tpu.vector_store %arg9[%c0_122, %c304], %67 {strides = array<i32>} : memref<256x432xbf16, #tpu.memory_space<vmem>>, vector<256x16xbf16>,
    %c2_123 = arith.constant 2 : index
    %c0_124 = arith.constant 0 : index
    %c2_125 = arith.constant 2 : index
    %c0_126 = arith.constant 0 : index
    %69 = vector.load %arg8[%c2_123, %c0_124, %c2_125, %c0_126] : memref<6x10x10x16xbf16, #tpu.memory_space<vmem>>, vector<4x8x8x16xbf16>
    %70 = vector.shape_cast %69 : vector<4x8x8x16xbf16> to vector<256x16xbf16>
    %c0_127 = arith.constant 0 : index
    %c320 = arith.constant 320 : index
    %71 = vector.load %arg9[%c0_127, %c320] : memref<256x432xbf16, #tpu.memory_space<vmem>>, vector<256x16xbf16>
    tpu.vector_store %arg9[%c0_127, %c320], %70 {strides = array<i32>} : memref<256x432xbf16, #tpu.memory_space<vmem>>, vector<256x16xbf16>,
    %c2_128 = arith.constant 2 : index
    %c1_129 = arith.constant 1 : index
    %c0_130 = arith.constant 0 : index
    %c0_131 = arith.constant 0 : index
    %72 = vector.load %arg8[%c2_128, %c1_129, %c0_130, %c0_131] : memref<6x10x10x16xbf16, #tpu.memory_space<vmem>>, vector<4x8x8x16xbf16>
    %73 = vector.shape_cast %72 : vector<4x8x8x16xbf16> to vector<256x16xbf16>
    %c0_132 = arith.constant 0 : index
    %c336 = arith.constant 336 : index
    %74 = vector.load %arg9[%c0_132, %c336] : memref<256x432xbf16, #tpu.memory_space<vmem>>, vector<256x16xbf16>
    tpu.vector_store %arg9[%c0_132, %c336], %73 {strides = array<i32>} : memref<256x432xbf16, #tpu.memory_space<vmem>>, vector<256x16xbf16>,
    %c2_133 = arith.constant 2 : index
    %c1_134 = arith.constant 1 : index
    %c1_135 = arith.constant 1 : index
    %c0_136 = arith.constant 0 : index
    %75 = vector.load %arg8[%c2_133, %c1_134, %c1_135, %c0_136] : memref<6x10x10x16xbf16, #tpu.memory_space<vmem>>, vector<4x8x8x16xbf16>
    %76 = vector.shape_cast %75 : vector<4x8x8x16xbf16> to vector<256x16xbf16>
    %c0_137 = arith.constant 0 : index
    %c352 = arith.constant 352 : index
    %77 = vector.load %arg9[%c0_137, %c352] : memref<256x432xbf16, #tpu.memory_space<vmem>>, vector<256x16xbf16>
    tpu.vector_store %arg9[%c0_137, %c352], %76 {strides = array<i32>} : memref<256x432xbf16, #tpu.memory_space<vmem>>, vector<256x16xbf16>,
    %c2_138 = arith.constant 2 : index
    %c1_139 = arith.constant 1 : index
    %c2_140 = arith.constant 2 : index
    %c0_141 = arith.constant 0 : index
    %78 = vector.load %arg8[%c2_138, %c1_139, %c2_140, %c0_141] : memref<6x10x10x16xbf16, #tpu.memory_space<vmem>>, vector<4x8x8x16xbf16>
    %79 = vector.shape_cast %78 : vector<4x8x8x16xbf16> to vector<256x16xbf16>
    %c0_142 = arith.constant 0 : index
    %c368 = arith.constant 368 : index
    %80 = vector.load %arg9[%c0_142, %c368] : memref<256x432xbf16, #tpu.memory_space<vmem>>, vector<256x16xbf16>
    tpu.vector_store %arg9[%c0_142, %c368], %79 {strides = array<i32>} : memref<256x432xbf16, #tpu.memory_space<vmem>>, vector<256x16xbf16>,
    %c2_143 = arith.constant 2 : index
    %c2_144 = arith.constant 2 : index
    %c0_145 = arith.constant 0 : index
    %c0_146 = arith.constant 0 : index
    %81 = vector.load %arg8[%c2_143, %c2_144, %c0_145, %c0_146] : memref<6x10x10x16xbf16, #tpu.memory_space<vmem>>, vector<4x8x8x16xbf16>
    %82 = vector.shape_cast %81 : vector<4x8x8x16xbf16> to vector<256x16xbf16>
    %c0_147 = arith.constant 0 : index
    %c384 = arith.constant 384 : index
    %83 = vector.load %arg9[%c0_147, %c384] : memref<256x432xbf16, #tpu.memory_space<vmem>>, vector<256x16xbf16>
    tpu.vector_store %arg9[%c0_147, %c384], %82 {strides = array<i32>} : memref<256x432xbf16, #tpu.memory_space<vmem>>, vector<256x16xbf16>,
    %c2_148 = arith.constant 2 : index
    %c2_149 = arith.constant 2 : index
    %c1_150 = arith.constant 1 : index
    %c0_151 = arith.constant 0 : index
    %84 = vector.load %arg8[%c2_148, %c2_149, %c1_150, %c0_151] : memref<6x10x10x16xbf16, #tpu.memory_space<vmem>>, vector<4x8x8x16xbf16>
    %85 = vector.shape_cast %84 : vector<4x8x8x16xbf16> to vector<256x16xbf16>
    %c0_152 = arith.constant 0 : index
    %c400 = arith.constant 400 : index
    %86 = vector.load %arg9[%c0_152, %c400] : memref<256x432xbf16, #tpu.memory_space<vmem>>, vector<256x16xbf16>
    tpu.vector_store %arg9[%c0_152, %c400], %85 {strides = array<i32>} : memref<256x432xbf16, #tpu.memory_space<vmem>>, vector<256x16xbf16>,
    %c2_153 = arith.constant 2 : index
    %c2_154 = arith.constant 2 : index
    %c2_155 = arith.constant 2 : index
    %c0_156 = arith.constant 0 : index
    %87 = vector.load %arg8[%c2_153, %c2_154, %c2_155, %c0_156] : memref<6x10x10x16xbf16, #tpu.memory_space<vmem>>, vector<4x8x8x16xbf16>
    %88 = vector.shape_cast %87 : vector<4x8x8x16xbf16> to vector<256x16xbf16>
    %c0_157 = arith.constant 0 : index
    %c416 = arith.constant 416 : index
    %89 = vector.load %arg9[%c0_157, %c416] : memref<256x432xbf16, #tpu.memory_space<vmem>>, vector<256x16xbf16>
    tpu.vector_store %arg9[%c0_157, %c416], %88 {strides = array<i32>} : memref<256x432xbf16, #tpu.memory_space<vmem>>, vector<256x16xbf16>,
    %c0_158 = arith.constant 0 : index
    %c0_159 = arith.constant 0 : index
    %90 = vector.load %arg9[%c0_158, %c0_159] : memref<256x432xbf16, #tpu.memory_space<vmem>>, vector<256x432xbf16>
    %c0_160 = arith.constant 0 : index
    %c0_161 = arith.constant 0 : index
    %91 = vector.load %arg5[%c0_160, %c0_161] : memref<432x128xbf16, #tpu.memory_space<vmem>>, vector<432x128xbf16>
    %cst = arith.constant dense<0.000000e+00> : vector<256x128xf32>
    %92 = tpu.matmul %90, %91, %cst {dimension_numbers = #tpu.dot_dimension_numbers<[1], [0], [0], [1], [0, 0, 1, 1], [], []>} : vector<256x432xbf16>, vector<432x128xbf16>, vector<256x128xf32> -> vector<256x128xf32>
    %c0_162 = arith.constant 0 : index
    %c0_163 = arith.constant 0 : index
    %93 = vector.load %arg6[%c0_162, %c0_163] : memref<1x128xf32, #tpu.memory_space<vmem>>, vector<1x128xf32>
    %94 = vector.broadcast %93 : vector<1x128xf32> to vector<256x128xf32>
    %95 = arith.addf %92, %94 : vector<256x128xf32>
    %96 = vector.shape_cast %95 : vector<256x128xf32> to vector<4x8x8x128xf32>
    %c0_164 = arith.constant 0 : index
    %c0_165 = arith.constant 0 : index
    %c0_166 = arith.constant 0 : index
    %c0_167 = arith.constant 0 : index
    %c0_168 = arith.constant 0 : index
    %97 = vector.load %arg7[%c0_164, %c0_165, %c0_166, %c0_167, %c0_168] : memref<1x4x8x8x128xf32, #tpu.memory_space<vmem>>, vector<1x4x8x8x128xf32>
    %98 = vector.shape_cast %97 : vector<1x4x8x8x128xf32> to vector<4x8x8x128xf32>
    %99 = vector.shape_cast %96 : vector<4x8x8x128xf32> to vector<1x4x8x8x128xf32>
    tpu.vector_store %arg7[%c0_164, %c0_165, %c0_166, %c0_167, %c0_168], %99 {strides = array<i32>} : memref<1x4x8x8x128xf32, #tpu.memory_space<vmem>>, vector<1x4x8x8x128xf32>,
    return
  }
  func.func @transform_0(%arg0: i32, %arg1: i32) -> (i32, i32, i32, i32, i32) {
    %c0_i32 = arith.constant 0 : i32
    %c0_i32_0 = arith.constant 0 : i32
    %c0_i32_1 = arith.constant 0 : i32
    %c0_i32_2 = arith.constant 0 : i32
    return %arg0, %arg1, %c0_i32, %c0_i32_0, %c0_i32_1 : i32, i32, i32, i32, i32
  }
  func.func @transform_1(%arg0: i32, %arg1: i32) -> (i32, i32, i32, i32, i32) {
    %c4_i32 = arith.constant 4 : i32
    %0 = arith.muli %arg1, %c4_i32 : i32
    %c4_i32_0 = arith.constant 4 : i32
    %1 = arith.addi %0, %c4_i32_0 : i32
    %c0_i32 = arith.constant 0 : i32
    %c0_i32_1 = arith.constant 0 : i32
    %c0_i32_2 = arith.constant 0 : i32
    %c0_i32_3 = arith.constant 0 : i32
    return %arg0, %1, %c0_i32, %c0_i32_1, %c0_i32_2 : i32, i32, i32, i32, i32
  }
  func.func @transform_2(%arg0: i32, %arg1: i32) -> (i32, i32, i32, i32, i32) {
    %c4_i32 = arith.constant 4 : i32
    %0 = arith.muli %arg1, %c4_i32 : i32
    %c4_i32_0 = arith.constant 4 : i32
    %1 = arith.addi %0, %c4_i32_0 : i32
    %c1_i32 = arith.constant 1 : i32
    %2 = arith.addi %1, %c1_i32 : i32
    %c0_i32 = arith.constant 0 : i32
    %c0_i32_1 = arith.constant 0 : i32
    %c0_i32_2 = arith.constant 0 : i32
    %c0_i32_3 = arith.constant 0 : i32
    return %arg0, %2, %c0_i32, %c0_i32_1, %c0_i32_2 : i32, i32, i32, i32, i32
  }
  func.func @transform_3(%arg0: i32, %arg1: i32) -> (i32, i32) {
    %c0_i32 = arith.constant 0 : i32
    %c0_i32_0 = arith.constant 0 : i32
    %c0_i32_1 = arith.constant 0 : i32
    return %c0_i32, %c0_i32_0 : i32, i32
  }
  func.func @transform_4(%arg0: i32, %arg1: i32) -> (i32, i32) {
    %c0_i32 = arith.constant 0 : i32
    %c0_i32_0 = arith.constant 0 : i32
    %c0_i32_1 = arith.constant 0 : i32
    return %c0_i32, %c0_i32_0 : i32, i32
  }
  func.func @transform_5(%arg0: i32, %arg1: i32) -> (i32, i32, i32, i32, i32) {
    %c0_i32 = arith.constant 0 : i32
    %c0_i32_0 = arith.constant 0 : i32
    %c0_i32_1 = arith.constant 0 : i32
    %c0_i32_2 = arith.constant 0 : i32
    return %arg0, %arg1, %c0_i32, %c0_i32_0, %c0_i32_1 : i32, i32, i32, i32, i32
  }
}

</mosaic_0001>

<bundles_post_ra>
// kernel: tile.9
= control target key start
LH: loop header
LB: loop body
LE: loop exit
PB: predicated region body
PF: predicated region fallthrough
CT: control target
= control target key end

     0   :  { %s67_s10 = smov 112   ;;  %s68_s11 = smov 80   ;;  %vm3_vm0 = vcmask 130048   ;;  %vm9_vm1 = vcmask 1048448   ;;  %vm15_vm2 = vcmask 917248   ;;  %vm21_vm3 = vcmask 786048   ;;  %s111_s0 = inlined_call_operand.vmem [shape: f32[8,16], index: 0, kind: input, shape index: {}]   ;;  %s112_s1 = inlined_call_operand.vmem [shape: f32[1,128], index: 1, kind: output, shape index: {}]  }
   0x1   :  { %v53_v0 = vld [vmem:[%s111_s0 + $0x7] sm:$0x1]   ;;  %v55_v1 = vld [vmem:[%s111_s0 + $0x5] sm:$0x1]   ;;  %v54_v2 = vld [vmem:[%s111_s0 + $0x6] sm:$0x1]  }
   0x2   :  { %7 = vrot.lane.b32.xlu0 %v53_v0, %s67_s10  ;;  %19 = vrot.lane.b32.xlu1 %v55_v1, %s68_s11  ;;  %v56_v3 = vld [vmem:[%s111_s0 + $0x4] sm:$0x1]   ;;  %v2_v4 = vld [vmem:[%s111_s0] sm:$0x1]   ;;  %s69_s18 = smov 96   ;;  %s70_s19 = smov 64  }
   0x3   :  { %4 = vst.msk [vmem:[#allocation0] sm:$0x1] %vm3_vm0, %v2_v4   ;;  %v57_v5 = vld [vmem:[%s111_s0 + $0x3] sm:$0x1]   ;;  %v58_v6 = vld [vmem:[%s111_s0 + $0x2] sm:$0x1]  }
   0x4   :  { %s71_s24 = smov 48   ;;  %s72_s25 = smov 32   ;;  %v59_v7 = vld [vmem:[%s111_s0 + $0x1] sm:$0x1]   ;;  %vm27_vm4 = vcmask 654848   ;;  %vm33_vm5 = vcmask 523648  }
   0x5   :  { %s73_s0 = smov 16   ;;  %vm39_vm6 = vcmask 392448   ;;  %vm45_vm7 = vcmask 261248  }
   0x6   :  { %13 = vrot.lane.b32.xlu0 %v54_v2, %s69_s18  ;;  %25 = vrot.lane.b32.xlu1 %v56_v3, %s70_s19 }
   0xa   :  { %31 = vrot.lane.b32.xlu0 %v57_v5, %s71_s24  ;;  %37 = vrot.lane.b32.xlu1 %v58_v6, %s72_s25 }
   0xe   :  { %43 = vrot.lane.b32.xlu0 %v59_v7, %s73_s0 }
  0x74   :  { %v8_v8 = vpop.permute.xlu0 %7   ;;  %v20_v9 = vpop.permute.xlu1 %19  }
  0x75   :  { %10 = vst.msk [vmem:[#allocation0] sm:$0x1] %vm9_vm1, %v8_v8  }
  0x78   :  { %v14_v10 = vpop.permute.xlu0 %13   ;;  %v26_v11 = vpop.permute.xlu1 %25  }
  0x79   :  { %16 = vst.msk [vmem:[#allocation0] sm:$0x1] %vm15_vm2, %v14_v10  }
  0x7a   :  { %22 = vst.msk [vmem:[#allocation0] sm:$0x1] %vm21_vm3, %v20_v9  }
  0x7b   :  { %28 = vst.msk [vmem:[#allocation0] sm:$0x1] %vm27_vm4, %v26_v11  }
  0x7c   :  { %v32_v12 = vpop.permute.xlu0 %31   ;;  %v38_v13 = vpop.permute.xlu1 %37  }
  0x7d   :  { %34 = vst.msk [vmem:[#allocation0] sm:$0x1] %vm33_vm5, %v32_v12  }
  0x7e   :  { %40 = vst.msk [vmem:[#allocation0] sm:$0x1] %vm39_vm6, %v38_v13  }
  0x80   :  { %v44_v14 = vpop.permute.xlu0 %43  }
  0x81   :  { %46 = vst.msk [vmem:[#allocation0] sm:$0x1] %vm45_vm7, %v44_v14  }
  0x88   :  { %v50_v15 = vld [vmem:[#allocation0] sm:$0x1] }
  0x89   :  { %52 = vst [vmem:[%s112_s1] sm:$0x1] %v50_v15 }

// kernel: tile.8
= control target key start
LH: loop header
LB: loop body
LE: loop exit
PB: predicated region body
PF: predicated region fallthrough
CT: control target
= control target key end

     0   :  { %2 = vsyncpa [#allocation1], 0  ;;  %s44_s6 = smov [#allocation0]   ;;  %s70_s0 = inlined_call_operand.hbm [shape: f32[16], index: 0, kind: input, shape index: {}]   ;;  %s71_s1 = inlined_call_operand.vmem [shape: f32[8,16], index: 1, kind: output, shape index: {}]  }
   0x1   :  { %s9_s7 = sshll.u32 %s44_s6, 4  ;;  %s20_s10 = scalar_lea.hbm %s70_s0, 16  ;;  %s10_s7 = int_to_ptr.vmem [resolvable:$true] %s9_s7 }
   0x2   :  { %p21_p0 = scmp.ne.s32.totalorder %s70_s0, %s20_s10  ;;  %p24_p1 = scmp.lt.u32.totalorder %s20_s10, %s70_s0 }
   0x4   :  { %p26_p2 = pnand %p24_p1, %p21_p0 }
   0x6   :  { %29 = shalt.err (!%p26_p2)
}
   0x7   :  { %s30_s15 = scalar_lea.vmem %s10_s7, 16  ;;  %s34_s16 = scalar_lea.vmem %s10_s7, 32 }
   0x8   :  { %p31_p3 = scmp.ne.s32.totalorder %s10_s7, %s30_s15  ;;  %p35_p4 = scmp.lt.s32.totalorder %s10_s7, %s10_s7 }
   0x9   :  { %p36_p5 = scmp.lt.s32.totalorder %s34_s16, %s30_s15 }
   0xb   :  { %p37_p6 = por %p36_p5, %p35_p4 }
   0xd   :  { %p38_p7 = pnand %p37_p6, %p31_p3 }
   0xf   :  { %41 = shalt.err (!%p38_p7)
}
  0x10   :  { %12 = dma.hbm_to_vmem [thread:$0]  %s70_s0, 16, %s10_s7, [#allocation1]  }
  0x11   :  { %42 = dma.done.wait [#allocation1], 16  }
  0x12   :  { %43 = vsyncadd [#allocation1], 4294967280  ;;  %v16_v0 = vld [vmem:[#allocation0] ss:$0 sm:$0xff] }
  0x13   :  { %17 = vst [vmem:[%s71_s1] sm:$0xff] %v16_v0 }
  0x14   :  { %18 = vsyncpa [#allocation1], 1 }

// kernel: upsample_forward.1
= control target key start
LH: loop header
LB: loop body
LE: loop exit
PB: predicated region body
PF: predicated region fallthrough
CT: control target
= control target key end

     0   :  { %s13076_s18 = smov 0   ;;  %s13078_s19 = smov 0   ;;  %s16466_s0 = inlined_call_operand.vmem [shape: bf16[2,10,10,10,16], index: 0, kind: input, shape index: {}, may-alias: {0,1,2}]   ;;  %s16467_s1 = inlined_call_operand.vmem [shape: bf16[2,10,10,10,16], index: 1, kind: input, shape index: {}, may-alias: {0,1,2}]   ;;  %s16468_s2 = inlined_call_operand.vmem [shape: bf16[2,10,10,10,16], index: 2, kind: input, shape index: {}, may-alias: {0,1,2}]   ;;  %s16469_s3 = inlined_call_operand.vmem [shape: bf16[432,128], index: 3, kind: input, shape index: {}]   ;;  %s16470_s4 = inlined_call_operand.vmem [shape: f32[1,128], index: 4, kind: input, shape index: {}]   ;;  %s16471_s5 = inlined_call_operand.vmem [shape: f32[2,8,8,8,128], index: 5, kind: output, shape index: {}]  }
   0x1   :  { %s13080_s20 = smov 0   ;;  %s13082_s21 = smov 0  }
   0x2   :  { %s13084_s22 = smov 0  }
   0x3 LB: > { %s24_s23 = sadd.s32 1, %s13028_s20  ;;  %s27_s24 = sadd.s32 1, %s13032_s21  ;;  %s13036_s22 = sphi %s13084_s22, %s15_s22   ;;  %s13032_s21 = sphi %s13082_s21, %s16481_s21   ;;  %s13028_s20 = sphi %s13080_s20, %s16480_s20   ;;  %s13024_s19 = sphi %s13078_s19, %s16479_s19   ;;  %s13020_s18 = sphi %s13076_s18, %s16478_s18  }
   0x4   : > { %p25_p0 = scmp.ge.s32.totalorder %s24_s23, 2  ;;  %p11885_p1 = scmp.ge.s32.totalorder %s13036_s22, 1 }
   0x5   : > { %p269_p2 = scmp.lt.s32.totalorder %s13036_s22, 5 }
   0x6   : > { %s16483_s23 = smov (%p25_p0, %s24_s23), 0  ;;  %s16485_s24 = smov (!%p25_p0, %s27_s24), %s13032_s21 }
   0x7   : > { %p270_p3 = pnand %p11885_p1, %p269_p2  ;;  %p29_p4 = scmp.ge.s32.totalorder %s16485_s24, 2 }
   0x8   : > { %s13106_s25 = sshll.u32 (!%p270_p3), %s13020_s18, 2  ;;  %p342_p5 = scmp.lt.s32.totalorder (!%p270_p3), %s13024_s19, 1  ;;  %vm476_vm0 = vcmask (!%p270_p3), 125952   ;;  %vm478_vm1 = vcmask (!%p270_p3), 122880   ;;  %vm849_vm2 = vsmask.f32 (!%p270_p3), 3328 }
   0x9   : > { %s16487_s24 = smov (%p29_p4, %s16485_s24), 0  ;;  %273 = sbr.rel (%p270_p3) target bundleno = 1435 (0x59b), region = 40 }
   0xa   : > { %p344_p6 = scmp.lt.s32.totalorder (!%p270_p3), %s13106_s25, 9  ;;  %vm850_vm3 = vsmask.f32 (!%p270_p3), 7440  ;;  %s13038_s9 = smov (!%p270_p3), 16   ;;  %vm1541_vm5 = vcmask (!%p270_p3), 1042432   ;;  %vm1542_vm6 = vcmask (!%p270_p3), 1046532  }
   0xb   : > { %vm13171_vm4 = vmor (!%p270_p3), %vm849_vm2, %vm850_vm3  ;;  %s13039_s10 = smov (!%p270_p3), 32   ;;  %s13040_s11 = smov (!%p270_p3), 48   ;;  %vm768_vm8 = vcmask (!%p270_p3), 130048   ;;  %vm1396_vm9 = vcmask (!%p270_p3), 261248   ;;  %vm1768_vm10 = vcmask (!%p270_p3), 392448   ;;  %vm1946_vm11 = vcmask (!%p270_p3), 523648  }
   0xc   : > { %vm13333_vm7 = vmor (!%p270_p3), %vm1541_vm5, %vm1542_vm6  ;;  %s13041_s12 = smov (!%p270_p3), 64   ;;  %s13042_s13 = smov (!%p270_p3), 80   ;;  %vm2571_vm12 = vcmask (!%p270_p3), 654848   ;;  %vm2940_vm13 = vcmask (!%p270_p3), 786048   ;;  %vm3118_vm14 = vcmask (!%p270_p3), 917248   ;;  %vm3743_vm15 = vcmask (!%p270_p3), 1048448  }
   0xd   : > { %s13043_s14 = smov (!%p270_p3), 96   ;;  %s13044_s15 = smov (!%p270_p3), 112   ;;  %vm11333_vm2 = vcmask (!%p270_p3), 392192  }
   0xe   : > { %s359_s16 = sadd.s32 (!%p270_p3), 4, %s13106_s25  ;;  %s372_s7 = sadd.s32 (!%p270_p3), 5, %s13106_s25 }
   0xf   : > { %p13876_p7 = scmp.lt.s32.totalorder (!%p270_p3), %s359_s16, 9  ;;  %p15497_p8 = scmp.lt.s32.totalorder (!%p270_p3), %s372_s7, 9 }
  0x10   : > { %s16489_s19 = smov (!%p342_p5, %s13024_s19), 1  ;;  %p387_p9 = scmp.lt.s32.totalorder %s13106_s25, 7 }
  0x11   : > { %s345_s26 = scalar_select %p344_p6, %s13106_s25, 9 }
  0x12   : > { %s13113_s27 = smul.u32 200, %s16489_s19  ;;  %s16491_s16 = smov (!%p13876_p7, %s359_s16), 9 }
  0x13   : > { %s12774_s28 = smul.u32 20, %s345_s26  ;;  %s16493_s7 = smov (!%p15497_p8, %s372_s7), 9 }
  0x14   : > { %s12776_s18 = smul.u32 20, %s16491_s16  ;;  %s16495_s25 = smov (!%p387_p9, %s13106_s25), 7 }
  0x15   : > { %s348_s29 = sadd.s32 %s13113_s27, %s12774_s28  ;;  %s12777_s16 = smul.u32 20, %s16493_s7 }
  0x16   : > { %s11887_s30 = sshll.u32 %s348_s29, 2  ;;  %s13906_s26 = sadd.s32 %s12776_s18, %s13113_s27 }
  0x17   : > { %s13119_s8 = scalar_lea.vmem %s16466_s0, %s11887_s30  ;;  %s11889_s28 = sshll.u32 %s13906_s26, 2 }
  0x18   : > { %v404_v0 = vld [vmem:[%s13119_s8 + $0x20] sm:$0xf]  ;;  %v405_v1 = vld [vmem:[%s13119_s8 + $0x24] sm:$0x1]  ;;  %v406_v2 = vld [vmem:[%s13119_s8 + $0x28] sm:$0xf]  ;;  %s13924_s6 = scalar_lea.vmem %s16467_s1, %s11889_s28  ;;  %s15609_s17 = sadd.s32 %s12777_s16, %s13113_s27 }
  0x19   : > { %v407_v3 = vld [vmem:[%s13119_s8 + $0x2c] sm:$0x1]  ;;  %486 = vst.msk [vmem:[#allocation2 + $0x20] sm:$0xf] %vm476_vm0, %v404_v0  ;;  %488 = vst.msk [vmem:[#allocation2 + $0x28] sm:$0xf] %vm476_vm0, %v406_v2 }
  0x1a   : > { %487 = vst.msk [vmem:[#allocation2 + $0x24] sm:$0x1] %vm478_vm1, %v405_v1  ;;  %v396_v4 = vld [vmem:[%s13119_s8] sm:$0xf]  ;;  %v397_v5 = vld [vmem:[%s13119_s8 + $0x4] sm:$0x1] }
  0x1b   : > { %489 = vst.msk [vmem:[#allocation2 + $0x2c] sm:$0x1] %vm478_vm1, %v407_v3  ;;  %v398_v6 = vld [vmem:[%s13119_s8 + $0x8] sm:$0xf]  ;;  %v399_v7 = vld [vmem:[%s13119_s8 + $0xc] sm:$0x1] }
  0x1c   : > { %477 = vst.msk [vmem:[#allocation2] sm:$0xf] %vm476_vm0, %v396_v4  ;;  %v408_v8 = vld [vmem:[%s13119_s8 + $0x30] sm:$0xf]  ;;  %480 = vst.msk [vmem:[#allocation2 + $0x8] sm:$0xf] %vm476_vm0, %v398_v6 }
  0x1d   : > { %479 = vst.msk [vmem:[#allocation2 + $0x4] sm:$0x1] %vm478_vm1, %v397_v5  ;;  %481 = vst.msk [vmem:[#allocation2 + $0xc] sm:$0x1] %vm478_vm1, %v399_v7  ;;  %v409_v9 = vld [vmem:[%s13119_s8 + $0x34] sm:$0x1] }
  0x1e   : > { %v410_v10 = vld [vmem:[%s13119_s8 + $0x38] sm:$0xf]  ;;  %v411_v11 = vld [vmem:[%s13119_s8 + $0x3c] sm:$0x1]  ;;  %490 = vst.msk [vmem:[#allocation2 + $0x30] sm:$0xf] %vm476_vm0, %v408_v8 }
  0x1f   : > { %491 = vst.msk [vmem:[#allocation2 + $0x34] sm:$0x1] %vm478_vm1, %v409_v9  ;;  %493 = vst.msk [vmem:[#allocation2 + $0x3c] sm:$0x1] %vm478_vm1, %v411_v11  ;;  %v400_v12 = vld [vmem:[%s13119_s8 + $0x10] sm:$0xf] }
  0x20   : > { %492 = vst.msk [vmem:[#allocation2 + $0x38] sm:$0xf] %vm476_vm0, %v410_v10  ;;  %v401_v13 = vld [vmem:[%s13119_s8 + $0x14] sm:$0x1]  ;;  %v402_v14 = vld [vmem:[%s13119_s8 + $0x18] sm:$0xf] }
  0x21   : > { %v403_v15 = vld [vmem:[%s13119_s8 + $0x1c] sm:$0x1]  ;;  %482 = vst.msk [vmem:[#allocation2 + $0x10] sm:$0xf] %vm476_vm0, %v400_v12  ;;  %484 = vst.msk [vmem:[#allocation2 + $0x18] sm:$0xf] %vm476_vm0, %v402_v14 }
  0x22   : > { %483 = vst.msk [vmem:[#allocation2 + $0x14] sm:$0x1] %vm478_vm1, %v401_v13  ;;  %v420_v16 = vld [vmem:[%s13119_s8 + $0x60] sm:$0xf]  ;;  %v421_v17 = vld [vmem:[%s13119_s8 + $0x64] sm:$0x1] }
  0x23   : > { %485 = vst.msk [vmem:[#allocation2 + $0x1c] sm:$0x1] %vm478_vm1, %v403_v15  ;;  %v422_v18 = vld [vmem:[%s13119_s8 + $0x68] sm:$0xf]  ;;  %v423_v19 = vld [vmem:[%s13119_s8 + $0x6c] sm:$0x1] }
  0x24   : > { %502 = vst.msk [vmem:[#allocation2 + $0x60] sm:$0xf] %vm476_vm0, %v420_v16  ;;  %v416_v20 = vld [vmem:[%s13119_s8 + $0x50] sm:$0xf]  ;;  %504 = vst.msk [vmem:[#allocation2 + $0x68] sm:$0xf] %vm476_vm0, %v422_v18 }
  0x25   : > { %503 = vst.msk [vmem:[#allocation2 + $0x64] sm:$0x1] %vm478_vm1, %v421_v17  ;;  %505 = vst.msk [vmem:[#allocation2 + $0x6c] sm:$0x1] %vm478_vm1, %v423_v19  ;;  %v417_v21 = vld [vmem:[%s13119_s8 + $0x54] sm:$0x1] }
  0x26   : > { %v418_v22 = vld [vmem:[%s13119_s8 + $0x58] sm:$0xf]  ;;  %v419_v23 = vld [vmem:[%s13119_s8 + $0x5c] sm:$0x1]  ;;  %498 = vst.msk [vmem:[#allocation2 + $0x50] sm:$0xf] %vm476_vm0, %v416_v20 }
  0x27   : > { %v793_v24 = vld [vmem:[#allocation2 + $0x20] sm:$0xf]  ;;  %v794_v25 = vld [vmem:[#allocation2 + $0x24] sm:$0x1]  ;;  %v795_v26 = vld [vmem:[#allocation2 + $0x28] sm:$0xf] }
  0x28   : > { %499 = vst.msk [vmem:[#allocation2 + $0x54] sm:$0x1] %vm478_vm1, %v417_v21  ;;  %501 = vst.msk [vmem:[#allocation2 + $0x5c] sm:$0x1] %vm478_vm1, %v419_v23  ;;  %v796_v27 = vld [vmem:[#allocation2 + $0x2c] sm:$0x1] }
  0x29   : > { %500 = vst.msk [vmem:[#allocation2 + $0x58] sm:$0xf] %vm476_vm0, %v418_v22  ;;  %v909_v28 = vshrl.u32 %v793_v24, 16  ;;  %v912_v29 = vshll.u32 %v793_v24, 16  ;;  %v918_v30 = vshll.u32 %v794_v25, 16  ;;  %v923_v31 = vshrl.u32 %v795_v26, 16 }
  0x2a   : > { %v926_v32 = vshll.u32 %v795_v26, 16  ;;  %v932_v33 = vshll.u32 %v796_v27, 16  ;;  %v785_v34 = vld [vmem:[#allocation2] sm:$0xf]  ;;  %v786_v35 = vld [vmem:[#allocation2 + $0x4] sm:$0x1] }
  0x2b   : > { %v911_v36 = vrot.slane %v909_v28, 4  ;;  %v914_v37 = vrot.slane %v912_v29, 5  ;;  %v920_v38 = vrot.slane %v918_v30, 5  ;;  %v925_v39 = vrot.slane %v923_v31, 4  ;;  %v787_v40 = vld [vmem:[#allocation2 + $0x8] sm:$0xf] }
  0x2c   : > { %v928_v41 = vrot.slane %v926_v32, 5  ;;  %v934_v42 = vrot.slane %v932_v33, 5  ;;  %v788_v43 = vld [vmem:[#allocation2 + $0xc] sm:$0x1]  ;;  %v853_v44 = vshrl.u32 %v785_v34, 16  ;;  %v856_v45 = vshll.u32 %v785_v34, 16 }
  0x2d   : > { %v915_v46 = vor.u32 %v914_v37, %v911_v36  ;;  %v862_v47 = vshll.u32 %v786_v35, 16  ;;  %v867_v48 = vshrl.u32 %v787_v40, 16  ;;  %v870_v49 = vshll.u32 %v787_v40, 16  ;;  %v797_v50 = vld [vmem:[#allocation2 + $0x30] sm:$0xf]  ;;  %s11891_s27 = sshll.u32 %s15609_s17, 2 }
  0x2e   : > { %v929_v52 = vor.u32 %v928_v41, %v925_v39  ;;  %v855_v53 = vrot.slane %v853_v44, 4  ;;  %v858_v54 = vrot.slane %v856_v45, 5  ;;  %v876_v55 = vshll.u32 %v788_v43, 16  ;;  %v798_v56 = vld [vmem:[#allocation2 + $0x34] sm:$0x1]  ;;  %s15680_s26 = scalar_lea.vmem %s16468_s2, %s11891_s27  ;;  %s11893_s28 = sshll.u32 %s16495_s25, 3 }
  0x2f   : > { %v916_v57 = vrot.slane %v915_v46, 4  ;;  %v864_v58 = vrot.slane %v862_v47, 5  ;;  %v869_v59 = vrot.slane %v867_v48, 4  ;;  %v872_v60 = vrot.slane %v870_v49, 5  ;;  %v799_v61 = vld [vmem:[#allocation2 + $0x38] sm:$0xf] }
  0x30   : > { %v930_v62 = vrot.slane %v929_v52, 4  ;;  %v859_v63 = vor.u32 %v858_v54, %v855_v53  ;;  %v878_v0 = vrot.slane %v876_v55, 5  ;;  %v937_v1 = vshrl.u32 %v797_v50, 16  ;;  %v800_v4 = vld [vmem:[#allocation2 + $0x3c] sm:$0x1]  ;;  %s11894_s29 = sshll.u32 %s16489_s19, 6 }
  0x31   : > { %v921_v2 = vsel %vm13171_vm4, %v916_v57, %v920_v38  ;;  %v873_v3 = vor.u32 %v872_v60, %v869_v59  ;;  %v940_v5 = vshll.u32 %v797_v50, 16  ;;  %v946_v6 = vshll.u32 %v798_v56, 16  ;;  %v789_v11 = vld [vmem:[#allocation2 + $0x10] sm:$0xf]  ;;  %v790_v16 = vld [vmem:[#allocation2 + $0x14] sm:$0x1]  ;;  %s15906_s30 = sadd.s32 %s11894_s29, %s11893_s28 }
  0x32   : > { %v935_v7 = vsel %vm13171_vm4, %v930_v62, %v934_v42  ;;  %v860_v8 = vrot.slane %v859_v63, 4  ;;  %v939_v9 = vrot.slane %v937_v1, 4  ;;  %v951_v10 = vshrl.u32 %v799_v61, 16  ;;  %v791_v21 = vld [vmem:[#allocation2 + $0x18] sm:$0xf]  ;;  %s11895_s19 = sshll.u32 %s15906_s30, 3 }
  0x33   : > { %v11914_v12 = vcombine.low %v921_v2, %v935_v7  ;;  %v874_v13 = vrot.slane %v873_v3, 4  ;;  %v942_v14 = vrot.slane %v940_v5, 5  ;;  %v948_v15 = vrot.slane %v946_v6, 5  ;;  %v792_v24 = vld [vmem:[#allocation2 + $0x1c] sm:$0x1]  ;;  %s15967_s17 = scalar_lea.vmem %s16471_s5, %s11895_s19 }
  0x34   : > { %v865_v17 = vsel %vm13171_vm4, %v860_v8, %v864_v58  ;;  %v953_v18 = vrot.slane %v951_v10, 4  ;;  %v954_v19 = vshll.u32 %v799_v61, 16  ;;  %v960_v20 = vshll.u32 %v800_v4, 16  ;;  %v805_v31 = vld [vmem:[#allocation2 + $0x60] sm:$0xf] }
  0x35   : > { %1352 = vrot.lane.b32.xlu1 %v11914_v12, %s13038_s9  ;;  %v879_v22 = vsel %vm13171_vm4, %v874_v13, %v878_v0  ;;  %v943_v23 = vor.u32 %v942_v14, %v939_v9  ;;  %v881_v25 = vshrl.u32 %v789_v11, 16  ;;  %v884_v26 = vshll.u32 %v789_v11, 16  ;;  %v806_v36 = vld [vmem:[#allocation2 + $0x64] sm:$0x1]  ;;  %v807_v41 = vld [vmem:[#allocation2 + $0x68] sm:$0xf] }
  0x36   : > { %v11912_v27 = vcombine.low %v865_v17, %v879_v22  ;;  %v956_v28 = vrot.slane %v954_v19, 5  ;;  %v962_v29 = vrot.slane %v960_v20, 5  ;;  %v890_v30 = vshll.u32 %v790_v16, 16  ;;  %v808_v45 = vld [vmem:[#allocation2 + $0x6c] sm:$0x1] }
  0x37   : > { %v944_v32 = vrot.slane %v943_v23, 4  ;;  %v883_v33 = vrot.slane %v881_v25, 4  ;;  %v886_v34 = vrot.slane %v884_v26, 5  ;;  %v895_v35 = vshrl.u32 %v791_v21, 16  ;;  %v801_v52 = vld [vmem:[#allocation2 + $0x50] sm:$0xf] }
  0x38   : > { %1348 = vrot.lane.b32.xlu0 %v11912_v27, %s13038_s9  ;;  %v957_v37 = vor.u32 %v956_v28, %v953_v18  ;;  %v892_v38 = vrot.slane %v890_v30, 5  ;;  %v898_v39 = vshll.u32 %v791_v21, 16  ;;  %v904_v40 = vshll.u32 %v792_v24, 16  ;;  %v802_v53 = vld [vmem:[#allocation2 + $0x54] sm:$0x1] }
  0x39   : > { %v949_v42 = vsel %vm13171_vm4, %v944_v32, %v948_v15  ;;  %v887_v43 = vor.u32 %v886_v34, %v883_v33  ;;  %v897_v44 = vrot.slane %v895_v35, 4  ;;  %v993_v46 = vshrl.u32 %v805_v31, 16  ;;  %v13187_v54 = vld [vmem:[#allocation2 + $0x58] sm:$0xf]  ;;  %v428_v55 = vld [vmem:[%s13119_s8 + $0x80] sm:$0xf] }
  0x3a   : > { %v958_v47 = vrot.slane %v957_v37, 4  ;;  %v900_v48 = vrot.slane %v898_v39, 5  ;;  %v906_v49 = vrot.slane %v904_v40, 5  ;;  %v996_v50 = vshll.u32 %v805_v31, 16  ;;  %v429_v60 = vld [vmem:[%s13119_s8 + $0x84] sm:$0x1] }
  0x3b   : > { %v888_v56 = vrot.slane %v887_v43, 4  ;;  %v995_v57 = vrot.slane %v993_v46, 4  ;;  %v1002_v58 = vshll.u32 %v806_v36, 16  ;;  %v1007_v59 = vshrl.u32 %v807_v41, 16  ;;  %510 = vst.msk [vmem:[#allocation2 + $0x80] sm:$0xf] %vm476_vm0, %v428_v55 }
  0x3c   : > { %v963_v61 = vsel %vm13171_vm4, %v958_v47, %v962_v29  ;;  %v901_v62 = vor.u32 %v900_v48, %v897_v44  ;;  %v998_v63 = vrot.slane %v996_v50, 5  ;;  %v1010_v0 = vshll.u32 %v807_v41, 16  ;;  %v430_v1 = vld [vmem:[%s13119_s8 + $0x88] sm:$0xf]  ;;  %v431_v2 = vld [vmem:[%s13119_s8 + $0x8c] sm:$0x1] }
  0x3d   : > { %511 = vst.msk [vmem:[#allocation2 + $0x84] sm:$0x1] %vm478_vm1, %v429_v60  ;;  %v11915_v3 = vcombine.low %v949_v42, %v963_v61  ;;  %v893_v4 = vsel %vm13171_vm4, %v888_v56, %v892_v38  ;;  %v1004_v5 = vrot.slane %v1002_v58, 5  ;;  %v1009_v6 = vrot.slane %v1007_v59, 4  ;;  %513 = vst.msk [vmem:[#allocation2 + $0x8c] sm:$0x1] %vm478_vm1, %v431_v2 }
  0x3e   : > { %512 = vst.msk [vmem:[#allocation2 + $0x88] sm:$0xf] %vm476_vm0, %v430_v1  ;;  %v424_v7 = vld [vmem:[%s13119_s8 + $0x70] sm:$0xf]  ;;  %v425_v8 = vld [vmem:[%s13119_s8 + $0x74] sm:$0x1]  ;;  %v999_v10 = vor.u32 %v998_v63, %v995_v57 }
  0x3f   : > { %v902_v9 = vrot.slane %v901_v62, 4  ;;  %v1012_v11 = vrot.slane %v1010_v0, 5  ;;  %v1016_v12 = vshll.u32 %v808_v45, 16  ;;  %v804_v13 = vld [vmem:[#allocation2 + $0x5c] sm:$0x1]  ;;  %1354 = vrot.lane.b32.xlu1 %v11915_v3, %s13038_s9  ;;  %v965_v15 = vshrl.u32 %v801_v52, 16 }
  0x40   : > { %v426_v14 = vld [vmem:[%s13119_s8 + $0x78] sm:$0xf]  ;;  %506 = vst.msk [vmem:[#allocation2 + $0x70] sm:$0xf] %vm476_vm0, %v424_v7  ;;  %v968_v16 = vshll.u32 %v801_v52, 16  ;;  %v974_v17 = vshll.u32 %v802_v53, 16 }
  0x41   : > { %507 = vst.msk [vmem:[#allocation2 + $0x74] sm:$0x1] %vm478_vm1, %v425_v8  ;;  %v979_v18 = vshrl.u32 %v13187_v54, 16  ;;  %v427_v19 = vld [vmem:[%s13119_s8 + $0x7c] sm:$0x1]  ;;  %v907_v20 = vsel %vm13171_vm4, %v902_v9, %v906_v49  ;;  %v1000_v21 = vrot.slane %v999_v10, 4  ;;  %v1013_v22 = vor.u32 %v1012_v11, %v1009_v6 }
  0x42   : > { %508 = vst.msk [vmem:[#allocation2 + $0x78] sm:$0xf] %vm476_vm0, %v426_v14  ;;  %v1018_v23 = vrot.slane %v1016_v12, 5  ;;  %v440_v24 = vld [vmem:[%s13119_s8 + $0xb0] sm:$0xf]  ;;  %v11913_v26 = vcombine.low %v893_v4, %v907_v20  ;;  %v967_v27 = vrot.slane %v965_v15, 4 }
  0x43   : > { %509 = vst.msk [vmem:[#allocation2 + $0x7c] sm:$0x1] %vm478_vm1, %v427_v19  ;;  %v441_v25 = vld [vmem:[%s13119_s8 + $0xb4] sm:$0x1]  ;;  %v970_v28 = vrot.slane %v968_v16, 5  ;;  %v976_v29 = vrot.slane %v974_v17, 5  ;;  %v1005_v31 = vsel %vm13171_vm4, %v1000_v21, %v1004_v5 }
  0x44   : > { %v442_v30 = vld [vmem:[%s13119_s8 + $0xb8] sm:$0xf]  ;;  %522 = vst.msk [vmem:[#allocation2 + $0xb0] sm:$0xf] %vm476_vm0, %v440_v24  ;;  %v1014_v32 = vrot.slane %v1013_v22, 4  ;;  %v981_v33 = vrot.slane %v979_v18, 4  ;;  %1350 = vrot.lane.b32.xlu0 %v11913_v26, %s13038_s9 }
  0x45   : > { %523 = vst.msk [vmem:[#allocation2 + $0xb4] sm:$0x1] %vm478_vm1, %v441_v25  ;;  %v982_v34 = vshll.u32 %v13187_v54, 16  ;;  %v813_v35 = vld [vmem:[#allocation2 + $0x80] sm:$0xf]  ;;  %v971_v36 = vor.u32 %v970_v28, %v967_v27  ;;  %v988_v37 = vshll.u32 %v804_v13, 16 }
  0x46   : > { %524 = vst.msk [vmem:[#allocation2 + $0xb8] sm:$0xf] %vm476_vm0, %v442_v30  ;;  %v814_v38 = vld [vmem:[#allocation2 + $0x84] sm:$0x1]  ;;  %v1049_v39 = vshrl.u32 %v813_v35, 16  ;;  %v1052_v40 = vshll.u32 %v813_v35, 16  ;;  %v1019_v41 = vsel %vm13171_vm4, %v1014_v32, %v1018_v23 }
  0x47   : > { %v984_v42 = vrot.slane %v982_v34, 5  ;;  %v815_v43 = vld [vmem:[#allocation2 + $0x88] sm:$0xf]  ;;  %v816_v44 = vld [vmem:[#allocation2 + $0x8c] sm:$0x1]  ;;  %v1058_v45 = vshll.u32 %v814_v38, 16  ;;  %v11917_v46 = vcombine.low %v1005_v31, %v1019_v41 }
  0x48   : > { %v972_v47 = vrot.slane %v971_v36, 4  ;;  %v990_v48 = vrot.slane %v988_v37, 5  ;;  %v1051_v49 = vrot.slane %v1049_v39, 4  ;;  %v809_v50 = vld [vmem:[#allocation2 + $0x70] sm:$0xf]  ;;  %v1054_v53 = vrot.slane %v1052_v40, 5 }
  0x49   : > { %v985_v52 = vor.u32 %v984_v42, %v981_v33  ;;  %v1060_v54 = vrot.slane %v1058_v45, 5  ;;  %v1063_v55 = vshrl.u32 %v815_v43, 16  ;;  %v810_v56 = vld [vmem:[#allocation2 + $0x74] sm:$0x1]  ;;  %1358 = vrot.lane.b32.xlu1 %v11917_v46, %s13038_s9  ;;  %v1066_v58 = vshll.u32 %v815_v43, 16 }
  0x4a   : > { %v977_v57 = vsel %vm13171_vm4, %v972_v47, %v976_v29  ;;  %v1072_v59 = vshll.u32 %v816_v44, 16  ;;  %v811_v60 = vld [vmem:[#allocation2 + $0x78] sm:$0xf]  ;;  %v812_v61 = vld [vmem:[#allocation2 + $0x7c] sm:$0x1]  ;;  %v1055_v63 = vor.u32 %v1054_v53, %v1051_v49  ;;  %v1021_v1 = vshrl.u32 %v809_v50, 16 }
  0x4b   : > { %v986_v62 = vrot.slane %v985_v52, 4  ;;  %v1065_v0 = vrot.slane %v1063_v55, 4  ;;  %v443_v2 = vld [vmem:[%s13119_s8 + $0xbc] sm:$0x1]  ;;  %v1068_v3 = vrot.slane %v1066_v58, 5  ;;  %v1024_v4 = vshll.u32 %v809_v50, 16 }
  0x4c   : > { %v1030_v5 = vshll.u32 %v810_v56, 16  ;;  %525 = vst.msk [vmem:[#allocation2 + $0xbc] sm:$0x1] %vm478_vm1, %v443_v2  ;;  %v821_v6 = vld [vmem:[#allocation2 + $0xb0] sm:$0xf]  ;;  %v1056_v8 = vrot.slane %v1055_v63, 4 }
  0x4d   : > { %v991_v7 = vsel %vm13171_vm4, %v986_v62, %v990_v48  ;;  %v1023_v9 = vrot.slane %v1021_v1, 4  ;;  %v1035_v10 = vshrl.u32 %v811_v60, 16  ;;  %v822_v11 = vld [vmem:[#allocation2 + $0xb4] sm:$0x1]  ;;  %v1069_v13 = vor.u32 %v1068_v3, %v1065_v0  ;;  %v823_v16 = vld [vmem:[#allocation2 + $0xb8] sm:$0xf] }
  0x4e   : > { %v11916_v12 = vcombine.low %v977_v57, %v991_v7  ;;  %v1074_v14 = vrot.slane %v1072_v59, 5  ;;  %v1026_v15 = vrot.slane %v1024_v4, 5  ;;  %v436_v17 = vld [vmem:[%s13119_s8 + $0xa0] sm:$0xf]  ;;  %v1061_v18 = vsel %vm13171_vm4, %v1056_v8, %v1060_v54  ;;  %v437_v22 = vld [vmem:[%s13119_s8 + $0xa4] sm:$0x1] }
  0x4f   : > { %v1037_v19 = vrot.slane %v1035_v10, 4  ;;  %v1038_v20 = vshll.u32 %v811_v60, 16  ;;  %v1044_v21 = vshll.u32 %v812_v61, 16  ;;  %518 = vst.msk [vmem:[#allocation2 + $0xa0] sm:$0xf] %vm476_vm0, %v436_v17  ;;  %v1070_v23 = vrot.slane %v1069_v13, 4 }
  0x50   : > { %1356 = vrot.lane.b32.xlu0 %v11916_v12, %s13038_s9  ;;  %v1027_v24 = vor.u32 %v1026_v15, %v1023_v9  ;;  %v1105_v25 = vshrl.u32 %v821_v6, 16  ;;  %v1108_v26 = vshll.u32 %v821_v6, 16  ;;  %v438_v27 = vld [vmem:[%s13119_s8 + $0xa8] sm:$0xf]  ;;  %519 = vst.msk [vmem:[#allocation2 + $0xa4] sm:$0x1] %vm478_vm1, %v437_v22 }
  0x51   : > { %v1032_v28 = vrot.slane %v1030_v5, 5  ;;  %v1040_v29 = vrot.slane %v1038_v20, 5  ;;  %v1114_v30 = vshll.u32 %v822_v11, 16  ;;  %v1119_v31 = vshrl.u32 %v823_v16, 16  ;;  %v439_v32 = vld [vmem:[%s13119_s8 + $0xac] sm:$0x1] }
  0x52   : > { %520 = vst.msk [vmem:[#allocation2 + $0xa8] sm:$0xf] %vm476_vm0, %v438_v27  ;;  %v1075_v33 = vsel %vm13171_vm4, %v1070_v23, %v1074_v14  ;;  %v1028_v34 = vrot.slane %v1027_v24, 4  ;;  %v1107_v35 = vrot.slane %v1105_v25, 4  ;;  %v1110_v36 = vrot.slane %v1108_v26, 5 }
  0x53   : > { %521 = vst.msk [vmem:[#allocation2 + $0xac] sm:$0x1] %vm478_vm1, %v439_v32  ;;  %v448_v37 = vld [vmem:[%s13119_s8 + $0xd0] sm:$0xf]  ;;  %v11919_v38 = vcombine.low %v1061_v18, %v1075_v33  ;;  %v1041_v39 = vor.u32 %v1040_v29, %v1037_v19  ;;  %v1046_v40 = vrot.slane %v1044_v21, 5  ;;  %v1121_v42 = vrot.slane %v1119_v31, 4 }
  0x54   : > { %v824_v41 = vld [vmem:[#allocation2 + $0xbc] sm:$0x1]  ;;  %v449_v43 = vld [vmem:[%s13119_s8 + $0xd4] sm:$0x1]  ;;  %530 = vst.msk [vmem:[#allocation2 + $0xd0] sm:$0xf] %vm476_vm0, %v448_v37  ;;  %v1111_v44 = vor.u32 %v1110_v36, %v1107_v35  ;;  %v1033_v49 = vsel %vm13171_vm4, %v1028_v34, %v1032_v28 }
  0x55   : > { %v1122_v45 = vshll.u32 %v823_v16, 16  ;;  %v1128_v46 = vshll.u32 %v824_v41, 16  ;;  %v450_v47 = vld [vmem:[%s13119_s8 + $0xd8] sm:$0xf]  ;;  %v451_v48 = vld [vmem:[%s13119_s8 + $0xdc] sm:$0x1]  ;;  %1362 = vrot.lane.b32.xlu1 %v11919_v38, %s13038_s9 }
  0x56   : > { %531 = vst.msk [vmem:[#allocation2 + $0xd4] sm:$0x1] %vm478_vm1, %v449_v43  ;;  %v1042_v50 = vrot.slane %v1041_v39, 4  ;;  %533 = vst.msk [vmem:[#allocation2 + $0xdc] sm:$0x1] %vm478_vm1, %v451_v48  ;;  %v1112_v54 = vrot.slane %v1111_v44, 4 }
  0x57   : > { %532 = vst.msk [vmem:[#allocation2 + $0xd8] sm:$0xf] %vm476_vm0, %v450_v47  ;;  %v444_v52 = vld [vmem:[%s13119_s8 + $0xc0] sm:$0xf]  ;;  %v445_v53 = vld [vmem:[%s13119_s8 + $0xc4] sm:$0x1] }
  0x58   : > { %v1116_v55 = vrot.slane %v1114_v30, 5  ;;  %v1124_v56 = vrot.slane %v1122_v45, 5  ;;  %v817_v57 = vld [vmem:[#allocation2 + $0xa0] sm:$0xf]  ;;  %526 = vst.msk [vmem:[#allocation2 + $0xc0] sm:$0xf] %vm476_vm0, %v444_v52  ;;  %v1047_v58 = vsel %vm13171_vm4, %v1042_v50, %v1046_v40 }
  0x59   : > { %527 = vst.msk [vmem:[#allocation2 + $0xc4] sm:$0x1] %vm478_vm1, %v445_v53  ;;  %v818_v59 = vld [vmem:[#allocation2 + $0xa4] sm:$0x1]  ;;  %v1077_v60 = vshrl.u32 %v817_v57, 16  ;;  %v1080_v61 = vshll.u32 %v817_v57, 16  ;;  %v11918_v63 = vcombine.low %v1033_v49, %v1047_v58 }
  0x5a   : > { %v446_v62 = vld [vmem:[%s13119_s8 + $0xc8] sm:$0xf]  ;;  %v1125_v0 = vor.u32 %v1124_v56, %v1121_v42  ;;  %v1130_v1 = vrot.slane %v1128_v46, 5  ;;  %v1086_v3 = vshll.u32 %v818_v59, 16  ;;  %v447_v4 = vld [vmem:[%s13119_s8 + $0xcc] sm:$0x1]  ;;  %v1117_v10 = vsel %vm13171_vm4, %v1112_v54, %v1116_v55 }
  0x5b   : > { %v819_v2 = vld [vmem:[#allocation2 + $0xa8] sm:$0xf]  ;;  %528 = vst.msk [vmem:[#allocation2 + $0xc8] sm:$0xf] %vm476_vm0, %v446_v62  ;;  %v820_v5 = vld [vmem:[#allocation2 + $0xac] sm:$0x1]  ;;  %1360 = vrot.lane.b32.xlu0 %v11918_v63, %s13038_s9 }
  0x5c   : > { %v1079_v6 = vrot.slane %v1077_v60, 4  ;;  %v1082_v7 = vrot.slane %v1080_v61, 5  ;;  %v1091_v8 = vshrl.u32 %v819_v2, 16  ;;  %v1094_v9 = vshll.u32 %v819_v2, 16  ;;  %529 = vst.msk [vmem:[#allocation2 + $0xcc] sm:$0x1] %vm478_vm1, %v447_v4 }
  0x5d   : > { %v1126_v11 = vrot.slane %v1125_v0, 4  ;;  %v1088_v12 = vrot.slane %v1086_v3, 5  ;;  %v1100_v13 = vshll.u32 %v820_v5, 16  ;;  %v829_v14 = vld [vmem:[#allocation2 + $0xd0] sm:$0xf] }
  0x5e   : > { %v1083_v15 = vor.u32 %v1082_v7, %v1079_v6  ;;  %v1093_v16 = vrot.slane %v1091_v8, 4  ;;  %v1096_v17 = vrot.slane %v1094_v9, 5  ;;  %v830_v18 = vld [vmem:[#allocation2 + $0xd4] sm:$0x1]  ;;  %v1161_v19 = vshrl.u32 %v829_v14, 16 }
  0x5f   : > { %v1131_v20 = vsel %vm13171_vm4, %v1126_v11, %v1130_v1  ;;  %v1102_v21 = vrot.slane %v1100_v13, 5  ;;  %v831_v22 = vld [vmem:[#allocation2 + $0xd8] sm:$0xf]  ;;  %v832_v23 = vld [vmem:[#allocation2 + $0xdc] sm:$0x1]  ;;  %v1164_v24 = vshll.u32 %v829_v14, 16 }
  0x60   : > { %v11921_v25 = vcombine.low %v1117_v10, %v1131_v20  ;;  %v1084_v26 = vrot.slane %v1083_v15, 4  ;;  %v1097_v27 = vor.u32 %v1096_v17, %v1093_v16  ;;  %v1163_v28 = vrot.slane %v1161_v19, 4  ;;  %v825_v29 = vld [vmem:[#allocation2 + $0xc0] sm:$0xf]  ;;  %v826_v30 = vld [vmem:[#allocation2 + $0xc4] sm:$0x1] }
  0x61   : > { %v1166_v31 = vrot.slane %v1164_v24, 5  ;;  %v1170_v32 = vshll.u32 %v830_v18, 16  ;;  %v1175_v33 = vshrl.u32 %v831_v22, 16  ;;  %v1178_v34 = vshll.u32 %v831_v22, 16  ;;  %v460_v35 = vld [vmem:[%s13119_s8 + $0x100] sm:$0xf] }
  0x62   : > { %1366 = vrot.lane.b32.xlu1 %v11921_v25, %s13038_s9  ;;  %v1089_v36 = vsel %vm13171_vm4, %v1084_v26, %v1088_v12  ;;  %v1098_v37 = vrot.slane %v1097_v27, 4  ;;  %v1184_v38 = vshll.u32 %v832_v23, 16  ;;  %v827_v39 = vld [vmem:[#allocation2 + $0xc8] sm:$0xf]  ;;  %v1133_v40 = vshrl.u32 %v825_v29, 16 }
  0x63   : > { %542 = vst.msk [vmem:[#allocation2 + $0x100] sm:$0xf] %vm476_vm0, %v460_v35  ;;  %v1167_v41 = vor.u32 %v1166_v31, %v1163_v28  ;;  %v1172_v42 = vrot.slane %v1170_v32, 5  ;;  %v1177_v43 = vrot.slane %v1175_v33, 4  ;;  %v1180_v44 = vrot.slane %v1178_v34, 5 }
  0x64   : > { %v828_v45 = vld [vmem:[#allocation2 + $0xcc] sm:$0x1]  ;;  %v1103_v46 = vsel %vm13171_vm4, %v1098_v37, %v1102_v21  ;;  %v1186_v47 = vrot.slane %v1184_v38, 5  ;;  %v1135_v48 = vrot.slane %v1133_v40, 4  ;;  %v1136_v49 = vshll.u32 %v825_v29, 16 }
  0x65   : > { %v461_v50 = vld [vmem:[%s13119_s8 + $0x104] sm:$0x1]  ;;  %v11920_v52 = vcombine.low %v1089_v36, %v1103_v46  ;;  %v1168_v53 = vrot.slane %v1167_v41, 4  ;;  %v1181_v54 = vor.u32 %v1180_v44, %v1177_v43  ;;  %v1142_v55 = vshll.u32 %v826_v30, 16  ;;  %v462_v56 = vld [vmem:[%s13119_s8 + $0x108] sm:$0xf] }
  0x66   : > { %v463_v57 = vld [vmem:[%s13119_s8 + $0x10c] sm:$0x1]  ;;  %543 = vst.msk [vmem:[#allocation2 + $0x104] sm:$0x1] %vm478_vm1, %v461_v50  ;;  %v1138_v58 = vrot.slane %v1136_v49, 5  ;;  %v1147_v59 = vshrl.u32 %v827_v39, 16 }
  0x67   : > { %v1150_v60 = vshll.u32 %v827_v39, 16  ;;  %v1156_v61 = vshll.u32 %v828_v45, 16  ;;  %544 = vst.msk [vmem:[#allocation2 + $0x108] sm:$0xf] %vm476_vm0, %v462_v56  ;;  %v456_v62 = vld [vmem:[%s13119_s8 + $0xf0] sm:$0xf]  ;;  %1364 = vrot.lane.b32.xlu0 %v11920_v52, %s13038_s9  ;;  %v1173_v63 = vsel %vm13171_vm4, %v1168_v53, %v1172_v42 }
  0x68   : > { %545 = vst.msk [vmem:[#allocation2 + $0x10c] sm:$0x1] %vm478_vm1, %v463_v57  ;;  %v1182_v0 = vrot.slane %v1181_v54, 4  ;;  %v1144_v1 = vrot.slane %v1142_v55, 5  ;;  %v457_v2 = vld [vmem:[%s13119_s8 + $0xf4] sm:$0x1]  ;;  %v1139_v4 = vor.u32 %v1138_v58, %v1135_v48 }
  0x69   : > { %v458_v3 = vld [vmem:[%s13119_s8 + $0xf8] sm:$0xf]  ;;  %538 = vst.msk [vmem:[#allocation2 + $0xf0] sm:$0xf] %vm476_vm0, %v456_v62  ;;  %v1149_v5 = vrot.slane %v1147_v59, 4  ;;  %v1152_v6 = vrot.slane %v1150_v60, 5 }
  0x6a   : > { %v1158_v7 = vrot.slane %v1156_v61, 5  ;;  %v459_v8 = vld [vmem:[%s13119_s8 + $0xfc] sm:$0x1]  ;;  %539 = vst.msk [vmem:[#allocation2 + $0xf4] sm:$0x1] %vm478_vm1, %v457_v2  ;;  %v1187_v9 = vsel %vm13171_vm4, %v1182_v0, %v1186_v47  ;;  %v1140_v14 = vrot.slane %v1139_v4, 4 }
  0x6b   : > { %540 = vst.msk [vmem:[#allocation2 + $0xf8] sm:$0xf] %vm476_vm0, %v458_v3  ;;  %v837_v10 = vld [vmem:[#allocation2 + $0x100] sm:$0xf]  ;;  %v469_v12 = vld [vmem:[%s13119_s8 + $0x124] sm:$0x1]  ;;  %v11923_v13 = vcombine.low %v1173_v63, %v1187_v9  ;;  %v1153_v15 = vor.u32 %v1152_v6, %v1149_v5 }
  0x6c   : > { %541 = vst.msk [vmem:[#allocation2 + $0xfc] sm:$0x1] %vm478_vm1, %v459_v8  ;;  %v468_v11 = vld [vmem:[%s13119_s8 + $0x120] sm:$0xf]  ;;  %v1217_v16 = vshrl.u32 %v837_v10, 16  ;;  %v1220_v19 = vshll.u32 %v837_v10, 16  ;;  %v1145_v22 = vsel %vm13171_vm4, %v1140_v14, %v1144_v1 }
  0x6d   : > { %v470_v17 = vld [vmem:[%s13119_s8 + $0x128] sm:$0xf]  ;;  %v471_v18 = vld [vmem:[%s13119_s8 + $0x12c] sm:$0x1]  ;;  %550 = vst.msk [vmem:[#allocation2 + $0x120] sm:$0xf] %vm476_vm0, %v468_v11  ;;  %1370 = vrot.lane.b32.xlu1 %v11923_v13, %s13038_s9 }
  0x6e   : > { %551 = vst.msk [vmem:[#allocation2 + $0x124] sm:$0x1] %vm478_vm1, %v469_v12  ;;  %553 = vst.msk [vmem:[#allocation2 + $0x12c] sm:$0x1] %vm478_vm1, %v471_v18  ;;  %v464_v20 = vld [vmem:[%s13119_s8 + $0x110] sm:$0xf] }
  0x6f   : > { %552 = vst.msk [vmem:[#allocation2 + $0x128] sm:$0xf] %vm476_vm0, %v470_v17  ;;  %v465_v21 = vld [vmem:[%s13119_s8 + $0x114] sm:$0x1]  ;;  %v1154_v23 = vrot.slane %v1153_v15, 4  ;;  %v1219_v25 = vrot.slane %v1217_v16, 4 }
  0x70   : > { %v838_v24 = vld [vmem:[#allocation2 + $0x104] sm:$0x1]  ;;  %v466_v26 = vld [vmem:[%s13119_s8 + $0x118] sm:$0xf]  ;;  %546 = vst.msk [vmem:[#allocation2 + $0x110] sm:$0xf] %vm476_vm0, %v464_v20 }
  0x71   : > { %547 = vst.msk [vmem:[#allocation2 + $0x114] sm:$0x1] %vm478_vm1, %v465_v21  ;;  %v839_v27 = vld [vmem:[#allocation2 + $0x108] sm:$0xf]  ;;  %v840_v28 = vld [vmem:[#allocation2 + $0x10c] sm:$0x1]  ;;  %v1159_v31 = vsel %vm13171_vm4, %v1154_v23, %v1158_v7 }
  0x72   : > { %v1222_v29 = vrot.slane %v1220_v19, 5  ;;  %v1226_v30 = vshll.u32 %v838_v24, 16  ;;  %548 = vst.msk [vmem:[#allocation2 + $0x118] sm:$0xf] %vm476_vm0, %v466_v26  ;;  %v1231_v32 = vshrl.u32 %v839_v27, 16  ;;  %v1234_v33 = vshll.u32 %v839_v27, 16 }
  0x73   : > { %v1240_v34 = vshll.u32 %v840_v28, 16  ;;  %v833_v35 = vld [vmem:[#allocation2 + $0xf0] sm:$0xf]  ;;  %v11922_v36 = vcombine.low %v1145_v22, %v1159_v31  ;;  %v834_v39 = vld [vmem:[#allocation2 + $0xf4] sm:$0x1] }
  0x74   : > { %v1223_v37 = vor.u32 %v1222_v29, %v1219_v25  ;;  %v1228_v38 = vrot.slane %v1226_v30, 5  ;;  %v835_v40 = vld [vmem:[#allocation2 + $0xf8] sm:$0xf]  ;;  %v1189_v41 = vshrl.u32 %v833_v35, 16  ;;  %v1233_v42 = vrot.slane %v1231_v32, 4 }
  0x75   : > { %v1236_v43 = vrot.slane %v1234_v33, 5  ;;  %v1242_v44 = vrot.slane %v1240_v34, 5  ;;  %v836_v45 = vld [vmem:[#allocation2 + $0xfc] sm:$0x1]  ;;  %v1192_v46 = vshll.u32 %v833_v35, 16  ;;  %1368 = vrot.lane.b32.xlu0 %v11922_v36, %s13038_s9  ;;  %v1198_v49 = vshll.u32 %v834_v39, 16 }
  0x76   : > { %v1224_v47 = vrot.slane %v1223_v37, 4  ;;  %v1191_v48 = vrot.slane %v1189_v41, 4  ;;  %v1203_v50 = vshrl.u32 %v835_v40, 16  ;;  %v845_v52 = vld [vmem:[#allocation2 + $0x120] sm:$0xf]  ;;  %v1206_v55 = vshll.u32 %v835_v40, 16 }
  0x77   : > { %v1237_v53 = vor.u32 %v1236_v43, %v1233_v42  ;;  %v1194_v54 = vrot.slane %v1192_v46, 5  ;;  %v1212_v56 = vshll.u32 %v836_v45, 16  ;;  %v846_v57 = vld [vmem:[#allocation2 + $0x124] sm:$0x1]  ;;  %v1200_v59 = vrot.slane %v1198_v49, 5 }
  0x78   : > { %v1229_v58 = vsel %vm13171_vm4, %v1224_v47, %v1228_v38  ;;  %v1205_v60 = vrot.slane %v1203_v50, 4  ;;  %v847_v61 = vld [vmem:[#allocation2 + $0x128] sm:$0xf]  ;;  %v1208_v0 = vrot.slane %v1206_v55, 5  ;;  %v467_v2 = vld [vmem:[%s13119_s8 + $0x11c] sm:$0x1] }
  0x79   : > { %v1238_v62 = vrot.slane %v1237_v53, 4  ;;  %v1195_v63 = vor.u32 %v1194_v54, %v1191_v48  ;;  %v1214_v1 = vrot.slane %v1212_v56, 5  ;;  %v848_v3 = vld [vmem:[#allocation2 + $0x12c] sm:$0x1]  ;;  %v1273_v4 = vshrl.u32 %v845_v52, 16 }
  0x7a   : > { %v1276_v5 = vshll.u32 %v845_v52, 16  ;;  %v1282_v6 = vshll.u32 %v846_v57, 16  ;;  %v1287_v7 = vshrl.u32 %v847_v61, 16  ;;  %549 = vst.msk [vmem:[#allocation2 + $0x11c] sm:$0x1] %vm478_vm1, %v467_v2  ;;  %v1209_v10 = vor.u32 %v1208_v0, %v1205_v60 }
  0x7b   : > { %v1243_v8 = vsel %vm13171_vm4, %v1238_v62, %v1242_v44  ;;  %v1196_v9 = vrot.slane %v1195_v63, 4  ;;  %v1290_v11 = vshll.u32 %v847_v61, 16  ;;  %v841_v12 = vld [vmem:[#allocation2 + $0x110] sm:$0xf]  ;;  %v842_v13 = vld [vmem:[#allocation2 + $0x114] sm:$0x1] }
  0x7c   : > { %v11925_v14 = vcombine.low %v1229_v58, %v1243_v8  ;;  %v1275_v15 = vrot.slane %v1273_v4, 4  ;;  %v1278_v16 = vrot.slane %v1276_v5, 5  ;;  %v1284_v17 = vrot.slane %v1282_v6, 5  ;;  %v843_v18 = vld [vmem:[#allocation2 + $0x118] sm:$0xf] }
  0x7d   : > { %v1201_v19 = vsel %vm13171_vm4, %v1196_v9, %v1200_v59  ;;  %v1210_v20 = vrot.slane %v1209_v10, 4  ;;  %v1289_v21 = vrot.slane %v1287_v7, 4  ;;  %v1292_v22 = vrot.slane %v1290_v11, 5  ;;  %v1417_v23 = vld [vmem:[#allocation2 + $0x10] sm:$0xe] }
  0x7e   : > { %1374 = vrot.lane.b32.xlu1 %v11925_v14, %s13038_s9  ;;  %v1279_v24 = vor.u32 %v1278_v16, %v1275_v15  ;;  %v1296_v25 = vshll.u32 %v848_v3, 16  ;;  %v1245_v26 = vshrl.u32 %v841_v12, 16  ;;  %v1248_v27 = vshll.u32 %v841_v12, 16  ;;  %v1418_v28 = vld [vmem:[#allocation2 + $0x14] sm:$0x1] }
  0x7f   : > { %v1215_v29 = vsel %vm13171_vm4, %v1210_v20, %v1214_v1  ;;  %v1293_v30 = vor.u32 %v1292_v22, %v1289_v21  ;;  %v1254_v31 = vshll.u32 %v842_v13, 16  ;;  %v1259_v32 = vshrl.u32 %v843_v18, 16  ;;  %v1419_v33 = vld [vmem:[#allocation2 + $0x18] sm:$0xe]  ;;  %v1420_v34 = vld [vmem:[#allocation2 + $0x1c] sm:$0x1] }
  0x80   : > { %v11924_v35 = vcombine.low %v1201_v19, %v1215_v29  ;;  %v1280_v36 = vrot.slane %v1279_v24, 4  ;;  %v1298_v37 = vrot.slane %v1296_v25, 5  ;;  %v1247_v38 = vrot.slane %v1245_v26, 4  ;;  %v1413_v39 = vld [vmem:[#allocation2] sm:$0xe] }
  0x81   : > { %v1414_v40 = vld [vmem:[#allocation2 + $0x4] sm:$0x1]  ;;  %v1294_v41 = vrot.slane %v1293_v30, 4  ;;  %v844_v42 = vld [vmem:[#allocation2 + $0x11c] sm:$0x1]  ;;  %v1250_v43 = vrot.slane %v1248_v27, 5 }
  0x82   : > { %v1256_v44 = vrot.slane %v1254_v31, 5  ;;  %v1261_v45 = vrot.slane %v1259_v32, 4  ;;  %1372 = vrot.lane.b32.xlu0 %v11924_v35, %s13038_s9  ;;  %v1285_v46 = vsel %vm13171_vm4, %v1280_v36, %v1284_v17  ;;  %v1262_v47 = vshll.u32 %v843_v18, 16  ;;  %v1415_v52 = vld [vmem:[#allocation2 + $0x8] sm:$0xe] }
  0x83   : > { %v1268_v48 = vshll.u32 %v844_v42, 16  ;;  %v11930_v50 = vrot.slane %v1417_v23, 9  ;;  %v1299_v53 = vsel %vm13171_vm4, %v1294_v41, %v1298_v37  ;;  %v1251_v54 = vor.u32 %v1250_v43, %v1247_v38  ;;  %v1416_v57 = vld [vmem:[#allocation2 + $0xc] sm:$0x1]  ;;  %v1425_v58 = vld [vmem:[#allocation2 + $0x30] sm:$0xe] }
  0x84   : > { %v1554_v55 = vrot.slane %v1418_v28, 5  ;;  %v11931_v56 = vrot.slane %v1419_v33, 9  ;;  %v11927_v59 = vcombine.low %v1285_v46, %v1299_v53  ;;  %v1264_v60 = vrot.slane %v1262_v47, 5  ;;  %v1426_v63 = vld [vmem:[#allocation2 + $0x34] sm:$0x1] }
  0x85   : > { %v1270_v61 = vrot.slane %v1268_v48, 5  ;;  %v1558_v62 = vrot.slane %v1420_v34, 5  ;;  %v1252_v0 = vrot.slane %v1251_v54, 4  ;;  %v11928_v2 = vrot.slane %v1413_v39, 9  ;;  %v1427_v4 = vld [vmem:[#allocation2 + $0x38] sm:$0xe] }
  0x86   : > { %v1555_v1 = vsel %vm13333_vm7, %v11930_v50, %v1554_v55  ;;  %v1546_v3 = vrot.slane %v1414_v40, 5  ;;  %1378 = vrot.lane.b32.xlu1 %v11927_v59, %s13038_s9  ;;  %v1265_v5 = vor.u32 %v1264_v60, %v1261_v45  ;;  %v11929_v7 = vrot.slane %v1415_v52, 9  ;;  %v1428_v9 = vld [vmem:[#allocation2 + $0x3c] sm:$0x1]  ;;  %v1421_v10 = vld [vmem:[#allocation2 + $0x20] sm:$0xe] }
  0x87   : > { %v1559_v6 = vsel %vm13333_vm7, %v11931_v56, %v1558_v62  ;;  %v1550_v8 = vrot.slane %v1416_v57, 5  ;;  %v1257_v11 = vsel %vm13171_vm4, %v1252_v0, %v1256_v44  ;;  %v11934_v13 = vrot.slane %v1425_v58, 9  ;;  %v1422_v14 = vld [vmem:[#allocation2 + $0x24] sm:$0x1]  ;;  %v1423_v15 = vld [vmem:[#allocation2 + $0x28] sm:$0xe] }
  0x88   : > { %v11961_v12 = vcombine.low %v1555_v1, %v1559_v6  ;;  %v1266_v16 = vrot.slane %v1265_v5, 4  ;;  %v1547_v17 = vsel %vm13333_vm7, %v11928_v2, %v1546_v3  ;;  %v1570_v18 = vrot.slane %v1426_v63, 5  ;;  %v1424_v20 = vld [vmem:[#allocation2 + $0x2c] sm:$0x1]  ;;  %v1433_v25 = vld [vmem:[#allocation2 + $0x60] sm:$0xe] }
  0x89   : > { %v11935_v19 = vrot.slane %v1427_v4, 9  ;;  %v1551_v21 = vsel %vm13333_vm7, %v11929_v7, %v1550_v8  ;;  %v1574_v22 = vrot.slane %v1428_v9, 5  ;;  %v11932_v23 = vrot.slane %v1421_v10, 9  ;;  %v1434_v30 = vld [vmem:[#allocation2 + $0x64] sm:$0x1] }
  0x8a   : > { %v1562_v24 = vrot.slane %v1422_v14, 5  ;;  %v1271_v26 = vsel %vm13171_vm4, %v1266_v16, %v1270_v61  ;;  %1722 = vrot.lane.b32.xlu1 %v11961_v12, %s13039_s10  ;;  %v1571_v27 = vsel %vm13333_vm7, %v11934_v13, %v1570_v18  ;;  %v11933_v28 = vrot.slane %v1423_v15, 9  ;;  %v1435_v31 = vld [vmem:[#allocation2 + $0x68] sm:$0xe]  ;;  %v1436_v35 = vld [vmem:[#allocation2 + $0x6c] sm:$0x1] }
  0x8b   : > { %v1566_v29 = vrot.slane %v1424_v20, 5  ;;  %v11926_v32 = vcombine.low %v1257_v11, %v1271_v26  ;;  %v1575_v33 = vsel %vm13333_vm7, %v11935_v19, %v1574_v22  ;;  %v11938_v36 = vrot.slane %v1433_v25, 9  ;;  %v1429_v37 = vld [vmem:[#allocation2 + $0x50] sm:$0xe]  ;;  %v1430_v42 = vld [vmem:[#allocation2 + $0x54] sm:$0x1] }
  0x8c   : > { %v1563_v34 = vsel %vm13333_vm7, %v11932_v23, %v1562_v24  ;;  %v11963_v38 = vcombine.low %v1571_v27, %v1575_v33  ;;  %v1586_v40 = vrot.slane %v1434_v30, 5  ;;  %v11939_v41 = vrot.slane %v1435_v31, 9  ;;  %v1431_v43 = vld [vmem:[#allocation2 + $0x58] sm:$0xe]  ;;  %v1432_v46 = vld [vmem:[#allocation2 + $0x5c] sm:$0x1] }
  0x8d   : > { %v1567_v39 = vsel %vm13333_vm7, %v11933_v28, %v1566_v29  ;;  %1376 = vrot.lane.b32.xlu0 %v11926_v32, %s13038_s9  ;;  %v11960_v44 = vcombine.low %v1547_v17, %v1551_v21  ;;  %v1590_v45 = vrot.slane %v1436_v35, 5  ;;  %v11936_v47 = vrot.slane %v1429_v37, 9  ;;  %v1441_v54 = vld [vmem:[#allocation2 + $0x80] sm:$0xe]  ;;  %v1442_v55 = vld [vmem:[#allocation2 + $0x84] sm:$0x1] }
  0x8e   : > { %v1578_v48 = vrot.slane %v1430_v42, 5  ;;  %1726 = vrot.lane.b32.xlu1 %v11963_v38, %s13039_s10  ;;  %v1587_v50 = vsel %vm13333_vm7, %v11938_v36, %v1586_v40  ;;  %v11937_v52 = vrot.slane %v1431_v43, 9  ;;  %v1582_v53 = vrot.slane %v1432_v46, 5  ;;  %v1443_v58 = vld [vmem:[#allocation2 + $0x88] sm:$0xe] }
  0x8f   : > { %v11962_v56 = vcombine.low %v1563_v34, %v1567_v39  ;;  %v1591_v57 = vsel %vm13333_vm7, %v11939_v41, %v1590_v45  ;;  %v1444_v59 = vld [vmem:[#allocation2 + $0x8c] sm:$0x1]  ;;  %v11942_v60 = vrot.slane %v1441_v54, 9  ;;  %v1602_v61 = vrot.slane %v1442_v55, 5  ;;  %v1437_v2 = vld [vmem:[#allocation2 + $0x70] sm:$0xe] }
  0x90   : > { %v11965_v62 = vcombine.low %v1587_v50, %v1591_v57  ;;  %v1579_v63 = vsel %vm13333_vm7, %v11936_v47, %v1578_v48  ;;  %v11943_v0 = vrot.slane %v1443_v58, 9  ;;  %v1606_v1 = vrot.slane %v1444_v59, 5  ;;  %v1438_v3 = vld [vmem:[#allocation2 + $0x74] sm:$0x1]  ;;  %v1439_v6 = vld [vmem:[#allocation2 + $0x78] sm:$0xe] }
  0x91   : > { %1720 = vrot.lane.b32.xlu0 %v11960_v44, %s13039_s10  ;;  %v1583_v4 = vsel %vm13333_vm7, %v11937_v52, %v1582_v53  ;;  %v1603_v5 = vsel %vm13333_vm7, %v11942_v60, %v1602_v61  ;;  %v1440_v7 = vld [vmem:[#allocation2 + $0x7c] sm:$0x1]  ;;  %v11940_v8 = vrot.slane %v1437_v2, 9  ;;  %v1594_v9 = vrot.slane %v1438_v3, 5  ;;  %v1449_v13 = vld [vmem:[#allocation2 + $0xb0] sm:$0xe] }
  0x92   : > { %1730 = vrot.lane.b32.xlu1 %v11965_v62, %s13039_s10  ;;  %v1607_v10 = vsel %vm13333_vm7, %v11943_v0, %v1606_v1  ;;  %v11941_v11 = vrot.slane %v1439_v6, 9  ;;  %v1598_v12 = vrot.slane %v1440_v7, 5  ;;  %v1450_v14 = vld [vmem:[#allocation2 + $0xb4] sm:$0x1]  ;;  %v1451_v16 = vld [vmem:[#allocation2 + $0xb8] sm:$0xe]  ;;  %v11964_v20 = vcombine.low %v1579_v63, %v1583_v4 }
  0x93   : > { %v11967_v15 = vcombine.low %v1603_v5, %v1607_v10  ;;  %v1452_v17 = vld [vmem:[#allocation2 + $0xbc] sm:$0x1]  ;;  %v11946_v18 = vrot.slane %v1449_v13, 9  ;;  %v1618_v19 = vrot.slane %v1450_v14, 5  ;;  %v1595_v21 = vsel %vm13333_vm7, %v11940_v8, %v1594_v9  ;;  %v1445_v24 = vld [vmem:[#allocation2 + $0xa0] sm:$0xe] }
  0x94   : > { %v11947_v22 = vrot.slane %v1451_v16, 9  ;;  %v1622_v23 = vrot.slane %v1452_v17, 5  ;;  %v1446_v25 = vld [vmem:[#allocation2 + $0xa4] sm:$0x1]  ;;  %v1599_v26 = vsel %vm13333_vm7, %v11941_v11, %v1598_v12  ;;  %v1447_v28 = vld [vmem:[#allocation2 + $0xa8] sm:$0xe] }
  0x95   : > { %1724 = vrot.lane.b32.xlu0 %v11962_v56, %s13039_s10  ;;  %v1619_v27 = vsel %vm13333_vm7, %v11946_v18, %v1618_v19  ;;  %v1448_v29 = vld [vmem:[#allocation2 + $0xac] sm:$0x1]  ;;  %v11944_v30 = vrot.slane %v1445_v24, 9  ;;  %v1610_v31 = vrot.slane %v1446_v25, 5  ;;  %v11945_v33 = vrot.slane %v1447_v28, 9 }
  0x96   : > { %1734 = vrot.lane.b32.xlu1 %v11967_v15, %s13039_s10  ;;  %v1623_v32 = vsel %vm13333_vm7, %v11947_v22, %v1622_v23  ;;  %v1614_v34 = vrot.slane %v1448_v29, 5  ;;  %v1457_v35 = vld [vmem:[#allocation2 + $0xd0] sm:$0xe]  ;;  %v1458_v36 = vld [vmem:[#allocation2 + $0xd4] sm:$0x1]  ;;  %v11966_v42 = vcombine.low %v1595_v21, %v1599_v26 }
  0x97   : > { %v11969_v37 = vcombine.low %v1619_v27, %v1623_v32  ;;  %v1459_v38 = vld [vmem:[#allocation2 + $0xd8] sm:$0xe]  ;;  %v1460_v39 = vld [vmem:[#allocation2 + $0xdc] sm:$0x1]  ;;  %v11950_v40 = vrot.slane %v1457_v35, 9  ;;  %v1634_v41 = vrot.slane %v1458_v36, 5  ;;  %v1611_v43 = vsel %vm13333_vm7, %v11944_v30, %v1610_v31 }
  0x98   : > { %v11951_v44 = vrot.slane %v1459_v38, 9  ;;  %v1638_v45 = vrot.slane %v1460_v39, 5  ;;  %v1453_v46 = vld [vmem:[#allocation2 + $0xc0] sm:$0xe]  ;;  %v1454_v47 = vld [vmem:[#allocation2 + $0xc4] sm:$0x1]  ;;  %v1615_v48 = vsel %vm13333_vm7, %v11945_v33, %v1614_v34 }
  0x99   : > { %1728 = vrot.lane.b32.xlu0 %v11964_v20, %s13039_s10  ;;  %v1635_v50 = vsel %vm13333_vm7, %v11950_v40, %v1634_v41  ;;  %v1455_v52 = vld [vmem:[#allocation2 + $0xc8] sm:$0xe]  ;;  %v1456_v53 = vld [vmem:[#allocation2 + $0xcc] sm:$0x1]  ;;  %v11948_v54 = vrot.slane %v1453_v46, 9  ;;  %v1626_v55 = vrot.slane %v1454_v47, 5  ;;  %v11968_v2 = vcombine.low %v1611_v43, %v1615_v48 }
  0x9a   : > { %1738 = vrot.lane.b32.xlu1 %v11969_v37, %s13039_s10  ;;  %v1639_v56 = vsel %vm13333_vm7, %v11951_v44, %v1638_v45  ;;  %v11949_v57 = vrot.slane %v1455_v52, 9  ;;  %v1630_v58 = vrot.slane %v1456_v53, 5  ;;  %v1465_v59 = vld [vmem:[#allocation2 + $0x100] sm:$0xe]  ;;  %v1466_v60 = vld [vmem:[#allocation2 + $0x104] sm:$0x1] }
  0x9b   : > { %v11971_v61 = vcombine.low %v1635_v50, %v1639_v56  ;;  %v1467_v62 = vld [vmem:[#allocation2 + $0x108] sm:$0xe]  ;;  %v1468_v63 = vld [vmem:[#allocation2 + $0x10c] sm:$0x1]  ;;  %v11954_v0 = vrot.slane %v1465_v59, 9  ;;  %v1650_v1 = vrot.slane %v1466_v60, 5  ;;  %v1627_v3 = vsel %vm13333_vm7, %v11948_v54, %v1626_v55 }
  0x9c   : > { %v11955_v4 = vrot.slane %v1467_v62, 9  ;;  %v1654_v5 = vrot.slane %v1468_v63, 5  ;;  %v1461_v6 = vld [vmem:[#allocation2 + $0xf0] sm:$0xe]  ;;  %v1462_v7 = vld [vmem:[#allocation2 + $0xf4] sm:$0x1]  ;;  %v1631_v8 = vsel %vm13333_vm7, %v11949_v57, %v1630_v58 }
  0x9d   : > { %1732 = vrot.lane.b32.xlu0 %v11966_v42, %s13039_s10  ;;  %v1651_v9 = vsel %vm13333_vm7, %v11954_v0, %v1650_v1  ;;  %v1463_v10 = vld [vmem:[#allocation2 + $0xf8] sm:$0xe]  ;;  %v1464_v11 = vld [vmem:[#allocation2 + $0xfc] sm:$0x1]  ;;  %v11952_v12 = vrot.slane %v1461_v6, 9  ;;  %v1642_v13 = vrot.slane %v1462_v7, 5  ;;  %v11970_v24 = vcombine.low %v1627_v3, %v1631_v8 }
  0x9e   : > { %1742 = vrot.lane.b32.xlu1 %v11971_v61, %s13039_s10  ;;  %v1655_v14 = vsel %vm13333_vm7, %v11955_v4, %v1654_v5  ;;  %v11953_v15 = vrot.slane %v1463_v10, 9  ;;  %v1646_v16 = vrot.slane %v1464_v11, 5  ;;  %v1473_v17 = vld [vmem:[#allocation2 + $0x120] sm:$0xe]  ;;  %v1474_v18 = vld [vmem:[#allocation2 + $0x124] sm:$0x1] }
  0x9f   : > { %v11973_v19 = vcombine.low %v1651_v9, %v1655_v14  ;;  %v1475_v20 = vld [vmem:[#allocation2 + $0x128] sm:$0xe]  ;;  %v1476_v21 = vld [vmem:[#allocation2 + $0x12c] sm:$0x1]  ;;  %v11958_v22 = vrot.slane %v1473_v17, 9  ;;  %v1666_v23 = vrot.slane %v1474_v18, 5  ;;  %v1643_v29 = vsel %vm13333_vm7, %v11952_v12, %v1642_v13 }
  0xa0   : > { %v11959_v25 = vrot.slane %v1475_v20, 9  ;;  %v1670_v26 = vrot.slane %v1476_v21, 5  ;;  %v1469_v27 = vld [vmem:[#allocation2 + $0x110] sm:$0xe]  ;;  %v1470_v28 = vld [vmem:[#allocation2 + $0x114] sm:$0x1]  ;;  %v1647_v35 = vsel %vm13333_vm7, %v11953_v15, %v1646_v16 }
  0xa1   : > { %1736 = vrot.lane.b32.xlu0 %v11968_v2, %s13039_s10  ;;  %v1667_v30 = vsel %vm13333_vm7, %v11958_v22, %v1666_v23  ;;  %v1471_v31 = vld [vmem:[#allocation2 + $0x118] sm:$0xe]  ;;  %v1472_v32 = vld [vmem:[#allocation2 + $0x11c] sm:$0x1]  ;;  %v11956_v33 = vrot.slane %v1469_v27, 9  ;;  %v1658_v34 = vrot.slane %v1470_v28, 5  ;;  %v11972_v41 = vcombine.low %v1643_v29, %v1647_v35 }
  0xa2   : > { %1746 = vrot.lane.b32.xlu1 %v11973_v19, %s13039_s10  ;;  %v1671_v36 = vsel %vm13333_vm7, %v11959_v25, %v1670_v26  ;;  %v11957_v37 = vrot.slane %v1471_v31, 9  ;;  %v1662_v38 = vrot.slane %v1472_v32, 5  ;;  %v412_v40 = vld [vmem:[%s13119_s8 + $0x40] sm:$0xf]  ;;  %v432_v45 = vld [vmem:[%s13119_s8 + $0x90] sm:$0xf] }
  0xa3   : > { %v11975_v39 = vcombine.low %v1667_v30, %v1671_v36  ;;  %494 = vst.msk [vmem:[#allocation2 + $0x40] sm:$0xf] %vm476_vm0, %v412_v40  ;;  %v1659_v42 = vsel %vm13333_vm7, %v11956_v33, %v1658_v34  ;;  %v12826_v44 = vld [vmem:[#allocation2 + $0x18] ss:$8 sps:$4 sm:$0xff]   ;;  %514 = vst.msk [vmem:[#allocation2 + $0x90] sm:$0xf] %vm476_vm0, %v432_v45 }
  0xa4   : > { %v1663_v43 = vsel %vm13333_vm7, %v11957_v37, %v1662_v38  ;;  %v452_v47 = vld [vmem:[%s13119_s8 + $0xe0] sm:$0xf]  ;;  %v12827_v50 = vld [vmem:[#allocation2 + $0x8] ss:$8 sps:$4 sm:$0xff]   ;;  %v1967_v56 = vld [vmem:[#allocation2 + $0x18] sm:$0xf] }
  0xa5   : > { %1740 = vrot.lane.b32.xlu0 %v11970_v24, %s13039_s10  ;;  %v11974_v46 = vcombine.low %v1659_v42, %v1663_v43  ;;  %534 = vst.msk [vmem:[#allocation2 + $0xe0] sm:$0xf] %vm476_vm0, %v452_v47  ;;  %v12830_v52 = vld [vmem:[#allocation2 + $0x68] ss:$8 sps:$4 sm:$0xff]   ;;  %v1968_v57 = vld [vmem:[#allocation2 + $0x1c] sm:$0x1] }
  0xa6   : > { %1750 = vrot.lane.b32.xlu1 %v11975_v39, %s13039_s10  ;;  %v12829_v53 = vld [vmem:[#allocation2 + $0x28] ss:$8 sps:$4 sm:$0xff]   ;;  %v12831_v58 = vld [vmem:[#allocation2 + $0x58] ss:$8 sps:$4 sm:$0xff]   ;;  %v1970_v61 = vld [vmem:[#allocation2 + $0x24] sm:$0x1] }
  0xa7   : > { %v472_v54 = vld [vmem:[%s13119_s8 + $0x130] sm:$0xf]  ;;  %v1969_v59 = vld [vmem:[#allocation2 + $0x20] sm:$0xf]  ;;  %v2056_v62 = vshrl.u32 %v1967_v56, 16  ;;  %v2059_v63 = vshll.u32 %v1967_v56, 16 }
  0xa8   : > { %554 = vst.msk [vmem:[#allocation2 + $0x130] sm:$0xf] %vm476_vm0, %v472_v54  ;;  %v12834_v60 = vld [vmem:[#allocation2 + $0xb8] ss:$8 sps:$4 sm:$0xff]   ;;  %v2065_v0 = vshll.u32 %v1968_v57, 16  ;;  %v2070_v1 = vshrl.u32 %v1969_v59, 16 }
  0xa9   : > { %1744 = vrot.lane.b32.xlu0 %v11972_v41, %s13039_s10  ;;  %v2073_v2 = vshll.u32 %v1969_v59, 16  ;;  %v2079_v3 = vshll.u32 %v1970_v61, 16  ;;  %v1963_v4 = vld [vmem:[#allocation2 + $0x8] sm:$0xf]  ;;  %v1964_v5 = vld [vmem:[#allocation2 + $0xc] sm:$0x1] }
  0xaa   : > { %1900 = vrot.lane.b32.xlu1 %v12826_v44, %s13040_s11  ;;  %v12828_v48 = vld [vmem:[#allocation2 + $0x38] ss:$8 sps:$4 sm:$0xff]   ;;  %v12832_v55 = vld [vmem:[#allocation2 + $0x88] ss:$8 sps:$4 sm:$0xff]   ;;  %v2058_v6 = vrot.slane %v2056_v62, 4  ;;  %v2061_v7 = vrot.slane %v2059_v63, 5 }
  0xab   : > { %v2072_v8 = vrot.slane %v2070_v1, 4  ;;  %v1965_v9 = vld [vmem:[#allocation2 + $0x10] sm:$0xf]  ;;  %v12833_v10 = vld [vmem:[#allocation2 + $0x78] ss:$8 sps:$4 sm:$0xff]   ;;  %v2067_v11 = vrot.slane %v2065_v0, 5 }
  0xac   : > { %v2075_v12 = vrot.slane %v2073_v2, 5  ;;  %v1966_v13 = vld [vmem:[#allocation2 + $0x14] sm:$0x1]  ;;  %v2028_v14 = vshrl.u32 %v1963_v4, 16  ;;  %v2031_v15 = vshll.u32 %v1963_v4, 16  ;;  %v2062_v17 = vor.u32 %v2061_v7, %v2058_v6 }
  0xad   : > { %1748 = vrot.lane.b32.xlu0 %v11974_v46, %s13039_s10  ;;  %v12836_v16 = vld [vmem:[#allocation2 + $0xd8] ss:$8 sps:$4 sm:$0xff]   ;;  %v2081_v18 = vrot.slane %v2079_v3, 5  ;;  %v2037_v19 = vshll.u32 %v1964_v5, 16  ;;  %v2042_v20 = vshrl.u32 %v1965_v9, 16  ;;  %v2045_v24 = vshll.u32 %v1965_v9, 16 }
  0xae   : > { %1904 = vrot.lane.b32.xlu1 %v12828_v48, %s13040_s11  ;;  %v2076_v21 = vor.u32 %v2075_v12, %v2072_v8  ;;  %v2030_v22 = vrot.slane %v2028_v14, 4  ;;  %v2033_v23 = vrot.slane %v2031_v15, 5  ;;  %v413_v25 = vld [vmem:[%s13119_s8 + $0x44] sm:$0x1]  ;;  %v2063_v26 = vrot.slane %v2062_v17, 4 }
  0xaf   : > { %v2039_v27 = vrot.slane %v2037_v19, 5  ;;  %v2044_v28 = vrot.slane %v2042_v20, 4  ;;  %v2051_v29 = vshll.u32 %v1966_v13, 16  ;;  %495 = vst.msk [vmem:[#allocation2 + $0x44] sm:$0x1] %vm478_vm1, %v413_v25  ;;  %v2047_v34 = vrot.slane %v2045_v24, 5 }
  0xb0   : > { %v1975_v30 = vld [vmem:[#allocation2 + $0x38] sm:$0xf]  ;;  %v12835_v31 = vld [vmem:[#allocation2 + $0xa8] ss:$8 sps:$4 sm:$0xff]   ;;  %v2077_v32 = vrot.slane %v2076_v21, 4  ;;  %v2034_v33 = vor.u32 %v2033_v23, %v2030_v22  ;;  %v2068_v38 = vsel %vm13171_vm4, %v2063_v26, %v2067_v11 }
  0xb1   : > { %1898 = vrot.lane.b32.xlu0 %v12827_v50, %s13040_s11  ;;  %v1976_v35 = vld [vmem:[#allocation2 + $0x3c] sm:$0x1]  ;;  %v1977_v36 = vld [vmem:[#allocation2 + $0x40] sm:$0xf]  ;;  %v12838_v37 = vld [vmem:[#allocation2 + $0x108] ss:$8 sps:$4 sm:$0xff]   ;;  %v2048_v44 = vor.u32 %v2047_v34, %v2044_v28 }
  0xb2   : > { %1908 = vrot.lane.b32.xlu1 %v12830_v52, %s13040_s11  ;;  %v2053_v39 = vrot.slane %v2051_v29, 5  ;;  %v2112_v40 = vshrl.u32 %v1975_v30, 16  ;;  %v2115_v41 = vshll.u32 %v1975_v30, 16  ;;  %v2082_v42 = vsel %vm13171_vm4, %v2077_v32, %v2081_v18  ;;  %v1971_v46 = vld [vmem:[#allocation2 + $0x28] sm:$0xf] }
  0xb3   : > { %v2035_v43 = vrot.slane %v2034_v33, 4  ;;  %v2121_v45 = vshll.u32 %v1976_v35, 16  ;;  %v1972_v47 = vld [vmem:[#allocation2 + $0x2c] sm:$0x1]  ;;  %v13449_v48 = vcombine.low %v2068_v38, %v2082_v42  ;;  %v1973_v54 = vld [vmem:[#allocation2 + $0x30] sm:$0xf] }
  0xb4   : > { %v2114_v50 = vrot.slane %v2112_v40, 4  ;;  %v2117_v52 = vrot.slane %v2115_v41, 5  ;;  %v2049_v57 = vrot.slane %v2048_v44, 4  ;;  %v2129_v59 = vshll.u32 %v1977_v36, 16  ;;  %v12840_v61 = vld [vmem:[#allocation2 + $0x128] ss:$8 sps:$4 sm:$0xff]  }
  0xb5   : > { %1902 = vrot.lane.b32.xlu0 %v12829_v53, %s13040_s11  ;;  %v2126_v53 = vshrl.u32 %v1977_v36, 16  ;;  %v2040_v56 = vsel %vm13171_vm4, %v2035_v43, %v2039_v27  ;;  %v2084_v0 = vshrl.u32 %v1971_v46, 16  ;;  %v2087_v1 = vshll.u32 %v1971_v46, 16  ;;  %v1983_v2 = vld [vmem:[#allocation2 + $0x68] sm:$0xf] }
  0xb6   : > { %1912 = vrot.lane.b32.xlu1 %v12832_v55, %s13040_s11  ;;  %v12837_v55 = vld [vmem:[#allocation2 + $0xc8] ss:$8 sps:$4 sm:$0xff]   ;;  %v2118_v62 = vor.u32 %v2117_v52, %v2114_v50  ;;  %v2054_v3 = vsel %vm13171_vm4, %v2049_v57, %v2053_v39  ;;  %v1978_v4 = vld [vmem:[#allocation2 + $0x44] sm:$0x1]  ;;  %v2131_v5 = vrot.slane %v2129_v59, 5  ;;  %v2093_v6 = vshll.u32 %v1972_v47, 16 }
  0xb7   : > { %v2128_v63 = vrot.slane %v2126_v53, 4  ;;  %v2098_v7 = vshrl.u32 %v1973_v54, 16  ;;  %v13457_v8 = vcombine.low %v2040_v56, %v2054_v3  ;;  %v2086_v11 = vrot.slane %v2084_v0, 4  ;;  %v1984_v12 = vld [vmem:[#allocation2 + $0x6c] sm:$0x1] }
  0xb8   : > { %v2119_v9 = vrot.slane %v2118_v62, 4  ;;  %v2089_v14 = vrot.slane %v2087_v1, 5  ;;  %v2095_v15 = vrot.slane %v2093_v6, 5  ;;  %v1985_v17 = vld [vmem:[#allocation2 + $0x70] sm:$0xf]  ;;  %v2101_v21 = vshll.u32 %v1973_v54, 16 }
  0xb9   : > { %1906 = vrot.lane.b32.xlu0 %v12831_v58, %s13040_s11  ;;  %v2123_v58 = vrot.slane %v2121_v45, 5  ;;  %v2132_v13 = vor.u32 %v2131_v5, %v2128_v63  ;;  %v12839_v18 = vld [vmem:[#allocation2 + $0xf8] ss:$8 sps:$4 sm:$0xff]   ;;  %v1986_v25 = vld [vmem:[#allocation2 + $0x74] sm:$0x1]  ;;  %v2168_v26 = vshrl.u32 %v1983_v2, 16 }
  0xba   : > { %1916 = vrot.lane.b32.xlu1 %v12834_v60, %s13040_s11  ;;  %v1974_v60 = vld [vmem:[#allocation2 + $0x34] sm:$0x1]  ;;  %v2090_v24 = vor.u32 %v2089_v14, %v2086_v11  ;;  %v2171_v27 = vshll.u32 %v1983_v2, 16  ;;  %v2103_v28 = vrot.slane %v2101_v21, 5  ;;  %v2177_v30 = vshll.u32 %v1984_v12, 16 }
  0xbb   : > { %v2124_v19 = vsel %vm13171_vm4, %v2119_v9, %v2123_v58  ;;  %v2107_v22 = vshll.u32 %v1974_v60, 16  ;;  %v2133_v23 = vrot.slane %v2132_v13, 4  ;;  %v1979_v32 = vld [vmem:[#allocation2 + $0x58] sm:$0xf]  ;;  %v2170_v35 = vrot.slane %v2168_v26, 4  ;;  %v13478_v13 = vpop.permute.xlu1 %1352 }
  0xbc   : > { %v2091_v34 = vrot.slane %v2090_v24, 4  ;;  %v2173_v36 = vrot.slane %v2171_v27, 5  ;;  %v2179_v40 = vrot.slane %v2177_v30, 5  ;;  %v1981_v42 = vld [vmem:[#allocation2 + $0x60] sm:$0xf]  ;;  %v2185_v47 = vshll.u32 %v1985_v17, 16 }
  0xbd   : > { %1910 = vrot.lane.b32.xlu0 %v12833_v10, %s13040_s11  ;;  %v2135_v10 = vshll.u32 %v1978_v4, 16  ;;  %v2109_v29 = vrot.slane %v2107_v22, 5  ;;  %v433_v43 = vld [vmem:[%s13119_s8 + $0x94] sm:$0x1]  ;;  %v12841_v44 = vld [vmem:[#allocation2 + $0x118] ss:$8 sps:$4 sm:$0xff]  }
  0xbe   : > { %1920 = vrot.lane.b32.xlu1 %v12836_v16, %s13040_s11  ;;  %v2100_v16 = vrot.slane %v2098_v7, 4  ;;  %v2096_v45 = vsel %vm13171_vm4, %v2091_v34, %v2095_v15  ;;  %v2174_v46 = vor.u32 %v2173_v36, %v2170_v35  ;;  %v2191_v50 = vshll.u32 %v1986_v25, 16  ;;  %v1982_v52 = vld [vmem:[#allocation2 + $0x64] sm:$0x1]  ;;  %515 = vst.msk [vmem:[#allocation2 + $0x94] sm:$0x1] %vm478_vm1, %v433_v43 }
  0xbf   : > { %v2137_v20 = vrot.slane %v2135_v10, 5  ;;  %v2140_v54 = vshrl.u32 %v1979_v32, 16  ;;  %v1991_v57 = vld [vmem:[#allocation2 + $0x88] sm:$0xf]  ;;  %v2187_v59 = vrot.slane %v2185_v47, 5  ;;  %v2157_v9 = vshll.u32 %v1981_v42, 16 }
  0xc0   : > { %v2104_v39 = vor.u32 %v2103_v28, %v2100_v16  ;;  %v2175_v58 = vrot.slane %v2174_v46, 4  ;;  %v2193_v60 = vrot.slane %v2191_v50, 5  ;;  %v1992_v62 = vld [vmem:[#allocation2 + $0x8c] sm:$0x1]  ;;  %v1993_v3 = vld [vmem:[#allocation2 + $0x90] sm:$0xf] }
  0xc1   : > { %1914 = vrot.lane.b32.xlu0 %v12835_v31, %s13040_s11  ;;  %v2182_v31 = vshrl.u32 %v1985_v17, 16  ;;  %v2138_v33 = vsel %vm13171_vm4, %v2133_v23, %v2137_v20  ;;  %v2142_v0 = vrot.slane %v2140_v54, 4  ;;  %v2163_v10 = vshll.u32 %v1982_v52, 16  ;;  %v1987_v12 = vld [vmem:[#allocation2 + $0x78] sm:$0xf]  ;;  %v13490_v52 = vpop.permute.xlu0 %1348 }
  0xc2   : > { %1924 = vrot.lane.b32.xlu1 %v12838_v37, %s13040_s11  ;;  %v1980_v37 = vld [vmem:[#allocation2 + $0x5c] sm:$0x1]  ;;  %v11995_v38 = vcombine.low %v2124_v19, %v2138_v33  ;;  %v2105_v53 = vrot.slane %v2104_v39, 4  ;;  %v2180_v4 = vsel %vm13171_vm4, %v2175_v58, %v2179_v40  ;;  %v2224_v11 = vshrl.u32 %v1991_v57, 16  ;;  %v1989_v28 = vld [vmem:[#allocation2 + $0x80] sm:$0xf] }
  0xc3   : > { %v2184_v41 = vrot.slane %v2182_v31, 4  ;;  %v2149_v56 = vshll.u32 %v1980_v37, 16  ;;  %v2227_v15 = vshll.u32 %v1991_v57, 16  ;;  %v2233_v16 = vshll.u32 %v1992_v62, 16  ;;  %v1990_v35 = vld [vmem:[#allocation2 + $0x84] sm:$0x1] }
  0xc4   : > { %v2110_v63 = vsel %vm13171_vm4, %v2105_v53, %v2109_v29  ;;  %v2238_v17 = vshrl.u32 %v1993_v3, 16  ;;  %v2159_v20 = vrot.slane %v2157_v9, 5  ;;  %v2165_v21 = vrot.slane %v2163_v10, 5  ;;  %v2001_v43 = vld [vmem:[#allocation2 + $0xc0] sm:$0xf] }
  0xc5   : > { %1918 = vrot.lane.b32.xlu0 %v12837_v55, %s13040_s11  ;;  %v2143_v55 = vshll.u32 %v1979_v32, 16  ;;  %v2151_v2 = vrot.slane %v2149_v56, 5  ;;  %v2188_v5 = vor.u32 %v2187_v59, %v2184_v41  ;;  %v1994_v22 = vld [vmem:[#allocation2 + $0x94] sm:$0x1]  ;;  %v2226_v23 = vrot.slane %v2224_v11, 4 }
  0xc6   : > { %1928 = vrot.lane.b32.xlu1 %v12840_v61, %s13040_s11  ;;  %v2154_v61 = vshrl.u32 %v1981_v42, 16  ;;  %v2229_v25 = vrot.slane %v2227_v15, 5  ;;  %v2235_v26 = vrot.slane %v2233_v16, 5  ;;  %v2240_v27 = vrot.slane %v2238_v17, 4  ;;  %v2000_v42 = vld [vmem:[#allocation2 + $0xbc] sm:$0x1] }
  0xc7   : > { %v2145_v1 = vrot.slane %v2143_v55, 5  ;;  %v2189_v14 = vrot.slane %v2188_v5, 4  ;;  %v2241_v32 = vshll.u32 %v1993_v3, 16  ;;  %v2247_v34 = vshll.u32 %v1994_v22, 16  ;;  %v12842_v57 = vld [vmem:[#allocation2 + $0x20] ss:$8 sps:$4 sm:$0xff]   ;;  %v13507_v22 = vpop.permute.xlu0 %1350 }
  0xc8   : > { %v2156_v6 = vrot.slane %v2154_v61, 4  ;;  %v2230_v33 = vor.u32 %v2229_v25, %v2226_v23  ;;  %v2196_v36 = vshrl.u32 %v1987_v12, 16  ;;  %v2199_v37 = vshll.u32 %v1987_v12, 16  ;;  %v2002_v62 = vld [vmem:[#allocation2 + $0xc4] sm:$0x1]  ;;  %771 = vst.msk [vmem:[#allocation3 + $0x40] sm:$0xff] %vm768_vm8, %v12842_v57 }
  0xc9   : > { %1922 = vrot.lane.b32.xlu0 %v12839_v18, %s13040_s11  ;;  %v2146_v7 = vor.u32 %v2145_v1, %v2142_v0  ;;  %v1988_v18 = vld [vmem:[#allocation2 + $0x7c] sm:$0x1]  ;;  %v2194_v24 = vsel %vm13171_vm4, %v2189_v14, %v2193_v60  ;;  %v2243_v39 = vrot.slane %v2241_v32, 5  ;;  %v2210_v41 = vshrl.u32 %v1989_v28, 16  ;;  %v1995_v3 = vld [vmem:[#allocation2 + $0xa8] sm:$0xf] }
  0xca   : > { %2525 = vrot.lane.b32.xlu1 %v13449_v48, %s13041_s12  ;;  %v11994_v48 = vcombine.low %v2096_v45, %v2110_v63  ;;  %v11997_v29 = vcombine.low %v2180_v4, %v2194_v24  ;;  %v2160_v31 = vor.u32 %v2159_v20, %v2156_v6  ;;  %v2205_v40 = vshll.u32 %v1988_v18, 16  ;;  %v453_v9 = vld [vmem:[%s13119_s8 + $0xe4] sm:$0x1]  ;;  %v1996_v15 = vld [vmem:[#allocation2 + $0xac] sm:$0x1]  ;;  %1399 = vst.msk [vmem:[#allocation3 + $0x40] sm:$0xff] %vm1396_vm9, %v13478_v13 }
  0xcb   : > { %v2147_v19 = vrot.slane %v2146_v7, 4  ;;  %v2231_v45 = vrot.slane %v2230_v33, 4  ;;  %v2249_v46 = vrot.slane %v2247_v34, 5  ;;  %v2198_v47 = vrot.slane %v2196_v36, 4  ;;  %535 = vst.msk [vmem:[#allocation2 + $0xe4] sm:$0x1] %vm478_vm1, %v453_v9  ;;  %v13518_v57 = vpop.permute.xlu0 %1356 }
  0xcc   : > { %v2201_v50 = vrot.slane %v2199_v37, 5  ;;  %v2244_v54 = vor.u32 %v2243_v39, %v2240_v27  ;;  %v2207_v55 = vrot.slane %v2205_v40, 5  ;;  %v2212_v56 = vrot.slane %v2210_v41, 4  ;;  %v1998_v27 = vld [vmem:[#allocation2 + $0xb4] sm:$0x1] }
  0xcd   : > { %1926 = vrot.lane.b32.xlu0 %v12841_v44, %s13040_s11  ;;  %v2152_v30 = vsel %vm13171_vm4, %v2147_v19, %v2151_v2  ;;  %v13487_v44 = vpop.permute.xlu1 %1354  ;;  %v2236_v59 = vsel %vm13171_vm4, %v2231_v45, %v2235_v26  ;;  %v2213_v61 = vshll.u32 %v1989_v28, 16  ;;  %v2219_v0 = vshll.u32 %v1990_v35, 16  ;;  %v2007_v32 = vld [vmem:[#allocation2 + $0xd8] sm:$0xf]  ;;  %v2008_v37 = vld [vmem:[#allocation2 + $0xdc] sm:$0x1] }
  0xce   : > { %2529 = vrot.lane.b32.xlu1 %v11995_v38, %s13041_s12  ;;  %v1999_v38 = vld [vmem:[#allocation2 + $0xb8] sm:$0xf]  ;;  %v2202_v60 = vor.u32 %v2201_v50, %v2198_v47  ;;  %v2245_v63 = vrot.slane %v2244_v54, 4  ;;  %v2289_v6 = vshll.u32 %v2000_v42, 16  ;;  %v2294_v7 = vshrl.u32 %v2001_v43, 16 }
  0xcf   : > { %v2280_v1 = vshrl.u32 %v1999_v38, 16  ;;  %v2283_v2 = vshll.u32 %v1999_v38, 16  ;;  %v2215_v5 = vrot.slane %v2213_v61, 5  ;;  %v2221_v11 = vrot.slane %v2219_v0, 5  ;;  %v2009_v41 = vld [vmem:[#allocation2 + $0xe0] sm:$0xf] }
  0xd0   : > { %v2203_v4 = vrot.slane %v2202_v60, 4  ;;  %v2250_v10 = vsel %vm13171_vm4, %v2245_v63, %v2249_v46  ;;  %v2291_v20 = vrot.slane %v2289_v6, 5  ;;  %v2296_v24 = vrot.slane %v2294_v7, 4  ;;  %v2005_v63 = vld [vmem:[#allocation2 + $0xd0] sm:$0xf] }
  0xd1   : > { %2523 = vrot.lane.b32.xlu0 %v13457_v8, %s13041_s12  ;;  %v2161_v8 = vrot.slane %v2160_v31, 4  ;;  %v2282_v12 = vrot.slane %v2280_v1, 4  ;;  %v2285_v14 = vrot.slane %v2283_v2, 5  ;;  %v13503_v16 = vpop.permute.xlu1 %1358  ;;  %v11999_v17 = vcombine.low %v2236_v59, %v2250_v10  ;;  %v12844_v0 = vld [vmem:[#allocation2 + $0x30] ss:$8 sps:$4 sm:$0xff]  }
  0xd2   : > { %2533 = vrot.lane.b32.xlu1 %v11997_v29, %s13041_s12  ;;  %v2208_v18 = vsel %vm13171_vm4, %v2203_v4, %v2207_v55  ;;  %v2216_v19 = vor.u32 %v2215_v5, %v2212_v56  ;;  %v2297_v25 = vshll.u32 %v2001_v43, 16  ;;  %v2303_v26 = vshll.u32 %v2002_v62, 16  ;;  %v2010_v55 = vld [vmem:[#allocation2 + $0xe4] sm:$0x1]  ;;  %v2003_v56 = vld [vmem:[#allocation2 + $0xc8] sm:$0xf] }
  0xd3   : > { %v2166_v53 = vsel %vm13171_vm4, %v2161_v8, %v2165_v21  ;;  %v1997_v21 = vld [vmem:[#allocation2 + $0xb0] sm:$0xf]  ;;  %v2286_v23 = vor.u32 %v2285_v14, %v2282_v12  ;;  %v2252_v29 = vshrl.u32 %v1995_v3, 16  ;;  %v2261_v31 = vshll.u32 %v1996_v15, 16  ;;  %v2004_v62 = vld [vmem:[#allocation2 + $0xcc] sm:$0x1] }
  0xd4   : > { %v11996_v58 = vcombine.low %v2152_v30, %v2166_v53  ;;  %v2217_v28 = vrot.slane %v2216_v19, 4  ;;  %v2255_v30 = vshll.u32 %v1995_v3, 16  ;;  %v2299_v34 = vrot.slane %v2297_v25, 5  ;;  %772 = vst.msk [vmem:[#allocation3 + $0x60] sm:$0xff] %vm768_vm8, %v12844_v0  ;;  %v2015_v25 = vld [vmem:[#allocation2 + $0x108] sm:$0xf] }
  0xd5   : > { %2527 = vrot.lane.b32.xlu0 %v11994_v48, %s13041_s12  ;;  %v12843_v48 = vld [vmem:[#allocation2] ss:$8 sps:$4 sm:$0xff]   ;;  %v2287_v33 = vrot.slane %v2286_v23, 4  ;;  %v2305_v35 = vrot.slane %v2303_v26, 5  ;;  %v2266_v36 = vshrl.u32 %v1997_v21, 16  ;;  %v2254_v8 = vrot.slane %v2252_v29, 4  ;;  %v13516_v47 = vpop.permute.xlu1 %1362  ;;  %v13537_v26 = vpop.permute.xlu0 %1360 }
  0xd6   : > { %769 = vst.msk [vmem:[#allocation3] sm:$0xff] %vm768_vm8, %v12843_v48  ;;  %2537 = vrot.lane.b32.xlu1 %v11999_v17, %s13041_s12  ;;  %v2222_v38 = vsel %vm13171_vm4, %v2217_v28, %v2221_v11  ;;  %v2257_v39 = vrot.slane %v2255_v30, 5  ;;  %v13512_v40 = vrot.slane %v2261_v31, 5  ;;  %v2300_v45 = vor.u32 %v2299_v34, %v2296_v24  ;;  %v12845_v11 = vld [vmem:[#allocation2 + $0x10] ss:$8 sps:$4 sm:$0xff]  }
  0xd7   : > { %v11998_v42 = vcombine.low %v2208_v18, %v2222_v38  ;;  %v2292_v43 = vsel %vm13171_vm4, %v2287_v33, %v2291_v20  ;;  %v2268_v46 = vrot.slane %v2266_v36, 4  ;;  %v2269_v53 = vshll.u32 %v1997_v21, 16  ;;  %1397 = vst.msk [vmem:[#allocation3] sm:$0xff] %vm1396_vm9, %v13490_v52  ;;  %1400 = vst.msk [vmem:[#allocation3 + $0x60] sm:$0xff] %vm1396_vm9, %v13487_v44  ;;  %v2006_v17 = vld [vmem:[#allocation2 + $0xd4] sm:$0x1] }
  0xd8   : > { %v2258_v50 = vor.u32 %v2257_v39, %v2254_v8  ;;  %v2275_v54 = vshll.u32 %v1998_v27, 16  ;;  %v2336_v59 = vshrl.u32 %v2007_v32, 16  ;;  %v2339_v60 = vshll.u32 %v2007_v32, 16  ;;  %770 = vst.msk [vmem:[#allocation3 + $0x20] sm:$0xff] %vm768_vm8, %v12845_v11  ;;  %v2016_v30 = vld [vmem:[#allocation2 + $0x10c] sm:$0x1] }
  0xd9   : > { %2531 = vrot.lane.b32.xlu0 %v11996_v58, %s13041_s12  ;;  %v2301_v58 = vrot.slane %v2300_v45, 4  ;;  %v2345_v61 = vshll.u32 %v2008_v37, 16  ;;  %v2271_v2 = vrot.slane %v2269_v53, 5  ;;  %v2350_v48 = vshrl.u32 %v2009_v41, 16  ;;  %v13533_v19 = vpop.permute.xlu1 %1366  ;;  %1398 = vst.msk [vmem:[#allocation3 + $0x20] sm:$0xff] %vm1396_vm9, %v13507_v22 }
  0xda   : > { %v2259_v1 = vrot.slane %v2258_v50, 4  ;;  %v2277_v3 = vrot.slane %v2275_v54, 5  ;;  %v2338_v5 = vrot.slane %v2336_v59, 4  ;;  %v2341_v6 = vrot.slane %v2339_v60, 5  ;;  %v2011_v22 = vld [vmem:[#allocation2 + $0xf8] sm:$0xf] }
  0xdb   : > { %v2306_v4 = vsel %vm13171_vm4, %v2301_v58, %v2305_v35  ;;  %v2347_v7 = vrot.slane %v2345_v61, 5  ;;  %v2272_v9 = vor.u32 %v2271_v2, %v2268_v46  ;;  %v2352_v10 = vrot.slane %v2350_v48, 4  ;;  %v2017_v35 = vld [vmem:[#allocation2 + $0x110] sm:$0xf]  ;;  %v2012_v54 = vld [vmem:[#allocation2 + $0xfc] sm:$0x1] }
  0xdc   : > { %v12001_v13 = vcombine.low %v2292_v43, %v2306_v4  ;;  %v2264_v52 = vsel %vm13171_vm4, %v2259_v1, %v13512_v40  ;;  %v2342_v12 = vor.u32 %v2341_v6, %v2338_v5  ;;  %v2353_v14 = vshll.u32 %v2009_v41, 16  ;;  %v2018_v41 = vld [vmem:[#allocation2 + $0x114] sm:$0x1] }
  0xdd   : > { %2535 = vrot.lane.b32.xlu0 %v11998_v42, %s13041_s12  ;;  %v2359_v15 = vshll.u32 %v2010_v55, 16  ;;  %v2308_v18 = vshrl.u32 %v2003_v56, 16  ;;  %v2273_v20 = vrot.slane %v2272_v9, 4  ;;  %v2311_v21 = vshll.u32 %v2003_v56, 16  ;;  %v2013_v55 = vld [vmem:[#allocation2 + $0x100] sm:$0xf] }
  0xde   : > { %2541 = vrot.lane.b32.xlu1 %v12001_v13, %s13041_s12  ;;  %v2317_v23 = vshll.u32 %v2004_v62, 16  ;;  %v2322_v24 = vshrl.u32 %v2005_v63, 16  ;;  %v2343_v44 = vrot.slane %v2342_v12, 4  ;;  %v2355_v27 = vrot.slane %v2353_v14, 5  ;;  %v13548_v62 = vpop.permute.xlu0 %1364  ;;  %v12847_v13 = vld [vmem:[#allocation2 + $0x50] ss:$8 sps:$4 sm:$0xff]  }
  0xdf   : > { %v2361_v28 = vrot.slane %v2359_v15, 5  ;;  %v2310_v29 = vrot.slane %v2308_v18, 4  ;;  %v2278_v31 = vsel %vm13171_vm4, %v2273_v20, %v2277_v3  ;;  %v2313_v32 = vrot.slane %v2311_v21, 5  ;;  %v13546_v56 = vpop.permute.xlu1 %1370  ;;  %v12846_v3 = vld [vmem:[#allocation2 + $0x60] ss:$8 sps:$4 sm:$0xff]   ;;  %773 = vst.msk [vmem:[#allocation3 + $0x80] sm:$0xff] %vm768_vm8, %v12847_v13 }
  0xe0   : > { %v2319_v33 = vrot.slane %v2317_v23, 5  ;;  %v2324_v34 = vrot.slane %v2322_v24, 4  ;;  %v12000_v36 = vcombine.low %v2264_v52, %v2278_v31  ;;  %v2348_v37 = vsel %vm13171_vm4, %v2343_v44, %v2347_v7  ;;  %v2014_v7 = vld [vmem:[#allocation2 + $0x104] sm:$0x1]  ;;  %774 = vst.msk [vmem:[#allocation3 + $0xa0] sm:$0xff] %vm768_vm8, %v12846_v3 }
  0xe1   : > { %v2356_v38 = vor.u32 %v2355_v27, %v2352_v10  ;;  %v2325_v8 = vshll.u32 %v2005_v63, 16  ;;  %v2314_v39 = vor.u32 %v2313_v32, %v2310_v29  ;;  %v2331_v40 = vshll.u32 %v2006_v17, 16  ;;  %v473_v12 = vld [vmem:[%s13119_s8 + $0x134] sm:$0x1]  ;;  %1402 = vst.msk [vmem:[#allocation3 + $0xa0] sm:$0xff] %vm1396_vm9, %v13503_v16  ;;  %1401 = vst.msk [vmem:[#allocation3 + $0x80] sm:$0xff] %vm1396_vm9, %v13518_v57 }
  0xe2   : > { %v2392_v42 = vshrl.u32 %v2015_v25, 16  ;;  %v2395_v43 = vshll.u32 %v2015_v25, 16  ;;  %2539 = vrot.lane.b32.xlu0 %v12000_v36, %s13041_s12  ;;  %v2401_v50 = vshll.u32 %v2016_v30, 16  ;;  %v2406_v53 = vshrl.u32 %v2017_v35, 16  ;;  %555 = vst.msk [vmem:[#allocation2 + $0x134] sm:$0x1] %vm478_vm1, %v473_v12 }
  0xe3   : > { %v2357_v45 = vrot.slane %v2356_v38, 4  ;;  %v2327_v46 = vrot.slane %v2325_v8, 5  ;;  %v2315_v58 = vrot.slane %v2314_v39, 4  ;;  %v2333_v59 = vrot.slane %v2331_v40, 5  ;;  %v2023_v20 = vld [vmem:[#allocation2 + $0x128] sm:$0xf] }
  0xe4   : > { %v2394_v60 = vrot.slane %v2392_v42, 4  ;;  %v2397_v61 = vrot.slane %v2395_v43, 5  ;;  %v2403_v1 = vrot.slane %v2401_v50, 5  ;;  %v2408_v2 = vrot.slane %v2406_v53, 4  ;;  %v2024_v44 = vld [vmem:[#allocation2 + $0x12c] sm:$0x1] }
  0xe5   : > { %v2362_v63 = vsel %vm13171_vm4, %v2357_v45, %v2361_v28  ;;  %v2328_v0 = vor.u32 %v2327_v46, %v2324_v34  ;;  %v2320_v4 = vsel %vm13171_vm4, %v2315_v58, %v2319_v33  ;;  %v2409_v6 = vshll.u32 %v2017_v35, 16  ;;  %v2025_v31 = vld [vmem:[#allocation2 + $0x130] sm:$0xf]  ;;  %v2020_v40 = vld [vmem:[#allocation2 + $0x11c] sm:$0x1] }
  0xe6   : > { %v12003_v48 = vcombine.low %v2348_v37, %v2362_v63  ;;  %v2398_v5 = vor.u32 %v2397_v61, %v2394_v60  ;;  %v2415_v9 = vshll.u32 %v2018_v41, 16  ;;  %v2364_v10 = vshrl.u32 %v2011_v22, 16  ;;  %v2019_v37 = vld [vmem:[#allocation2 + $0x118] sm:$0xf]  ;;  %v2021_v45 = vld [vmem:[#allocation2 + $0x120] sm:$0xf] }
  0xe7   : > { %v2329_v52 = vrot.slane %v2328_v0, 4  ;;  %v2367_v11 = vshll.u32 %v2011_v22, 16  ;;  %v2411_v15 = vrot.slane %v2409_v6, 5  ;;  %v2373_v17 = vshll.u32 %v2012_v54, 16  ;;  %v13569_v32 = vpop.permute.xlu0 %1368  ;;  %v2022_v3 = vld [vmem:[#allocation2 + $0x124] sm:$0x1] }
  0xe8   : > { %2545 = vrot.lane.b32.xlu1 %v12003_v48, %s13041_s12  ;;  %v2399_v14 = vrot.slane %v2398_v5, 4  ;;  %v2378_v18 = vshrl.u32 %v2013_v55, 16  ;;  %v2417_v23 = vrot.slane %v2415_v9, 5  ;;  %v2366_v24 = vrot.slane %v2364_v10, 4 }
  0xe9   : > { %v2334_v21 = vsel %vm13171_vm4, %v2329_v52, %v2333_v59  ;;  %v2369_v25 = vrot.slane %v2367_v11, 5  ;;  %v2412_v29 = vor.u32 %v2411_v15, %v2408_v2  ;;  %v2375_v30 = vrot.slane %v2373_v17, 5  ;;  %v2026_v60 = vld [vmem:[#allocation2 + $0x134] sm:$0x1] }
  0xea   : > { %v12002_v28 = vcombine.low %v2320_v4, %v2334_v21  ;;  %v2404_v16 = vsel %vm13171_vm4, %v2399_v14, %v2403_v1  ;;  %v2380_v34 = vrot.slane %v2378_v18, 4  ;;  %v2381_v35 = vshll.u32 %v2013_v55, 16  ;;  %v12848_v4 = vld [vmem:[#allocation2 + $0x80] ss:$8 sps:$4 sm:$0xff]   ;;  %v12849_v18 = vld [vmem:[#allocation2 + $0x70] ss:$8 sps:$4 sm:$0xff]  }
  0xeb   : > { %v2370_v33 = vor.u32 %v2369_v25, %v2366_v24  ;;  %v2387_v36 = vshll.u32 %v2014_v7, 16  ;;  %v2413_v57 = vrot.slane %v2412_v29, 4  ;;  %v2448_v38 = vshrl.u32 %v2023_v20, 16  ;;  %776 = vst.msk [vmem:[#allocation3 + $0xe0] sm:$0xff] %vm768_vm8, %v12848_v4  ;;  %775 = vst.msk [vmem:[#allocation3 + $0xc0] sm:$0xff] %vm768_vm8, %v12849_v18 }
  0xec   : > { %2543 = vrot.lane.b32.xlu0 %v12002_v28, %s13041_s12  ;;  %v2451_v8 = vshll.u32 %v2023_v20, 16  ;;  %v2457_v39 = vshll.u32 %v2024_v44, 16  ;;  %v2383_v42 = vrot.slane %v2381_v35, 5  ;;  %v2462_v22 = vshrl.u32 %v2025_v31, 16  ;;  %1404 = vst.msk [vmem:[#allocation3 + $0xe0] sm:$0xff] %vm1396_vm9, %v13516_v47  ;;  %1403 = vst.msk [vmem:[#allocation3 + $0xc0] sm:$0xff] %vm1396_vm9, %v13537_v26 }
  0xed   : > { %v2371_v41 = vrot.slane %v2370_v33, 4  ;;  %v2389_v43 = vrot.slane %v2387_v36, 5  ;;  %v2418_v46 = vsel %vm13171_vm4, %v2413_v57, %v2417_v23  ;;  %v2450_v50 = vrot.slane %v2448_v38, 4  ;;  %v2592_v44 = vld [vmem:[#allocation2 + $0x18] sm:$0xe] }
  0xee   : > { %v2453_v53 = vrot.slane %v2451_v8, 5  ;;  %v13574_v54 = vrot.slane %v2457_v39, 5  ;;  %v12005_v55 = vcombine.low %v2404_v16, %v2418_v46  ;;  %v2384_v59 = vor.u32 %v2383_v42, %v2380_v34  ;;  %v2593_v28 = vld [vmem:[#allocation2 + $0x1c] sm:$0x1]  ;;  %v2595_v33 = vld [vmem:[#allocation2 + $0x24] sm:$0x1] }
  0xef   : > { %v2376_v58 = vsel %vm13171_vm4, %v2371_v41, %v2375_v30  ;;  %v2464_v61 = vrot.slane %v2462_v22, 4  ;;  %v2465_v1 = vshll.u32 %v2025_v31, 16  ;;  %v2471_v2 = vshll.u32 %v2026_v60, 16  ;;  %v2594_v31 = vld [vmem:[#allocation2 + $0x20] sm:$0xe] }
  0xf0   : > { %v13565_v27 = vpop.permute.xlu1 %1374  ;;  %v2454_v0 = vor.u32 %v2453_v53, %v2450_v50  ;;  %v2420_v48 = vshrl.u32 %v2019_v37, 16  ;;  %2549 = vrot.lane.b32.xlu1 %v12005_v55, %s13041_s12  ;;  %v2385_v6 = vrot.slane %v2384_v59, 4  ;;  %v2423_v7 = vshll.u32 %v2019_v37, 16  ;;  %v2588_v57 = vld [vmem:[#allocation2 + $0x8] sm:$0xe] }
  0xf1   : > { %v2429_v13 = vshll.u32 %v2020_v40, 16  ;;  %v2434_v52 = vshrl.u32 %v2021_v45, 16  ;;  %v2467_v10 = vrot.slane %v2465_v1, 5  ;;  %v2473_v14 = vrot.slane %v2471_v2, 5  ;;  %v2589_v41 = vld [vmem:[#allocation2 + $0xc] sm:$0x1] }
  0xf2   : > { %v2455_v9 = vrot.slane %v2454_v0, 4  ;;  %v2422_v11 = vrot.slane %v2420_v48, 4  ;;  %v2390_v12 = vsel %vm13171_vm4, %v2385_v6, %v2389_v43  ;;  %v2425_v15 = vrot.slane %v2423_v7, 5  ;;  %v2590_v50 = vld [vmem:[#allocation2 + $0x10] sm:$0xe] }
  0xf3   : > { %v2431_v17 = vrot.slane %v2429_v13, 5  ;;  %v12004_v21 = vcombine.low %v2376_v58, %v2390_v12  ;;  %v2468_v23 = vor.u32 %v2467_v10, %v2464_v61  ;;  %v2436_v24 = vrot.slane %v2434_v52, 4  ;;  %v2591_v26 = vld [vmem:[#allocation2 + $0x14] sm:$0x1]  ;;  %v12850_v0 = vld [vmem:[#allocation2 + $0xb0] ss:$8 sps:$4 sm:$0xff]  }
  0xf4   : > { %v13580_v5 = vpop.permute.xlu0 %1372  ;;  %v2437_v25 = vshll.u32 %v2021_v45, 16  ;;  %v2460_v16 = vsel %vm13171_vm4, %v2455_v9, %v13574_v54  ;;  %v2426_v29 = vor.u32 %v2425_v15, %v2422_v11  ;;  %v2443_v30 = vshll.u32 %v2022_v3, 16  ;;  %v12851_v48 = vld [vmem:[#allocation2 + $0xa0] ss:$8 sps:$4 sm:$0xff]   ;;  %v2600_v4 = vld [vmem:[#allocation2 + $0x38] sm:$0xe] }
  0xf5   : > { %v12010_v47 = vrot.slane %v2592_v44, 9  ;;  %2547 = vrot.lane.b32.xlu0 %v12004_v21, %s13041_s12  ;;  %v2469_v34 = vrot.slane %v2468_v23, 4  ;;  %v2726_v36 = vrot.slane %v2593_v28, 5  ;;  %v12011_v37 = vrot.slane %v2594_v31, 9  ;;  %778 = vst.msk [vmem:[#allocation3 + $0x120] sm:$0xff] %vm768_vm8, %v12850_v0  ;;  %777 = vst.msk [vmem:[#allocation3 + $0x100] sm:$0xff] %vm768_vm8, %v12851_v48 }
  0xf6   : > { %v2439_v35 = vrot.slane %v2437_v25, 5  ;;  %v2427_v8 = vrot.slane %v2426_v29, 4  ;;  %v2445_v39 = vrot.slane %v2443_v30, 5  ;;  %v2730_v40 = vrot.slane %v2595_v33, 5  ;;  %v2601_v52 = vld [vmem:[#allocation2 + $0x3c] sm:$0x1] }
  0xf7   : > { %v12008_v42 = vrot.slane %v2588_v57, 9  ;;  %v2474_v22 = vsel %vm13171_vm4, %v2469_v34, %v2473_v14  ;;  %v2727_v46 = vsel %vm13333_vm7, %v12010_v47, %v2726_v36  ;;  %v2718_v53 = vrot.slane %v2589_v41, 5  ;;  %v2602_v9 = vld [vmem:[#allocation2 + $0x40] sm:$0xe]  ;;  %v2603_v10 = vld [vmem:[#allocation2 + $0x44] sm:$0x1] }
  0xf8   : > { %v13578_v63 = vpop.permute.xlu1 %1378  ;;  %v2440_v45 = vor.u32 %v2439_v35, %v2436_v24  ;;  %v12007_v54 = vcombine.low %v2460_v16, %v2474_v22  ;;  %v2731_v55 = vsel %vm13333_vm7, %v12011_v37, %v2730_v40  ;;  %v12009_v58 = vrot.slane %v2590_v50, 9  ;;  %1406 = vst.msk [vmem:[#allocation3 + $0x120] sm:$0xff] %vm1396_vm9, %v13533_v19  ;;  %v2596_v15 = vld [vmem:[#allocation2 + $0x28] sm:$0xe]  ;;  %1405 = vst.msk [vmem:[#allocation3 + $0x100] sm:$0xff] %vm1396_vm9, %v13548_v62 }
  0xf9   : > { %v2432_v59 = vsel %vm13171_vm4, %v2427_v8, %v2431_v17  ;;  %v2722_v61 = vrot.slane %v2591_v26, 5  ;;  %v12041_v2 = vcombine.low %v2727_v46, %v2731_v55  ;;  %v2719_v3 = vsel %vm13333_vm7, %v12008_v42, %v2718_v53  ;;  %v2597_v17 = vld [vmem:[#allocation2 + $0x2c] sm:$0x1]  ;;  %v2598_v24 = vld [vmem:[#allocation2 + $0x30] sm:$0xe] }
  0xfa   : > { %v2441_v60 = vrot.slane %v2440_v45, 4  ;;  %2553 = vrot.lane.b32.xlu1 %v12007_v54, %s13041_s12  ;;  %v12014_v12 = vrot.slane %v2600_v4, 9  ;;  %v2742_v14 = vrot.slane %v2601_v52, 5  ;;  %v12015_v21 = vrot.slane %v2602_v9, 9  ;;  %v2599_v25 = vld [vmem:[#allocation2 + $0x34] sm:$0x1] }
  0xfb   : > { %v2723_v13 = vsel %vm13333_vm7, %v12009_v58, %v2722_v61  ;;  %v2746_v23 = vrot.slane %v2603_v10, 5  ;;  %v12012_v28 = vrot.slane %v2596_v15, 9  ;;  %v2734_v16 = vrot.slane %v2597_v17, 5  ;;  %v12852_v33 = vld [vmem:[#allocation2 + $0xd0] ss:$8 sps:$4 sm:$0xff]  }
  0xfc   : > { %v13588_v20 = vpop.permute.xlu1 %1722  ;;  %v2446_v7 = vsel %vm13171_vm4, %v2441_v60, %v2445_v39  ;;  %v12040_v18 = vcombine.low %v2719_v3, %v2723_v13  ;;  %v2743_v19 = vsel %vm13333_vm7, %v12014_v12, %v2742_v14  ;;  %v12013_v29 = vrot.slane %v2598_v24, 9  ;;  %v12853_v35 = vld [vmem:[#allocation2 + $0xc0] ss:$8 sps:$4 sm:$0xff]   ;;  %780 = vst.msk [vmem:[#allocation3 + $0x160] sm:$0xff] %vm768_vm8, %v12852_v33  ;;  %v2609_v57 = vld [vmem:[#allocation2 + $0x6c] sm:$0x1] }
  0xfd   : > { %v12006_v11 = vcombine.low %v2432_v59, %v2446_v7  ;;  %v2747_v62 = vsel %vm13333_vm7, %v12015_v21, %v2746_v23  ;;  %v2738_v31 = vrot.slane %v2599_v25, 5  ;;  %v2735_v34 = vsel %vm13333_vm7, %v12012_v28, %v2734_v16  ;;  %1770 = vst.msk [vmem:[#allocation3 + $0x20] sm:$0xff] %vm1768_vm10, %v13588_v20  ;;  %v2608_v37 = vld [vmem:[#allocation2 + $0x68] sm:$0xe]  ;;  %v2610_v8 = vld [vmem:[#allocation2 + $0x70] sm:$0xe] }
  0xfe   : > { %2894 = vrot.lane.b32.xlu1 %v12041_v2, %s13042_s13  ;;  %v12043_v47 = vcombine.low %v2743_v19, %v2747_v62  ;;  %1408 = vst.msk [vmem:[#allocation3 + $0x160] sm:$0xff] %vm1396_vm9, %v13546_v56  ;;  %v2611_v40 = vld [vmem:[#allocation2 + $0x74] sm:$0x1]  ;;  %v12018_v41 = vrot.slane %v2608_v37, 9  ;;  %v2758_v42 = vrot.slane %v2609_v57, 5 }
  0xff   : > { %v13597_v38 = vpop.permute.xlu0 %1376  ;;  %2551 = vrot.lane.b32.xlu0 %v12006_v11, %s13041_s12  ;;  %v2739_v36 = vsel %vm13333_vm7, %v12013_v29, %v2738_v31  ;;  %779 = vst.msk [vmem:[#allocation3 + $0x140] sm:$0xff] %vm768_vm8, %v12853_v35  ;;  %v2762_v45 = vrot.slane %v2611_v40, 5  ;;  %v2604_v46 = vld [vmem:[#allocation2 + $0x58] sm:$0xe]  ;;  %v2605_v50 = vld [vmem:[#allocation2 + $0x5c] sm:$0x1] }
 0x100   : > { %v1727_v43 = vpop.permute.xlu1 %1726  ;;  %v12042_v20 = vcombine.low %v2735_v34, %v2739_v36  ;;  %1407 = vst.msk [vmem:[#allocation3 + $0x140] sm:$0xff] %vm1396_vm9, %v13569_v32  ;;  %v2759_v56 = vsel %vm13333_vm7, %v12018_v41, %v2758_v42  ;;  %v2606_v26 = vld [vmem:[#allocation2 + $0x60] sm:$0xe]  ;;  %v2607_v53 = vld [vmem:[#allocation2 + $0x64] sm:$0x1]  ;;  %v12016_v54 = vrot.slane %v2604_v46, 9 }
 0x101   : > { %1772 = vst.msk [vmem:[#allocation3 + $0x60] sm:$0xff] %vm1768_vm10, %v1727_v43  ;;  %v12019_v43 = vrot.slane %v2610_v8, 9  ;;  %v2750_v55 = vrot.slane %v2605_v50, 5  ;;  %v12017_v59 = vrot.slane %v2606_v26, 9  ;;  %v2754_v60 = vrot.slane %v2607_v53, 5 }
 0x102   : > { %2898 = vrot.lane.b32.xlu1 %v12043_v47, %s13042_s13  ;;  %v12855_v48 = vld [vmem:[#allocation2 + $0xf0] ss:$8 sps:$4 sm:$0xff]   ;;  %v2616_v4 = vld [vmem:[#allocation2 + $0x88] sm:$0xe]  ;;  %v2619_v52 = vld [vmem:[#allocation2 + $0x94] sm:$0x1] }
 0x103   : > { %v1721_v1 = vpop.permute.xlu0 %1720  ;;  %2892 = vrot.lane.b32.xlu0 %v12040_v18, %s13042_s13  ;;  %v2763_v58 = vsel %vm13333_vm7, %v12019_v43, %v2762_v45  ;;  %v2751_v0 = vsel %vm13333_vm7, %v12016_v54, %v2750_v55  ;;  %v2755_v3 = vsel %vm13333_vm7, %v12017_v59, %v2754_v60  ;;  %v2618_v13 = vld [vmem:[#allocation2 + $0x90] sm:$0xe]  ;;  %v12022_v9 = vrot.slane %v2616_v4, 9  ;;  %781 = vst.msk [vmem:[#allocation3 + $0x180] sm:$0xff] %vm768_vm8, %v12855_v48  ;;  %v2612_v14 = vld [vmem:[#allocation2 + $0x78] sm:$0xe] }
 0x104   : > { %v1731_v6 = vpop.permute.xlu1 %1730  ;;  %1769 = vst.msk [vmem:[#allocation3] sm:$0xff] %vm1768_vm10, %v1721_v1  ;;  %v12045_v32 = vcombine.low %v2759_v56, %v2763_v58  ;;  %v12854_v1 = vld [vmem:[#allocation2 + $0x100] ss:$8 sps:$4 sm:$0xff]   ;;  %v12044_v7 = vcombine.low %v2751_v0, %v2755_v3  ;;  %v12023_v11 = vrot.slane %v2618_v13, 9  ;;  %v2778_v12 = vrot.slane %v2619_v52, 5 }
 0x105   : > { %1774 = vst.msk [vmem:[#allocation3 + $0xa0] sm:$0xff] %vm1768_vm10, %v1731_v6  ;;  %v2617_v6 = vld [vmem:[#allocation2 + $0x8c] sm:$0x1]  ;;  %v2613_v15 = vld [vmem:[#allocation2 + $0x7c] sm:$0x1]  ;;  %v12020_v24 = vrot.slane %v2612_v14, 9 }
 0x106   : > { %2902 = vrot.lane.b32.xlu1 %v12045_v32, %s13042_s13  ;;  %782 = vst.msk [vmem:[#allocation3 + $0x1a0] sm:$0xff] %vm768_vm8, %v12854_v1  ;;  %v2774_v10 = vrot.slane %v2617_v6, 5  ;;  %v2614_v21 = vld [vmem:[#allocation2 + $0x80] sm:$0xe]  ;;  %v2615_v23 = vld [vmem:[#allocation2 + $0x84] sm:$0x1] }
 0x107   : > { %v1725_v44 = vpop.permute.xlu0 %1724  ;;  %2896 = vrot.lane.b32.xlu0 %v12042_v20, %s13042_s13  ;;  %1410 = vst.msk [vmem:[#allocation3 + $0x1a0] sm:$0xff] %vm1396_vm9, %v13565_v27  ;;  %1409 = vst.msk [vmem:[#allocation3 + $0x180] sm:$0xff] %vm1396_vm9, %v13580_v5  ;;  %v2766_v25 = vrot.slane %v2613_v15, 5  ;;  %v12021_v19 = vrot.slane %v2614_v21, 9  ;;  %v2770_v28 = vrot.slane %v2615_v23, 5 }
 0x108   : > { %v1735_v30 = vpop.permute.xlu1 %1734  ;;  %1771 = vst.msk [vmem:[#allocation3 + $0x40] sm:$0xff] %vm1768_vm10, %v1725_v44  ;;  %v2775_v18 = vsel %vm13333_vm7, %v12022_v9, %v2774_v10  ;;  %v2779_v44 = vsel %vm13333_vm7, %v12023_v11, %v2778_v12  ;;  %v12856_v29 = vld [vmem:[#allocation2 + $0x120] ss:$8 sps:$4 sm:$0xff]   ;;  %v12857_v62 = vld [vmem:[#allocation2 + $0x110] ss:$8 sps:$4 sm:$0xff]  }
 0x109   : > { %1776 = vst.msk [vmem:[#allocation3 + $0xe0] sm:$0xff] %vm1768_vm10, %v1735_v30  ;;  %v12047_v16 = vcombine.low %v2775_v18, %v2779_v44  ;;  %v2767_v5 = vsel %vm13333_vm7, %v12020_v24, %v2766_v25  ;;  %v2771_v30 = vsel %vm13333_vm7, %v12021_v19, %v2770_v28  ;;  %v2624_v31 = vld [vmem:[#allocation2 + $0xb8] sm:$0xe]  ;;  %v2625_v33 = vld [vmem:[#allocation2 + $0xbc] sm:$0x1] }
 0x10a   : > { %v12046_v34 = vcombine.low %v2767_v5, %v2771_v30  ;;  %784 = vst.msk [vmem:[#allocation3 + $0x1e0] sm:$0xff] %vm768_vm8, %v12856_v29  ;;  %v2626_v35 = vld [vmem:[#allocation2 + $0xc0] sm:$0xe]  ;;  %v2627_v36 = vld [vmem:[#allocation2 + $0xc4] sm:$0x1]  ;;  %v12026_v37 = vrot.slane %v2624_v31, 9 }
 0x10b   : > { %v1729_v39 = vpop.permute.xlu0 %1728  ;;  %2900 = vrot.lane.b32.xlu0 %v12044_v7, %s13042_s13  ;;  %2906 = vrot.lane.b32.xlu1 %v12047_v16, %s13042_s13  ;;  %v2790_v57 = vrot.slane %v2625_v33, 5  ;;  %1412 = vst.msk [vmem:[#allocation3 + $0x1e0] sm:$0xff] %vm1396_vm9, %v13578_v63  ;;  %v2794_v20 = vrot.slane %v2627_v36, 5  ;;  %v2620_v40 = vld [vmem:[#allocation2 + $0xa8] sm:$0xe] }
 0x10c   : > { %1773 = vst.msk [vmem:[#allocation3 + $0x80] sm:$0xff] %vm1768_vm10, %v1729_v39  ;;  %v1739_v22 = vpop.permute.xlu1 %1738  ;;  %v12027_v39 = vrot.slane %v2626_v35, 9  ;;  %v2621_v41 = vld [vmem:[#allocation2 + $0xac] sm:$0x1]  ;;  %v2622_v43 = vld [vmem:[#allocation2 + $0xb0] sm:$0xe] }
 0x10d   : > { %1778 = vst.msk [vmem:[#allocation3 + $0x120] sm:$0xff] %vm1768_vm10, %v1739_v22  ;;  %v2791_v42 = vsel %vm13333_vm7, %v12026_v37, %v2790_v57  ;;  %v2623_v22 = vld [vmem:[#allocation2 + $0xb4] sm:$0x1]  ;;  %v12024_v45 = vrot.slane %v2620_v40, 9  ;;  %v2782_v46 = vrot.slane %v2621_v41, 5  ;;  %v12025_v50 = vrot.slane %v2622_v43, 9 }
 0x10e   : > { %783 = vst.msk [vmem:[#allocation3 + $0x1c0] sm:$0xff] %vm768_vm8, %v12857_v62  ;;  %v2795_v63 = vsel %vm13333_vm7, %v12027_v39, %v2794_v20  ;;  %v2786_v56 = vrot.slane %v2623_v22, 5  ;;  %v2632_v26 = vld [vmem:[#allocation2 + $0xd8] sm:$0xe]  ;;  %v2633_v53 = vld [vmem:[#allocation2 + $0xdc] sm:$0x1] }
 0x10f   : > { %v1733_v61 = vpop.permute.xlu0 %1732  ;;  %2904 = vrot.lane.b32.xlu0 %v12046_v34, %s13042_s13  ;;  %1411 = vst.msk [vmem:[#allocation3 + $0x1c0] sm:$0xff] %vm1396_vm9, %v13597_v38  ;;  %v12049_v55 = vcombine.low %v2791_v42, %v2795_v63  ;;  %v2783_v38 = vsel %vm13333_vm7, %v12024_v45, %v2782_v46  ;;  %v2634_v58 = vld [vmem:[#allocation2 + $0xe0] sm:$0xe]  ;;  %v2635_v59 = vld [vmem:[#allocation2 + $0xe4] sm:$0x1]  ;;  %v12030_v60 = vrot.slane %v2632_v26, 9 }
 0x110   : > { %1775 = vst.msk [vmem:[#allocation3 + $0xc0] sm:$0xff] %vm1768_vm10, %v1733_v61  ;;  %v1743_v2 = vpop.permute.xlu1 %1742  ;;  %v2806_v61 = vrot.slane %v2633_v53, 5  ;;  %v2787_v0 = vsel %vm13333_vm7, %v12025_v50, %v2786_v56  ;;  %v12031_v1 = vrot.slane %v2634_v58, 9  ;;  %v2628_v3 = vld [vmem:[#allocation2 + $0xc8] sm:$0xe] }
 0x111   : > { %1780 = vst.msk [vmem:[#allocation3 + $0x160] sm:$0xff] %vm1768_vm10, %v1743_v2  ;;  %v2810_v2 = vrot.slane %v2635_v59, 5  ;;  %v2629_v48 = vld [vmem:[#allocation2 + $0xcc] sm:$0x1]  ;;  %2910 = vrot.lane.b32.xlu1 %v12049_v55, %s13042_s13  ;;  %v12048_v4 = vcombine.low %v2783_v38, %v2787_v0  ;;  %v2630_v7 = vld [vmem:[#allocation2 + $0xd0] sm:$0xe] }
 0x112   : > { %v2807_v6 = vsel %vm13333_vm7, %v12030_v60, %v2806_v61  ;;  %v2631_v13 = vld [vmem:[#allocation2 + $0xd4] sm:$0x1]  ;;  %v12028_v52 = vrot.slane %v2628_v3, 9  ;;  %v2798_v9 = vrot.slane %v2629_v48, 5  ;;  %v12029_v11 = vrot.slane %v2630_v7, 9 }
 0x113   : > { %v1737_v17 = vpop.permute.xlu0 %1736  ;;  %v2811_v10 = vsel %vm13333_vm7, %v12031_v1, %v2810_v2  ;;  %v2802_v12 = vrot.slane %v2631_v13, 5  ;;  %v2640_v14 = vld [vmem:[#allocation2 + $0x108] sm:$0xe]  ;;  %v2641_v15 = vld [vmem:[#allocation2 + $0x10c] sm:$0x1]  ;;  %2908 = vrot.lane.b32.xlu0 %v12048_v4, %s13042_s13 }
 0x114   : > { %1777 = vst.msk [vmem:[#allocation3 + $0x100] sm:$0xff] %vm1768_vm10, %v1737_v17  ;;  %v1747_v27 = vpop.permute.xlu1 %1746  ;;  %v12051_v18 = vcombine.low %v2807_v6, %v2811_v10  ;;  %v2799_v21 = vsel %vm13333_vm7, %v12028_v52, %v2798_v9  ;;  %v2642_v23 = vld [vmem:[#allocation2 + $0x110] sm:$0xe]  ;;  %v2643_v24 = vld [vmem:[#allocation2 + $0x114] sm:$0x1]  ;;  %v12034_v25 = vrot.slane %v2640_v14, 9 }
 0x115   : > { %1782 = vst.msk [vmem:[#allocation3 + $0x1a0] sm:$0xff] %vm1768_vm10, %v1747_v27  ;;  %v2822_v27 = vrot.slane %v2641_v15, 5  ;;  %v2803_v19 = vsel %vm13333_vm7, %v12029_v11, %v2802_v12  ;;  %v12035_v28 = vrot.slane %v2642_v23, 9  ;;  %v2826_v16 = vrot.slane %v2643_v24, 5  ;;  %v2636_v5 = vld [vmem:[#allocation2 + $0xf8] sm:$0xe] }
 0x116   : > { %v2637_v29 = vld [vmem:[#allocation2 + $0xfc] sm:$0x1]  ;;  %2914 = vrot.lane.b32.xlu1 %v12051_v18, %s13042_s13  ;;  %v12050_v30 = vcombine.low %v2799_v21, %v2803_v19  ;;  %v2638_v31 = vld [vmem:[#allocation2 + $0x100] sm:$0xe]  ;;  %v2639_v33 = vld [vmem:[#allocation2 + $0x104] sm:$0x1] }
 0x117   : > { %v1741_v47 = vpop.permute.xlu0 %1740  ;;  %v2823_v62 = vsel %vm13333_vm7, %v12034_v25, %v2822_v27  ;;  %v2814_v34 = vrot.slane %v2637_v29, 5  ;;  %v2827_v35 = vsel %vm13333_vm7, %v12035_v28, %v2826_v16  ;;  %v12033_v36 = vrot.slane %v2638_v31, 9  ;;  %v2648_v57 = vld [vmem:[#allocation2 + $0x128] sm:$0xe]  ;;  %v2650_v41 = vld [vmem:[#allocation2 + $0x130] sm:$0xe] }
 0x118   : > { %1779 = vst.msk [vmem:[#allocation3 + $0x140] sm:$0xff] %vm1768_vm10, %v1741_v47  ;;  %v1751_v8 = vpop.permute.xlu1 %1750  ;;  %v12032_v47 = vrot.slane %v2636_v5, 9  ;;  %v2818_v37 = vrot.slane %v2639_v33, 5  ;;  %2912 = vrot.lane.b32.xlu0 %v12050_v30, %s13042_s13  ;;  %v12053_v20 = vcombine.low %v2823_v62, %v2827_v35  ;;  %v2651_v42 = vld [vmem:[#allocation2 + $0x134] sm:$0x1]  ;;  %v12038_v43 = vrot.slane %v2648_v57, 9 }
 0x119   : > { %1784 = vst.msk [vmem:[#allocation3 + $0x1e0] sm:$0xff] %vm1768_vm10, %v1751_v8  ;;  %v2649_v8 = vld [vmem:[#allocation2 + $0x12c] sm:$0x1]  ;;  %v12039_v63 = vrot.slane %v2650_v41, 9  ;;  %v2842_v50 = vrot.slane %v2651_v42, 5 }
 0x11a   : > { %v2815_v40 = vsel %vm13333_vm7, %v12032_v47, %v2814_v34  ;;  %v2838_v22 = vrot.slane %v2649_v8, 5  ;;  %v2819_v46 = vsel %vm13333_vm7, %v12033_v36, %v2818_v37  ;;  %v2644_v56 = vld [vmem:[#allocation2 + $0x118] sm:$0xe]  ;;  %v2645_v26 = vld [vmem:[#allocation2 + $0x11c] sm:$0x1]  ;;  %2918 = vrot.lane.b32.xlu1 %v12053_v20, %s13042_s13 }
 0x11b   : > { %v1745_v54 = vpop.permute.xlu0 %1744  ;;  %v12052_v53 = vcombine.low %v2815_v40, %v2819_v46  ;;  %v2646_v55 = vld [vmem:[#allocation2 + $0x120] sm:$0xe]  ;;  %v2647_v38 = vld [vmem:[#allocation2 + $0x124] sm:$0x1]  ;;  %v12036_v58 = vrot.slane %v2644_v56, 9  ;;  %v2830_v59 = vrot.slane %v2645_v26, 5  ;;  %v2843_v60 = vsel %vm13333_vm7, %v12039_v63, %v2842_v50 }
 0x11c   : > { %1781 = vst.msk [vmem:[#allocation3 + $0x180] sm:$0xff] %vm1768_vm10, %v1745_v54  ;;  %v1901_v32 = vpop.permute.xlu1 %1900  ;;  %v2839_v54 = vsel %vm13333_vm7, %v12038_v43, %v2838_v22  ;;  %v12037_v61 = vrot.slane %v2646_v55, 9  ;;  %v414_v4 = vld [vmem:[%s13119_s8 + $0x48] sm:$0xf]  ;;  %v12859_v52 = vld [vmem:[#allocation2 + $0x10] ss:$8 sps:$4 sm:$0xff]  }
 0x11d   : > { %1948 = vst.msk [vmem:[#allocation3 + $0x20] sm:$0xff] %vm1946_vm11, %v1901_v32  ;;  %v2834_v32 = vrot.slane %v2647_v38, 5  ;;  %2916 = vrot.lane.b32.xlu0 %v12052_v53, %s13042_s13  ;;  %v12055_v1 = vcombine.low %v2839_v54, %v2843_v60  ;;  %v2831_v2 = vsel %vm13333_vm7, %v12036_v58, %v2830_v59  ;;  %v12858_v7 = vld [vmem:[#allocation2 + $0x20] ss:$8 sps:$4 sm:$0xff]   ;;  %v434_v10 = vld [vmem:[%s13119_s8 + $0x98] sm:$0xf] }
 0x11e   : > { %496 = vst.msk [vmem:[#allocation2 + $0x48] sm:$0xf] %vm476_vm0, %v414_v4  ;;  %516 = vst.msk [vmem:[#allocation2 + $0x98] sm:$0xf] %vm476_vm0, %v434_v10  ;;  %v12861_v12 = vld [vmem:[#allocation2 + $0x30] ss:$8 sps:$4 sm:$0xff]  }
 0x11f   : > { %v1749_v17 = vpop.permute.xlu0 %1748  ;;  %v2835_v48 = vsel %vm13333_vm7, %v12037_v61, %v2834_v32  ;;  %2922 = vrot.lane.b32.xlu1 %v12055_v1, %s13042_s13  ;;  %v454_v14 = vld [vmem:[%s13119_s8 + $0xe8] sm:$0xf]  ;;  %v12862_v18 = vld [vmem:[#allocation2 + $0x70] ss:$8 sps:$4 sm:$0xff]   ;;  %v3140_v19 = vld [vmem:[#allocation2 + $0x24] sm:$0x1] }
 0x120   : > { %1783 = vst.msk [vmem:[#allocation3 + $0x1c0] sm:$0xff] %vm1768_vm10, %v1749_v17  ;;  %v1905_v44 = vpop.permute.xlu1 %1904  ;;  %v12054_v6 = vcombine.low %v2831_v2, %v2835_v48  ;;  %v12863_v23 = vld [vmem:[#allocation2 + $0x60] ss:$8 sps:$4 sm:$0xff]   ;;  %v474_v25 = vld [vmem:[%s13119_s8 + $0x138] sm:$0xf]  ;;  %v3237_v47 = vshll.u32 %v3140_v19, 16 }
 0x121   : > { %1950 = vst.msk [vmem:[#allocation3 + $0x60] sm:$0xff] %vm1946_vm11, %v1905_v44  ;;  %v3139_v44 = vld [vmem:[#allocation2 + $0x20] sm:$0xf]  ;;  %v3141_v5 = vld [vmem:[#allocation2 + $0x28] sm:$0xf] }
 0x122   : > { %2920 = vrot.lane.b32.xlu0 %v12054_v6, %s13042_s13  ;;  %536 = vst.msk [vmem:[#allocation2 + $0xe8] sm:$0xf] %vm476_vm0, %v454_v14  ;;  %556 = vst.msk [vmem:[#allocation2 + $0x138] sm:$0xf] %vm476_vm0, %v474_v25  ;;  %v12865_v16 = vld [vmem:[#allocation2 + $0x80] ss:$8 sps:$4 sm:$0xff]  }
 0x123   : > { %v1899_v39 = vpop.permute.xlu0 %1898  ;;  %3072 = vrot.lane.b32.xlu1 %v12858_v7, %s13043_s14  ;;  %v12866_v30 = vld [vmem:[#allocation2 + $0xc0] ss:$8 sps:$4 sm:$0xff]   ;;  %v3142_v62 = vld [vmem:[#allocation2 + $0x2c] sm:$0x1]  ;;  %v3228_v31 = vshrl.u32 %v3139_v44, 16  ;;  %v3231_v33 = vshll.u32 %v3139_v44, 16 }
 0x124   : > { %1947 = vst.msk [vmem:[#allocation3] sm:$0xff] %vm1946_vm11, %v1899_v39  ;;  %v1909_v45 = vpop.permute.xlu1 %1908  ;;  %v3242_v34 = vshrl.u32 %v3141_v5, 16  ;;  %v12867_v35 = vld [vmem:[#allocation2 + $0xb0] ss:$8 sps:$4 sm:$0xff]   ;;  %v3245_v36 = vshll.u32 %v3141_v5, 16  ;;  %v3251_v37 = vshll.u32 %v3142_v62, 16 }
 0x125   : > { %1952 = vst.msk [vmem:[#allocation3 + $0xa0] sm:$0xff] %vm1946_vm11, %v1909_v45  ;;  %v12860_v17 = vld [vmem:[#allocation2 + $0x40] ss:$8 sps:$4 sm:$0xff]   ;;  %v12864_v27 = vld [vmem:[#allocation2 + $0x90] ss:$8 sps:$4 sm:$0xff]   ;;  %v3230_v39 = vrot.slane %v3228_v31, 4 }
 0x126   : > { %3070 = vrot.lane.b32.xlu0 %v12859_v52, %s13043_s14  ;;  %v3135_v57 = vld [vmem:[#allocation2 + $0x10] sm:$0xf]  ;;  %v3136_v8 = vld [vmem:[#allocation2 + $0x14] sm:$0x1]  ;;  %v3233_v20 = vrot.slane %v3231_v33, 5  ;;  %v3244_v40 = vrot.slane %v3242_v34, 4 }
 0x127   : > { %v1903_v0 = vpop.permute.xlu0 %1902  ;;  %3076 = vrot.lane.b32.xlu1 %v12860_v17, %s13043_s14  ;;  %v3137_v41 = vld [vmem:[#allocation2 + $0x18] sm:$0xf]  ;;  %v3239_v43 = vrot.slane %v3237_v47, 5  ;;  %v3247_v22 = vrot.slane %v3245_v36, 5  ;;  %v3138_v45 = vld [vmem:[#allocation2 + $0x1c] sm:$0x1] }
 0x128   : > { %1949 = vst.msk [vmem:[#allocation3 + $0x40] sm:$0xff] %vm1946_vm11, %v1903_v0  ;;  %v1913_v3 = vpop.permute.xlu1 %1912  ;;  %v3200_v46 = vshrl.u32 %v3135_v57, 16  ;;  %v3203_v63 = vshll.u32 %v3135_v57, 16  ;;  %v3234_v56 = vor.u32 %v3233_v20, %v3230_v39  ;;  %v3253_v26 = vrot.slane %v3251_v37, 5  ;;  %v12869_v55 = vld [vmem:[#allocation2 + $0xd0] ss:$8 sps:$4 sm:$0xff]  }
 0x129   : > { %1954 = vst.msk [vmem:[#allocation3 + $0xe0] sm:$0xff] %vm1946_vm11, %v1913_v3  ;;  %v12868_v50 = vld [vmem:[#allocation2 + $0xe0] ss:$8 sps:$4 sm:$0xff]   ;;  %v3209_v53 = vshll.u32 %v3136_v8, 16  ;;  %v3214_v54 = vshrl.u32 %v3137_v41, 16  ;;  %v3248_v38 = vor.u32 %v3247_v22, %v3244_v40  ;;  %v3217_v60 = vshll.u32 %v3137_v41, 16 }
 0x12a   : > { %3074 = vrot.lane.b32.xlu0 %v12861_v12, %s13043_s14  ;;  %v3202_v58 = vrot.slane %v3200_v46, 4  ;;  %v3205_v59 = vrot.slane %v3203_v63, 5  ;;  %v415_v61 = vld [vmem:[%s13119_s8 + $0x4c] sm:$0x1]  ;;  %v3235_v32 = vrot.slane %v3234_v56, 4  ;;  %v3223_v2 = vshll.u32 %v3138_v45, 16 }
 0x12b   : > { %v1907_v13 = vpop.permute.xlu0 %1906  ;;  %3080 = vrot.lane.b32.xlu1 %v12862_v18, %s13043_s14  ;;  %v3211_v0 = vrot.slane %v3209_v53, 5  ;;  %v3216_v1 = vrot.slane %v3214_v54, 4  ;;  %497 = vst.msk [vmem:[#allocation2 + $0x4c] sm:$0x1] %vm478_vm1, %v415_v61  ;;  %v3147_v3 = vld [vmem:[#allocation2 + $0x40] sm:$0xf] }
 0x12c   : > { %1951 = vst.msk [vmem:[#allocation3 + $0x80] sm:$0xff] %vm1946_vm11, %v1907_v13  ;;  %v1917_v9 = vpop.permute.xlu1 %1916  ;;  %v3249_v4 = vrot.slane %v3248_v38, 4  ;;  %v3206_v6 = vor.u32 %v3205_v59, %v3202_v58  ;;  %v3219_v7 = vrot.slane %v3217_v60, 5  ;;  %v3148_v13 = vld [vmem:[#allocation2 + $0x44] sm:$0x1]  ;;  %v3240_v10 = vsel %vm13171_vm4, %v3235_v32, %v3239_v43 }
 0x12d   : > { %1956 = vst.msk [vmem:[#allocation3 + $0x120] sm:$0xff] %vm1946_vm11, %v1917_v9  ;;  %v3149_v52 = vld [vmem:[#allocation2 + $0x48] sm:$0xf]  ;;  %v12870_v9 = vld [vmem:[#allocation2 + $0x110] ss:$8 sps:$4 sm:$0xff]   ;;  %v3284_v12 = vshrl.u32 %v3147_v3, 16 }
 0x12e   : > { %3078 = vrot.lane.b32.xlu0 %v12863_v23, %s13043_s14  ;;  %v3287_v14 = vshll.u32 %v3147_v3, 16  ;;  %v3254_v17 = vsel %vm13171_vm4, %v3249_v4, %v3253_v26  ;;  %v3207_v18 = vrot.slane %v3206_v6, 4  ;;  %v3293_v23 = vshll.u32 %v3148_v13, 16  ;;  %v3144_v25 = vld [vmem:[#allocation2 + $0x34] sm:$0x1] }
 0x12f   : > { %v1911_v11 = vpop.permute.xlu0 %1910  ;;  %3084 = vrot.lane.b32.xlu1 %v12864_v27, %s13043_s14  ;;  %v13769_v27 = vcombine.low %v3240_v10, %v3254_v17  ;;  %v3286_v44 = vrot.slane %v3284_v12, 4  ;;  %v3301_v62 = vshll.u32 %v3149_v52, 16  ;;  %v3146_v31 = vld [vmem:[#allocation2 + $0x3c] sm:$0x1]  ;;  %v12872_v33 = vld [vmem:[#allocation2 + $0x130] ss:$8 sps:$4 sm:$0xff]  }
 0x130   : > { %1953 = vst.msk [vmem:[#allocation3 + $0xc0] sm:$0xff] %vm1946_vm11, %v1911_v11  ;;  %v1921_v15 = vpop.permute.xlu1 %1920  ;;  %v3225_v11 = vrot.slane %v3223_v2, 5  ;;  %v3289_v19 = vrot.slane %v3287_v14, 5  ;;  %v3212_v5 = vsel %vm13171_vm4, %v3207_v18, %v3211_v0  ;;  %v3155_v37 = vld [vmem:[#allocation2 + $0x70] sm:$0xf]  ;;  %v3265_v40 = vshll.u32 %v3144_v25, 16 }
 0x131   : > { %1958 = vst.msk [vmem:[#allocation3 + $0x160] sm:$0xff] %vm1946_vm11, %v1921_v15  ;;  %v12871_v15 = vld [vmem:[#allocation2 + $0x100] ss:$8 sps:$4 sm:$0xff]   ;;  %v3303_v20 = vrot.slane %v3301_v62, 5  ;;  %v3156_v63 = vld [vmem:[#allocation2 + $0x74] sm:$0x1] }
 0x132   : > { %3082 = vrot.lane.b32.xlu0 %v12865_v16, %s13043_s14  ;;  %v3145_v16 = vld [vmem:[#allocation2 + $0x38] sm:$0xf]  ;;  %v3290_v47 = vor.u32 %v3289_v19, %v3286_v44  ;;  %v12873_v57 = vld [vmem:[#allocation2 + $0x120] ss:$8 sps:$4 sm:$0xff]   ;;  %v3150_v39 = vld [vmem:[#allocation2 + $0x4c] sm:$0x1] }
 0x133   : > { %v1915_v21 = vpop.permute.xlu0 %1914  ;;  %3088 = vrot.lane.b32.xlu1 %v12866_v30, %s13043_s14  ;;  %v3295_v30 = vrot.slane %v3293_v23, 5  ;;  %v3270_v41 = vshrl.u32 %v3145_v16, 16  ;;  %v3307_v45 = vshll.u32 %v3150_v39, 16  ;;  %v3267_v26 = vrot.slane %v3265_v40, 5  ;;  %v3157_v54 = vld [vmem:[#allocation2 + $0x78] sm:$0xf] }
 0x134   : > { %1955 = vst.msk [vmem:[#allocation3 + $0x100] sm:$0xff] %vm1946_vm11, %v1915_v21  ;;  %v1925_v24 = vpop.permute.xlu1 %1924  ;;  %v3220_v21 = vor.u32 %v3219_v7, %v3216_v1  ;;  %v3291_v22 = vrot.slane %v3290_v47, 4  ;;  %v3273_v58 = vshll.u32 %v3145_v16, 16  ;;  %v3279_v59 = vshll.u32 %v3146_v31, 16  ;;  %v3158_v0 = vld [vmem:[#allocation2 + $0x7c] sm:$0x1] }
 0x135   : > { %1960 = vst.msk [vmem:[#allocation3 + $0x1a0] sm:$0xff] %vm1946_vm11, %v1925_v24  ;;  %v3143_v24 = vld [vmem:[#allocation2 + $0x30] sm:$0xf]  ;;  %v3272_v53 = vrot.slane %v3270_v41, 4  ;;  %v3309_v38 = vrot.slane %v3307_v45, 5  ;;  %v3340_v1 = vshrl.u32 %v3155_v37, 16 }
 0x136   : > { %3086 = vrot.lane.b32.xlu0 %v12867_v35, %s13043_s14  ;;  %v3256_v35 = vshrl.u32 %v3143_v24, 16  ;;  %v3259_v36 = vshll.u32 %v3143_v24, 16  ;;  %v3343_v2 = vshll.u32 %v3155_v37, 16  ;;  %v3275_v3 = vrot.slane %v3273_v58, 5  ;;  %v3151_v7 = vld [vmem:[#allocation2 + $0x60] sm:$0xf] }
 0x137   : > { %v1919_v28 = vpop.permute.xlu0 %1918  ;;  %3092 = vrot.lane.b32.xlu1 %v12868_v50, %s13043_s14  ;;  %v3349_v4 = vshll.u32 %v3156_v63, 16  ;;  %v3354_v6 = vshrl.u32 %v3157_v54, 16  ;;  %v435_v23 = vld [vmem:[%s13119_s8 + $0x9c] sm:$0x1]  ;;  %v3357_v44 = vshll.u32 %v3157_v54, 16  ;;  %v3363_v19 = vshll.u32 %v3158_v0, 16 }
 0x138   : > { %1957 = vst.msk [vmem:[#allocation3 + $0x140] sm:$0xff] %vm1946_vm11, %v1919_v28  ;;  %v1929_v29 = vpop.permute.xlu1 %1928  ;;  %v3298_v28 = vshrl.u32 %v3149_v52, 16  ;;  %v3258_v46 = vrot.slane %v3256_v35, 4  ;;  %v3261_v56 = vrot.slane %v3259_v36, 5  ;;  %v3345_v10 = vrot.slane %v3343_v2, 5 }
 0x139   : > { %1962 = vst.msk [vmem:[#allocation3 + $0x1e0] sm:$0xff] %vm1946_vm11, %v1929_v29  ;;  %v3221_v29 = vrot.slane %v3220_v21, 4  ;;  %v3351_v17 = vrot.slane %v3349_v4, 5  ;;  %v3356_v18 = vrot.slane %v3354_v6, 4  ;;  %v3153_v21 = vld [vmem:[#allocation2 + $0x68] sm:$0xf] }
 0x13a   : > { %3090 = vrot.lane.b32.xlu0 %v12869_v55, %s13043_s14  ;;  %v3300_v34 = vrot.slane %v3298_v28, 4  ;;  %v3296_v55 = vsel %vm13171_vm4, %v3291_v22, %v3295_v30  ;;  %v3262_v32 = vor.u32 %v3261_v56, %v3258_v46  ;;  %v3154_v28 = vld [vmem:[#allocation2 + $0x6c] sm:$0x1]  ;;  %517 = vst.msk [vmem:[#allocation2 + $0x9c] sm:$0x1] %vm478_vm1, %v435_v23  ;;  %v3359_v47 = vrot.slane %v3357_v44, 5 }
 0x13b   : > { %v1923_v42 = vpop.permute.xlu0 %1922  ;;  %v3226_v8 = vsel %vm13171_vm4, %v3221_v29, %v3225_v11  ;;  %3096 = vrot.lane.b32.xlu1 %v12870_v9, %s13043_s14  ;;  %v3342_v9 = vrot.slane %v3340_v1, 4  ;;  %v3152_v11 = vld [vmem:[#allocation2 + $0x64] sm:$0x1]  ;;  %v3315_v29 = vshll.u32 %v3151_v7, 16  ;;  %v3163_v62 = vld [vmem:[#allocation2 + $0x90] sm:$0xf] }
 0x13c   : > { %1959 = vst.msk [vmem:[#allocation3 + $0x180] sm:$0xff] %vm1946_vm11, %v1923_v42  ;;  %v13776_v42 = vpop.permute.xlu1 %2525  ;;  %v12072_v43 = vcombine.low %v3212_v5, %v3226_v8  ;;  %v3304_v50 = vor.u32 %v3303_v20, %v3300_v34  ;;  %v3263_v52 = vrot.slane %v3262_v32, 4  ;;  %v3312_v5 = vshrl.u32 %v3151_v7, 16  ;;  %v3164_v36 = vld [vmem:[#allocation2 + $0x94] sm:$0x1] }
 0x13d   : > { %v3346_v25 = vor.u32 %v3345_v10, %v3342_v9  ;;  %v3321_v30 = vshll.u32 %v3152_v11, 16  ;;  %v3365_v34 = vrot.slane %v3363_v19, 5  ;;  %v3326_v35 = vshrl.u32 %v3153_v21, 16  ;;  %v3165_v39 = vld [vmem:[#allocation2 + $0x98] sm:$0xf]  ;;  %2573 = vst.msk [vmem:[#allocation3 + $0x20] sm:$0xff] %vm2571_vm12, %v13776_v42 }
 0x13e   : > { %3094 = vrot.lane.b32.xlu0 %v12871_v15, %s13043_s14  ;;  %v3305_v61 = vrot.slane %v3304_v50, 4  ;;  %v3276_v15 = vor.u32 %v3275_v3, %v3272_v53  ;;  %v3268_v24 = vsel %vm13171_vm4, %v3263_v52, %v3267_v26  ;;  %v3317_v8 = vrot.slane %v3315_v29, 5  ;;  %v3159_v56 = vld [vmem:[#allocation2 + $0x80] sm:$0xf]  ;;  %v3161_v6 = vld [vmem:[#allocation2 + $0x88] sm:$0xf] }
 0x13f   : > { %v1927_v48 = vpop.permute.xlu0 %1926  ;;  %3100 = vrot.lane.b32.xlu1 %v12872_v33, %s13043_s14  ;;  %v3347_v33 = vrot.slane %v3346_v25, 4  ;;  %v3360_v41 = vor.u32 %v3359_v47, %v3356_v18  ;;  %v3328_v22 = vrot.slane %v3326_v35, 4  ;;  %v3329_v46 = vshll.u32 %v3153_v21, 16  ;;  %v3171_v44 = vld [vmem:[#allocation2 + $0xc0] sm:$0xf] }
 0x140   : > { %1961 = vst.msk [vmem:[#allocation3 + $0x1c0] sm:$0xff] %vm1946_vm11, %v1927_v48  ;;  %v3281_v48 = vrot.slane %v3279_v59, 5  ;;  %v3310_v13 = vsel %vm13171_vm4, %v3305_v61, %v3309_v38  ;;  %v13788_v12 = vpop.permute.xlu1 %2529  ;;  %v3277_v16 = vrot.slane %v3276_v15, 4  ;;  %v3335_v63 = vshll.u32 %v3154_v28, 16  ;;  %v3160_v38 = vld [vmem:[#allocation2 + $0x84] sm:$0x1] }
 0x141   : > { %v12075_v14 = vcombine.low %v3296_v55, %v3310_v13  ;;  %v3352_v40 = vsel %vm13171_vm4, %v3347_v33, %v3351_v17  ;;  %v3396_v50 = vshrl.u32 %v3163_v62, 16  ;;  %v3361_v26 = vrot.slane %v3360_v41, 4  ;;  %v3166_v32 = vld [vmem:[#allocation2 + $0x9c] sm:$0x1]  ;;  %v455_v29 = vld [vmem:[%s13119_s8 + $0xec] sm:$0x1] }
 0x142   : > { %3098 = vrot.lane.b32.xlu0 %v12873_v57, %s13043_s14  ;;  %v3282_v37 = vsel %vm13171_vm4, %v3277_v16, %v3281_v48  ;;  %v3314_v57 = vrot.slane %v3312_v5, 4  ;;  %v3399_v53 = vshll.u32 %v3163_v62, 16  ;;  %v3405_v54 = vshll.u32 %v3164_v36, 16  ;;  %v3173_v35 = vld [vmem:[#allocation2 + $0xc8] sm:$0xf]  ;;  %2575 = vst.msk [vmem:[#allocation3 + $0x60] sm:$0xff] %vm2571_vm12, %v13788_v12 }
 0x143   : > { %v13782_v60 = vpop.permute.xlu0 %2523  ;;  %3697 = vrot.lane.b32.xlu1 %v13769_v27, %s13044_s15  ;;  %v3323_v27 = vrot.slane %v3321_v30, 5  ;;  %v12074_v20 = vcombine.low %v3268_v24, %v3282_v37  ;;  %v3410_v55 = vshrl.u32 %v3165_v39, 16  ;;  %v3331_v59 = vrot.slane %v3329_v46, 5  ;;  %537 = vst.msk [vmem:[#allocation2 + $0xec] sm:$0x1] %vm478_vm1, %v455_v29 }
 0x144   : > { %v13803_v45 = vpop.permute.xlu1 %2533  ;;  %v3337_v61 = vrot.slane %v3335_v63, 5  ;;  %v3398_v0 = vrot.slane %v3396_v50, 4  ;;  %v3366_v2 = vsel %vm13171_vm4, %v3361_v26, %v3365_v34  ;;  %v3401_v3 = vrot.slane %v3399_v53, 5  ;;  %v3172_v34 = vld [vmem:[#allocation2 + $0xc4] sm:$0x1]  ;;  %2572 = vst.msk [vmem:[#allocation3] sm:$0xff] %vm2571_vm12, %v13782_v60 }
 0x145   : > { %v3407_v48 = vrot.slane %v3405_v54, 5  ;;  %v3412_v4 = vrot.slane %v3410_v55, 4  ;;  %v12077_v7 = vcombine.low %v3352_v40, %v3366_v2  ;;  %v3332_v52 = vor.u32 %v3331_v59, %v3328_v22  ;;  %v3174_v40 = vld [vmem:[#allocation2 + $0xcc] sm:$0x1]  ;;  %v3169_v2 = vld [vmem:[#allocation2 + $0xb8] sm:$0xf] }
 0x146   : > { %3695 = vrot.lane.b32.xlu0 %v12072_v43, %s13044_s15  ;;  %v3318_v43 = vor.u32 %v3317_v8, %v3314_v57  ;;  %v3413_v9 = vshll.u32 %v3165_v39, 16  ;;  %v3402_v10 = vor.u32 %v3401_v3, %v3398_v0  ;;  %v3419_v11 = vshll.u32 %v3166_v32, 16  ;;  %2577 = vst.msk [vmem:[#allocation3 + $0xa0] sm:$0xff] %vm2571_vm12, %v13803_v45  ;;  %v475_v42 = vld [vmem:[%s13119_s8 + $0x13c] sm:$0x1] }
 0x147   : > { %v13796_v31 = vpop.permute.xlu0 %2527  ;;  %3701 = vrot.lane.b32.xlu1 %v12075_v14, %s13044_s15  ;;  %v3162_v14 = vld [vmem:[#allocation2 + $0x8c] sm:$0x1]  ;;  %v3368_v15 = vshrl.u32 %v3159_v56, 16  ;;  %v3371_v17 = vshll.u32 %v3159_v56, 16  ;;  %v3333_v21 = vrot.slane %v3332_v52, 4  ;;  %v3377_v24 = vshll.u32 %v3160_v38, 16 }
 0x148   : > { %v3319_v58 = vrot.slane %v3318_v43, 4  ;;  %v13813_v18 = vpop.permute.xlu1 %2537  ;;  %v3415_v23 = vrot.slane %v3413_v9, 5  ;;  %v3382_v25 = vshrl.u32 %v3161_v6, 16  ;;  %v3403_v19 = vrot.slane %v3402_v10, 4  ;;  %v3167_v56 = vld [vmem:[#allocation2 + $0xb0] sm:$0xf] }
 0x149   : > { %v3421_v28 = vrot.slane %v3419_v11, 5  ;;  %v3370_v16 = vrot.slane %v3368_v15, 4  ;;  %v3373_v5 = vrot.slane %v3371_v17, 5  ;;  %v3338_v30 = vsel %vm13171_vm4, %v3333_v21, %v3337_v61  ;;  %v3170_v52 = vld [vmem:[#allocation2 + $0xbc] sm:$0x1]  ;;  %2574 = vst.msk [vmem:[#allocation3 + $0x40] sm:$0xff] %vm2571_vm12, %v13796_v31 }
 0x14a   : > { %3699 = vrot.lane.b32.xlu0 %v12074_v20, %s13044_s15  ;;  %v3324_v13 = vsel %vm13171_vm4, %v3319_v58, %v3323_v27  ;;  %v3416_v62 = vor.u32 %v3415_v23, %v3412_v4  ;;  %v3379_v33 = vrot.slane %v3377_v24, 5  ;;  %v3384_v47 = vrot.slane %v3382_v25, 4  ;;  %v3168_v58 = vld [vmem:[#allocation2 + $0xb4] sm:$0x1]  ;;  %v3179_v23 = vld [vmem:[#allocation2 + $0xe0] sm:$0xf] }
 0x14b   : > { %v13807_v1 = vpop.permute.xlu0 %2531  ;;  %3705 = vrot.lane.b32.xlu1 %v12077_v7, %s13044_s15  ;;  %v12076_v37 = vcombine.low %v3324_v13, %v3338_v30  ;;  %v3408_v57 = vsel %vm13171_vm4, %v3403_v19, %v3407_v48  ;;  %v3374_v8 = vor.u32 %v3373_v5, %v3370_v16  ;;  %v3385_v27 = vshll.u32 %v3161_v6, 16  ;;  %2579 = vst.msk [vmem:[#allocation3 + $0xe0] sm:$0xff] %vm2571_vm12, %v13813_v18 }
 0x14c   : > { %v3417_v39 = vrot.slane %v3416_v62, 4  ;;  %v3391_v20 = vshll.u32 %v3162_v14, 16  ;;  %v3452_v41 = vshrl.u32 %v3171_v44, 16  ;;  %v3455_v22 = vshll.u32 %v3171_v44, 16  ;;  %2576 = vst.msk [vmem:[#allocation3 + $0x80] sm:$0xff] %vm2571_vm12, %v13807_v1 }
 0x14d   : > { %v3375_v43 = vrot.slane %v3374_v8, 4  ;;  %v3387_v46 = vrot.slane %v3385_v27, 5  ;;  %v3461_v63 = vshll.u32 %v3172_v34, 16  ;;  %v3466_v50 = vshrl.u32 %v3173_v35, 16  ;;  %557 = vst.msk [vmem:[#allocation2 + $0x13c] sm:$0x1] %vm478_vm1, %v475_v42 }
 0x14e   : > { %3703 = vrot.lane.b32.xlu0 %v12076_v37, %s13044_s15  ;;  %v3422_v53 = vsel %vm13171_vm4, %v3417_v39, %v3421_v28  ;;  %v3393_v54 = vrot.slane %v3391_v20, 5  ;;  %v3454_v55 = vrot.slane %v3452_v41, 4  ;;  %v3457_v38 = vrot.slane %v3455_v22, 5  ;;  %v3180_v28 = vld [vmem:[#allocation2 + $0xe4] sm:$0x1] }
 0x14f   : > { %v13820_v36 = vpop.permute.xlu0 %2535  ;;  %v12079_v59 = vcombine.low %v3408_v57, %v3422_v53  ;;  %v3380_v61 = vsel %vm13171_vm4, %v3375_v43, %v3379_v33  ;;  %v3388_v32 = vor.u32 %v3387_v46, %v3384_v47  ;;  %v13829_v0 = vrot.slane %v3461_v63, 5  ;;  %v3181_v33 = vld [vmem:[#allocation2 + $0xe8] sm:$0xf]  ;;  %v3175_v37 = vld [vmem:[#allocation2 + $0xd0] sm:$0xf] }
 0x150   : > { %v2542_v26 = vpop.permute.xlu1 %2541  ;;  %v3458_v3 = vor.u32 %v3457_v38, %v3454_v55  ;;  %v3468_v48 = vrot.slane %v3466_v50, 4  ;;  %v3469_v4 = vshll.u32 %v3173_v35, 16  ;;  %v3475_v6 = vshll.u32 %v3174_v40, 16  ;;  %v3176_v20 = vld [vmem:[#allocation2 + $0xd4] sm:$0x1]  ;;  %2578 = vst.msk [vmem:[#allocation3 + $0xc0] sm:$0xff] %vm2571_vm12, %v13820_v36 }
 0x151   : > { %3709 = vrot.lane.b32.xlu1 %v12079_v59, %s13044_s15  ;;  %v3389_v13 = vrot.slane %v3388_v32, 4  ;;  %v3424_v9 = vshrl.u32 %v3167_v56, 16  ;;  %v3427_v10 = vshll.u32 %v3167_v56, 16  ;;  %v3433_v11 = vshll.u32 %v3168_v58, 16  ;;  %2581 = vst.msk [vmem:[#allocation3 + $0x120] sm:$0xff] %vm2571_vm12, %v2542_v26 }
 0x152   : > { %v3459_v14 = vrot.slane %v3458_v3, 4  ;;  %v3471_v15 = vrot.slane %v3469_v4, 5  ;;  %v3477_v17 = vrot.slane %v3475_v6, 5  ;;  %v3438_v21 = vshrl.u32 %v3169_v2, 16  ;;  %v3182_v40 = vld [vmem:[#allocation2 + $0xec] sm:$0x1] }
 0x153   : > { %v3394_v24 = vsel %vm13171_vm4, %v3389_v13, %v3393_v54  ;;  %v3426_v25 = vrot.slane %v3424_v9, 4  ;;  %v3429_v44 = vrot.slane %v3427_v10, 5  ;;  %v13834_v19 = vrot.slane %v3433_v11, 5  ;;  %v3177_v43 = vld [vmem:[#allocation2 + $0xd8] sm:$0xf] }
 0x154   : > { %v2540_v7 = vpop.permute.xlu0 %2539  ;;  %v12078_v5 = vcombine.low %v3380_v61, %v3394_v24  ;;  %v3464_v29 = vsel %vm13171_vm4, %v3459_v14, %v13829_v0  ;;  %v3472_v30 = vor.u32 %v3471_v15, %v3468_v48  ;;  %v3440_v62 = vrot.slane %v3438_v21, 4  ;;  %v3178_v55 = vld [vmem:[#allocation2 + $0xdc] sm:$0x1]  ;;  %v3187_v58 = vld [vmem:[#allocation2 + $0x110] sm:$0xf] }
 0x155   : > { %v3430_v47 = vor.u32 %v3429_v44, %v3426_v25  ;;  %v3441_v34 = vshll.u32 %v3169_v2, 16  ;;  %v3447_v35 = vshll.u32 %v3170_v52, 16  ;;  %v3508_v8 = vshrl.u32 %v3179_v23, 16  ;;  %2580 = vst.msk [vmem:[#allocation3 + $0x100] sm:$0xff] %vm2571_vm12, %v2540_v7  ;;  %v3188_v2 = vld [vmem:[#allocation2 + $0x114] sm:$0x1] }
 0x156   : > { %3707 = vrot.lane.b32.xlu0 %v12078_v5, %s13044_s15  ;;  %v3473_v57 = vrot.slane %v3472_v30, 4  ;;  %v3511_v27 = vshll.u32 %v3179_v23, 16  ;;  %v3517_v39 = vshll.u32 %v3180_v28, 16  ;;  %v3522_v41 = vshrl.u32 %v3181_v33, 16  ;;  %v3189_v13 = vld [vmem:[#allocation2 + $0x118] sm:$0xf] }
 0x157   : > { %v3431_v12 = vrot.slane %v3430_v47, 4  ;;  %v3443_v31 = vrot.slane %v3441_v34, 5  ;;  %v3449_v45 = vrot.slane %v3447_v35, 5  ;;  %v3510_v18 = vrot.slane %v3508_v8, 4  ;;  %v3190_v25 = vld [vmem:[#allocation2 + $0x11c] sm:$0x1] }
 0x158   : > { %v3478_v1 = vsel %vm13171_vm4, %v3473_v57, %v3477_v17  ;;  %v3513_v36 = vrot.slane %v3511_v27, 5  ;;  %v3519_v22 = vrot.slane %v3517_v39, 5  ;;  %v3524_v56 = vrot.slane %v3522_v41, 4  ;;  %v3183_v28 = vld [vmem:[#allocation2 + $0x100] sm:$0xf] }
 0x159   : > { %v12081_v46 = vcombine.low %v3464_v29, %v3478_v1  ;;  %v3436_v63 = vsel %vm13171_vm4, %v3431_v12, %v13834_v19  ;;  %v3444_v50 = vor.u32 %v3443_v31, %v3440_v62  ;;  %v3525_v53 = vshll.u32 %v3181_v33, 16 }
 0x15a   : > { %v2546_v16 = vpop.permute.xlu1 %2545  ;;  %v3514_v26 = vor.u32 %v3513_v36, %v3510_v18  ;;  %v3531_v54 = vshll.u32 %v3182_v40, 16  ;;  %v3480_v38 = vshrl.u32 %v3175_v37, 16  ;;  %v3483_v61 = vshll.u32 %v3175_v37, 16  ;;  %v3184_v37 = vld [vmem:[#allocation2 + $0x104] sm:$0x1] }
 0x15b   : > { %2583 = vst.msk [vmem:[#allocation3 + $0x160] sm:$0xff] %vm2571_vm12, %v2546_v16  ;;  %3713 = vrot.lane.b32.xlu1 %v12081_v46, %s13044_s15  ;;  %v3445_v59 = vrot.slane %v3444_v50, 4  ;;  %v3489_v32 = vshll.u32 %v3176_v20, 16  ;;  %v3494_v0 = vshrl.u32 %v3177_v43, 16  ;;  %v3527_v4 = vrot.slane %v3525_v53, 5 }
 0x15c   : > { %v3515_v48 = vrot.slane %v3514_v26, 4  ;;  %v3533_v6 = vrot.slane %v3531_v54, 5  ;;  %v3482_v7 = vrot.slane %v3480_v38, 4  ;;  %v3485_v9 = vrot.slane %v3483_v61, 5  ;;  %v3185_v20 = vld [vmem:[#allocation2 + $0x108] sm:$0xf] }
 0x15d   : > { %v3450_v52 = vsel %vm13171_vm4, %v3445_v59, %v3449_v45  ;;  %v3491_v10 = vrot.slane %v3489_v32, 5  ;;  %v3496_v11 = vrot.slane %v3494_v0, 4  ;;  %v3528_v17 = vor.u32 %v3527_v4, %v3524_v56  ;;  %v3186_v45 = vld [vmem:[#allocation2 + $0x10c] sm:$0x1]  ;;  %v3195_v36 = vld [vmem:[#allocation2 + $0x130] sm:$0xf] }
 0x15e   : > { %v2544_v60 = vpop.permute.xlu0 %2543  ;;  %v12080_v14 = vcombine.low %v3436_v63, %v3450_v52  ;;  %v3520_v15 = vsel %vm13171_vm4, %v3515_v48, %v3519_v22  ;;  %v3497_v21 = vshll.u32 %v3177_v43, 16  ;;  %v3486_v23 = vor.u32 %v3485_v9, %v3482_v7  ;;  %v3196_v22 = vld [vmem:[#allocation2 + $0x134] sm:$0x1]  ;;  %v3198_v48 = vld [vmem:[#allocation2 + $0x13c] sm:$0x1] }
 0x15f   : > { %2582 = vst.msk [vmem:[#allocation3 + $0x140] sm:$0xff] %vm2571_vm12, %v2544_v60  ;;  %v3503_v24 = vshll.u32 %v3178_v55, 16  ;;  %v3564_v44 = vshrl.u32 %v3187_v58, 16  ;;  %v3567_v19 = vshll.u32 %v3187_v58, 16  ;;  %v3529_v16 = vrot.slane %v3528_v17, 4 }
 0x160   : > { %3711 = vrot.lane.b32.xlu0 %v12080_v14, %s13044_s15  ;;  %v3499_v5 = vrot.slane %v3497_v21, 5  ;;  %v3573_v29 = vshll.u32 %v3188_v2, 16  ;;  %v3578_v30 = vshrl.u32 %v3189_v13, 16  ;;  %v3487_v33 = vrot.slane %v3486_v23, 4  ;;  %v3197_v55 = vld [vmem:[#allocation2 + $0x138] sm:$0xf] }
 0x161   : > { %v3505_v47 = vrot.slane %v3503_v24, 5  ;;  %v3566_v34 = vrot.slane %v3564_v44, 4  ;;  %v3569_v35 = vrot.slane %v3567_v19, 5  ;;  %v3534_v57 = vsel %vm13171_vm4, %v3529_v16, %v3533_v6  ;;  %v3191_v4 = vld [vmem:[#allocation2 + $0x120] sm:$0xf] }
 0x162   : > { %v2550_v3 = vpop.permute.xlu1 %2549  ;;  %v3500_v8 = vor.u32 %v3499_v5, %v3496_v11  ;;  %v3575_v27 = vrot.slane %v3573_v29, 5  ;;  %v3580_v39 = vrot.slane %v3578_v30, 4  ;;  %v12083_v42 = vcombine.low %v3520_v15, %v3534_v57  ;;  %v3192_v21 = vld [vmem:[#allocation2 + $0x124] sm:$0x1]  ;;  %v3193_v19 = vld [vmem:[#allocation2 + $0x128] sm:$0xf] }
 0x163   : > { %2585 = vst.msk [vmem:[#allocation3 + $0x1a0] sm:$0xff] %vm2571_vm12, %v2550_v3  ;;  %v3492_v60 = vsel %vm13171_vm4, %v3487_v33, %v3491_v10  ;;  %v3570_v12 = vor.u32 %v3569_v35, %v3566_v34  ;;  %v3581_v31 = vshll.u32 %v3189_v13, 16  ;;  %v3587_v41 = vshll.u32 %v3190_v25, 16 }
 0x164   : > { %v3501_v40 = vrot.slane %v3500_v8, 4  ;;  %v3536_v1 = vshrl.u32 %v3183_v28, 16  ;;  %v3539_v18 = vshll.u32 %v3183_v28, 16  ;;  %3717 = vrot.lane.b32.xlu1 %v12083_v42, %s13044_s15  ;;  %v3550_v63 = vshrl.u32 %v3185_v20, 16 }
 0x165   : > { %v3571_v43 = vrot.slane %v3570_v12, 4  ;;  %v3583_v46 = vrot.slane %v3581_v31, 5  ;;  %v3545_v54 = vshll.u32 %v3184_v37, 16  ;;  %v3589_v61 = vrot.slane %v3587_v41, 5 }
 0x166   : > { %v3506_v56 = vsel %vm13171_vm4, %v3501_v40, %v3505_v47  ;;  %v3538_v26 = vrot.slane %v3536_v1, 4  ;;  %v3541_v53 = vrot.slane %v3539_v18, 5  ;;  %v3552_v0 = vrot.slane %v3550_v63, 4  ;;  %v3194_v47 = vld [vmem:[#allocation2 + $0x12c] sm:$0x1] }
 0x167   : > { %v2548_v62 = vpop.permute.xlu0 %2547  ;;  %v12082_v38 = vcombine.low %v3492_v60, %v3506_v56  ;;  %v3576_v58 = vsel %vm13171_vm4, %v3571_v43, %v3575_v27  ;;  %v3584_v59 = vor.u32 %v3583_v46, %v3580_v39  ;;  %v3553_v2 = vshll.u32 %v3185_v20, 16 }
 0x168   : > { %2584 = vst.msk [vmem:[#allocation3 + $0x180] sm:$0xff] %vm2571_vm12, %v2548_v62  ;;  %v3542_v32 = vor.u32 %v3541_v53, %v3538_v26  ;;  %v3559_v3 = vshll.u32 %v3186_v45, 16  ;;  %v3620_v7 = vshrl.u32 %v3195_v36, 16  ;;  %v3623_v13 = vshll.u32 %v3195_v36, 16 }
 0x169   : > { %3715 = vrot.lane.b32.xlu0 %v12082_v38, %s13044_s15  ;;  %v3585_v6 = vrot.slane %v3584_v59, 4  ;;  %v3629_v52 = vshll.u32 %v3196_v22, 16  ;;  %v3547_v14 = vrot.slane %v3545_v54, 5  ;;  %v3555_v15 = vrot.slane %v3553_v2, 5  ;;  %v564_v2 = vld [vmem:[%s13924_s6 + $0x18] sm:$0xf] }
 0x16a   : > { %v3543_v11 = vrot.slane %v3542_v32, 4  ;;  %v3634_v17 = vshrl.u32 %v3197_v55, 16  ;;  %v3561_v24 = vrot.slane %v3559_v3, 5  ;;  %v3622_v25 = vrot.slane %v3620_v7, 4  ;;  %v12874_v32 = vld [vmem:[#allocation2 + $0x60] ss:$8 sps:$4 sm:$0xff]  }
 0x16b   : > { %v3590_v23 = vsel %vm13171_vm4, %v3585_v6, %v3589_v61  ;;  %v3625_v44 = vrot.slane %v3623_v13, 5  ;;  %v3556_v16 = vor.u32 %v3555_v15, %v3552_v0  ;;  %v3631_v5 = vrot.slane %v3629_v52, 5  ;;  %v562_v0 = vld [vmem:[%s13924_s6 + $0x10] sm:$0xf]  ;;  %585 = vst.msk [vmem:[#allocation2 + $0x158] sm:$0xf] %vm476_vm0, %v564_v2 }
 0x16c   : > { %v2554_v50 = vpop.permute.xlu1 %2553  ;;  %v12085_v28 = vcombine.low %v3576_v58, %v3590_v23  ;;  %v3636_v29 = vrot.slane %v3634_v17, 4  ;;  %v3637_v62 = vshll.u32 %v3197_v55, 16  ;;  %v3643_v33 = vshll.u32 %v3198_v48, 16  ;;  %583 = vst.msk [vmem:[#allocation2 + $0x150] sm:$0xf] %vm476_vm0, %v562_v0 }
 0x16d   : > { %2587 = vst.msk [vmem:[#allocation3 + $0x1e0] sm:$0xff] %vm2571_vm12, %v2554_v50  ;;  %v3626_v30 = vor.u32 %v3625_v44, %v3622_v25  ;;  %v3592_v34 = vshrl.u32 %v3191_v4, 16  ;;  %v3548_v57 = vsel %vm13171_vm4, %v3543_v11, %v3547_v14  ;;  %v3557_v8 = vrot.slane %v3556_v16, 4  ;;  %v560_v6 = vld [vmem:[%s13924_s6 + $0x8] sm:$0xf] }
 0x16e   : > { %3721 = vrot.lane.b32.xlu1 %v12085_v28, %s13044_s15  ;;  %v3595_v27 = vshll.u32 %v3191_v4, 16  ;;  %v3606_v39 = vshrl.u32 %v3193_v19, 16  ;;  %v3639_v42 = vrot.slane %v3637_v62, 5  ;;  %v3601_v12 = vshll.u32 %v3192_v21, 16  ;;  %v558_v4 = vld [vmem:[%s13924_s6] sm:$0xf] }
 0x16f   : > { %v3627_v20 = vrot.slane %v3626_v30, 4  ;;  %v3594_v60 = vrot.slane %v3592_v34, 4  ;;  %v3562_v31 = vsel %vm13171_vm4, %v3557_v8, %v3561_v24  ;;  %v3645_v45 = vrot.slane %v3643_v33, 5  ;;  %579 = vst.msk [vmem:[#allocation2 + $0x140] sm:$0xf] %vm476_vm0, %v558_v4 }
 0x170   : > { %v2895_v10 = vpop.permute.xlu1 %2894  ;;  %v3597_v40 = vrot.slane %v3595_v27, 5  ;;  %v12084_v41 = vcombine.low %v3548_v57, %v3562_v31  ;;  %v3640_v1 = vor.u32 %v3639_v42, %v3636_v29  ;;  %v3608_v18 = vrot.slane %v3606_v39, 4  ;;  %581 = vst.msk [vmem:[#allocation2 + $0x148] sm:$0xf] %vm476_vm0, %v560_v6  ;;  %v570_v7 = vld [vmem:[%s13924_s6 + $0x30] sm:$0xf] }
 0x171   : > { %v2552_v9 = vpop.permute.xlu0 %2551  ;;  %v3609_v36 = vshll.u32 %v3193_v19, 16  ;;  %v3615_v46 = vshll.u32 %v3194_v47, 16  ;;  %v3632_v63 = vsel %vm13171_vm4, %v3627_v20, %v3631_v5  ;;  %v3603_v56 = vrot.slane %v3601_v12, 5  ;;  %2942 = vst.msk [vmem:[#allocation3 + $0x20] sm:$0xff] %vm2940_vm13, %v2895_v10  ;;  %v572_v13 = vld [vmem:[%s13924_s6 + $0x38] sm:$0xf] }
 0x172   : > { %2586 = vst.msk [vmem:[#allocation3 + $0x1c0] sm:$0xff] %vm2571_vm12, %v2552_v9  ;;  %v3598_v43 = vor.u32 %v3597_v40, %v3594_v60  ;;  %3719 = vrot.lane.b32.xlu0 %v12084_v41, %s13044_s15  ;;  %v3641_v50 = vrot.slane %v3640_v1, 4  ;;  %v566_v52 = vld [vmem:[%s13924_s6 + $0x20] sm:$0xf]  ;;  %v568_v10 = vld [vmem:[%s13924_s6 + $0x28] sm:$0xf] }
 0x173   : > { %v3611_v26 = vrot.slane %v3609_v36, 5  ;;  %v3617_v58 = vrot.slane %v3615_v46, 5  ;;  %591 = vst.msk [vmem:[#allocation2 + $0x170] sm:$0xf] %vm476_vm0, %v570_v7  ;;  %593 = vst.msk [vmem:[#allocation2 + $0x178] sm:$0xf] %vm476_vm0, %v572_v13 }
 0x174   : > { %v2899_v37 = vpop.permute.xlu1 %2898  ;;  %v3599_v54 = vrot.slane %v3598_v43, 4  ;;  %v3646_v55 = vsel %vm13171_vm4, %v3641_v50, %v3645_v45  ;;  %587 = vst.msk [vmem:[#allocation2 + $0x160] sm:$0xf] %vm476_vm0, %v566_v52  ;;  %v4277_v14 = vld [vmem:[#allocation2 + $0x60] sm:$0xf] }
 0x175   : > { %v2893_v35 = vpop.permute.xlu0 %2892  ;;  %2944 = vst.msk [vmem:[#allocation3 + $0x60] sm:$0xff] %vm2940_vm13, %v2899_v37  ;;  %v3612_v38 = vor.u32 %v3611_v26, %v3608_v18  ;;  %v12087_v61 = vcombine.low %v3632_v63, %v3646_v55  ;;  %v4278_v15 = vld [vmem:[#allocation2 + $0x64] sm:$0x1]  ;;  %v4279_v21 = vld [vmem:[#allocation2 + $0x68] sm:$0xf]  ;;  %v4366_v24 = vshrl.u32 %v4277_v14, 16 }
 0x176   : > { %2941 = vst.msk [vmem:[#allocation3] sm:$0xff] %vm2940_vm13, %v2893_v35  ;;  %v3604_v3 = vsel %vm13171_vm4, %v3599_v54, %v3603_v56  ;;  %v4280_v23 = vld [vmem:[#allocation2 + $0x6c] sm:$0x1]  ;;  %v4369_v25 = vshll.u32 %v4277_v14, 16  ;;  %v4375_v19 = vshll.u32 %v4278_v15, 16  ;;  %v4380_v28 = vshrl.u32 %v4279_v21, 16 }
 0x177   : > { %v3613_v48 = vrot.slane %v3612_v38, 4  ;;  %3725 = vrot.lane.b32.xlu1 %v12087_v61, %s13044_s15  ;;  %589 = vst.msk [vmem:[#allocation2 + $0x168] sm:$0xf] %vm476_vm0, %v568_v10  ;;  %v4383_v16 = vshll.u32 %v4279_v21, 16  ;;  %v4389_v5 = vshll.u32 %v4280_v23, 16  ;;  %v4368_v62 = vrot.slane %v4366_v24, 4 }
 0x178   : > { %v2903_v53 = vpop.permute.xlu1 %2902  ;;  %v12875_v29 = vld [vmem:[#allocation2 + $0x50] ss:$8 sps:$4 sm:$0xff]   ;;  %v12876_v30 = vld [vmem:[#allocation2 + $0x80] ss:$8 sps:$4 sm:$0xff]   ;;  %v4371_v33 = vrot.slane %v4369_v25, 5  ;;  %v4382_v47 = vrot.slane %v4380_v28, 4 }
 0x179   : > { %v2897_v22 = vpop.permute.xlu0 %2896  ;;  %2946 = vst.msk [vmem:[#allocation3 + $0xa0] sm:$0xff] %vm2940_vm13, %v2903_v53  ;;  %v3618_v9 = vsel %vm13171_vm4, %v3613_v48, %v3617_v58  ;;  %v4385_v34 = vrot.slane %v4383_v16, 5  ;;  %v4273_v35 = vld [vmem:[#allocation2 + $0x50] sm:$0xf]  ;;  %v4274_v27 = vld [vmem:[#allocation2 + $0x54] sm:$0x1] }
 0x17a   : > { %2943 = vst.msk [vmem:[#allocation3 + $0x40] sm:$0xff] %vm2940_vm13, %v2897_v22  ;;  %v12086_v17 = vcombine.low %v3604_v3, %v3618_v9  ;;  %v12877_v37 = vld [vmem:[#allocation2 + $0x70] ss:$8 sps:$4 sm:$0xff]   ;;  %v4372_v8 = vor.u32 %v4371_v33, %v4368_v62  ;;  %v4377_v20 = vrot.slane %v4375_v19, 5  ;;  %v4391_v60 = vrot.slane %v4389_v5, 5 }
 0x17b   : > { %4211 = vrot.lane.b32.xlu1 %v12874_v32, %s13038_s9  ;;  %v12878_v57 = vld [vmem:[#allocation2 + $0xb0] ss:$8 sps:$4 sm:$0xff]   ;;  %v4386_v42 = vor.u32 %v4385_v34, %v4382_v47  ;;  %v4276_v31 = vld [vmem:[#allocation2 + $0x5c] sm:$0x1]  ;;  %v12879_v40 = vld [vmem:[#allocation2 + $0xa0] ss:$8 sps:$4 sm:$0xff]  }
 0x17c   : > { %3723 = vrot.lane.b32.xlu0 %v12086_v17, %s13044_s15  ;;  %v4275_v39 = vld [vmem:[#allocation2 + $0x58] sm:$0xf]  ;;  %v4373_v1 = vrot.slane %v4372_v8, 4  ;;  %v4338_v36 = vshrl.u32 %v4273_v35, 16  ;;  %v4341_v22 = vshll.u32 %v4273_v35, 16  ;;  %v4347_v43 = vshll.u32 %v4274_v27, 16 }
 0x17d   : > { %v2901_v59 = vpop.permute.xlu0 %2900  ;;  %v2907_v11 = vpop.permute.xlu1 %2906  ;;  %v12880_v41 = vld [vmem:[#allocation2 + $0xd0] ss:$8 sps:$4 sm:$0xff]   ;;  %v4387_v18 = vrot.slane %v4386_v42, 4  ;;  %v4352_v46 = vshrl.u32 %v4275_v39, 16  ;;  %v4355_v63 = vshll.u32 %v4275_v39, 16  ;;  %v4361_v50 = vshll.u32 %v4276_v31, 16 }
 0x17e   : > { %2945 = vst.msk [vmem:[#allocation3 + $0x80] sm:$0xff] %vm2940_vm13, %v2901_v59  ;;  %2948 = vst.msk [vmem:[#allocation3 + $0xe0] sm:$0xff] %vm2940_vm13, %v2907_v11  ;;  %v4285_v56 = vld [vmem:[#allocation2 + $0x80] sm:$0xf]  ;;  %v4378_v53 = vsel %vm13171_vm4, %v4373_v1, %v4377_v20  ;;  %v4340_v55 = vrot.slane %v4338_v36, 4  ;;  %v4343_v38 = vrot.slane %v4341_v22, 5 }
 0x17f   : > { %4215 = vrot.lane.b32.xlu1 %v12876_v30, %s13038_s9  ;;  %v4392_v54 = vsel %vm13171_vm4, %v4387_v18, %v4391_v60  ;;  %v4286_v58 = vld [vmem:[#allocation2 + $0x84] sm:$0x1]  ;;  %v4287_v59 = vld [vmem:[#allocation2 + $0x88] sm:$0xf]  ;;  %v4349_v32 = vrot.slane %v4347_v43, 5  ;;  %v4354_v0 = vrot.slane %v4352_v46, 4 }
 0x180   : > { %4209 = vrot.lane.b32.xlu0 %v12875_v29, %s13038_s9  ;;  %v13966_v61 = vcombine.low %v4378_v53, %v4392_v54  ;;  %v4357_v2 = vrot.slane %v4355_v63, 5  ;;  %v4288_v3 = vld [vmem:[#allocation2 + $0x8c] sm:$0x1]  ;;  %v12881_v4 = vld [vmem:[#allocation2 + $0xc0] ss:$8 sps:$4 sm:$0xff]   ;;  %v4344_v7 = vor.u32 %v4343_v38, %v4340_v55  ;;  %v4363_v13 = vrot.slane %v4361_v50, 5 }
 0x181   : > { %v2905_v44 = vpop.permute.xlu0 %2904  ;;  %v12882_v6 = vld [vmem:[#allocation2 + $0x100] ss:$8 sps:$4 sm:$0xff]   ;;  %v4422_v52 = vshrl.u32 %v4285_v56, 16  ;;  %v4425_v9 = vshll.u32 %v4285_v56, 16  ;;  %v4431_v11 = vshll.u32 %v4286_v58, 16  ;;  %v4436_v14 = vshrl.u32 %v4287_v59, 16 }
 0x182   : > { %2947 = vst.msk [vmem:[#allocation3 + $0xc0] sm:$0xff] %vm2940_vm13, %v2905_v44  ;;  %v4358_v10 = vor.u32 %v4357_v2, %v4354_v0  ;;  %v4439_v15 = vshll.u32 %v4287_v59, 16  ;;  %v4281_v17 = vld [vmem:[#allocation2 + $0x70] sm:$0xf]  ;;  %v4345_v23 = vrot.slane %v4344_v7, 4  ;;  %v4445_v44 = vshll.u32 %v4288_v3, 16 }
 0x183   : > { %v2911_v12 = vpop.permute.xlu1 %2910  ;;  %4219 = vrot.lane.b32.xlu1 %v12878_v57, %s13038_s9  ;;  %v4424_v24 = vrot.slane %v4422_v52, 4  ;;  %v4427_v25 = vrot.slane %v4425_v9, 5  ;;  %v4282_v19 = vld [vmem:[#allocation2 + $0x74] sm:$0x1]  ;;  %v4433_v16 = vrot.slane %v4431_v11, 5  ;;  %v4438_v5 = vrot.slane %v4436_v14, 4 }
 0x184   : > { %2950 = vst.msk [vmem:[#allocation3 + $0x120] sm:$0xff] %vm2940_vm13, %v2911_v12  ;;  %4213 = vrot.lane.b32.xlu0 %v12877_v37, %s13038_s9  ;;  %v4359_v28 = vrot.slane %v4358_v10, 4  ;;  %v4441_v29 = vrot.slane %v4439_v15, 5  ;;  %v4283_v30 = vld [vmem:[#allocation2 + $0x78] sm:$0xf]  ;;  %v4350_v47 = vsel %vm13171_vm4, %v4345_v23, %v4349_v32  ;;  %v4447_v35 = vrot.slane %v4445_v44, 5 }
 0x185   : > { %v2909_v45 = vpop.permute.xlu0 %2908  ;;  %v12883_v33 = vld [vmem:[#allocation2 + $0xf0] ss:$8 sps:$4 sm:$0xff]   ;;  %v4428_v34 = vor.u32 %v4427_v25, %v4424_v24  ;;  %v4394_v37 = vshrl.u32 %v4281_v17, 16  ;;  %v4284_v27 = vld [vmem:[#allocation2 + $0x7c] sm:$0x1]  ;;  %v4397_v39 = vshll.u32 %v4281_v17, 16 }
 0x186   : > { %2949 = vst.msk [vmem:[#allocation3 + $0x100] sm:$0xff] %vm2940_vm13, %v2909_v45  ;;  %v4364_v57 = vsel %vm13171_vm4, %v4359_v28, %v4363_v13  ;;  %v4442_v8 = vor.u32 %v4441_v29, %v4438_v5  ;;  %v4403_v20 = vshll.u32 %v4282_v19, 16  ;;  %v4293_v42 = vld [vmem:[#allocation2 + $0xb0] sm:$0xf]  ;;  %v12884_v12 = vld [vmem:[#allocation2 + $0x120] ss:$8 sps:$4 sm:$0xff]  }
 0x187   : > { %4223 = vrot.lane.b32.xlu1 %v12880_v41, %s13038_s9  ;;  %v13979_v31 = vcombine.low %v4350_v47, %v4364_v57  ;;  %v4429_v45 = vrot.slane %v4428_v34, 4  ;;  %v4408_v41 = vshrl.u32 %v4283_v30, 16  ;;  %v4399_v18 = vrot.slane %v4397_v39, 5  ;;  %v4294_v43 = vld [vmem:[#allocation2 + $0xb4] sm:$0x1] }
 0x188   : > { %v2915_v26 = vpop.permute.xlu1 %2914  ;;  %4217 = vrot.lane.b32.xlu0 %v12879_v40, %s13038_s9  ;;  %v4396_v40 = vrot.slane %v4394_v37, 4  ;;  %v4443_v1 = vrot.slane %v4442_v8, 4  ;;  %v4405_v36 = vrot.slane %v4403_v20, 5  ;;  %v4411_v22 = vshll.u32 %v4283_v30, 16  ;;  %v12885_v63 = vld [vmem:[#allocation2 + $0x110] ss:$8 sps:$4 sm:$0xff]  }
 0x189   : > { %2952 = vst.msk [vmem:[#allocation3 + $0x160] sm:$0xff] %vm2940_vm13, %v2915_v26  ;;  %v4434_v50 = vsel %vm13171_vm4, %v4429_v45, %v4433_v16  ;;  %v4410_v56 = vrot.slane %v4408_v41, 4  ;;  %v4417_v26 = vshll.u32 %v4284_v27, 16  ;;  %v4295_v53 = vld [vmem:[#allocation2 + $0xb8] sm:$0xf]  ;;  %v4478_v54 = vshrl.u32 %v4293_v42, 16 }
 0x18a   : > { %v2913_v48 = vpop.permute.xlu0 %2912  ;;  %v4448_v55 = vsel %vm13171_vm4, %v4443_v1, %v4447_v35  ;;  %v4400_v38 = vor.u32 %v4399_v18, %v4396_v40  ;;  %v4413_v58 = vrot.slane %v4411_v22, 5  ;;  %v4296_v59 = vld [vmem:[#allocation2 + $0xbc] sm:$0x1]  ;;  %v4481_v32 = vshll.u32 %v4293_v42, 16  ;;  %v4289_v0 = vld [vmem:[#allocation2 + $0xa0] sm:$0xf] }
 0x18b   : > { %2951 = vst.msk [vmem:[#allocation3 + $0x140] sm:$0xff] %vm2940_vm13, %v2913_v48  ;;  %4227 = vrot.lane.b32.xlu1 %v12882_v6, %s13038_s9  ;;  %v12886_v3 = vld [vmem:[#allocation2 + $0x150] ss:$8 sps:$4 sm:$0xff]   ;;  %v13989_v48 = vcombine.low %v4434_v50, %v4448_v55  ;;  %v4480_v6 = vrot.slane %v4478_v54, 4  ;;  %v4487_v7 = vshll.u32 %v4294_v43, 16  ;;  %v4492_v10 = vshrl.u32 %v4295_v53, 16 }
 0x18c   : > { %v2919_v21 = vpop.permute.xlu1 %2918  ;;  %4221 = vrot.lane.b32.xlu0 %v12881_v4, %s13038_s9  ;;  %v4419_v4 = vrot.slane %v4417_v26, 5  ;;  %v4401_v13 = vrot.slane %v4400_v38, 4  ;;  %v4414_v52 = vor.u32 %v4413_v58, %v4410_v56  ;;  %v4483_v9 = vrot.slane %v4481_v32, 5  ;;  %v4290_v11 = vld [vmem:[#allocation2 + $0xa4] sm:$0x1] }
 0x18d   : > { %2954 = vst.msk [vmem:[#allocation3 + $0x1a0] sm:$0xff] %vm2940_vm13, %v2919_v21  ;;  %v4489_v15 = vrot.slane %v4487_v7, 5  ;;  %v4495_v17 = vshll.u32 %v4295_v53, 16  ;;  %v4501_v21 = vshll.u32 %v4296_v59, 16  ;;  %v4291_v23 = vld [vmem:[#allocation2 + $0xa8] sm:$0xf] }
 0x18e   : > { %v4450_v24 = vshrl.u32 %v4289_v0, 16  ;;  %v12887_v25 = vld [vmem:[#allocation2 + $0x140] ss:$8 sps:$4 sm:$0xff]   ;;  %v12888_v44 = vld [vmem:[#allocation2 + $0x170] ss:$8 sps:$4 sm:$0xff]   ;;  %v4406_v19 = vsel %vm13171_vm4, %v4401_v13, %v4405_v36  ;;  %v4415_v28 = vrot.slane %v4414_v52, 4  ;;  %v4484_v16 = vor.u32 %v4483_v9, %v4480_v6 }
 0x18f   : > { %v2917_v62 = vpop.permute.xlu0 %2916  ;;  %4231 = vrot.lane.b32.xlu1 %v12884_v12, %s13038_s9  ;;  %v4494_v5 = vrot.slane %v4492_v10, 4  ;;  %v4497_v29 = vrot.slane %v4495_v17, 5  ;;  %v4503_v30 = vrot.slane %v4501_v21, 5  ;;  %v4453_v47 = vshll.u32 %v4289_v0, 16  ;;  %v4301_v27 = vld [vmem:[#allocation2 + $0xd0] sm:$0xf] }
 0x190   : > { %2953 = vst.msk [vmem:[#allocation3 + $0x180] sm:$0xff] %vm2940_vm13, %v2917_v62  ;;  %4225 = vrot.lane.b32.xlu0 %v12883_v33, %s13038_s9  ;;  %v4292_v62 = vld [vmem:[#allocation2 + $0xac] sm:$0x1]  ;;  %v4452_v33 = vrot.slane %v4450_v24, 4  ;;  %v4420_v35 = vsel %vm13171_vm4, %v4415_v28, %v4419_v4  ;;  %v4485_v37 = vrot.slane %v4484_v16, 4  ;;  %v4459_v57 = vshll.u32 %v4290_v11, 16 }
 0x191   : > { %v2923_v60 = vpop.permute.xlu1 %2922  ;;  %v4464_v8 = vshrl.u32 %v4291_v23, 16  ;;  %v14000_v20 = vcombine.low %v4406_v19, %v4420_v35  ;;  %v4498_v42 = vor.u32 %v4497_v29, %v4494_v5  ;;  %v4467_v12 = vshll.u32 %v4291_v23, 16  ;;  %v4302_v45 = vld [vmem:[#allocation2 + $0xd4] sm:$0x1]  ;;  %v4303_v40 = vld [vmem:[#allocation2 + $0xd8] sm:$0xf] }
 0x192   : > { %2956 = vst.msk [vmem:[#allocation3 + $0x1e0] sm:$0xff] %vm2940_vm13, %v2923_v60  ;;  %v4455_v60 = vrot.slane %v4453_v47, 5  ;;  %v4490_v41 = vsel %vm13171_vm4, %v4485_v37, %v4489_v15  ;;  %v4461_v1 = vrot.slane %v4459_v57, 5  ;;  %v4473_v36 = vshll.u32 %v4292_v62, 16  ;;  %v12889_v22 = vld [vmem:[#allocation2 + $0x160] ss:$8 sps:$4 sm:$0xff]  }
 0x193   : > { %4235 = vrot.lane.b32.xlu1 %v12886_v3, %s13038_s9  ;;  %v4466_v18 = vrot.slane %v4464_v8, 4  ;;  %v4499_v43 = vrot.slane %v4498_v42, 4  ;;  %v4534_v50 = vshrl.u32 %v4301_v27, 16  ;;  %v4304_v53 = vld [vmem:[#allocation2 + $0xdc] sm:$0x1]  ;;  %v4537_v54 = vshll.u32 %v4301_v27, 16 }
 0x194   : > { %v2921_v46 = vpop.permute.xlu0 %2920  ;;  %4229 = vrot.lane.b32.xlu0 %v12885_v63, %s13038_s9  ;;  %v4469_v63 = vrot.slane %v4467_v12, 5  ;;  %v4475_v26 = vrot.slane %v4473_v36, 5  ;;  %v4543_v55 = vshll.u32 %v4302_v45, 16  ;;  %v4548_v38 = vshrl.u32 %v4303_v40, 16  ;;  %v4297_v3 = vld [vmem:[#allocation2 + $0xc0] sm:$0xf] }
 0x195   : > { %2955 = vst.msk [vmem:[#allocation3 + $0x1c0] sm:$0xff] %vm2940_vm13, %v2921_v46  ;;  %v3073_v2 = vpop.permute.xlu1 %3072  ;;  %v4456_v46 = vor.u32 %v4455_v60, %v4452_v33  ;;  %v4504_v59 = vsel %vm13171_vm4, %v4499_v43, %v4503_v30  ;;  %v4298_v4 = vld [vmem:[#allocation2 + $0xc4] sm:$0x1]  ;;  %v4539_v7 = vrot.slane %v4537_v54, 5  ;;  %v4299_v9 = vld [vmem:[#allocation2 + $0xc8] sm:$0xf] }
 0x196   : > { %3120 = vst.msk [vmem:[#allocation3 + $0x20] sm:$0xff] %vm3118_vm14, %v3073_v2  ;;  %v4470_v0 = vor.u32 %v4469_v63, %v4466_v18  ;;  %v4536_v2 = vrot.slane %v4534_v50, 4  ;;  %v12157_v6 = vcombine.low %v4490_v41, %v4504_v59  ;;  %v14011_v13 = vrot.slane %v4543_v55, 5  ;;  %v4300_v23 = vld [vmem:[#allocation2 + $0xcc] sm:$0x1] }
 0x197   : > { %4239 = vrot.lane.b32.xlu1 %v12888_v44, %s13038_s9  ;;  %v4457_v32 = vrot.slane %v4456_v46, 4  ;;  %v4550_v52 = vrot.slane %v4548_v38, 4  ;;  %v4557_v15 = vshll.u32 %v4304_v53, 16  ;;  %v4506_v24 = vshrl.u32 %v4297_v3, 16  ;;  %v4309_v29 = vld [vmem:[#allocation2 + $0x100] sm:$0xf] }
 0x198   : > { %v3071_v14 = vpop.permute.xlu0 %3070  ;;  %4233 = vrot.lane.b32.xlu0 %v12887_v25, %s13038_s9  ;;  %v4471_v11 = vrot.slane %v4470_v0, 4  ;;  %v4540_v21 = vor.u32 %v4539_v7, %v4536_v2  ;;  %v4509_v25 = vshll.u32 %v4297_v3, 16  ;;  %v4515_v44 = vshll.u32 %v4298_v4, 16  ;;  %v4311_v27 = vld [vmem:[#allocation2 + $0x108] sm:$0xf] }
 0x199   : > { %3119 = vst.msk [vmem:[#allocation3] sm:$0xff] %vm3118_vm14, %v3071_v14  ;;  %v3077_v34 = vpop.permute.xlu1 %3076  ;;  %v4462_v10 = vsel %vm13171_vm4, %v4457_v32, %v4461_v1  ;;  %v4551_v14 = vshll.u32 %v4303_v40, 16  ;;  %v4520_v5 = vshrl.u32 %v4299_v9, 16  ;;  %v4508_v33 = vrot.slane %v4506_v24, 4  ;;  %v4312_v45 = vld [vmem:[#allocation2 + $0x10c] sm:$0x1] }
 0x19a   : > { %3122 = vst.msk [vmem:[#allocation3 + $0x60] sm:$0xff] %vm3118_vm14, %v3077_v34  ;;  %v4476_v28 = vsel %vm13171_vm4, %v4471_v11, %v4475_v26  ;;  %v4541_v62 = vrot.slane %v4540_v21, 4  ;;  %v4511_v47 = vrot.slane %v4509_v25, 5  ;;  %v4310_v34 = vld [vmem:[#allocation2 + $0x104] sm:$0x1]  ;;  %v14028_v37 = vrot.slane %v4515_v44, 5 }
 0x19b   : > { %4835 = vrot.lane.b32.xlu1 %v13966_v61, %s13039_s10  ;;  %v4553_v16 = vrot.slane %v4551_v14, 5  ;;  %v4559_v61 = vrot.slane %v4557_v15, 5  ;;  %v14022_v30 = vcombine.low %v4462_v10, %v4476_v28  ;;  %v4522_v57 = vrot.slane %v4520_v5, 4  ;;  %v4305_v40 = vld [vmem:[#allocation2 + $0xf0] sm:$0xf] }
 0x19c   : > { %v3075_v39 = vpop.permute.xlu0 %3074  ;;  %4237 = vrot.lane.b32.xlu0 %v12889_v22, %s13038_s9  ;;  %v4523_v8 = vshll.u32 %v4299_v9, 16  ;;  %v4546_v42 = vsel %vm13171_vm4, %v4541_v62, %v14011_v13  ;;  %v4512_v60 = vor.u32 %v4511_v47, %v4508_v33  ;;  %v4529_v12 = vshll.u32 %v4300_v23, 16  ;;  %v563_v22 = vld [vmem:[%s13924_s6 + $0x14] sm:$0x1]  ;;  %v4308_v3 = vld [vmem:[#allocation2 + $0xfc] sm:$0x1] }
 0x19d   : > { %3121 = vst.msk [vmem:[#allocation3 + $0x40] sm:$0xff] %vm3118_vm14, %v3075_v39  ;;  %v3081_v56 = vpop.permute.xlu1 %3080  ;;  %v4554_v35 = vor.u32 %v4553_v16, %v4550_v52  ;;  %v4593_v18 = vshll.u32 %v4309_v29, 16  ;;  %v4599_v36 = vshll.u32 %v4310_v34, 16  ;;  %v4604_v50 = vshrl.u32 %v4311_v27, 16  ;;  %v4306_v38 = vld [vmem:[#allocation2 + $0xf4] sm:$0x1] }
 0x19e   : > { %3124 = vst.msk [vmem:[#allocation3 + $0xa0] sm:$0xff] %vm3118_vm14, %v3081_v56  ;;  %v4525_v1 = vrot.slane %v4523_v8, 5  ;;  %v4513_v43 = vrot.slane %v4512_v60, 4  ;;  %v4531_v46 = vrot.slane %v4529_v12, 5  ;;  %v565_v56 = vld [vmem:[%s13924_s6 + $0x1c] sm:$0x1] }
 0x19f   : > { %4839 = vrot.lane.b32.xlu1 %v13989_v48, %s13039_s10  ;;  %v4555_v41 = vrot.slane %v4554_v35, 4  ;;  %584 = vst.msk [vmem:[#allocation2 + $0x154] sm:$0x1] %vm478_vm1, %v563_v22  ;;  %v4595_v54 = vrot.slane %v4593_v18, 5  ;;  %v14043_v55 = vrot.slane %v4599_v36, 5  ;;  %v4606_v0 = vrot.slane %v4604_v50, 4 }
 0x1a0   : > { %v3079_v58 = vpop.permute.xlu0 %3078  ;;  %4833 = vrot.lane.b32.xlu0 %v13979_v31, %s13039_s10  ;;  %v4590_v31 = vshrl.u32 %v4309_v29, 16  ;;  %v4526_v53 = vor.u32 %v4525_v1, %v4522_v57  ;;  %586 = vst.msk [vmem:[#allocation2 + $0x15c] sm:$0x1] %vm478_vm1, %v565_v56  ;;  %v4607_v2 = vshll.u32 %v4311_v27, 16  ;;  %v559_v4 = vld [vmem:[%s13924_s6 + $0x4] sm:$0x1] }
 0x1a1   : > { %3123 = vst.msk [vmem:[#allocation3 + $0x80] sm:$0xff] %vm3118_vm14, %v3079_v58  ;;  %v3085_v17 = vpop.permute.xlu1 %3084  ;;  %v4560_v26 = vsel %vm13171_vm4, %v4555_v41, %v4559_v61  ;;  %v4307_v58 = vld [vmem:[#allocation2 + $0xf8] sm:$0xf]  ;;  %v4613_v9 = vshll.u32 %v4312_v45, 16  ;;  %v4562_v10 = vshrl.u32 %v4305_v40, 16  ;;  %v4565_v15 = vshll.u32 %v4305_v40, 16 }
 0x1a2   : > { %3126 = vst.msk [vmem:[#allocation3 + $0xe0] sm:$0xff] %vm3118_vm14, %v3085_v17  ;;  %v4592_v63 = vrot.slane %v4590_v31, 4  ;;  %v12159_v32 = vcombine.low %v4546_v42, %v4560_v26  ;;  %v4527_v13 = vrot.slane %v4526_v53, 4  ;;  %v4317_v11 = vld [vmem:[#allocation2 + $0x120] sm:$0xf]  ;;  %v4609_v14 = vrot.slane %v4607_v2, 5 }
 0x1a3   : > { %4843 = vrot.lane.b32.xlu1 %v12157_v6, %s13039_s10  ;;  %v561_v6 = vld [vmem:[%s13924_s6 + $0xc] sm:$0x1]  ;;  %580 = vst.msk [vmem:[#allocation2 + $0x144] sm:$0x1] %vm478_vm1, %v559_v4  ;;  %v4571_v17 = vshll.u32 %v4306_v38, 16  ;;  %v4576_v21 = vshrl.u32 %v4307_v58, 16 }
 0x1a4   : > { %v3083_v19 = vpop.permute.xlu0 %3082  ;;  %4837 = vrot.lane.b32.xlu0 %v14000_v20, %s13039_s10  ;;  %v4518_v20 = vsel %vm13171_vm4, %v4513_v43, %v14028_v37  ;;  %v4596_v52 = vor.u32 %v4595_v54, %v4592_v63  ;;  %582 = vst.msk [vmem:[#allocation2 + $0x14c] sm:$0x1] %vm478_vm1, %v561_v6  ;;  %v4318_v23 = vld [vmem:[#allocation2 + $0x124] sm:$0x1]  ;;  %v4532_v24 = vsel %vm13171_vm4, %v4527_v13, %v4531_v46  ;;  %v4615_v44 = vrot.slane %v4613_v9, 5 }
 0x1a5   : > { %3125 = vst.msk [vmem:[#allocation3 + $0xc0] sm:$0xff] %vm3118_vm14, %v3083_v19  ;;  %v3089_v39 = vpop.permute.xlu1 %3088  ;;  %v4564_v19 = vrot.slane %v4562_v10, 4  ;;  %v571_v28 = vld [vmem:[%s13924_s6 + $0x34] sm:$0x1]  ;;  %v12158_v61 = vcombine.low %v4518_v20, %v4532_v24  ;;  %v4610_v5 = vor.u32 %v4609_v14, %v4606_v0  ;;  %v4567_v29 = vrot.slane %v4565_v15, 5 }
 0x1a6   : > { %3128 = vst.msk [vmem:[#allocation3 + $0x120] sm:$0xff] %vm3118_vm14, %v3089_v39  ;;  %v4597_v25 = vrot.slane %v4596_v52, 4  ;;  %v14061_v62 = vrot.slane %v4571_v17, 5  ;;  %v4319_v33 = vld [vmem:[#allocation2 + $0x128] sm:$0xf]  ;;  %v4578_v35 = vrot.slane %v4576_v21, 4 }
 0x1a7   : > { %4847 = vrot.lane.b32.xlu1 %v12159_v32, %s13039_s10  ;;  %v573_v47 = vld [vmem:[%s13924_s6 + $0x3c] sm:$0x1]  ;;  %592 = vst.msk [vmem:[#allocation2 + $0x174] sm:$0x1] %vm478_vm1, %v571_v28  ;;  %v4579_v37 = vshll.u32 %v4307_v58, 16  ;;  %v4585_v57 = vshll.u32 %v4308_v3, 16  ;;  %v4568_v27 = vor.u32 %v4567_v29, %v4564_v19 }
 0x1a8   : > { %v3087_v48 = vpop.permute.xlu0 %3086  ;;  %4841 = vrot.lane.b32.xlu0 %v14022_v30, %s13039_s10  ;;  %v4602_v34 = vsel %vm13171_vm4, %v4597_v25, %v14043_v55  ;;  %594 = vst.msk [vmem:[#allocation2 + $0x17c] sm:$0x1] %vm478_vm1, %v573_v47  ;;  %v4611_v8 = vrot.slane %v4610_v5, 4  ;;  %v4320_v39 = vld [vmem:[#allocation2 + $0x12c] sm:$0x1]  ;;  %v4646_v42 = vshrl.u32 %v4317_v11, 16 }
 0x1a9   : > { %3127 = vst.msk [vmem:[#allocation3 + $0x100] sm:$0xff] %vm3118_vm14, %v3087_v48  ;;  %v3093_v59 = vpop.permute.xlu1 %3092  ;;  %v4649_v60 = vshll.u32 %v4317_v11, 16  ;;  %v4581_v12 = vrot.slane %v4579_v37, 5  ;;  %v4587_v45 = vrot.slane %v4585_v57, 5  ;;  %v4655_v31 = vshll.u32 %v4318_v23, 16 }
 0x1aa   : > { %3130 = vst.msk [vmem:[#allocation3 + $0x160] sm:$0xff] %vm3118_vm14, %v3093_v59  ;;  %v4660_v40 = vshrl.u32 %v4319_v33, 16  ;;  %v4313_v48 = vld [vmem:[#allocation2 + $0x110] sm:$0xf]  ;;  %v4616_v1 = vsel %vm13171_vm4, %v4611_v8, %v4615_v44  ;;  %v4569_v18 = vrot.slane %v4568_v27, 4  ;;  %v4648_v36 = vrot.slane %v4646_v42, 4 }
 0x1ab   : > { %v4651_v22 = vrot.slane %v4649_v60, 5  ;;  %v4314_v43 = vld [vmem:[#allocation2 + $0x114] sm:$0x1]  ;;  %v12161_v63 = vcombine.low %v4602_v34, %v4616_v1  ;;  %v4582_v50 = vor.u32 %v4581_v12, %v4578_v35  ;;  %v4657_v56 = vrot.slane %v4655_v31, 5  ;;  %v4315_v53 = vld [vmem:[#allocation2 + $0x118] sm:$0xf] }
 0x1ac   : > { %v3091_v7 = vpop.permute.xlu0 %3090  ;;  %4845 = vrot.lane.b32.xlu0 %v12158_v61, %s13039_s10  ;;  %v4662_v26 = vrot.slane %v4660_v40, 4  ;;  %v567_v54 = vld [vmem:[%s13924_s6 + $0x24] sm:$0x1]  ;;  %v4574_v55 = vsel %vm13171_vm4, %v4569_v18, %v14061_v62  ;;  %v4663_v58 = vshll.u32 %v4319_v33, 16  ;;  %v4669_v59 = vshll.u32 %v4320_v39, 16 }
 0x1ad   : > { %3129 = vst.msk [vmem:[#allocation3 + $0x140] sm:$0xff] %vm3118_vm14, %v3091_v7  ;;  %v3097_v16 = vpop.permute.xlu1 %3096  ;;  %v4652_v38 = vor.u32 %v4651_v22, %v4648_v36  ;;  %v4316_v32 = vld [vmem:[#allocation2 + $0x11c] sm:$0x1]  ;;  %v569_v20 = vld [vmem:[%s13924_s6 + $0x2c] sm:$0x1]  ;;  %4851 = vrot.lane.b32.xlu1 %v12161_v63, %s13039_s10  ;;  %v4583_v0 = vrot.slane %v4582_v50, 4 }
 0x1ae   : > { %3132 = vst.msk [vmem:[#allocation3 + $0x1a0] sm:$0xff] %vm3118_vm14, %v3097_v16  ;;  %v4618_v2 = vshrl.u32 %v4313_v48, 16  ;;  %v4621_v3 = vshll.u32 %v4313_v48, 16  ;;  %v4627_v4 = vshll.u32 %v4314_v43, 16  ;;  %v4325_v6 = vld [vmem:[#allocation2 + $0x150] sm:$0xf] }
 0x1af   : > { %588 = vst.msk [vmem:[#allocation2 + $0x164] sm:$0x1] %vm478_vm1, %v567_v54  ;;  %590 = vst.msk [vmem:[#allocation2 + $0x16c] sm:$0x1] %vm478_vm1, %v569_v20  ;;  %v4653_v7 = vrot.slane %v4652_v38, 4  ;;  %v4665_v13 = vrot.slane %v4663_v58, 5  ;;  %v4588_v11 = vsel %vm13171_vm4, %v4583_v0, %v4587_v45 }
 0x1b0   : > { %v3095_v30 = vpop.permute.xlu0 %3094  ;;  %v4671_v52 = vrot.slane %v4669_v59, 5  ;;  %v4632_v9 = vshrl.u32 %v4315_v53, 16  ;;  %v4327_v10 = vld [vmem:[#allocation2 + $0x158] sm:$0xf]  ;;  %v4620_v14 = vrot.slane %v4618_v2, 4  ;;  %v4623_v15 = vrot.slane %v4621_v3, 5 }
 0x1b1   : > { %3131 = vst.msk [vmem:[#allocation3 + $0x180] sm:$0xff] %vm3118_vm14, %v3095_v30  ;;  %v3101_v41 = vpop.permute.xlu1 %3100  ;;  %v4629_v17 = vrot.slane %v4627_v4, 5  ;;  %v4326_v21 = vld [vmem:[#allocation2 + $0x154] sm:$0x1]  ;;  %v12160_v23 = vcombine.low %v4574_v55, %v4588_v11  ;;  %v4658_v24 = vsel %vm13171_vm4, %v4653_v7, %v4657_v56  ;;  %v4666_v25 = vor.u32 %v4665_v13, %v4662_v26  ;;  %v4321_v5 = vld [vmem:[#allocation2 + $0x140] sm:$0xf] }
 0x1b2   : > { %3134 = vst.msk [vmem:[#allocation3 + $0x1e0] sm:$0xff] %vm3118_vm14, %v3101_v41  ;;  %v4634_v44 = vrot.slane %v4632_v9, 4  ;;  %v4624_v19 = vor.u32 %v4623_v15, %v4620_v14  ;;  %v4635_v28 = vshll.u32 %v4315_v53, 16  ;;  %v4641_v16 = vshll.u32 %v4316_v32, 16  ;;  %v4323_v30 = vld [vmem:[#allocation2 + $0x148] sm:$0xf] }
 0x1b3   : > { %v4702_v61 = vshrl.u32 %v4325_v6, 16  ;;  %4849 = vrot.lane.b32.xlu0 %v12160_v23, %s13039_s10  ;;  %v4667_v29 = vrot.slane %v4666_v25, 4  ;;  %v4705_v62 = vshll.u32 %v4325_v6, 16  ;;  %v4711_v33 = vshll.u32 %v4326_v21, 16  ;;  %v4328_v57 = vld [vmem:[#allocation2 + $0x15c] sm:$0x1] }
 0x1b4   : > { %v3099_v46 = vpop.permute.xlu0 %3098  ;;  %v4716_v47 = vshrl.u32 %v4327_v10, 16  ;;  %v4625_v34 = vrot.slane %v4624_v19, 4  ;;  %v4637_v35 = vrot.slane %v4635_v28, 5  ;;  %v4643_v37 = vrot.slane %v4641_v16, 5  ;;  %v4322_v12 = vld [vmem:[#allocation2 + $0x144] sm:$0x1] }
 0x1b5   : > { %3133 = vst.msk [vmem:[#allocation3 + $0x1c0] sm:$0xff] %vm3118_vm14, %v3099_v46  ;;  %v4704_v8 = vrot.slane %v4702_v61, 4  ;;  %v4672_v27 = vsel %vm13171_vm4, %v4667_v29, %v4671_v52  ;;  %v4707_v39 = vrot.slane %v4705_v62, 5  ;;  %v4713_v42 = vrot.slane %v4711_v33, 5  ;;  %v4333_v50 = vld [vmem:[#allocation2 + $0x170] sm:$0xf]  ;;  %v14094_v38 = vpop.permute.xlu1 %3697 }
 0x1b6   : > { %v4718_v60 = vrot.slane %v4716_v47, 4  ;;  %v12163_v45 = vcombine.low %v4658_v24, %v4672_v27  ;;  %v4630_v31 = vsel %vm13171_vm4, %v4625_v34, %v4629_v17  ;;  %v4638_v40 = vor.u32 %v4637_v35, %v4634_v44  ;;  %v4324_v53 = vld [vmem:[#allocation2 + $0x14c] sm:$0x1]  ;;  %v4334_v0 = vld [vmem:[#allocation2 + $0x174] sm:$0x1]  ;;  %3745 = vst.msk [vmem:[#allocation3 + $0x20] sm:$0xff] %vm3743_vm15, %v14094_v38 }
 0x1b7   : > { %v4719_v48 = vshll.u32 %v4327_v10, 16  ;;  %v4708_v41 = vor.u32 %v4707_v39, %v4704_v8  ;;  %v4725_v1 = vshll.u32 %v4328_v57, 16  ;;  %v4674_v18 = vshrl.u32 %v4321_v5, 16  ;;  %v4335_v2 = vld [vmem:[#allocation2 + $0x178] sm:$0xf] }
 0x1b8   : > { %v4677_v36 = vshll.u32 %v4321_v5, 16  ;;  %4855 = vrot.lane.b32.xlu1 %v12163_v45, %s13039_s10  ;;  %v4639_v22 = vrot.slane %v4638_v40, 4  ;;  %v4683_v46 = vshll.u32 %v4322_v12, 16  ;;  %v4688_v63 = vshrl.u32 %v4323_v30, 16  ;;  %v14100_v13 = vpop.permute.xlu0 %3695  ;;  %v4329_v14 = vld [vmem:[#allocation2 + $0x160] sm:$0xf] }
 0x1b9   : > { %v4721_v43 = vrot.slane %v4719_v48, 5  ;;  %v4709_v56 = vrot.slane %v4708_v41, 4  ;;  %v4727_v26 = vrot.slane %v4725_v1, 5  ;;  %v4676_v54 = vrot.slane %v4674_v18, 4  ;;  %v4336_v21 = vld [vmem:[#allocation2 + $0x17c] sm:$0x1]  ;;  %v14107_v47 = vpop.permute.xlu1 %3701 }
 0x1ba   : > { %v4679_v55 = vrot.slane %v4677_v36, 5  ;;  %v4644_v58 = vsel %vm13171_vm4, %v4639_v22, %v4643_v37  ;;  %v4685_v32 = vrot.slane %v4683_v46, 5  ;;  %v4690_v20 = vrot.slane %v4688_v63, 4  ;;  %v4330_v16 = vld [vmem:[#allocation2 + $0x164] sm:$0x1]  ;;  %3744 = vst.msk [vmem:[#allocation3] sm:$0xff] %vm3743_vm15, %v14100_v13 }
 0x1bb   : > { %v4722_v59 = vor.u32 %v4721_v43, %v4718_v60  ;;  %v12162_v3 = vcombine.low %v4630_v31, %v4644_v58  ;;  %v4714_v4 = vsel %vm13171_vm4, %v4709_v56, %v4713_v42  ;;  %v4691_v7 = vshll.u32 %v4323_v30, 16  ;;  %v4331_v33 = vld [vmem:[#allocation2 + $0x168] sm:$0xf]  ;;  %v4901_v57 = vld [vmem:[#allocation2 + $0x60] sm:$0xe]  ;;  %3747 = vst.msk [vmem:[#allocation3 + $0x60] sm:$0xff] %vm3743_vm15, %v14107_v47 }
 0x1bc   : > { %v4680_v6 = vor.u32 %v4679_v55, %v4676_v54  ;;  %v4697_v9 = vshll.u32 %v4324_v53, 16  ;;  %v4758_v10 = vshrl.u32 %v4333_v50, 16  ;;  %v4761_v11 = vshll.u32 %v4333_v50, 16  ;;  %v4902_v60 = vld [vmem:[#allocation2 + $0x64] sm:$0x1]  ;;  %v14110_v45 = vpop.permute.xlu0 %3699 }
 0x1bd   : > { %v4723_v52 = vrot.slane %v4722_v59, 4  ;;  %4853 = vrot.lane.b32.xlu0 %v12162_v3, %s13039_s10  ;;  %v4693_v17 = vrot.slane %v4691_v7, 5  ;;  %v4767_v23 = vshll.u32 %v4334_v0, 16  ;;  %v4772_v24 = vshrl.u32 %v4335_v2, 16  ;;  %v4903_v12 = vld [vmem:[#allocation2 + $0x68] sm:$0xe]  ;;  %v14118_v3 = vpop.permute.xlu1 %3705 }
 0x1be   : > { %v4681_v15 = vrot.slane %v4680_v6, 4  ;;  %v4699_v44 = vrot.slane %v4697_v9, 5  ;;  %v4760_v19 = vrot.slane %v4758_v10, 4  ;;  %v4763_v28 = vrot.slane %v4761_v11, 5  ;;  %v4332_v41 = vld [vmem:[#allocation2 + $0x16c] sm:$0x1] }
 0x1bf   : > { %v4728_v25 = vsel %vm13171_vm4, %v4723_v52, %v4727_v26  ;;  %v4694_v29 = vor.u32 %v4693_v17, %v4690_v20  ;;  %v4769_v62 = vrot.slane %v4767_v23, 5  ;;  %v4774_v34 = vrot.slane %v4772_v24, 4  ;;  %v4904_v46 = vld [vmem:[#allocation2 + $0x6c] sm:$0x1]  ;;  %v4897_v53 = vld [vmem:[#allocation2 + $0x50] sm:$0xe] }
 0x1c0   : > { %v12165_v61 = vcombine.low %v4714_v4, %v4728_v25  ;;  %v4686_v5 = vsel %vm13171_vm4, %v4681_v15, %v4685_v32  ;;  %v4764_v30 = vor.u32 %v4763_v28, %v4760_v19  ;;  %v4775_v35 = vshll.u32 %v4335_v2, 16  ;;  %v4898_v54 = vld [vmem:[#allocation2 + $0x54] sm:$0x1]  ;;  %v4899_v20 = vld [vmem:[#allocation2 + $0x58] sm:$0xe]  ;;  %3746 = vst.msk [vmem:[#allocation3 + $0x40] sm:$0xff] %vm3743_vm15, %v14110_v45 }
 0x1c1   : > { %v4781_v37 = vshll.u32 %v4336_v21, 16  ;;  %v4695_v8 = vrot.slane %v4694_v29, 4  ;;  %v4730_v27 = vshrl.u32 %v4329_v14, 16  ;;  %v4733_v39 = vshll.u32 %v4329_v14, 16  ;;  %v4900_v0 = vld [vmem:[#allocation2 + $0x5c] sm:$0x1]  ;;  %v14121_v21 = vpop.permute.xlu0 %3703 }
 0x1c2   : > { %4859 = vrot.lane.b32.xlu1 %v12165_v61, %s13039_s10  ;;  %v4739_v42 = vshll.u32 %v4330_v16, 16  ;;  %v4765_v31 = vrot.slane %v4764_v30, 4  ;;  %v4777_v40 = vrot.slane %v4775_v35, 5  ;;  %v4744_v1 = vshrl.u32 %v4331_v33, 16  ;;  %v4909_v2 = vld [vmem:[#allocation2 + $0x80] sm:$0xe] }
 0x1c3   : > { %v4783_v48 = vrot.slane %v4781_v37, 5  ;;  %v4700_v18 = vsel %vm13171_vm4, %v4695_v8, %v4699_v44  ;;  %v4732_v36 = vrot.slane %v4730_v27, 4  ;;  %v4735_v22 = vrot.slane %v4733_v39, 5  ;;  %v4910_v9 = vld [vmem:[#allocation2 + $0x84] sm:$0x1]  ;;  %3749 = vst.msk [vmem:[#allocation3 + $0xa0] sm:$0xff] %vm3743_vm15, %v14118_v3 }
 0x1c4   : > { %v14114_v43 = vrot.slane %v4739_v42, 5  ;;  %v12164_v63 = vcombine.low %v4686_v5, %v4700_v18  ;;  %v4770_v50 = vsel %vm13171_vm4, %v4765_v31, %v4769_v62  ;;  %v4778_v56 = vor.u32 %v4777_v40, %v4774_v34  ;;  %v4911_v17 = vld [vmem:[#allocation2 + $0x88] sm:$0xe]  ;;  %v4912_v19 = vld [vmem:[#allocation2 + $0x8c] sm:$0x1]  ;;  %3748 = vst.msk [vmem:[#allocation3 + $0x80] sm:$0xff] %vm3743_vm15, %v14121_v21 }
 0x1c5   : > { %v4746_v26 = vrot.slane %v4744_v1, 4  ;;  %v4736_v55 = vor.u32 %v4735_v22, %v4732_v36  ;;  %v4747_v58 = vshll.u32 %v4331_v33, 16  ;;  %v4753_v59 = vshll.u32 %v4332_v41, 16  ;;  %v4905_v28 = vld [vmem:[#allocation2 + $0x70] sm:$0xe]  ;;  %v14137_v1 = vpop.permute.xlu1 %3709 }
 0x1c6   : > { %v12170_v32 = vrot.slane %v4901_v57, 9  ;;  %4857 = vrot.lane.b32.xlu0 %v12164_v63, %s13039_s10  ;;  %v4779_v4 = vrot.slane %v4778_v56, 4  ;;  %v5035_v6 = vrot.slane %v4902_v60, 5  ;;  %v12171_v7 = vrot.slane %v4903_v12, 9  ;;  %v4906_v62 = vld [vmem:[#allocation2 + $0x74] sm:$0x1] }
 0x1c7   : > { %v5039_v52 = vrot.slane %v4904_v46, 5  ;;  %v4737_v10 = vrot.slane %v4736_v55, 4  ;;  %v4749_v11 = vrot.slane %v4747_v58, 5  ;;  %v4755_v14 = vrot.slane %v4753_v59, 5  ;;  %v4907_v33 = vld [vmem:[#allocation2 + $0x78] sm:$0xe] }
 0x1c8   : > { %v12168_v15 = vrot.slane %v4897_v53, 9  ;;  %v4784_v23 = vsel %vm13171_vm4, %v4779_v4, %v4783_v48  ;;  %v5036_v24 = vsel %vm13333_vm7, %v12170_v32, %v5035_v6  ;;  %v5027_v44 = vrot.slane %v4898_v54, 5  ;;  %v4908_v30 = vld [vmem:[#allocation2 + $0x7c] sm:$0x1]  ;;  %v4917_v8 = vld [vmem:[#allocation2 + $0xb0] sm:$0xe]  ;;  %v14148_v58 = vpop.permute.xlu0 %3707 }
 0x1c9   : > { %v5040_v25 = vsel %vm13333_vm7, %v12171_v7, %v5039_v52  ;;  %v12167_v16 = vcombine.low %v4770_v50, %v4784_v23  ;;  %v4742_v61 = vsel %vm13171_vm4, %v4737_v10, %v14114_v43  ;;  %v4750_v5 = vor.u32 %v4749_v11, %v4746_v26  ;;  %v4918_v27 = vld [vmem:[#allocation2 + $0xb4] sm:$0x1]  ;;  %v4919_v39 = vld [vmem:[#allocation2 + $0xb8] sm:$0xe]  ;;  %v4920_v42 = vld [vmem:[#allocation2 + $0xbc] sm:$0x1] }
 0x1ca   : > { %v12201_v29 = vcombine.low %v5036_v24, %v5040_v25  ;;  %v14134_v34 = vsel %vm13333_vm7, %v12168_v15, %v5027_v44  ;;  %v12169_v35 = vrot.slane %v4899_v20, 9  ;;  %v5031_v37 = vrot.slane %v4900_v0, 5  ;;  %v4913_v48 = vld [vmem:[#allocation2 + $0xa0] sm:$0xe]  ;;  %v4914_v41 = vld [vmem:[#allocation2 + $0xa4] sm:$0x1] }
 0x1cb   : > { %v12174_v57 = vrot.slane %v4909_v2, 9  ;;  %4863 = vrot.lane.b32.xlu1 %v12167_v16, %s13039_s10  ;;  %v4751_v60 = vrot.slane %v4750_v5, 4  ;;  %v5051_v12 = vrot.slane %v4910_v9, 5  ;;  %v12175_v31 = vrot.slane %v4911_v17, 9  ;;  %v4915_v46 = vld [vmem:[#allocation2 + $0xa8] sm:$0xe] }
 0x1cc   : > { %v5055_v40 = vrot.slane %v4912_v19, 5  ;;  %v5032_v18 = vsel %vm13333_vm7, %v12169_v35, %v5031_v37  ;;  %v12172_v36 = vrot.slane %v4905_v28, 9  ;;  %v5043_v22 = vrot.slane %v4906_v62, 5  ;;  %v4916_v53 = vld [vmem:[#allocation2 + $0xac] sm:$0x1]  ;;  %3751 = vst.msk [vmem:[#allocation3 + $0xe0] sm:$0xff] %vm3743_vm15, %v14137_v1 }
 0x1cd   : > { %v12173_v43 = vrot.slane %v4907_v33, 9  ;;  %v4756_v63 = vsel %vm13171_vm4, %v4751_v60, %v4755_v14  ;;  %v12200_v50 = vcombine.low %v14134_v34, %v5032_v18  ;;  %v5052_v56 = vsel %vm13333_vm7, %v12174_v57, %v5051_v12  ;;  %v4925_v54 = vld [vmem:[#allocation2 + $0xd0] sm:$0xe]  ;;  %v4926_v55 = vld [vmem:[#allocation2 + $0xd4] sm:$0x1]  ;;  %3750 = vst.msk [vmem:[#allocation3 + $0xc0] sm:$0xff] %vm3743_vm15, %v14148_v58 }
 0x1ce   : > { %v5056_v26 = vsel %vm13333_vm7, %v12175_v31, %v5055_v40  ;;  %v12166_v59 = vcombine.low %v4742_v61, %v4756_v63  ;;  %v14152_v20 = vsel %vm13333_vm7, %v12172_v36, %v5043_v22  ;;  %v5047_v0 = vrot.slane %v4908_v30, 5  ;;  %v4927_v2 = vld [vmem:[#allocation2 + $0xd8] sm:$0xe]  ;;  %v4928_v4 = vld [vmem:[#allocation2 + $0xdc] sm:$0x1] }
 0x1cf   : > { %v12203_v32 = vcombine.low %v5052_v56, %v5056_v26  ;;  %v4921_v6 = vld [vmem:[#allocation2 + $0xc0] sm:$0xe]  ;;  %5203 = vrot.lane.b32.xlu1 %v12201_v29, %s13040_s11  ;;  %v12178_v7 = vrot.slane %v4917_v8, 9  ;;  %v5067_v52 = vrot.slane %v4918_v27, 5  ;;  %v12179_v9 = vrot.slane %v4919_v39, 9  ;;  %v14162_v29 = vpop.permute.xlu1 %3713 }
 0x1d0   : > { %v5071_v10 = vrot.slane %v4920_v42, 5  ;;  %v4922_v11 = vld [vmem:[#allocation2 + $0xc4] sm:$0x1]  ;;  %v4923_v14 = vld [vmem:[#allocation2 + $0xc8] sm:$0xe]  ;;  %4861 = vrot.lane.b32.xlu0 %v12166_v59, %s13039_s10  ;;  %v5048_v15 = vsel %vm13333_vm7, %v12173_v43, %v5047_v0  ;;  %v12176_v17 = vrot.slane %v4913_v48, 9 }
 0x1d1   : > { %v5059_v23 = vrot.slane %v4914_v41, 5  ;;  %v12177_v24 = vrot.slane %v4915_v46, 9  ;;  %v4924_v25 = vld [vmem:[#allocation2 + $0xcc] sm:$0x1]  ;;  %v4933_v44 = vld [vmem:[#allocation2 + $0x100] sm:$0xe]  ;;  %v5068_v19 = vsel %vm13333_vm7, %v12178_v7, %v5067_v52  ;;  %v12202_v62 = vcombine.low %v14152_v20, %v5048_v15 }
 0x1d2   : > { %v5072_v28 = vsel %vm13333_vm7, %v12179_v9, %v5071_v10  ;;  %v5063_v16 = vrot.slane %v4916_v53, 5  ;;  %v4934_v61 = vld [vmem:[#allocation2 + $0x104] sm:$0x1]  ;;  %v4935_v5 = vld [vmem:[#allocation2 + $0x108] sm:$0xe]  ;;  %v12182_v30 = vrot.slane %v4925_v54, 9  ;;  %v3712_v60 = vpop.permute.xlu0 %3711 }
 0x1d3   : > { %v12205_v33 = vcombine.low %v5068_v19, %v5072_v28  ;;  %v5083_v34 = vrot.slane %v4926_v55, 5  ;;  %v4936_v35 = vld [vmem:[#allocation2 + $0x10c] sm:$0x1]  ;;  %v14165_v37 = vld [vmem:[#allocation2 + $0xf0] sm:$0xe]  ;;  %5207 = vrot.lane.b32.xlu1 %v12203_v32, %s13040_s11  ;;  %v14170_v57 = vsel %vm13333_vm7, %v12176_v17, %v5059_v23  ;;  %v12183_v8 = vrot.slane %v4927_v2, 9 }
 0x1d4   : > { %v5087_v27 = vrot.slane %v4928_v4, 5  ;;  %v12180_v39 = vrot.slane %v4921_v6, 9  ;;  %v14172_v42 = vld [vmem:[#allocation2 + $0xf4] sm:$0x1]  ;;  %5201 = vrot.lane.b32.xlu0 %v12200_v50, %s13040_s11  ;;  %v14177_v12 = vsel %vm13333_vm7, %v12177_v24, %v5063_v16  ;;  %v5075_v40 = vrot.slane %v4922_v11, 5  ;;  %3753 = vst.msk [vmem:[#allocation3 + $0x120] sm:$0xff] %vm3743_vm15, %v14162_v29 }
 0x1d5   : > { %v5084_v31 = vsel %vm13333_vm7, %v12182_v30, %v5083_v34  ;;  %v12181_v48 = vrot.slane %v4923_v14, 9  ;;  %v14181_v41 = vld [vmem:[#allocation2 + $0xf8] sm:$0xe]  ;;  %v14183_v18 = vld [vmem:[#allocation2 + $0xfc] sm:$0x1]  ;;  %v5079_v43 = vrot.slane %v4924_v25, 5  ;;  %v12204_v10 = vcombine.low %v14170_v57, %v14177_v12 }
 0x1d6   : > { %v14185_v36 = vld [vmem:[#allocation2 + $0x120] sm:$0xe]  ;;  %v5088_v22 = vsel %vm13333_vm7, %v12183_v8, %v5087_v27  ;;  %v12186_v46 = vrot.slane %v4933_v44, 9  ;;  %v5099_v63 = vrot.slane %v4934_v61, 5  ;;  %v4942_v50 = vld [vmem:[#allocation2 + $0x124] sm:$0x1]  ;;  %v14191_v54 = vsel %vm13333_vm7, %v12180_v39, %v5075_v40  ;;  %v3718_v9 = vpop.permute.xlu1 %3717 }
 0x1d7   : > { %v4943_v56 = vld [vmem:[#allocation2 + $0x128] sm:$0xe]  ;;  %v4944_v26 = vld [vmem:[#allocation2 + $0x12c] sm:$0x1]  ;;  %v12207_v53 = vcombine.low %v5084_v31, %v5088_v22  ;;  %v12187_v55 = vrot.slane %v4935_v5, 9  ;;  %v5103_v59 = vrot.slane %v4936_v35, 5  ;;  %5211 = vrot.lane.b32.xlu1 %v12205_v33, %s13040_s11  ;;  %v14198_v0 = vsel %vm13333_vm7, %v12181_v48, %v5079_v43 }
 0x1d8   : > { %v14193_v32 = vld [vmem:[#allocation2 + $0x110] sm:$0xe]  ;;  %v4938_v20 = vld [vmem:[#allocation2 + $0x114] sm:$0x1]  ;;  %v14202_v2 = vsel %vm13333_vm7, %v12186_v46, %v5099_v63  ;;  %v12184_v4 = vrot.slane %v14165_v37, 9  ;;  %v5091_v6 = vrot.slane %v14172_v42, 5  ;;  %5205 = vrot.lane.b32.xlu0 %v12202_v62, %s13040_s11  ;;  %v12206_v11 = vcombine.low %v14191_v54, %v14198_v0 }
 0x1d9   : > { %v14206_v7 = vld [vmem:[#allocation2 + $0x118] sm:$0xe]  ;;  %v14208_v52 = vld [vmem:[#allocation2 + $0x11c] sm:$0x1]  ;;  %v5104_v14 = vsel %vm13333_vm7, %v12187_v55, %v5103_v59  ;;  %v4949_v15 = vld [vmem:[#allocation2 + $0x150] sm:$0xe] }
 0x1da   : > { %v4950_v17 = vld [vmem:[#allocation2 + $0x154] sm:$0x1]  ;;  %v14217_v23 = vld [vmem:[#allocation2 + $0x158] sm:$0xe]  ;;  %v12185_v24 = vrot.slane %v14181_v41, 9  ;;  %v5095_v25 = vrot.slane %v14183_v18, 5  ;;  %v12209_v5 = vcombine.low %v14202_v2, %v5104_v14  ;;  %v5092_v38 = vsel %vm13333_vm7, %v12184_v4, %v5091_v6 }
 0x1db   : > { %v12190_v44 = vrot.slane %v14185_v36, 9  ;;  %v4952_v19 = vld [vmem:[#allocation2 + $0x15c] sm:$0x1]  ;;  %v14222_v28 = vld [vmem:[#allocation2 + $0x140] sm:$0xe]  ;;  %v3716_v61 = vpop.permute.xlu0 %3715  ;;  %v5115_v62 = vrot.slane %v4942_v50, 5  ;;  %5215 = vrot.lane.b32.xlu1 %v12207_v53, %s13040_s11 }
 0x1dc   : > { %v14224_v16 = vld [vmem:[#allocation2 + $0x144] sm:$0x1]  ;;  %v12191_v33 = vrot.slane %v4943_v56, 9  ;;  %v5119_v30 = vrot.slane %v4944_v26, 5  ;;  %v4947_v34 = vld [vmem:[#allocation2 + $0x148] sm:$0xe]  ;;  %5209 = vrot.lane.b32.xlu0 %v12204_v10, %s13040_s11  ;;  %v5096_v57 = vsel %vm13333_vm7, %v12185_v24, %v5095_v25 }
 0x1dd   : > { %3752 = vst.msk [vmem:[#allocation3 + $0x100] sm:$0xff] %vm3743_vm15, %v3712_v60  ;;  %3755 = vst.msk [vmem:[#allocation3 + $0x160] sm:$0xff] %vm3743_vm15, %v3718_v9  ;;  %v12188_v13 = vrot.slane %v14193_v32, 9  ;;  %v5107_v47 = vrot.slane %v4938_v20, 5  ;;  %v12189_v45 = vrot.slane %v14206_v7, 9  ;;  %v5116_v21 = vsel %vm13333_vm7, %v12190_v44, %v5115_v62 }
 0x1de   : > { %3754 = vst.msk [vmem:[#allocation3 + $0x140] sm:$0xff] %vm3743_vm15, %v3716_v61  ;;  %v4948_v3 = vld [vmem:[#allocation2 + $0x14c] sm:$0x1]  ;;  %v5120_v1 = vsel %vm13333_vm7, %v12191_v33, %v5119_v30  ;;  %v5111_v58 = vrot.slane %v14208_v52, 5  ;;  %v12194_v29 = vrot.slane %v4949_v15, 9  ;;  %v5131_v27 = vrot.slane %v4950_v17, 5 }
 0x1df   : > { %v4957_v35 = vld [vmem:[#allocation2 + $0x170] sm:$0xe]  ;;  %v4958_v37 = vld [vmem:[#allocation2 + $0x174] sm:$0x1]  ;;  %v12211_v8 = vcombine.low %v5116_v21, %v5120_v1  ;;  %v12195_v39 = vrot.slane %v14217_v23, 9  ;;  %v5108_v12 = vsel %vm13333_vm7, %v12188_v13, %v5107_v47  ;;  %v5135_v31 = vrot.slane %v4952_v19, 5  ;;  %5219 = vrot.lane.b32.xlu1 %v12209_v5, %s13040_s11 }
 0x1e0   : > { %v4959_v42 = vld [vmem:[#allocation2 + $0x178] sm:$0xe]  ;;  %v4960_v60 = vld [vmem:[#allocation2 + $0x17c] sm:$0x1]  ;;  %v12192_v40 = vrot.slane %v14222_v28, 9  ;;  %v5123_v48 = vrot.slane %v14224_v16, 5  ;;  %v3722_v36 = vpop.permute.xlu1 %3721  ;;  %v5112_v22 = vsel %vm13333_vm7, %v12189_v45, %v5111_v58  ;;  %v5132_v43 = vsel %vm13333_vm7, %v12194_v29, %v5131_v27  ;;  %5213 = vrot.lane.b32.xlu0 %v12206_v11, %s13040_s11 }
 0x1e1   : > { %v4953_v41 = vld [vmem:[#allocation2 + $0x160] sm:$0xe]  ;;  %v4954_v18 = vld [vmem:[#allocation2 + $0x164] sm:$0x1]  ;;  %v12193_v46 = vrot.slane %v4947_v34, 9  ;;  %v5127_v63 = vrot.slane %v4948_v3, 5  ;;  %v12208_v56 = vcombine.low %v5092_v38, %v5096_v57  ;;  %v5136_v26 = vsel %vm13333_vm7, %v12195_v39, %v5135_v31 }
 0x1e2   : > { %v4955_v50 = vld [vmem:[#allocation2 + $0x168] sm:$0xe]  ;;  %3757 = vst.msk [vmem:[#allocation3 + $0x1a0] sm:$0xff] %vm3743_vm15, %v3722_v36  ;;  %v12198_v53 = vrot.slane %v4957_v35, 9  ;;  %v5147_v55 = vrot.slane %v4958_v37, 5  ;;  %v12199_v59 = vrot.slane %v4959_v42, 9  ;;  %v12210_v2 = vcombine.low %v5108_v12, %v5112_v22 }
 0x1e3   : > { %v5151_v32 = vrot.slane %v4960_v60, 5  ;;  %v5442_v20 = vld [vmem:[#allocation2 + $0x58] sm:$0xf]  ;;  %v12213_v4 = vcombine.low %v5132_v43, %v5136_v26  ;;  %v5124_v6 = vsel %vm13333_vm7, %v12192_v40, %v5123_v48  ;;  %v5128_v7 = vsel %vm13333_vm7, %v12193_v46, %v5127_v63  ;;  %v4956_v52 = vld [vmem:[#allocation2 + $0x16c] sm:$0x1]  ;;  %5223 = vrot.lane.b32.xlu1 %v12211_v8, %s13040_s11 }
 0x1e4   : > { %v5443_v54 = vld [vmem:[#allocation2 + $0x5c] sm:$0x1]  ;;  %v5444_v0 = vld [vmem:[#allocation2 + $0x60] sm:$0xf]  ;;  %v12196_v9 = vrot.slane %v4953_v41, 9  ;;  %v5139_v10 = vrot.slane %v4954_v18, 5  ;;  %v3720_v17 = vpop.permute.xlu0 %3719  ;;  %5217 = vrot.lane.b32.xlu0 %v12208_v56, %s13040_s11  ;;  %v5148_v23 = vsel %vm13333_vm7, %v12198_v53, %v5147_v55  ;;  %v12212_v38 = vcombine.low %v5124_v6, %v5128_v7 }
 0x1e5   : > { %v12197_v11 = vrot.slane %v4955_v50, 9  ;;  %v5445_v14 = vld [vmem:[#allocation2 + $0x64] sm:$0x1]  ;;  %v5507_v15 = vshrl.u32 %v5442_v20, 16  ;;  %v5152_v24 = vsel %vm13333_vm7, %v12199_v59, %v5151_v32  ;;  %v5510_v25 = vshll.u32 %v5442_v20, 16  ;;  %3756 = vst.msk [vmem:[#allocation3 + $0x180] sm:$0xff] %vm3743_vm15, %v3720_v17 }
 0x1e6   : > { %v5516_v44 = vshll.u32 %v5443_v54, 16  ;;  %v5143_v19 = vrot.slane %v4956_v52, 5  ;;  %v5521_v16 = vshrl.u32 %v5444_v0, 16  ;;  %v5524_v61 = vshll.u32 %v5444_v0, 16  ;;  %v6066_v3 = vld [vmem:[#allocation2 + $0x58] sm:$0xe] }
 0x1e7   : > { %v5509_v28 = vrot.slane %v5507_v15, 4  ;;  %v5512_v5 = vrot.slane %v5510_v25, 5  ;;  %v5530_v62 = vshll.u32 %v5445_v14, 16  ;;  %5227 = vrot.lane.b32.xlu1 %v12213_v4, %s13040_s11  ;;  %v12215_v33 = vcombine.low %v5148_v23, %v5152_v24  ;;  %v6067_v21 = vld [vmem:[#allocation2 + $0x5c] sm:$0x1] }
 0x1e8   : > { %v5523_v30 = vrot.slane %v5521_v16, 4  ;;  %v5526_v34 = vrot.slane %v5524_v61, 5  ;;  %5221 = vrot.lane.b32.xlu0 %v12210_v2, %s13040_s11  ;;  %v5140_v13 = vsel %vm13333_vm7, %v12196_v9, %v5139_v10  ;;  %v5518_v45 = vrot.slane %v5516_v44, 5  ;;  %v6068_v37 = vld [vmem:[#allocation2 + $0x60] sm:$0xe] }
 0x1e9   : > { %v5513_v47 = vor.u32 %v5512_v5, %v5509_v28  ;;  %v3726_v1 = vpop.permute.xlu1 %3725  ;;  %v5144_v58 = vsel %vm13333_vm7, %v12197_v11, %v5143_v19  ;;  %v5532_v35 = vrot.slane %v5530_v62, 5  ;;  %v6069_v57 = vld [vmem:[#allocation2 + $0x64] sm:$0x1]  ;;  %v12248_v8 = vrot.slane %v6066_v3, 9  ;;  %v12890_v12 = vld [vmem:[#allocation2 + $0x68] ss:$8 sps:$4 sm:$0xff]  }
 0x1ea   : > { %v5527_v29 = vor.u32 %v5526_v34, %v5523_v30  ;;  %3759 = vst.msk [vmem:[#allocation3 + $0x1e0] sm:$0xff] %vm3743_vm15, %v3726_v1  ;;  %v6196_v39 = vrot.slane %v6067_v21, 5  ;;  %v12249_v42 = vrot.slane %v6068_v37, 9  ;;  %v6200_v60 = vrot.slane %v6069_v57, 5  ;;  %v7203_v41 = vld [vmem:[#allocation2 + $0x60] sm:$0xe] }
 0x1eb   : > { %v5514_v27 = vrot.slane %v5513_v47, 4  ;;  %5231 = vrot.lane.b32.xlu1 %v12215_v33, %s13040_s11  ;;  %v12214_v40 = vcombine.low %v5140_v13, %v5144_v58  ;;  %v7204_v18 = vld [vmem:[#allocation2 + $0x64] sm:$0x1]  ;;  %v7205_v36 = vld [vmem:[#allocation2 + $0x68] sm:$0xe]  ;;  %v12328_v50 = vrot.slane %v7203_v41, 9 }
 0x1ec   : > { %v5528_v31 = vrot.slane %v5527_v29, 4  ;;  %5225 = vrot.lane.b32.xlu0 %v12212_v38, %s13040_s11  ;;  %v7206_v63 = vld [vmem:[#allocation2 + $0x6c] sm:$0x1]  ;;  %v7333_v56 = vrot.slane %v7204_v18, 5  ;;  %v8372_v26 = vld [vmem:[#allocation2 + $0xa0] sm:$0xe]  ;;  %v14307_v55 = vsel %vm13333_vm7, %v12248_v8, %v6196_v39  ;;  %v14311_v59 = vsel %vm13333_vm7, %v12249_v42, %v6200_v60 }
 0x1ed   : > { %v5519_v48 = vsel %vm13171_vm4, %v5514_v27, %v5518_v45  ;;  %v14300_v43 = vpop.permute.xlu1 %4211  ;;  %v12891_v53 = vld [vmem:[#allocation2 + $0x58] ss:$8 sps:$4 sm:$0xff]   ;;  %v8373_v32 = vld [vmem:[#allocation2 + $0xa4] sm:$0x1]  ;;  %v8374_v20 = vld [vmem:[#allocation2 + $0xa8] sm:$0xe]  ;;  %v12280_v17 = vcombine.low %v14307_v55, %v14311_v59 }
 0x1ee   : > { %v3724_v22 = vpop.permute.xlu0 %3723  ;;  %v5533_v46 = vsel %vm13171_vm4, %v5528_v31, %v5532_v35  ;;  %v12329_v4 = vrot.slane %v7205_v36, 9  ;;  %v7337_v6 = vrot.slane %v7206_v63, 5  ;;  %v8375_v7 = vld [vmem:[#allocation2 + $0xac] sm:$0x1]  ;;  %v12408_v52 = vrot.slane %v8372_v26, 9 }
 0x1ef   : > { %3758 = vst.msk [vmem:[#allocation3 + $0x1c0] sm:$0xff] %vm3743_vm15, %v3724_v22  ;;  %5380 = vrot.lane.b32.xlu1 %v12890_v12, %s13041_s12  ;;  %v12232_v2 = vcombine.low %v5519_v48, %v5533_v46  ;;  %v8502_v54 = vrot.slane %v8373_v32, 5  ;;  %v12409_v0 = vrot.slane %v8374_v20, 9  ;;  %v7748_v9 = vld [vmem:[#allocation2 + $0xa0] sm:$0xf]  ;;  %v14323_v23 = vsel %vm13333_vm7, %v12328_v50, %v7333_v56 }
 0x1f0   : > { %5229 = vrot.lane.b32.xlu0 %v12214_v40, %s13040_s11  ;;  %v7749_v10 = vld [vmem:[#allocation2 + $0xa4] sm:$0x1]  ;;  %v12893_v15 = vld [vmem:[#allocation2 + $0x60] ss:$8 sps:$4 sm:$0xff]   ;;  %v7751_v25 = vld [vmem:[#allocation2 + $0xac] sm:$0x1]  ;;  %v14328_v30 = vsel %vm13333_vm7, %v12329_v4, %v7337_v6 }
 0x1f1   : > { %v14317_v14 = vpop.permute.xlu1 %4215  ;;  %v7750_v24 = vld [vmem:[#allocation2 + $0xa8] sm:$0xf]  ;;  %v7813_v44 = vshrl.u32 %v7748_v9, 16  ;;  %v7816_v19 = vshll.u32 %v7748_v9, 16  ;;  %v12892_v28 = vld [vmem:[#allocation2 + $0x78] ss:$8 sps:$4 sm:$0xff]   ;;  %v14333_v45 = vsel %vm13333_vm7, %v12408_v52, %v8502_v54  ;;  %v12360_v18 = vcombine.low %v14323_v23, %v14328_v30 }
 0x1f2   : > { %v14315_v11 = vpop.permute.xlu0 %4209  ;;  %v8506_v16 = vrot.slane %v8375_v7, 5  ;;  %v7822_v61 = vshll.u32 %v7749_v10, 16  ;;  %v7827_v5 = vshrl.u32 %v7750_v24, 16  ;;  %v7830_v62 = vshll.u32 %v7750_v24, 16  ;;  %v3764_v33 = vld [vmem:[#allocation2 + $0x20] sm:$0xe] }
 0x1f3   : > { %6002 = vrot.lane.b32.xlu1 %v12232_v2, %s13042_s13  ;;  %v7815_v34 = vrot.slane %v7813_v44, 4  ;;  %v7818_v38 = vrot.slane %v7816_v19, 5  ;;  %v7836_v13 = vshll.u32 %v7751_v25, 16  ;;  %v3765_v47 = vld [vmem:[#allocation2 + $0x24] sm:$0x1]  ;;  %v12090_v58 = vrot.slane %v3764_v33, 9 }
 0x1f4   : > { %5378 = vrot.lane.b32.xlu0 %v12891_v53, %s13041_s12  ;;  %v7829_v3 = vrot.slane %v7827_v5, 4  ;;  %v7832_v21 = vrot.slane %v7830_v62, 5  ;;  %v3766_v1 = vld [vmem:[#allocation2 + $0x28] sm:$0xe]  ;;  %v14339_v8 = vrot.slane %v7822_v61, 5  ;;  %v3898_v39 = vrot.slane %v3765_v47, 5 }
 0x1f5   : > { %v14337_v35 = vpop.permute.xlu1 %4219  ;;  %v12894_v37 = vld [vmem:[#allocation2 + $0xa0] ss:$8 sps:$4 sm:$0xff]   ;;  %v7819_v57 = vor.u32 %v7818_v38, %v7815_v34  ;;  %v3767_v27 = vld [vmem:[#allocation2 + $0x2c] sm:$0x1]  ;;  %v12091_v42 = vrot.slane %v3766_v1, 9  ;;  %v8507_v60 = vsel %vm13333_vm7, %v12409_v0, %v8506_v16  ;;  %v7838_v31 = vrot.slane %v7836_v13, 5 }
 0x1f6   : > { %v14335_v29 = vpop.permute.xlu0 %4213  ;;  %v7833_v12 = vor.u32 %v7832_v21, %v7829_v3  ;;  %v3902_v40 = vrot.slane %v3767_v27, 5  ;;  %v3760_v48 = vld [vmem:[#allocation2 + $0x10] sm:$0xe]  ;;  %v3761_v41 = vld [vmem:[#allocation2 + $0x14] sm:$0x1]  ;;  %v3899_v22 = vsel %vm13333_vm7, %v12090_v58, %v3898_v39  ;;  %v12440_v6 = vcombine.low %v14333_v45, %v8507_v60 }
 0x1f7   : > { %6547 = vrot.lane.b32.xlu1 %v12893_v15, %s13044_s15  ;;  %v7820_v36 = vrot.slane %v7819_v57, 4  ;;  %v3762_v46 = vld [vmem:[#allocation2 + $0x18] sm:$0xe]  ;;  %v3763_v63 = vld [vmem:[#allocation2 + $0x1c] sm:$0x1]  ;;  %v12088_v50 = vrot.slane %v3760_v48, 9 }
 0x1f8   : > { %5382 = vrot.lane.b32.xlu0 %v12892_v28, %s13041_s12  ;;  %v7834_v56 = vrot.slane %v7833_v12, 4  ;;  %v3903_v26 = vsel %vm13333_vm7, %v12091_v42, %v3902_v40  ;;  %v3890_v53 = vrot.slane %v3761_v41, 5  ;;  %v12089_v32 = vrot.slane %v3762_v46, 9  ;;  %v10054_v20 = vld [vmem:[#allocation2 + $0xb0] sm:$0xf] }
 0x1f9   : > { %v14353_v4 = vpop.permute.xlu1 %4223  ;;  %v12121_v7 = vcombine.low %v3899_v22, %v3903_v26  ;;  %v3894_v52 = vrot.slane %v3763_v63, 5  ;;  %v10055_v54 = vld [vmem:[#allocation2 + $0xb4] sm:$0x1]  ;;  %v10056_v0 = vld [vmem:[#allocation2 + $0xb8] sm:$0xf]  ;;  %v10119_v9 = vshrl.u32 %v10054_v20, 16  ;;  %v7825_v10 = vsel %vm13171_vm4, %v7820_v36, %v14339_v8 }
 0x1fa   : > { %v14351_v2 = vpop.permute.xlu0 %4217  ;;  %v3891_v15 = vsel %vm13333_vm7, %v12088_v50, %v3890_v53  ;;  %v10057_v23 = vld [vmem:[#allocation2 + $0xbc] sm:$0x1]  ;;  %v10122_v24 = vshll.u32 %v10054_v20, 16  ;;  %v10128_v25 = vshll.u32 %v10055_v54, 16  ;;  %v7839_v44 = vsel %vm13171_vm4, %v7834_v56, %v7838_v31  ;;  %v3772_v30 = vld [vmem:[#allocation2 + $0x40] sm:$0xe] }
 0x1fb   : > { %7684 = vrot.lane.b32.xlu1 %v12894_v37, %s13039_s10  ;;  %4081 = vst.msk [vmem:[#allocation3 + $0x28] sm:$0xff] %vm768_vm8, %v12121_v7  ;;  %v3895_v19 = vsel %vm13333_vm7, %v12089_v32, %v3894_v52  ;;  %v10121_v28 = vrot.slane %v10119_v9, 4  ;;  %v10133_v16 = vshrl.u32 %v10056_v0, 16  ;;  %v10136_v33 = vshll.u32 %v10056_v0, 16  ;;  %v3773_v45 = vld [vmem:[#allocation2 + $0x44] sm:$0x1] }
 0x1fc   : > { %6370 = vrot.lane.b32.xlu0 %v12280_v17, %s13043_s14  ;;  %4258 = vst.msk [vmem:[#allocation3 + $0x28] sm:$0xff] %vm1396_vm9, %v14300_v43  ;;  %v12120_v61 = vcombine.low %v3891_v15, %v3895_v19  ;;  %v10124_v5 = vrot.slane %v10122_v24, 5  ;;  %v10130_v62 = vrot.slane %v10128_v25, 5  ;;  %v10142_v47 = vshll.u32 %v10057_v23, 16  ;;  %v3774_v3 = vld [vmem:[#allocation2 + $0x48] sm:$0xe] }
 0x1fd   : > { %v14375_v38 = vpop.permute.xlu1 %4227  ;;  %v10135_v13 = vrot.slane %v10133_v16, 4  ;;  %v10138_v59 = vrot.slane %v10136_v33, 5  ;;  %v3775_v17 = vld [vmem:[#allocation2 + $0x4c] sm:$0x1]  ;;  %v12094_v21 = vrot.slane %v3772_v30, 9  ;;  %v3914_v43 = vrot.slane %v3773_v45, 5 }
 0x1fe   : > { %v14373_v34 = vpop.permute.xlu0 %4221  ;;  %4080 = vst.msk [vmem:[#allocation3 + $0x8] sm:$0xff] %vm768_vm8, %v12120_v61  ;;  %v10125_v55 = vor.u32 %v10124_v5, %v10121_v28  ;;  %v12392_v1 = vcombine.low %v7825_v10, %v7839_v44  ;;  %v10144_v58 = vrot.slane %v10142_v47, 5  ;;  %v12095_v37 = vrot.slane %v3774_v3, 9  ;;  %v3768_v8 = vld [vmem:[#allocation2 + $0x30] sm:$0xe] }
 0x1ff   : > { %8676 = vrot.lane.b32.xlu1 %v12440_v6, %s13041_s12  ;;  %4257 = vst.msk [vmem:[#allocation3 + $0x8] sm:$0xff] %vm1396_vm9, %v14315_v11  ;;  %v3918_v57 = vrot.slane %v3775_v17, 5  ;;  %v10139_v39 = vor.u32 %v10138_v59, %v10135_v13  ;;  %v3915_v42 = vsel %vm13333_vm7, %v12094_v21, %v3914_v43  ;;  %v3769_v60 = vld [vmem:[#allocation2 + $0x34] sm:$0x1]  ;;  %v3770_v12 = vld [vmem:[#allocation2 + $0x38] sm:$0xe] }
 0x200   : > { %7507 = vrot.lane.b32.xlu0 %v12360_v18, %s13038_s9  ;;  %v10126_v27 = vrot.slane %v10125_v55, 4  ;;  %v12092_v31 = vrot.slane %v3768_v8, 9  ;;  %v3771_v41 = vld [vmem:[#allocation2 + $0x3c] sm:$0x1]  ;;  %v3906_v36 = vrot.slane %v3769_v60, 5  ;;  %v12093_v22 = vrot.slane %v3770_v12, 9 }
 0x201   : > { %v14386_v48 = vpop.permute.xlu1 %4231  ;;  %v3919_v11 = vsel %vm13333_vm7, %v12095_v37, %v3918_v57  ;;  %v10678_v46 = vld [vmem:[#allocation2 + $0xb0] sm:$0xe]  ;;  %v10140_v63 = vrot.slane %v10139_v39, 4  ;;  %v3910_v26 = vrot.slane %v3771_v41, 5  ;;  %v10679_v53 = vld [vmem:[#allocation2 + $0xb4] sm:$0x1] }
 0x202   : > { %v14384_v40 = vpop.permute.xlu0 %4225  ;;  %v10131_v18 = vsel %vm13171_vm4, %v10126_v27, %v10130_v62  ;;  %v12895_v50 = vld [vmem:[#allocation2 + $0xa8] ss:$8 sps:$4 sm:$0xff]   ;;  %v12123_v56 = vcombine.low %v3915_v42, %v3919_v11  ;;  %v10680_v32 = vld [vmem:[#allocation2 + $0xb8] sm:$0xe]  ;;  %v3907_v20 = vsel %vm13333_vm7, %v12092_v31, %v3906_v36  ;;  %v10681_v6 = vld [vmem:[#allocation2 + $0xbc] sm:$0x1] }
 0x203   : > { %v12568_v7 = vrot.slane %v10678_v46, 9  ;;  %v10808_v52 = vrot.slane %v10679_v53, 5  ;;  %v12569_v54 = vrot.slane %v10680_v32, 9  ;;  %v10145_v0 = vsel %vm13171_vm4, %v10140_v63, %v10144_v58  ;;  %v8917_v15 = vld [vmem:[#allocation2 + $0xa8] sm:$0xf]  ;;  %v12907_v17 = vld [vmem:[%s16469_s3 + $0x40] sm:$0xff]  }
 0x204   : > { %8308 = vrot.lane.b32.xlu0 %v12392_v1, %s13040_s11  ;;  %4083 = vst.msk [vmem:[#allocation3 + $0x68] sm:$0xff] %vm768_vm8, %v12123_v56  ;;  %v3911_v9 = vsel %vm13333_vm7, %v12093_v22, %v3910_v26  ;;  %v10812_v10 = vrot.slane %v10681_v6, 5  ;;  %v8918_v23 = vld [vmem:[#allocation2 + $0xac] sm:$0x1]  ;;  %v12552_v44 = vcombine.low %v10131_v18, %v10145_v0  ;;  %v8919_v16 = vld [vmem:[#allocation2 + $0xb0] sm:$0xf]  ;;  %12662 = vmatprep.subr.bf16.mxu0 %v12907_v17 }
 0x205   : > { %v14402_v25 = vpop.permute.xlu1 %4235  ;;  %4260 = vst.msk [vmem:[#allocation3 + $0x68] sm:$0xff] %vm1396_vm9, %v14317_v14  ;;  %v12122_v19 = vcombine.low %v3907_v20, %v3911_v9  ;;  %v10809_v28 = vsel %vm13333_vm7, %v12568_v7, %v10808_v52  ;;  %v8920_v61 = vld [vmem:[#allocation2 + $0xb4] sm:$0x1]  ;;  %v8982_v5 = vshrl.u32 %v8917_v15, 16  ;;  %v8985_v33 = vshll.u32 %v8917_v15, 16 }
 0x206   : > { %v14400_v24 = vpop.permute.xlu0 %4229  ;;  %v10813_v62 = vsel %vm13333_vm7, %v12569_v54, %v10812_v10  ;;  %v8991_v30 = vshll.u32 %v8918_v23, 16  ;;  %v8996_v13 = vshrl.u32 %v8919_v16, 16  ;;  %v3780_v47 = vld [vmem:[#allocation2 + $0x70] sm:$0xe]  ;;  %10614 = vrot.lane.b32.xlu1 %v12552_v44, %s13038_s9  ;;  %v8999_v3 = vshll.u32 %v8919_v16, 16 }
 0x207   : > { %4082 = vst.msk [vmem:[#allocation3 + $0x48] sm:$0xff] %vm768_vm8, %v12122_v19  ;;  %v12600_v45 = vcombine.low %v10809_v28, %v10813_v62  ;;  %v8984_v14 = vrot.slane %v8982_v5, 4  ;;  %v9005_v55 = vshll.u32 %v8920_v61, 16  ;;  %v3781_v59 = vld [vmem:[#allocation2 + $0x74] sm:$0x1]  ;;  %v8987_v21 = vrot.slane %v8985_v33, 5 }
 0x208   : > { %8853 = vrot.lane.b32.xlu0 %v12895_v50, %s13042_s13  ;;  %4259 = vst.msk [vmem:[#allocation3 + $0x48] sm:$0xff] %vm1396_vm9, %v14335_v29  ;;  %v8993_v43 = vrot.slane %v8991_v30, 5  ;;  %v8998_v1 = vrot.slane %v8996_v13, 4  ;;  %v3782_v58 = vld [vmem:[#allocation2 + $0x78] sm:$0xe]  ;;  %v12098_v37 = vrot.slane %v3780_v47, 9 }
 0x209   : > { %v14420_v8 = vpop.permute.xlu1 %4239  ;;  %v9001_v27 = vrot.slane %v8999_v3, 5  ;;  %v9007_v39 = vrot.slane %v9005_v55, 5  ;;  %v3783_v42 = vld [vmem:[#allocation2 + $0x7c] sm:$0x1]  ;;  %v3930_v60 = vrot.slane %v3781_v59, 5  ;;  %v12099_v12 = vrot.slane %v3782_v58, 9 }
 0x20a   : > { %v14418_v57 = vpop.permute.xlu0 %4233  ;;  %v8988_v31 = vor.u32 %v8987_v21, %v8984_v14  ;;  %v3934_v11 = vrot.slane %v3783_v42, 5  ;;  %v3776_v41 = vld [vmem:[#allocation2 + $0x60] sm:$0xe]  ;;  %v3777_v36 = vld [vmem:[#allocation2 + $0x64] sm:$0x1]  ;;  %10982 = vrot.lane.b32.xlu1 %v12600_v45, %s13039_s10 }
 0x20b   : > { %v12908_v29 = vld [vmem:[%s16469_s3] sm:$0xff]   ;;  %v9002_v22 = vor.u32 %v9001_v27, %v8998_v1  ;;  %v3931_v46 = vsel %vm13333_vm7, %v12098_v37, %v3930_v60  ;;  %v3778_v18 = vld [vmem:[#allocation2 + $0x68] sm:$0xe]  ;;  %v3779_v63 = vld [vmem:[#allocation2 + $0x6c] sm:$0x1]  ;;  %v12096_v50 = vrot.slane %v3776_v41, 9 }
 0x20c   : > { %v3922_v56 = vrot.slane %v3777_v36, 5  ;;  %v8989_v26 = vrot.slane %v8988_v31, 4  ;;  %v3935_v53 = vsel %vm13333_vm7, %v12099_v12, %v3934_v11  ;;  %v12097_v32 = vrot.slane %v3778_v18, 9  ;;  %v9541_v6 = vld [vmem:[#allocation2 + $0xa8] sm:$0xe]  ;;  %12663 = vmatpush3.bf16.msra.mxu0 %v12908_v29 }
 0x20d   : > { %v3926_v20 = vrot.slane %v3779_v63, 5  ;;  %v4836_v52 = vpop.permute.xlu1 %4835  ;;  %v9003_v54 = vrot.slane %v9002_v22, 4  ;;  %v12125_v0 = vcombine.low %v3931_v46, %v3935_v53  ;;  %v9542_v10 = vld [vmem:[#allocation2 + $0xac] sm:$0x1]  ;;  %v9543_v15 = vld [vmem:[#allocation2 + $0xb0] sm:$0xe] }
 0x20e   : > { %v14430_v7 = vpop.permute.xlu0 %4237  ;;  %v3923_v9 = vsel %vm13333_vm7, %v12096_v50, %v3922_v56  ;;  %v12488_v23 = vrot.slane %v9541_v6, 9  ;;  %4882 = vst.msk [vmem:[#allocation3 + $0x28] sm:$0xff] %vm1768_vm10, %v4836_v52  ;;  %v8994_v44 = vsel %vm13171_vm4, %v8989_v26, %v8993_v43  ;;  %v9544_v28 = vld [vmem:[#allocation2 + $0xb4] sm:$0x1]  ;;  %v9671_v16 = vrot.slane %v9542_v10, 5  ;;  %v12910_v36 = vld [vmem:[%s16469_s3 + $0x8] sm:$0xff]  }
 0x20f   : > { %v3927_v19 = vsel %vm13333_vm7, %v12097_v32, %v3926_v20  ;;  %v12489_v61 = vrot.slane %v9543_v15, 9  ;;  %v5446_v5 = vld [vmem:[#allocation2 + $0x68] sm:$0xf]  ;;  %v9008_v62 = vsel %vm13171_vm4, %v9003_v54, %v9007_v39  ;;  %4085 = vst.msk [vmem:[#allocation3 + $0xa8] sm:$0xff] %vm768_vm8, %v12125_v0  ;;  %v9675_v30 = vrot.slane %v9544_v28, 5 }
 0x210   : > { %v12124_v33 = vcombine.low %v3923_v9, %v3927_v19  ;;  %v5447_v13 = vld [vmem:[#allocation2 + $0x6c] sm:$0x1]  ;;  %v5448_v47 = vld [vmem:[#allocation2 + $0x70] sm:$0xf]  ;;  %v5535_v45 = vshrl.u32 %v5446_v5, 16  ;;  %v12472_v14 = vcombine.low %v8994_v44, %v9008_v62  ;;  %4262 = vst.msk [vmem:[#allocation3 + $0xa8] sm:$0xff] %vm1396_vm9, %v14337_v35  ;;  %v9672_v3 = vsel %vm13333_vm7, %v12488_v23, %v9671_v16 }
 0x211   : > { %v5449_v55 = vld [vmem:[#allocation2 + $0x74] sm:$0x1]  ;;  %v5538_v59 = vshll.u32 %v5446_v5, 16  ;;  %v5544_v17 = vshll.u32 %v5447_v13, 16  ;;  %v3788_v21 = vld [vmem:[#allocation2 + $0x90] sm:$0xe]  ;;  %v4840_v1 = vpop.permute.xlu1 %4839  ;;  %v9676_v58 = vsel %vm13333_vm7, %v12489_v61, %v9675_v30 }
 0x212   : > { %v4834_v43 = vpop.permute.xlu0 %4833  ;;  %4084 = vst.msk [vmem:[#allocation3 + $0x88] sm:$0xff] %vm768_vm8, %v12124_v33  ;;  %v5537_v37 = vrot.slane %v5535_v45, 4  ;;  %v5549_v27 = vshrl.u32 %v5448_v47, 16  ;;  %v5552_v39 = vshll.u32 %v5448_v47, 16  ;;  %v3789_v42 = vld [vmem:[#allocation2 + $0x94] sm:$0x1]  ;;  %9477 = vrot.lane.b32.xlu0 %v12472_v14, %s13043_s14  ;;  %v12520_v60 = vcombine.low %v9672_v3, %v9676_v58 }
 0x213   : > { %4881 = vst.msk [vmem:[#allocation3 + $0x8] sm:$0xff] %vm1768_vm10, %v4834_v43  ;;  %4884 = vst.msk [vmem:[#allocation3 + $0x68] sm:$0xff] %vm1768_vm10, %v4840_v1  ;;  %v12909_v35 = vld [vmem:[%s16469_s3 + $0x48] sm:$0xff]   ;;  %v5540_v12 = vrot.slane %v5538_v59, 5  ;;  %v5546_v31 = vrot.slane %v5544_v17, 5  ;;  %v5558_v11 = vshll.u32 %v5449_v55, 16 }
 0x214   : > { %4261 = vst.msk [vmem:[#allocation3 + $0x88] sm:$0xff] %vm1396_vm9, %v14351_v2  ;;  %v3790_v41 = vld [vmem:[#allocation2 + $0x98] sm:$0xe]  ;;  %v5551_v29 = vrot.slane %v5549_v27, 4  ;;  %v5554_v22 = vrot.slane %v5552_v39, 5  ;;  %v12102_v18 = vrot.slane %v3788_v21, 9  ;;  %12664 = vmatprep.subr.bf16.mxu0 %v12909_v35  ;;  %9845 = vrot.lane.b32.xlu1 %v12520_v60, %s13044_s15 }
 0x215   : > { %v3791_v46 = vld [vmem:[#allocation2 + $0x9c] sm:$0x1]  ;;  %v3946_v63 = vrot.slane %v3789_v42, 5  ;;  %v5541_v50 = vor.u32 %v5540_v12, %v5537_v37  ;;  %v5560_v56 = vrot.slane %v5558_v11, 5  ;;  %v12103_v2 = vrot.slane %v3790_v41, 9  ;;  %v4844_v20 = vpop.permute.xlu1 %4843  ;;  %12665 = vmatpush3.bf16.msra.mxu0 %v12910_v36  ;;  %v12913_v19 = vld [vmem:[%s16469_s3 + $0x50] sm:$0xff]  }
 0x216   : > { %v3950_v26 = vrot.slane %v3791_v46, 5  ;;  %v3784_v53 = vld [vmem:[#allocation2 + $0x80] sm:$0xe]  ;;  %v4838_v32 = vpop.permute.xlu0 %4837  ;;  %v5555_v6 = vor.u32 %v5554_v22, %v5551_v29  ;;  %v3785_v54 = vld [vmem:[#allocation2 + $0x84] sm:$0x1]  ;;  %4886 = vst.msk [vmem:[#allocation3 + $0xa8] sm:$0xff] %vm1768_vm10, %v4844_v20  ;;  %12666 = vmatprep.subr.bf16.mxu0 %v12913_v19 }
 0x217   : > { %v3947_v52 = vsel %vm13333_vm7, %v12102_v18, %v3946_v63  ;;  %v3786_v0 = vld [vmem:[#allocation2 + $0x88] sm:$0xe]  ;;  %v3787_v9 = vld [vmem:[#allocation2 + $0x8c] sm:$0x1]  ;;  %4883 = vst.msk [vmem:[#allocation3 + $0x48] sm:$0xff] %vm1768_vm10, %v4838_v32  ;;  %v5542_v10 = vrot.slane %v5541_v50, 4 }
 0x218   : > { %v3951_v15 = vsel %vm13333_vm7, %v12103_v2, %v3950_v26  ;;  %v12100_v23 = vrot.slane %v3784_v53, 9  ;;  %v3938_v44 = vrot.slane %v3785_v54, 5  ;;  %v5556_v28 = vrot.slane %v5555_v6, 4  ;;  %v12914_v62 = vld [vmem:[%s16469_s3 + $0x10] sm:$0xff]   ;;  %v6070_v47 = vld [vmem:[#allocation2 + $0x68] sm:$0xe] }
 0x219   : > { %v12127_v16 = vcombine.low %v3947_v52, %v3951_v15  ;;  %v12101_v61 = vrot.slane %v3786_v0, 9  ;;  %v3942_v5 = vrot.slane %v3787_v9, 5  ;;  %v5547_v33 = vsel %vm13171_vm4, %v5542_v10, %v5546_v31  ;;  %v12896_v13 = vld [vmem:[#allocation2 + $0x70] ss:$8 sps:$4 sm:$0xff]   ;;  %v6071_v45 = vld [vmem:[#allocation2 + $0x6c] sm:$0x1]  ;;  %v4848_v3 = vpop.permute.xlu1 %4847  ;;  %12667 = vmatpush3.bf16.msra.mxu0 %v12914_v62 }
 0x21a   : > { %v3939_v30 = vsel %vm13333_vm7, %v12100_v23, %v3938_v44  ;;  %v4842_v14 = vpop.permute.xlu0 %4841  ;;  %v5561_v55 = vsel %vm13171_vm4, %v5556_v28, %v5560_v56  ;;  %v6072_v17 = vld [vmem:[#allocation2 + $0x70] sm:$0xe]  ;;  %v6073_v21 = vld [vmem:[#allocation2 + $0x74] sm:$0x1]  ;;  %v12250_v43 = vrot.slane %v6070_v47, 9  ;;  %v6204_v1 = vrot.slane %v6071_v45, 5  ;;  %6549 = vrot.lane.b32.xlu1 %v12896_v13, %s13044_s15 }
 0x21b   : > { %4087 = vst.msk [vmem:[#allocation3 + $0xe8] sm:$0xff] %vm768_vm8, %v12127_v16  ;;  %v3943_v59 = vsel %vm13333_vm7, %v12101_v61, %v3942_v5  ;;  %v12233_v58 = vcombine.low %v5547_v33, %v5561_v55  ;;  %v12251_v27 = vrot.slane %v6072_v17, 9  ;;  %v6208_v39 = vrot.slane %v6073_v21, 5  ;;  %v3796_v42 = vld [vmem:[#allocation2 + $0xc0] sm:$0xe] }
 0x21c   : > { %4885 = vst.msk [vmem:[#allocation3 + $0x88] sm:$0xff] %vm1768_vm10, %v4842_v14  ;;  %v12126_v37 = vcombine.low %v3939_v30, %v3943_v59  ;;  %v3797_v35 = vld [vmem:[#allocation2 + $0xc4] sm:$0x1]  ;;  %v6205_v60 = vsel %vm13333_vm7, %v12250_v43, %v6204_v1  ;;  %v3798_v12 = vld [vmem:[#allocation2 + $0xc8] sm:$0xe]  ;;  %v12106_v11 = vrot.slane %v3796_v42, 9 }
 0x21d   : > { %4264 = vst.msk [vmem:[#allocation3 + $0xe8] sm:$0xff] %vm1396_vm9, %v14353_v4  ;;  %v3799_v31 = vld [vmem:[#allocation2 + $0xcc] sm:$0x1]  ;;  %v3962_v41 = vrot.slane %v3797_v35, 5  ;;  %6004 = vrot.lane.b32.xlu0 %v12233_v58, %s13042_s13  ;;  %v6209_v4 = vsel %vm13333_vm7, %v12251_v27, %v6208_v39  ;;  %v12107_v36 = vrot.slane %v3798_v12, 9 }
 0x21e   : > { %4888 = vst.msk [vmem:[#allocation3 + $0xe8] sm:$0xff] %vm1768_vm10, %v4848_v3  ;;  %v3966_v29 = vrot.slane %v3799_v31, 5  ;;  %v3792_v22 = vld [vmem:[#allocation2 + $0xb0] sm:$0xe]  ;;  %v3793_v46 = vld [vmem:[#allocation2 + $0xb4] sm:$0x1]  ;;  %v4846_v18 = vpop.permute.xlu0 %4845  ;;  %v12281_v63 = vcombine.low %v6205_v60, %v6209_v4 }
 0x21f   : > { %4086 = vst.msk [vmem:[#allocation3 + $0xc8] sm:$0xff] %vm768_vm8, %v12126_v37  ;;  %v3963_v50 = vsel %vm13333_vm7, %v12106_v11, %v3962_v41  ;;  %v3794_v56 = vld [vmem:[#allocation2 + $0xb8] sm:$0xe]  ;;  %v3795_v2 = vld [vmem:[#allocation2 + $0xbc] sm:$0x1]  ;;  %v12104_v26 = vrot.slane %v3792_v22, 9  ;;  %v4852_v28 = vpop.permute.xlu1 %4851 }
 0x220   : > { %4263 = vst.msk [vmem:[#allocation3 + $0xc8] sm:$0xff] %vm1396_vm9, %v14373_v34  ;;  %v3954_v53 = vrot.slane %v3793_v46, 5  ;;  %v3967_v32 = vsel %vm13333_vm7, %v12107_v36, %v3966_v29  ;;  %v12105_v20 = vrot.slane %v3794_v56, 9  ;;  %v3958_v6 = vrot.slane %v3795_v2, 5  ;;  %v12897_v34 = vld [vmem:[#allocation2 + $0xb0] ss:$8 sps:$4 sm:$0xff]  }
 0x221   : > { %4887 = vst.msk [vmem:[#allocation3 + $0xc8] sm:$0xff] %vm1768_vm10, %v4846_v18  ;;  %v12129_v52 = vcombine.low %v3963_v50, %v3967_v32  ;;  %v7207_v0 = vld [vmem:[#allocation2 + $0x70] sm:$0xe]  ;;  %v7208_v9 = vld [vmem:[#allocation2 + $0x74] sm:$0x1]  ;;  %6372 = vrot.lane.b32.xlu0 %v12281_v63, %s13043_s14  ;;  %7686 = vrot.lane.b32.xlu1 %v12897_v34, %s13039_s10 }
 0x222   : > { %v3955_v54 = vsel %vm13333_vm7, %v12104_v26, %v3954_v53  ;;  %v3959_v10 = vsel %vm13333_vm7, %v12105_v20, %v3958_v6  ;;  %v7209_v15 = vld [vmem:[#allocation2 + $0x78] sm:$0xe]  ;;  %v7210_v23 = vld [vmem:[#allocation2 + $0x7c] sm:$0x1]  ;;  %v12330_v44 = vrot.slane %v7207_v0, 9  ;;  %v7341_v19 = vrot.slane %v7208_v9, 5 }
 0x223   : > { %4089 = vst.msk [vmem:[#allocation3 + $0x128] sm:$0xff] %vm768_vm8, %v12129_v52  ;;  %v12128_v16 = vcombine.low %v3955_v54, %v3959_v10  ;;  %v12331_v61 = vrot.slane %v7209_v15, 9  ;;  %v7345_v5 = vrot.slane %v7210_v23, 5  ;;  %v3804_v62 = vld [vmem:[#allocation2 + $0xe0] sm:$0xe] }
 0x224   : > { %v3805_v33 = vld [vmem:[#allocation2 + $0xe4] sm:$0x1]  ;;  %4266 = vst.msk [vmem:[#allocation3 + $0x128] sm:$0xff] %vm1396_vm9, %v14375_v38  ;;  %v7342_v30 = vsel %vm13333_vm7, %v12330_v44, %v7341_v19  ;;  %v3806_v13 = vld [vmem:[#allocation2 + $0xe8] sm:$0xe]  ;;  %v12110_v45 = vrot.slane %v3804_v62, 9 }
 0x225   : > { %v3807_v47 = vld [vmem:[#allocation2 + $0xec] sm:$0x1]  ;;  %v3978_v14 = vrot.slane %v3805_v33, 5  ;;  %4088 = vst.msk [vmem:[#allocation3 + $0x108] sm:$0xff] %vm768_vm8, %v12128_v16  ;;  %v7346_v3 = vsel %vm13333_vm7, %v12331_v61, %v7345_v5  ;;  %v12111_v55 = vrot.slane %v3806_v13, 9  ;;  %v4850_v31 = vpop.permute.xlu0 %4849  ;;  %v12911_v9 = vld [vmem:[%s16469_s3 + $0x80] sm:$0xff]  }
 0x226   : > { %v3982_v59 = vrot.slane %v3807_v47, 5  ;;  %v3800_v17 = vld [vmem:[#allocation2 + $0xd0] sm:$0xe]  ;;  %v3801_v21 = vld [vmem:[#allocation2 + $0xd4] sm:$0x1]  ;;  %4890 = vst.msk [vmem:[#allocation3 + $0x128] sm:$0xff] %vm1768_vm10, %v4852_v28  ;;  %v12361_v38 = vcombine.low %v7342_v30, %v7346_v3 }
 0x227   : > { %4265 = vst.msk [vmem:[#allocation3 + $0x108] sm:$0xff] %vm1396_vm9, %v14384_v40  ;;  %v3979_v43 = vsel %vm13333_vm7, %v12110_v45, %v3978_v14  ;;  %v3802_v1 = vld [vmem:[#allocation2 + $0xd8] sm:$0xe]  ;;  %v3803_v58 = vld [vmem:[#allocation2 + $0xdc] sm:$0x1]  ;;  %v12108_v37 = vrot.slane %v3800_v17, 9 }
 0x228   : > { %v3970_v27 = vrot.slane %v3801_v21, 5  ;;  %v3983_v39 = vsel %vm13333_vm7, %v12111_v55, %v3982_v59  ;;  %v12109_v42 = vrot.slane %v3802_v1, 9  ;;  %v3974_v35 = vrot.slane %v3803_v58, 5  ;;  %v8376_v60 = vld [vmem:[#allocation2 + $0xb0] sm:$0xe]  ;;  %7509 = vrot.lane.b32.xlu0 %v12361_v38, %s13038_s9  ;;  %4889 = vst.msk [vmem:[#allocation3 + $0x108] sm:$0xff] %vm1768_vm10, %v4850_v31 }
 0x229   : > { %v8377_v12 = vld [vmem:[#allocation2 + $0xb4] sm:$0x1]  ;;  %v12131_v11 = vcombine.low %v3979_v43, %v3983_v39  ;;  %v8378_v41 = vld [vmem:[#allocation2 + $0xb8] sm:$0xe]  ;;  %v8379_v4 = vld [vmem:[#allocation2 + $0xbc] sm:$0x1] }
 0x22a   : > { %v3971_v40 = vsel %vm13333_vm7, %v12108_v37, %v3970_v27  ;;  %v12410_v36 = vrot.slane %v8376_v60, 9  ;;  %v8510_v29 = vrot.slane %v8377_v12, 5  ;;  %v3975_v22 = vsel %vm13333_vm7, %v12109_v42, %v3974_v35  ;;  %v7752_v63 = vld [vmem:[#allocation2 + $0xb0] sm:$0xf]  ;;  %v7753_v50 = vld [vmem:[#allocation2 + $0xb4] sm:$0x1]  ;;  %v4856_v28 = vpop.permute.xlu1 %4855 }
 0x22b   : > { %v12411_v46 = vrot.slane %v8378_v41, 9  ;;  %v8514_v18 = vrot.slane %v8379_v4, 5  ;;  %4091 = vst.msk [vmem:[#allocation3 + $0x168] sm:$0xff] %vm768_vm8, %v12131_v11  ;;  %v12130_v56 = vcombine.low %v3971_v40, %v3975_v22  ;;  %v7754_v26 = vld [vmem:[#allocation2 + $0xb8] sm:$0xf]  ;;  %v7841_v32 = vshrl.u32 %v7752_v63, 16 }
 0x22c   : > { %v8511_v2 = vsel %vm13333_vm7, %v12410_v36, %v8510_v29  ;;  %v7755_v53 = vld [vmem:[#allocation2 + $0xbc] sm:$0x1]  ;;  %v7844_v20 = vshll.u32 %v7752_v63, 16  ;;  %4268 = vst.msk [vmem:[#allocation3 + $0x168] sm:$0xff] %vm1396_vm9, %v14386_v48  ;;  %v7850_v52 = vshll.u32 %v7753_v50, 16  ;;  %v7855_v54 = vshrl.u32 %v7754_v26, 16 }
 0x22d   : > { %v8515_v6 = vsel %vm13333_vm7, %v12411_v46, %v8514_v18  ;;  %v7858_v34 = vshll.u32 %v7754_v26, 16  ;;  %v3812_v0 = vld [vmem:[#allocation2 + $0x110] sm:$0xe]  ;;  %4090 = vst.msk [vmem:[#allocation3 + $0x148] sm:$0xff] %vm768_vm8, %v12130_v56  ;;  %v7843_v15 = vrot.slane %v7841_v32, 4  ;;  %v7864_v44 = vshll.u32 %v7755_v53, 16 }
 0x22e   : > { %v12441_v10 = vcombine.low %v8511_v2, %v8515_v6  ;;  %v7846_v23 = vrot.slane %v7844_v20, 5  ;;  %v3813_v19 = vld [vmem:[#allocation2 + $0x114] sm:$0x1]  ;;  %v12917_v48 = vld [vmem:[%s16469_s3 + $0x58] sm:$0xff]   ;;  %4267 = vst.msk [vmem:[#allocation3 + $0x148] sm:$0xff] %vm1396_vm9, %v14400_v24  ;;  %v7852_v16 = vrot.slane %v7850_v52, 5 }
 0x22f   : > { %v7857_v61 = vrot.slane %v7855_v54, 4  ;;  %v7860_v5 = vrot.slane %v7858_v34, 5  ;;  %v3814_v62 = vld [vmem:[#allocation2 + $0x118] sm:$0xe]  ;;  %v12114_v33 = vrot.slane %v3812_v0, 9  ;;  %4892 = vst.msk [vmem:[#allocation3 + $0x168] sm:$0xff] %vm1768_vm10, %v4856_v28  ;;  %12668 = vmatprep.subr.bf16.mxu0 %v12917_v48  ;;  %v4854_v12 = vpop.permute.xlu0 %4853 }
 0x230   : > { %8678 = vrot.lane.b32.xlu1 %v12441_v10, %s13041_s12  ;;  %v7847_v30 = vor.u32 %v7846_v23, %v7843_v15  ;;  %v7866_v13 = vrot.slane %v7864_v44, 5  ;;  %v3815_v47 = vld [vmem:[#allocation2 + $0x11c] sm:$0x1]  ;;  %v3994_v45 = vrot.slane %v3813_v19, 5  ;;  %v12115_v14 = vrot.slane %v3814_v62, 9  ;;  %v12915_v31 = vld [vmem:[%s16469_s3 + $0x88] sm:$0xff]  }
 0x231   : > { %v12918_v3 = vld [vmem:[%s16469_s3 + $0x18] sm:$0xff]   ;;  %v7861_v24 = vor.u32 %v7860_v5, %v7857_v61  ;;  %v3998_v55 = vrot.slane %v3815_v47, 5  ;;  %v3808_v59 = vld [vmem:[#allocation2 + $0x100] sm:$0xe]  ;;  %v3809_v17 = vld [vmem:[#allocation2 + $0x104] sm:$0x1] }
 0x232   : > { %v7848_v21 = vrot.slane %v7847_v30, 4  ;;  %v3995_v38 = vsel %vm13333_vm7, %v12114_v33, %v3994_v45  ;;  %v3810_v43 = vld [vmem:[#allocation2 + $0x108] sm:$0xe]  ;;  %v3811_v1 = vld [vmem:[#allocation2 + $0x10c] sm:$0x1]  ;;  %v12112_v58 = vrot.slane %v3808_v59, 9  ;;  %12669 = vmatpush3.bf16.msra.mxu0 %v12918_v3 }
 0x233   : > { %v13045_v37 = vmov 0   ;;  %v7862_v27 = vrot.slane %v7861_v24, 4  ;;  %v3999_v39 = vsel %vm13333_vm7, %v12115_v14, %v3998_v55  ;;  %v3986_v42 = vrot.slane %v3809_v17, 5  ;;  %v10058_v60 = vld [vmem:[#allocation2 + $0xc0] sm:$0xf]  ;;  %4891 = vst.msk [vmem:[#allocation3 + $0x148] sm:$0xff] %vm1768_vm10, %v4854_v12 }
 0x234   : > { %11543 = vmatprep.subr.bf16.mxu1 %v13045_v37  ;;  %v12113_v35 = vrot.slane %v3810_v43, 9  ;;  %v7853_v11 = vsel %vm13171_vm4, %v7848_v21, %v7852_v16  ;;  %v12133_v40 = vcombine.low %v3995_v38, %v3999_v39  ;;  %v3990_v41 = vrot.slane %v3811_v1, 5  ;;  %v10059_v4 = vld [vmem:[#allocation2 + $0xc4] sm:$0x1]  ;;  %v10060_v36 = vld [vmem:[#allocation2 + $0xc8] sm:$0xf] }
 0x235   : > { %11544 = vmatpush1.bf16.msra.mxu1 %v12911_v9  ;;  %v10147_v29 = vshrl.u32 %v10058_v60, 16  ;;  %v7867_v22 = vsel %vm13171_vm4, %v7862_v27, %v7866_v13  ;;  %v3987_v46 = vsel %vm13333_vm7, %v12112_v58, %v3986_v42  ;;  %v10061_v18 = vld [vmem:[#allocation2 + $0xcc] sm:$0x1]  ;;  %v10150_v63 = vshll.u32 %v10058_v60, 16  ;;  %v12919_v56 = vld [vmem:[%s16469_s3 + $0x90] sm:$0xff]   ;;  %v4860_v9 = vpop.permute.xlu1 %4859  ;;  %v12920_v10 = vld [vmem:[%s16469_s3 + $0x60] sm:$0xff]  }
 0x236   : > { %11545 = vmatprep.subr.bf16.mxu1 %v13045_v37  ;;  %v10156_v50 = vshll.u32 %v10059_v4, 16  ;;  %v12393_v2 = vcombine.low %v7853_v11, %v7867_v22  ;;  %4093 = vst.msk [vmem:[#allocation3 + $0x1a8] sm:$0xff] %vm768_vm8, %v12133_v40  ;;  %v3991_v26 = vsel %vm13333_vm7, %v12113_v35, %v3990_v41  ;;  %v10161_v32 = vshrl.u32 %v10060_v36, 16  ;;  %v12898_v20 = vld [vmem:[#allocation2 + $0xb8] ss:$8 sps:$4 sm:$0xff]   ;;  %12670 = vmatprep.subr.bf16.mxu0 %v12920_v10  ;;  %v12924_v4 = vld [vmem:[%s16469_s3 + $0x68] sm:$0xff]  }
 0x237   : > { %v10149_v53 = vrot.slane %v10147_v29, 4  ;;  %4270 = vst.msk [vmem:[#allocation3 + $0x1a8] sm:$0xff] %vm1396_vm9, %v14402_v25  ;;  %v12132_v6 = vcombine.low %v3987_v46, %v3991_v26  ;;  %v10152_v52 = vrot.slane %v10150_v63, 5  ;;  %v10164_v34 = vshll.u32 %v10060_v36, 16  ;;  %v3820_v0 = vld [vmem:[#allocation2 + $0x130] sm:$0xe] }
 0x238   : > { %v14572_v54 = vrot.slane %v10156_v50, 5  ;;  %8310 = vrot.lane.b32.xlu0 %v12393_v2, %s13040_s11  ;;  %v10163_v15 = vrot.slane %v10161_v32, 4  ;;  %v10170_v23 = vshll.u32 %v10061_v18, 16  ;;  %v3821_v44 = vld [vmem:[#allocation2 + $0x134] sm:$0x1]  ;;  %4894 = vst.msk [vmem:[#allocation3 + $0x1a8] sm:$0xff] %vm1768_vm10, %v4860_v9  ;;  %v4858_v1 = vpop.permute.xlu0 %4857 }
 0x239   : > { %11546 = vmatpush1.bf16.msra.mxu1 %v12915_v31  ;;  %v3822_v19 = vld [vmem:[#allocation2 + $0x138] sm:$0xe]  ;;  %4092 = vst.msk [vmem:[#allocation3 + $0x188] sm:$0xff] %vm768_vm8, %v12132_v6  ;;  %v10153_v25 = vor.u32 %v10152_v52, %v10149_v53  ;;  %v10166_v28 = vrot.slane %v10164_v34, 5  ;;  %v3823_v48 = vld [vmem:[#allocation2 + $0x13c] sm:$0x1] }
 0x23a   : > { %11547 = vmatprep.subr.bf16.mxu1 %v13045_v37  ;;  %v12118_v16 = vrot.slane %v3820_v0, 9  ;;  %v4010_v61 = vrot.slane %v3821_v44, 5  ;;  %v12921_v5 = vld [vmem:[%s16469_s3 + $0x20] sm:$0xff]   ;;  %4269 = vst.msk [vmem:[#allocation3 + $0x188] sm:$0xff] %vm1396_vm9, %v14418_v57  ;;  %v10172_v62 = vrot.slane %v10170_v23, 5  ;;  %v12119_v33 = vrot.slane %v3822_v19, 9 }
 0x23b   : > { %v4014_v30 = vrot.slane %v3823_v48, 5  ;;  %v3816_v13 = vld [vmem:[#allocation2 + $0x120] sm:$0xe]  ;;  %v12922_v47 = vld [vmem:[%s16469_s3 + $0x98] sm:$0xff]   ;;  %v10154_v45 = vrot.slane %v10153_v25, 4  ;;  %v10167_v14 = vor.u32 %v10166_v28, %v10163_v15  ;;  %12671 = vmatpush3.bf16.msra.mxu0 %v12921_v5  ;;  %4893 = vst.msk [vmem:[#allocation3 + $0x188] sm:$0xff] %vm1768_vm10, %v4858_v1 }
 0x23c   : > { %v4011_v3 = vsel %vm13333_vm7, %v12118_v16, %v4010_v61  ;;  %v3817_v24 = vld [vmem:[#allocation2 + $0x124] sm:$0x1]  ;;  %v3818_v55 = vld [vmem:[#allocation2 + $0x128] sm:$0xe]  ;;  %v12116_v59 = vrot.slane %v3816_v13, 9  ;;  %8855 = vrot.lane.b32.xlu0 %v12898_v20, %s13042_s13  ;;  %12672 = vmatprep.subr.bf16.mxu0 %v12924_v4  ;;  %v12928_v9 = vld [vmem:[%s16469_s3 + $0x70] sm:$0xff]  }
 0x23d   : > { %11548 = vmatpush1.bf16.msra.mxu1 %v12919_v56  ;;  %v4015_v57 = vsel %vm13333_vm7, %v12119_v33, %v4014_v30  ;;  %v3819_v17 = vld [vmem:[#allocation2 + $0x12c] sm:$0x1]  ;;  %v4002_v21 = vrot.slane %v3817_v24, 5  ;;  %v12117_v38 = vrot.slane %v3818_v55, 9  ;;  %v10682_v43 = vld [vmem:[#allocation2 + $0xc0] sm:$0xe]  ;;  %v10159_v58 = vsel %vm13171_vm4, %v10154_v45, %v14572_v54  ;;  %v4864_v0 = vpop.permute.xlu1 %4863 }
 0x23e   : > { %11549 = vmatprep.subr.bf16.mxu1 %v13045_v37  ;;  %v10168_v27 = vrot.slane %v10167_v14, 4  ;;  %v12135_v39 = vcombine.low %v4011_v3, %v4015_v57  ;;  %v4006_v42 = vrot.slane %v3819_v17, 5  ;;  %v10683_v35 = vld [vmem:[#allocation2 + $0xc4] sm:$0x1]  ;;  %v10684_v60 = vld [vmem:[#allocation2 + $0xc8] sm:$0xe] }
 0x23f   : > { %v4003_v12 = vsel %vm13333_vm7, %v12116_v59, %v4002_v21  ;;  %v10685_v31 = vld [vmem:[#allocation2 + $0xcc] sm:$0x1]  ;;  %v12570_v11 = vrot.slane %v10682_v43, 9  ;;  %v10816_v40 = vrot.slane %v10683_v35, 5  ;;  %v12571_v41 = vrot.slane %v10684_v60, 9  ;;  %v12926_v20 = vld [vmem:[%s16469_s3 + $0xa0] sm:$0xff]  }
 0x240   : > { %v10173_v36 = vsel %vm13171_vm4, %v10168_v27, %v10172_v62  ;;  %4095 = vst.msk [vmem:[#allocation3 + $0x1e8] sm:$0xff] %vm768_vm8, %v12135_v39  ;;  %v4007_v29 = vsel %vm13333_vm7, %v12117_v38, %v4006_v42  ;;  %v10820_v22 = vrot.slane %v10685_v31, 5  ;;  %v8921_v46 = vld [vmem:[#allocation2 + $0xb8] sm:$0xf]  ;;  %v8922_v18 = vld [vmem:[#allocation2 + $0xbc] sm:$0x1] }
 0x241   : > { %11550 = vmatpush1.bf16.msra.mxu1 %v12922_v47  ;;  %v12925_v63 = vld [vmem:[%s16469_s3 + $0x28] sm:$0xff]   ;;  %v12553_v50 = vcombine.low %v10159_v58, %v10173_v36  ;;  %4272 = vst.msk [vmem:[#allocation3 + $0x1e8] sm:$0xff] %vm1396_vm9, %v14420_v8  ;;  %v12134_v56 = vcombine.low %v4003_v12, %v4007_v29  ;;  %v10817_v2 = vsel %vm13333_vm7, %v12570_v11, %v10816_v40  ;;  %v8923_v26 = vld [vmem:[#allocation2 + $0xc0] sm:$0xf]  ;;  %v8924_v53 = vld [vmem:[#allocation2 + $0xc4] sm:$0x1]  ;;  %v5204_v55 = vpop.permute.xlu1 %5203 }
 0x242   : > { %v9010_v32 = vshrl.u32 %v8921_v46, 16  ;;  %11551 = vmatprep.subr.bf16.mxu1 %v13045_v37  ;;  %v10821_v6 = vsel %vm13333_vm7, %v12571_v41, %v10820_v22  ;;  %v9013_v52 = vshll.u32 %v8921_v46, 16  ;;  %v9019_v54 = vshll.u32 %v8922_v18, 16  ;;  %v9545_v34 = vld [vmem:[#allocation2 + $0xb8] sm:$0xe]  ;;  %12673 = vmatpush3.bf16.msra.mxu0 %v12925_v63  ;;  %4896 = vst.msk [vmem:[#allocation3 + $0x1e8] sm:$0xff] %vm1768_vm10, %v4864_v0  ;;  %v4862_v1 = vpop.permute.xlu0 %4861 }
 0x243   : > { %v9024_v8 = vshrl.u32 %v8923_v26, 16  ;;  %10616 = vrot.lane.b32.xlu1 %v12553_v50, %s13038_s9  ;;  %4094 = vst.msk [vmem:[#allocation3 + $0x1c8] sm:$0xff] %vm768_vm8, %v12134_v56  ;;  %v12601_v10 = vcombine.low %v10817_v2, %v10821_v6  ;;  %v9027_v23 = vshll.u32 %v8923_v26, 16  ;;  %v9033_v44 = vshll.u32 %v8924_v53, 16  ;;  %v9546_v19 = vld [vmem:[#allocation2 + $0xbc] sm:$0x1]  ;;  %12674 = vmatprep.subr.bf16.mxu0 %v12928_v9 }
 0x244   : > { %v9012_v15 = vrot.slane %v9010_v32, 4  ;;  %v12929_v25 = vld [vmem:[%s16469_s3 + $0x30] sm:$0xff]   ;;  %4271 = vst.msk [vmem:[#allocation3 + $0x1c8] sm:$0xff] %vm1396_vm9, %v14430_v7  ;;  %v9015_v28 = vrot.slane %v9013_v52, 5  ;;  %v9021_v48 = vrot.slane %v9019_v54, 5  ;;  %v12490_v5 = vrot.slane %v9545_v34, 9 }
 0x245   : > { %v9026_v16 = vrot.slane %v9024_v8, 4  ;;  %v9547_v61 = vld [vmem:[#allocation2 + $0xc0] sm:$0xe]  ;;  %11552 = vmatpush1.bf16.msra.mxu1 %v12926_v20  ;;  %v9029_v62 = vrot.slane %v9027_v23, 5  ;;  %v9035_v33 = vrot.slane %v9033_v44, 5  ;;  %v9679_v13 = vrot.slane %v9546_v19, 5  ;;  %v5208_v46 = vpop.permute.xlu1 %5207 }
 0x246   : > { %v9548_v30 = vld [vmem:[#allocation2 + $0xc4] sm:$0x1]  ;;  %v12491_v47 = vrot.slane %v9547_v61, 9  ;;  %11553 = vmatprep.subr.bf16.mxu1 %v13045_v37  ;;  %v9016_v45 = vor.u32 %v9015_v28, %v9012_v15  ;;  %v5450_v3 = vld [vmem:[#allocation2 + $0x78] sm:$0xf]  ;;  %12675 = vmatpush3.bf16.msra.mxu0 %v12929_v25  ;;  %v12930_v7 = vld [vmem:[%s16469_s3 + $0xa8] sm:$0xff]   ;;  %v5202_v53 = vpop.permute.xlu0 %5201 }
 0x247   : > { %v9683_v14 = vrot.slane %v9548_v30, 5  ;;  %v5451_v24 = vld [vmem:[#allocation2 + $0x7c] sm:$0x1]  ;;  %10984 = vrot.lane.b32.xlu1 %v12601_v10, %s13039_s10  ;;  %v9030_v59 = vor.u32 %v9029_v62, %v9026_v16  ;;  %v9680_v57 = vsel %vm13333_vm7, %v12490_v5, %v9679_v13  ;;  %v5452_v17 = vld [vmem:[#allocation2 + $0x80] sm:$0xf]  ;;  %v5563_v38 = vshrl.u32 %v5450_v3, 16 }
 0x248   : > { %v5453_v21 = vld [vmem:[#allocation2 + $0x84] sm:$0x1]  ;;  %v5566_v43 = vshll.u32 %v5450_v3, 16  ;;  %5250 = vst.msk [vmem:[#allocation3 + $0x28] sm:$0xff] %vm1946_vm11, %v5204_v55  ;;  %v9017_v58 = vrot.slane %v9016_v45, 4  ;;  %v5572_v39 = vshll.u32 %v5451_v24, 16 }
 0x249   : > { %v9684_v27 = vsel %vm13333_vm7, %v12491_v47, %v9683_v14  ;;  %v5577_v42 = vshrl.u32 %v5452_v17, 16  ;;  %4895 = vst.msk [vmem:[#allocation3 + $0x1c8] sm:$0xff] %vm1768_vm10, %v4862_v1  ;;  %11554 = vmatpush1.bf16.msra.mxu1 %v12930_v7  ;;  %v12931_v35 = vld [vmem:[%s16469_s3 + $0x78] sm:$0xff]   ;;  %v9031_v60 = vrot.slane %v9030_v59, 4  ;;  %v5565_v31 = vrot.slane %v5563_v38, 4  ;;  %v12933_v18 = vld [vmem:[%s16469_s3 + $0xb0] sm:$0xff]   ;;  %v5212_v19 = vpop.permute.xlu1 %5211 }
 0x24a   : > { %v12521_v12 = vcombine.low %v9680_v57, %v9684_v27  ;;  %v5568_v11 = vrot.slane %v5566_v43, 5  ;;  %v12932_v40 = vld [vmem:[%s16469_s3 + $0x38] sm:$0xff]   ;;  %11555 = vmatprep.subr.bf16.mxu1 %v13045_v37  ;;  %v9022_v41 = vsel %vm13171_vm4, %v9017_v58, %v9021_v48  ;;  %v14653_v4 = vrot.slane %v5572_v39, 5  ;;  %v12899_v22 = vld [vmem:[#allocation2 + $0x80] ss:$8 sps:$4 sm:$0xff]   ;;  %12676 = vmatprep.subr.bf16.mxu0 %v12931_v35  ;;  %5252 = vst.msk [vmem:[#allocation3 + $0x68] sm:$0xff] %vm1946_vm11, %v5208_v46  ;;  %v5206_v5 = vpop.permute.xlu0 %5205 }
 0x24b   : > { %v5579_v36 = vrot.slane %v5577_v42, 4  ;;  %v5580_v29 = vshll.u32 %v5452_v17, 16  ;;  %v9036_v63 = vsel %vm13171_vm4, %v9031_v60, %v9035_v33  ;;  %v5586_v56 = vshll.u32 %v5453_v21, 16  ;;  %v6074_v2 = vld [vmem:[#allocation2 + $0x78] sm:$0xe]  ;;  %12677 = vmatpush3.bf16.msra.mxu0 %v12932_v40  ;;  %5249 = vst.msk [vmem:[#allocation3 + $0x8] sm:$0xff] %vm1946_vm11, %v5202_v53 }
 0x24c   : > { %9847 = vrot.lane.b32.xlu1 %v12521_v12, %s13044_s15  ;;  %v5569_v50 = vor.u32 %v5568_v11, %v5565_v31  ;;  %v6075_v26 = vld [vmem:[#allocation2 + $0x7c] sm:$0x1]  ;;  %v12473_v20 = vcombine.low %v9022_v41, %v9036_v63  ;;  %v6076_v52 = vld [vmem:[#allocation2 + $0x80] sm:$0xe]  ;;  %v6077_v54 = vld [vmem:[#allocation2 + $0x84] sm:$0x1] }
 0x24d   : > { %v12935_v32 = vld [vmem:[%s16469_s3 + $0xb8] sm:$0xff]   ;;  %v5582_v6 = vrot.slane %v5580_v29, 5  ;;  %v12252_v8 = vrot.slane %v6074_v2, 9  ;;  %11556 = vmatpush1.bf16.msra.mxu1 %v12933_v18  ;;  %v6212_v0 = vrot.slane %v6075_v26, 5  ;;  %v12253_v9 = vrot.slane %v6076_v52, 9  ;;  %5254 = vst.msk [vmem:[#allocation3 + $0xa8] sm:$0xff] %vm1946_vm11, %v5212_v19  ;;  %v5216_v1 = vpop.permute.xlu1 %5215 }
 0x24e   : > { %v5570_v34 = vrot.slane %v5569_v50, 4  ;;  %11557 = vmatprep.subr.bf16.mxu1 %v13045_v37  ;;  %9479 = vrot.lane.b32.xlu0 %v12473_v20, %s13043_s14  ;;  %v5588_v15 = vrot.slane %v5586_v56, 5  ;;  %v6216_v23 = vrot.slane %v6077_v54, 5  ;;  %v12900_v44 = vld [vmem:[#allocation2 + $0xc0] ss:$8 sps:$4 sm:$0xff]   ;;  %5251 = vst.msk [vmem:[#allocation3 + $0x48] sm:$0xff] %vm1946_vm11, %v5206_v5  ;;  %v5210_v31 = vpop.permute.xlu0 %5209 }
 0x24f   : > { %v5583_v10 = vor.u32 %v5582_v6, %v5579_v36  ;;  %v14674_v28 = vsel %vm13333_vm7, %v12252_v8, %v6212_v0  ;;  %v7211_v48 = vld [vmem:[#allocation2 + $0x80] sm:$0xe]  ;;  %v7212_v16 = vld [vmem:[#allocation2 + $0x84] sm:$0x1]  ;;  %v7213_v61 = vld [vmem:[#allocation2 + $0x88] sm:$0xe] }
 0x250   : > { %v5575_v25 = vsel %vm13171_vm4, %v5570_v34, %v14653_v4  ;;  %6551 = vrot.lane.b32.xlu1 %v12899_v22, %s13044_s15  ;;  %v14679_v33 = vsel %vm13333_vm7, %v12253_v9, %v6216_v23  ;;  %v7214_v30 = vld [vmem:[#allocation2 + $0x8c] sm:$0x1]  ;;  %v12332_v13 = vrot.slane %v7211_v48, 9  ;;  %v7349_v47 = vrot.slane %v7212_v16, 5  ;;  %v12937_v45 = vld [vmem:[%s16469_s3 + $0xc0] sm:$0xff]   ;;  %5256 = vst.msk [vmem:[#allocation3 + $0xe8] sm:$0xff] %vm1946_vm11, %v5216_v1 }
 0x251   : > { %v5584_v62 = vrot.slane %v5583_v10, 4  ;;  %11558 = vmatpush1.bf16.msra.mxu1 %v12935_v32  ;;  %v12282_v14 = vcombine.low %v14674_v28, %v14679_v33  ;;  %v12333_v3 = vrot.slane %v7213_v61, 9  ;;  %v7353_v24 = vrot.slane %v7214_v30, 5  ;;  %v8380_v55 = vld [vmem:[#allocation2 + $0xc0] sm:$0xe]  ;;  %v12939_v58 = vld [vmem:[%s16469_s3 + $0xc8] sm:$0xff]   ;;  %v5220_v20 = vpop.permute.xlu1 %5219 }
 0x252   : > { %v8381_v7 = vld [vmem:[#allocation2 + $0xc4] sm:$0x1]  ;;  %11559 = vmatprep.subr.bf16.mxu1 %v13045_v37  ;;  %v14692_v57 = vsel %vm13333_vm7, %v12332_v13, %v7349_v47  ;;  %v8382_v17 = vld [vmem:[#allocation2 + $0xc8] sm:$0xe]  ;;  %v8383_v21 = vld [vmem:[#allocation2 + $0xcc] sm:$0x1]  ;;  %v5214_v0 = vpop.permute.xlu0 %5213 }
 0x253   : > { %v5589_v59 = vsel %vm13171_vm4, %v5584_v62, %v5588_v15  ;;  %v12412_v38 = vrot.slane %v8380_v55, 9  ;;  %v8518_v43 = vrot.slane %v8381_v7, 5  ;;  %v14700_v39 = vsel %vm13333_vm7, %v12333_v3, %v7353_v24  ;;  %v7756_v60 = vld [vmem:[#allocation2 + $0xc0] sm:$0xf]  ;;  %v7757_v12 = vld [vmem:[#allocation2 + $0xc4] sm:$0x1] }
 0x254   : > { %v12234_v27 = vcombine.low %v5575_v25, %v5589_v59  ;;  %7688 = vrot.lane.b32.xlu1 %v12900_v44, %s13039_s10  ;;  %v12413_v42 = vrot.slane %v8382_v17, 9  ;;  %v8522_v35 = vrot.slane %v8383_v21, 5  ;;  %v12362_v11 = vcombine.low %v14692_v57, %v14700_v39  ;;  %v7758_v41 = vld [vmem:[#allocation2 + $0xc8] sm:$0xf]  ;;  %v7759_v4 = vld [vmem:[#allocation2 + $0xcc] sm:$0x1] }
 0x255   : > { %v8519_v40 = vsel %vm13333_vm7, %v12412_v38, %v8518_v43  ;;  %v7869_v36 = vshrl.u32 %v7756_v60, 16  ;;  %v7872_v29 = vshll.u32 %v7756_v60, 16  ;;  %5253 = vst.msk [vmem:[#allocation3 + $0x88] sm:$0xff] %vm1946_vm11, %v5210_v31  ;;  %11560 = vmatpush1.bf16.msra.mxu1 %v12937_v45  ;;  %v7878_v46 = vshll.u32 %v7757_v12, 16  ;;  %v10062_v50 = vld [vmem:[#allocation2 + $0xd0] sm:$0xf]  ;;  %v5224_v33 = vpop.permute.xlu1 %5223 }
 0x256   : > { %6006 = vrot.lane.b32.xlu0 %v12234_v27, %s13042_s13  ;;  %v8523_v22 = vsel %vm13333_vm7, %v12413_v42, %v8522_v35  ;;  %v7883_v18 = vshrl.u32 %v7758_v41, 16  ;;  %v7886_v63 = vshll.u32 %v7758_v41, 16  ;;  %11561 = vmatprep.subr.bf16.mxu1 %v13045_v37  ;;  %v7892_v53 = vshll.u32 %v7759_v4, 16  ;;  %v10063_v32 = vld [vmem:[#allocation2 + $0xd4] sm:$0x1]  ;;  %5258 = vst.msk [vmem:[#allocation3 + $0x128] sm:$0xff] %vm1946_vm11, %v5220_v20  ;;  %v5218_v45 = vpop.permute.xlu0 %5217 }
 0x257   : > { %v12442_v56 = vcombine.low %v8519_v40, %v8523_v22  ;;  %v7871_v2 = vrot.slane %v7869_v36, 4  ;;  %v7874_v26 = vrot.slane %v7872_v29, 5  ;;  %v7880_v6 = vrot.slane %v7878_v46, 5  ;;  %v10064_v8 = vld [vmem:[#allocation2 + $0xd8] sm:$0xf]  ;;  %5255 = vst.msk [vmem:[#allocation3 + $0xc8] sm:$0xff] %vm1946_vm11, %v5214_v0 }
 0x258   : > { %v7885_v52 = vrot.slane %v7883_v18, 4  ;;  %v7888_v54 = vrot.slane %v7886_v63, 5  ;;  %v10175_v34 = vshrl.u32 %v10062_v50, 16  ;;  %v7894_v10 = vrot.slane %v7892_v53, 5  ;;  %v10065_v15 = vld [vmem:[#allocation2 + $0xdc] sm:$0x1] }
 0x259   : > { %8680 = vrot.lane.b32.xlu1 %v12442_v56, %s13041_s12  ;;  %v7875_v9 = vor.u32 %v7874_v26, %v7871_v2  ;;  %v10178_v23 = vshll.u32 %v10062_v50, 16  ;;  %v10184_v44 = vshll.u32 %v10063_v32, 16  ;;  %11562 = vmatpush1.bf16.msra.mxu1 %v12939_v58  ;;  %v12941_v19 = vld [vmem:[%s16469_s3 + $0xd0] sm:$0xff]   ;;  %v10189_v48 = vshrl.u32 %v10064_v8, 16  ;;  %5260 = vst.msk [vmem:[#allocation3 + $0x168] sm:$0xff] %vm1946_vm11, %v5224_v33  ;;  %5257 = vst.msk [vmem:[#allocation3 + $0x108] sm:$0xff] %vm1946_vm11, %v5218_v45  ;;  %v5228_v42 = vpop.permute.xlu1 %5227 }
 0x25a   : > { %6374 = vrot.lane.b32.xlu0 %v12282_v14, %s13043_s14  ;;  %v7889_v25 = vor.u32 %v7888_v54, %v7885_v52  ;;  %v10177_v28 = vrot.slane %v10175_v34, 4  ;;  %v10192_v16 = vshll.u32 %v10064_v8, 16  ;;  %11563 = vmatprep.subr.bf16.mxu1 %v13045_v37  ;;  %v10198_v62 = vshll.u32 %v10065_v15, 16  ;;  %v8925_v7 = vld [vmem:[#allocation2 + $0xc8] sm:$0xf]  ;;  %v5222_v40 = vpop.permute.xlu0 %5221  ;;  %5262 = vst.msk [vmem:[#allocation3 + $0x1a8] sm:$0xff] %vm1946_vm11, %v5228_v42 }
 0x25b   : > { %v7876_v61 = vrot.slane %v7875_v9, 4  ;;  %v10180_v5 = vrot.slane %v10178_v23, 5  ;;  %v10191_v13 = vrot.slane %v10189_v48, 4  ;;  %v10186_v24 = vrot.slane %v10184_v44, 5  ;;  %v8926_v59 = vld [vmem:[#allocation2 + $0xcc] sm:$0x1] }
 0x25c   : > { %v7890_v30 = vrot.slane %v7889_v25, 4  ;;  %v10194_v47 = vrot.slane %v10192_v16, 5  ;;  %v10200_v55 = vrot.slane %v10198_v62, 5  ;;  %v8927_v17 = vld [vmem:[#allocation2 + $0xd0] sm:$0xf]  ;;  %v9038_v38 = vshrl.u32 %v8925_v7, 16 }
 0x25d   : > { %v7881_v3 = vsel %vm13171_vm4, %v7876_v61, %v7880_v6  ;;  %v10181_v14 = vor.u32 %v10180_v5, %v10177_v28  ;;  %11564 = vmatpush1.bf16.msra.mxu1 %v12941_v19  ;;  %v8928_v21 = vld [vmem:[#allocation2 + $0xd4] sm:$0x1]  ;;  %v9041_v43 = vshll.u32 %v8925_v7, 16  ;;  %v9047_v27 = vshll.u32 %v8926_v59, 16  ;;  %v12901_v41 = vld [vmem:[#allocation2 + $0xc8] ss:$8 sps:$4 sm:$0xff]   ;;  %v5232_v20 = vpop.permute.xlu1 %5231 }
 0x25e   : > { %7511 = vrot.lane.b32.xlu0 %v12362_v11, %s13038_s9  ;;  %v7895_v37 = vsel %vm13171_vm4, %v7890_v30, %v7894_v10  ;;  %v10195_v57 = vor.u32 %v10194_v47, %v10191_v13  ;;  %v9052_v39 = vshrl.u32 %v8927_v17, 16  ;;  %v9040_v60 = vrot.slane %v9038_v38, 4  ;;  %5259 = vst.msk [vmem:[#allocation3 + $0x148] sm:$0xff] %vm1946_vm11, %v5222_v40  ;;  %v5454_v63 = vld [vmem:[#allocation2 + $0x88] sm:$0xf]  ;;  %v5226_v9 = vpop.permute.xlu0 %5225  ;;  %5264 = vst.msk [vmem:[#allocation3 + $0x1e8] sm:$0xff] %vm1946_vm11, %v5232_v20 }
 0x25f   : > { %v12394_v1 = vcombine.low %v7881_v3, %v7895_v37  ;;  %v10182_v58 = vrot.slane %v10181_v14, 4  ;;  %v9043_v12 = vrot.slane %v9041_v43, 5  ;;  %v9055_v31 = vshll.u32 %v8927_v17, 16  ;;  %v5455_v50 = vld [vmem:[#allocation2 + $0x8c] sm:$0x1]  ;;  %5261 = vst.msk [vmem:[#allocation3 + $0x188] sm:$0xff] %vm1946_vm11, %v5226_v9 }
 0x260   : > { %v10196_v35 = vrot.slane %v10195_v57, 4  ;;  %v9054_v4 = vrot.slane %v9052_v39, 4  ;;  %v9061_v36 = vshll.u32 %v8928_v21, 16  ;;  %v9049_v46 = vrot.slane %v9047_v27, 5  ;;  %v5456_v26 = vld [vmem:[#allocation2 + $0x90] sm:$0xf] }
 0x261   : > { %v10187_v11 = vsel %vm13171_vm4, %v10182_v58, %v10186_v24  ;;  %v9044_v22 = vor.u32 %v9043_v12, %v9040_v60  ;;  %v9057_v18 = vrot.slane %v9055_v31, 5  ;;  %v5457_v53 = vld [vmem:[#allocation2 + $0x94] sm:$0x1]  ;;  %v5591_v32 = vshrl.u32 %v5454_v63, 16  ;;  %v12902_v54 = vld [vmem:[#allocation2 + $0x88] ss:$8 sps:$4 sm:$0xff]   ;;  %v5381_v47 = vpop.permute.xlu1 %5380 }
 0x262   : > { %8312 = vrot.lane.b32.xlu0 %v12394_v1, %s13040_s11  ;;  %v10201_v29 = vsel %vm13171_vm4, %v10196_v35, %v10200_v55  ;;  %v9063_v2 = vrot.slane %v9061_v36, 5  ;;  %v5594_v8 = vshll.u32 %v5454_v63, 16  ;;  %v5600_v34 = vshll.u32 %v5455_v50, 16  ;;  %v10686_v0 = vld [vmem:[#allocation2 + $0xd0] sm:$0xe]  ;;  %v5230_v59 = vpop.permute.xlu0 %5229  ;;  %5427 = vst.msk [vmem:[#allocation3 + $0x28] sm:$0xff] %vm2571_vm12, %v5381_v47 }
 0x263   : > { %v12554_v56 = vcombine.low %v10187_v11, %v10201_v29  ;;  %v9045_v6 = vrot.slane %v9044_v22, 4  ;;  %v9058_v52 = vor.u32 %v9057_v18, %v9054_v4  ;;  %v5593_v10 = vrot.slane %v5591_v32, 4  ;;  %v10687_v19 = vld [vmem:[#allocation2 + $0xd4] sm:$0x1]  ;;  %v10688_v61 = vld [vmem:[#allocation2 + $0xd8] sm:$0xe] }
 0x264   : > { %v5605_v15 = vshrl.u32 %v5456_v26, 16  ;;  %v5608_v23 = vshll.u32 %v5456_v26, 16  ;;  %v5614_v44 = vshll.u32 %v5457_v53, 16  ;;  %v5596_v48 = vrot.slane %v5594_v8, 5  ;;  %v10689_v30 = vld [vmem:[#allocation2 + $0xdc] sm:$0x1] }
 0x265   : > { %10618 = vrot.lane.b32.xlu1 %v12554_v56, %s13038_s9  ;;  %v9050_v25 = vsel %vm13171_vm4, %v9045_v6, %v9049_v46  ;;  %v9059_v28 = vrot.slane %v9058_v52, 4  ;;  %v5602_v16 = vrot.slane %v5600_v34, 5  ;;  %v12572_v13 = vrot.slane %v10686_v0, 9  ;;  %v6078_v55 = vld [vmem:[#allocation2 + $0x88] sm:$0xe]  ;;  %5263 = vst.msk [vmem:[#allocation3 + $0x1c8] sm:$0xff] %vm1946_vm11, %v5230_v59  ;;  %v6003_v11 = vpop.permute.xlu1 %6002 }
 0x266   : > { %8857 = vrot.lane.b32.xlu0 %v12901_v41, %s13042_s13  ;;  %v5607_v5 = vrot.slane %v5605_v15, 4  ;;  %v5610_v62 = vrot.slane %v5608_v23, 5  ;;  %v5616_v33 = vrot.slane %v5614_v44, 5  ;;  %v5597_v3 = vor.u32 %v5596_v48, %v5593_v10  ;;  %v6079_v7 = vld [vmem:[#allocation2 + $0x8c] sm:$0x1]  ;;  %v5379_v18 = vpop.permute.xlu0 %5378 }
 0x267   : > { %v9064_v45 = vsel %vm13171_vm4, %v9059_v28, %v9063_v2  ;;  %v10824_v14 = vrot.slane %v10687_v19, 5  ;;  %v12573_v24 = vrot.slane %v10688_v61, 9  ;;  %v10828_v17 = vrot.slane %v10689_v30, 5  ;;  %v6080_v21 = vld [vmem:[#allocation2 + $0x90] sm:$0xe]  ;;  %5426 = vst.msk [vmem:[#allocation3 + $0x8] sm:$0xff] %vm2571_vm12, %v5379_v18 }
 0x268   : > { %v12474_v37 = vcombine.low %v9050_v25, %v9064_v45  ;;  %v5611_v57 = vor.u32 %v5610_v62, %v5607_v5  ;;  %v6081_v38 = vld [vmem:[#allocation2 + $0x94] sm:$0x1]  ;;  %v12254_v43 = vrot.slane %v6078_v55, 9  ;;  %v5598_v1 = vrot.slane %v5597_v3, 4  ;;  %v9549_v42 = vld [vmem:[#allocation2 + $0xc8] sm:$0xe] }
 0x269   : > { %v10825_v58 = vsel %vm13333_vm7, %v12572_v13, %v10824_v14  ;;  %v6220_v27 = vrot.slane %v6079_v7, 5  ;;  %v12255_v39 = vrot.slane %v6080_v21, 9  ;;  %v10829_v60 = vsel %vm13333_vm7, %v12573_v24, %v10828_v17  ;;  %v9550_v31 = vld [vmem:[#allocation2 + $0xcc] sm:$0x1]  ;;  %v9551_v40 = vld [vmem:[#allocation2 + $0xd0] sm:$0xe]  ;;  %v6548_v3 = vpop.permute.xlu1 %6547 }
 0x26a   : > { %5384 = vrot.lane.b32.xlu0 %v12902_v54, %s13041_s12  ;;  %9481 = vrot.lane.b32.xlu1 %v12474_v37, %s13043_s14  ;;  %v5612_v35 = vrot.slane %v5611_v57, 4  ;;  %v6224_v12 = vrot.slane %v6081_v38, 5  ;;  %v5603_v41 = vsel %vm13171_vm4, %v5598_v1, %v5602_v16  ;;  %v12602_v4 = vcombine.low %v10825_v58, %v10829_v60  ;;  %v9552_v29 = vld [vmem:[#allocation2 + $0xd4] sm:$0x1]  ;;  %v7215_v46 = vld [vmem:[#allocation2 + $0x90] sm:$0xe]  ;;  %v5383_v44 = vpop.permute.xlu0 %5382 }
 0x26b   : > { %v6221_v36 = vsel %vm13333_vm7, %v12254_v43, %v6220_v27  ;;  %v12492_v22 = vrot.slane %v9549_v42, 9  ;;  %v9687_v56 = vrot.slane %v9550_v31, 5  ;;  %v12493_v2 = vrot.slane %v9551_v40, 9  ;;  %v7216_v26 = vld [vmem:[#allocation2 + $0x94] sm:$0x1]  ;;  %6050 = vst.msk [vmem:[#allocation3 + $0x8] sm:$0xff] %vm2940_vm13, %v6003_v11 }
 0x26c   : > { %v5617_v63 = vsel %vm13171_vm4, %v5612_v35, %v5616_v33  ;;  %v6225_v50 = vsel %vm13333_vm7, %v12255_v39, %v6224_v12  ;;  %v7217_v53 = vld [vmem:[#allocation2 + $0x98] sm:$0xe]  ;;  %v9691_v20 = vrot.slane %v9552_v29, 5  ;;  %v7218_v6 = vld [vmem:[#allocation2 + $0x9c] sm:$0x1]  ;;  %v12334_v52 = vrot.slane %v7215_v46, 9 }
 0x26d   : > { %v12235_v32 = vcombine.low %v5603_v41, %v5617_v63  ;;  %v9688_v54 = vsel %vm13333_vm7, %v12492_v22, %v9687_v56  ;;  %v7357_v8 = vrot.slane %v7216_v26, 5  ;;  %v12335_v34 = vrot.slane %v7217_v53, 9  ;;  %v7760_v15 = vld [vmem:[#allocation2 + $0xd0] sm:$0xf]  ;;  %v7761_v23 = vld [vmem:[#allocation2 + $0xd4] sm:$0x1]  ;;  %v14779_v11 = vpop.permute.xlu1 %7684 }
 0x26e   : > { %10986 = vrot.lane.b32.xlu0 %v12602_v4, %s13039_s10  ;;  %v7361_v0 = vrot.slane %v7218_v6, 5  ;;  %v12283_v9 = vcombine.low %v6221_v36, %v6225_v50  ;;  %v9692_v10 = vsel %vm13333_vm7, %v12493_v2, %v9691_v20  ;;  %v12903_v48 = vld [vmem:[#allocation2 + $0x90] ss:$8 sps:$4 sm:$0xff]   ;;  %v7763_v61 = vld [vmem:[#allocation2 + $0xdc] sm:$0x1]  ;;  %v7897_v5 = vshrl.u32 %v7760_v15, 16  ;;  %v6371_v7 = vpop.permute.xlu0 %6370 }
 0x26f   : > { %6008 = vrot.lane.b32.xlu1 %v12235_v32, %s13042_s13  ;;  %v12522_v19 = vcombine.low %v9688_v54, %v9692_v10  ;;  %v7358_v25 = vsel %vm13333_vm7, %v12334_v52, %v7357_v8  ;;  %v7762_v16 = vld [vmem:[#allocation2 + $0xd8] sm:$0xf]  ;;  %5428 = vst.msk [vmem:[#allocation3 + $0x48] sm:$0xff] %vm2571_vm12, %v5383_v44  ;;  %v7900_v62 = vshll.u32 %v7760_v15, 16  ;;  %v7906_v33 = vshll.u32 %v7761_v23, 16 }
 0x270   : > { %v7362_v28 = vsel %vm13333_vm7, %v12335_v34, %v7361_v0  ;;  %v7911_v30 = vshrl.u32 %v7762_v16, 16  ;;  %v7899_v13 = vrot.slane %v7897_v5, 4  ;;  %v7914_v47 = vshll.u32 %v7762_v16, 16  ;;  %v12904_v37 = vld [vmem:[#allocation2 + $0xd0] ss:$8 sps:$4 sm:$0xff]   ;;  %6418 = vst.msk [vmem:[#allocation3 + $0x8] sm:$0xff] %vm3118_vm14, %v6371_v7 }
 0x271   : > { %v7920_v45 = vshll.u32 %v7763_v61, 16  ;;  %v12363_v14 = vcombine.low %v7358_v25, %v7362_v28  ;;  %v7902_v24 = vrot.slane %v7900_v62, 5  ;;  %v7908_v17 = vrot.slane %v7906_v33, 5  ;;  %v8384_v38 = vld [vmem:[#allocation2 + $0xd0] sm:$0xe]  ;;  %6595 = vst.msk [vmem:[#allocation3 + $0x8] sm:$0xff] %vm3743_vm15, %v6548_v3  ;;  %v14792_v33 = vpop.permute.xlu1 %8676 }
 0x272   : > { %9849 = vrot.lane.b32.xlu0 %v12522_v19, %s13044_s15  ;;  %v7913_v55 = vrot.slane %v7911_v30, 4  ;;  %v7916_v59 = vrot.slane %v7914_v47, 5  ;;  %v8385_v43 = vld [vmem:[#allocation2 + $0xd4] sm:$0x1]  ;;  %v8386_v58 = vld [vmem:[#allocation2 + $0xd8] sm:$0xe]  ;;  %v14788_v54 = vpop.permute.xlu0 %7507 }
 0x273   : > { %6376 = vrot.lane.b32.xlu1 %v12283_v9, %s13043_s14  ;;  %v7903_v57 = vor.u32 %v7902_v24, %v7899_v13  ;;  %v7922_v21 = vrot.slane %v7920_v45, 5  ;;  %v8387_v27 = vld [vmem:[#allocation2 + $0xdc] sm:$0x1]  ;;  %v12414_v39 = vrot.slane %v8384_v38, 9  ;;  %v8526_v42 = vrot.slane %v8385_v43, 5  ;;  %v11046_v28 = vld [vmem:[#allocation3] sm:$0xff] }
 0x274   : > { %v7917_v1 = vor.u32 %v7916_v59, %v7913_v55  ;;  %v12415_v60 = vrot.slane %v8386_v58, 9  ;;  %v8530_v12 = vrot.slane %v8387_v27, 5  ;;  %v10066_v36 = vld [vmem:[#allocation2 + $0xe0] sm:$0xf]  ;;  %v10067_v29 = vld [vmem:[#allocation2 + $0xe4] sm:$0x1] }
 0x275   : > { %v7904_v35 = vrot.slane %v7903_v57, 4  ;;  %v8527_v40 = vsel %vm13333_vm7, %v12414_v39, %v8526_v42  ;;  %v10068_v22 = vld [vmem:[#allocation2 + $0xe8] sm:$0xf]  ;;  %v10069_v63 = vld [vmem:[#allocation2 + $0xec] sm:$0x1]  ;;  %v10203_v50 = vshrl.u32 %v10066_v36, 16 }
 0x276   : > { %6553 = vrot.lane.b32.xlu0 %v12903_v48, %s13044_s15  ;;  %v7918_v31 = vrot.slane %v7917_v1, 4  ;;  %v8531_v4 = vsel %vm13333_vm7, %v12415_v60, %v8530_v12  ;;  %v10206_v56 = vshll.u32 %v10066_v36, 16  ;;  %v10690_v2 = vld [vmem:[#allocation2 + $0xe0] sm:$0xe]  ;;  %v10212_v32 = vshll.u32 %v10067_v29, 16  ;;  %v14799_v58 = vpop.permute.xlu0 %8308 }
 0x277   : > { %7513 = vrot.lane.b32.xlu1 %v12363_v14, %s13038_s9  ;;  %v7909_v41 = vsel %vm13171_vm4, %v7904_v35, %v7908_v17  ;;  %v12443_v18 = vcombine.low %v8527_v40, %v8531_v4  ;;  %v12905_v53 = vld [vmem:[#allocation2 + $0xd8] ss:$8 sps:$4 sm:$0xff]   ;;  %v10217_v20 = vshrl.u32 %v10068_v22, 16  ;;  %v10220_v6 = vshll.u32 %v10068_v22, 16  ;;  %v10691_v52 = vld [vmem:[#allocation2 + $0xe4] sm:$0x1] }
 0x278   : > { %v7923_v46 = vsel %vm13171_vm4, %v7918_v31, %v7922_v21  ;;  %v10205_v8 = vrot.slane %v10203_v50, 4  ;;  %v10208_v34 = vrot.slane %v10206_v56, 5  ;;  %v10226_v0 = vshll.u32 %v10069_v63, 16  ;;  %v10692_v9 = vld [vmem:[#allocation2 + $0xe8] sm:$0xe]  ;;  %v14805_v50 = vpop.permute.xlu1 %10614 }
 0x279   : > { %v12395_v26 = vcombine.low %v7909_v41, %v7923_v46  ;;  %v12574_v10 = vrot.slane %v10690_v2, 9  ;;  %v10214_v15 = vrot.slane %v10212_v32, 5  ;;  %v10219_v23 = vrot.slane %v10217_v20, 4  ;;  %v10693_v19 = vld [vmem:[#allocation2 + $0xec] sm:$0x1] }
 0x27a   : > { %7690 = vrot.lane.b32.xlu0 %v12904_v37, %s13039_s10  ;;  %v10222_v44 = vrot.slane %v10220_v6, 5  ;;  %v10832_v25 = vrot.slane %v10691_v52, 5  ;;  %v10209_v48 = vor.u32 %v10208_v34, %v10205_v8  ;;  %v10228_v16 = vrot.slane %v10226_v0, 5  ;;  %v8929_v62 = vld [vmem:[#allocation2 + $0xd8] sm:$0xf]  ;;  %v11047_v30 = vld [vmem:[#allocation3 + $0x8] sm:$0xff] }
 0x27b   : > { %8314 = vrot.lane.b32.xlu1 %v12395_v26, %s13040_s11  ;;  %v12575_v61 = vrot.slane %v10692_v9, 9  ;;  %v10836_v5 = vrot.slane %v10693_v19, 5  ;;  %v12906_v13 = vld [vmem:[#allocation2 + $0xa8] ss:$8 sps:$4 sm:$0xff]   ;;  %v8930_v3 = vld [vmem:[#allocation2 + $0xdc] sm:$0x1]  ;;  %11414 = vmatprep.mubr.bf16.mxu0 %v11047_v30 }
 0x27c   : > { %v10223_v47 = vor.u32 %v10222_v44, %v10219_v23  ;;  %v10833_v45 = vsel %vm13333_vm7, %v12574_v10, %v10832_v25  ;;  %v8931_v14 = vld [vmem:[#allocation2 + $0xe0] sm:$0xf]  ;;  %v8932_v24 = vld [vmem:[#allocation2 + $0xe4] sm:$0x1]  ;;  %v10210_v55 = vrot.slane %v10209_v48, 4  ;;  %v9066_v59 = vshrl.u32 %v8929_v62, 16  ;;  %11415 = vmatmul.mubr.bf16.vlgmr.msra.gmra.mrb[0].mxu0 %v11046_v28  ;;  %v14813_v23 = vpop.permute.xlu0 %8853 }
 0x27d   : > { %v10837_v7 = vsel %vm13333_vm7, %v12575_v61, %v10836_v5  ;;  %v9069_v37 = vshll.u32 %v8929_v62, 16  ;;  %v9553_v57 = vld [vmem:[#allocation2 + $0xd8] sm:$0xe]  ;;  %v9075_v38 = vshll.u32 %v8930_v3, 16  ;;  %v9080_v43 = vshrl.u32 %v8931_v14, 16 }
 0x27e   : > { %8682 = vrot.lane.b32.xlu0 %v12443_v18, %s13041_s12  ;;  %v10224_v17 = vrot.slane %v10223_v47, 4  ;;  %v12603_v21 = vcombine.low %v10833_v45, %v10837_v7  ;;  %v9554_v1 = vld [vmem:[#allocation2 + $0xdc] sm:$0x1]  ;;  %v10215_v27 = vsel %vm13171_vm4, %v10210_v55, %v10214_v15  ;;  %v9068_v39 = vrot.slane %v9066_v59, 4  ;;  %v9555_v60 = vld [vmem:[#allocation2 + $0xe0] sm:$0xe] }
 0x27f   : > { %8859 = vrot.lane.b32.xlu1 %v12905_v53, %s13042_s13  ;;  %v9071_v42 = vrot.slane %v9069_v37, 5  ;;  %v9083_v35 = vshll.u32 %v8931_v14, 16  ;;  %v9077_v31 = vrot.slane %v9075_v38, 5  ;;  %v9082_v40 = vrot.slane %v9080_v43, 4  ;;  %v9556_v4 = vld [vmem:[#allocation2 + $0xe4] sm:$0x1] }
 0x280   : > { %v10229_v12 = vsel %vm13171_vm4, %v10224_v17, %v10228_v16  ;;  %v9089_v41 = vshll.u32 %v8932_v24, 16  ;;  %v12494_v46 = vrot.slane %v9553_v57, 9  ;;  %v5458_v18 = vld [vmem:[#allocation2 + $0xa8] sm:$0xf]  ;;  %v5459_v63 = vld [vmem:[#allocation2 + $0xac] sm:$0x1]  ;;  %v14820_v24 = vpop.permute.xlu1 %10982 }
 0x281   : > { %v12555_v36 = vcombine.low %v10215_v27, %v10229_v12  ;;  %v9072_v29 = vor.u32 %v9071_v42, %v9068_v39  ;;  %v9085_v22 = vrot.slane %v9083_v35, 5  ;;  %v9695_v2 = vrot.slane %v9554_v1, 5  ;;  %v5460_v32 = vld [vmem:[#allocation2 + $0xb0] sm:$0xf]  ;;  %v5461_v52 = vld [vmem:[#allocation2 + $0xb4] sm:$0x1] }
 0x282   : > { %v9091_v56 = vrot.slane %v9089_v41, 5  ;;  %v12495_v26 = vrot.slane %v9555_v60, 9  ;;  %v9699_v53 = vrot.slane %v9556_v4, 5  ;;  %v5619_v8 = vshrl.u32 %v5458_v18, 16  ;;  %v6082_v48 = vld [vmem:[#allocation2 + $0xa8] sm:$0xe] }
 0x283   : > { %5386 = vrot.lane.b32.xlu1 %v12906_v13, %s13041_s12  ;;  %10620 = vrot.lane.b32.xlu0 %v12555_v36, %s13038_s9  ;;  %v9073_v20 = vrot.slane %v9072_v29, 4  ;;  %v9086_v6 = vor.u32 %v9085_v22, %v9082_v40  ;;  %v5622_v34 = vshll.u32 %v5458_v18, 16  ;;  %v9696_v0 = vsel %vm13333_vm7, %v12494_v46, %v9695_v2  ;;  %v6083_v30 = vld [vmem:[#allocation2 + $0xac] sm:$0x1]  ;;  %v6084_v45 = vld [vmem:[#allocation2 + $0xb0] sm:$0xe] }
 0x284   : > { %v9700_v9 = vsel %vm13333_vm7, %v12495_v26, %v9699_v53  ;;  %v5628_v10 = vshll.u32 %v5459_v63, 16  ;;  %v5633_v15 = vshrl.u32 %v5460_v32, 16  ;;  %v5621_v28 = vrot.slane %v5619_v8, 4  ;;  %v6085_v3 = vld [vmem:[#allocation2 + $0xb4] sm:$0x1]  ;;  %v14824_v42 = vpop.permute.xlu0 %9477 }
 0x285   : > { %v9078_v44 = vsel %vm13171_vm4, %v9073_v20, %v9077_v31  ;;  %v9087_v19 = vrot.slane %v9086_v6, 4  ;;  %v12523_v25 = vcombine.low %v9696_v0, %v9700_v9  ;;  %v5624_v16 = vrot.slane %v5622_v34, 5  ;;  %v12912_v57 = vld [vmem:[#allocation2 + $0xb0] ss:$8 sps:$4 sm:$0xff]   ;;  %v7220_v39 = vld [vmem:[#allocation2 + $0xb4] sm:$0x1] }
 0x286   : > { %v5630_v61 = vrot.slane %v5628_v10, 5  ;;  %v5635_v5 = vrot.slane %v5633_v15, 4  ;;  %v5636_v62 = vshll.u32 %v5460_v32, 16  ;;  %v5642_v47 = vshll.u32 %v5461_v52, 16  ;;  %v7219_v27 = vld [vmem:[#allocation2 + $0xb0] sm:$0xe]  ;;  %v14832_v63 = vpop.permute.xlu1 %9845 }
 0x287   : > { %10988 = vrot.lane.b32.xlu1 %v12603_v21, %s13039_s10  ;;  %v9092_v13 = vsel %vm13171_vm4, %v9087_v19, %v9091_v56  ;;  %v12256_v14 = vrot.slane %v6082_v48, 9  ;;  %v5625_v7 = vor.u32 %v5624_v16, %v5621_v28  ;;  %v6228_v37 = vrot.slane %v6083_v30, 5  ;;  %v7221_v60 = vld [vmem:[#allocation2 + $0xb8] sm:$0xe]  ;;  %v7222_v12 = vld [vmem:[#allocation2 + $0xbc] sm:$0x1] }
 0x288   : > { %v12475_v55 = vcombine.low %v9078_v44, %v9092_v13  ;;  %v5638_v59 = vrot.slane %v5636_v62, 5  ;;  %v12257_v17 = vrot.slane %v6084_v45, 9  ;;  %v6232_v21 = vrot.slane %v6085_v3, 5  ;;  %v12916_v29 = vld [vmem:[#allocation2 + $0xf0] ss:$8 sps:$4 sm:$0xff]  }
 0x289   : > { %v5626_v38 = vrot.slane %v5625_v7, 4  ;;  %v5644_v1 = vrot.slane %v5642_v47, 5  ;;  %v6229_v35 = vsel %vm13333_vm7, %v12256_v14, %v6228_v37  ;;  %v12336_v31 = vrot.slane %v7219_v27, 9  ;;  %v8388_v18 = vld [vmem:[#allocation2 + $0xf0] sm:$0xe] }
 0x28a   : > { %9483 = vrot.lane.b32.xlu0 %v12475_v55, %s13043_s14  ;;  %v5639_v43 = vor.u32 %v5638_v59, %v5635_v5  ;;  %v7365_v40 = vrot.slane %v7220_v39, 5  ;;  %v6233_v36 = vsel %vm13333_vm7, %v12257_v17, %v6232_v21  ;;  %v12337_v22 = vrot.slane %v7221_v60, 9  ;;  %v8389_v2 = vld [vmem:[#allocation2 + $0xf4] sm:$0x1]  ;;  %v8390_v26 = vld [vmem:[#allocation2 + $0xf8] sm:$0xe] }
 0x28b   : > { %9851 = vrot.lane.b32.xlu1 %v12523_v25, %s13044_s15  ;;  %v5631_v41 = vsel %vm13171_vm4, %v5626_v38, %v5630_v61  ;;  %v7369_v46 = vrot.slane %v7222_v12, 5  ;;  %v8391_v53 = vld [vmem:[#allocation2 + $0xfc] sm:$0x1]  ;;  %v12284_v20 = vcombine.low %v6229_v35, %v6233_v36  ;;  %v12416_v6 = vrot.slane %v8388_v18, 9  ;;  %v7764_v8 = vld [vmem:[#allocation2 + $0xf0] sm:$0xf] }
 0x28c   : > { %v5640_v4 = vrot.slane %v5639_v43, 4  ;;  %v8534_v52 = vrot.slane %v8389_v2, 5  ;;  %v7765_v34 = vld [vmem:[#allocation2 + $0xf4] sm:$0x1]  ;;  %v7366_v0 = vsel %vm13333_vm7, %v12336_v31, %v7365_v40  ;;  %v12417_v10 = vrot.slane %v8390_v26, 9  ;;  %v6550_v14 = vpop.permute.xlu1 %6549 }
 0x28d   : > { %v7370_v9 = vsel %vm13333_vm7, %v12337_v22, %v7369_v46  ;;  %v8538_v15 = vrot.slane %v8391_v53, 5  ;;  %v7766_v44 = vld [vmem:[#allocation2 + $0xf8] sm:$0xf]  ;;  %v7767_v19 = vld [vmem:[#allocation2 + $0xfc] sm:$0x1]  ;;  %v7925_v48 = vshrl.u32 %v7764_v8, 16 }
 0x28e   : > { %v5645_v56 = vsel %vm13171_vm4, %v5640_v4, %v5644_v1  ;;  %v8535_v28 = vsel %vm13333_vm7, %v12416_v6, %v8534_v52  ;;  %v7928_v16 = vshll.u32 %v7764_v8, 16  ;;  %v7934_v61 = vshll.u32 %v7765_v34, 16  ;;  %v10070_v38 = vld [vmem:[#allocation2 + $0x100] sm:$0xf]  ;;  %v10071_v1 = vld [vmem:[#allocation2 + $0x104] sm:$0x1] }
 0x28f   : > { %6555 = vrot.lane.b32.xlu1 %v12912_v57, %s13044_s15  ;;  %v12236_v32 = vcombine.low %v5631_v41, %v5645_v56  ;;  %v6005_v25 = vpop.permute.xlu0 %6004  ;;  %v8539_v5 = vsel %vm13333_vm7, %v12417_v10, %v8538_v15  ;;  %v7939_v62 = vshrl.u32 %v7766_v44, 16  ;;  %v7942_v30 = vshll.u32 %v7766_v44, 16  ;;  %v10072_v27 = vld [vmem:[#allocation2 + $0x108] sm:$0xf]  ;;  %v10073_v39 = vld [vmem:[#allocation2 + $0x10c] sm:$0x1] }
 0x290   : > { %6051 = vst.msk [vmem:[#allocation3 + $0x28] sm:$0xff] %vm2940_vm13, %v6005_v25  ;;  %v7948_v13 = vshll.u32 %v7767_v19, 16  ;;  %v12444_v47 = vcombine.low %v8535_v28, %v8539_v5  ;;  %v7927_v45 = vrot.slane %v7925_v48, 4  ;;  %v7930_v3 = vrot.slane %v7928_v16, 5  ;;  %v12923_v6 = vld [vmem:[#allocation2 + $0xf8] ss:$8 sps:$4 sm:$0xff]  }
 0x291   : > { %6010 = vrot.lane.b32.xlu0 %v12236_v32, %s13042_s13  ;;  %v7936_v55 = vrot.slane %v7934_v61, 5  ;;  %v7941_v7 = vrot.slane %v7939_v62, 4  ;;  %v7944_v59 = vrot.slane %v7942_v30, 5  ;;  %v12364_v17 = vcombine.low %v7366_v0, %v7370_v9  ;;  %v8933_v8 = vld [vmem:[#allocation2 + $0xf8] sm:$0xf] }
 0x292   : > { %v7950_v37 = vrot.slane %v7948_v13, 5  ;;  %v7931_v21 = vor.u32 %v7930_v3, %v7927_v45  ;;  %v10231_v60 = vshrl.u32 %v10070_v38, 16  ;;  %v10234_v12 = vshll.u32 %v10070_v38, 16  ;;  %v8934_v0 = vld [vmem:[#allocation2 + $0xfc] sm:$0x1]  ;;  %v11050_v3 = vld [vmem:[#allocation3 + $0x20] sm:$0xff] }
 0x293   : > { %7692 = vrot.lane.b32.xlu1 %v12916_v29, %s13039_s10  ;;  %v6373_v57 = vpop.permute.xlu0 %6372  ;;  %v7945_v43 = vor.u32 %v7944_v59, %v7941_v7  ;;  %v10240_v31 = vshll.u32 %v10071_v1, 16  ;;  %v10245_v41 = vshrl.u32 %v10072_v27, 16  ;;  %v10248_v4 = vshll.u32 %v10072_v27, 16  ;;  %v8935_v9 = vld [vmem:[#allocation2 + $0x100] sm:$0xf] }
 0x294   : > { %6419 = vst.msk [vmem:[#allocation3 + $0x28] sm:$0xff] %vm3118_vm14, %v6373_v57  ;;  %v7932_v35 = vrot.slane %v7931_v21, 4  ;;  %v10254_v36 = vshll.u32 %v10073_v39, 16  ;;  %v10233_v22 = vrot.slane %v10231_v60, 4  ;;  %v10236_v46 = vrot.slane %v10234_v12, 5 }
 0x295   : > { %6378 = vrot.lane.b32.xlu0 %v12284_v20, %s13043_s14  ;;  %6596 = vst.msk [vmem:[#allocation3 + $0x28] sm:$0xff] %vm3743_vm15, %v6550_v14  ;;  %v7946_v40 = vrot.slane %v7945_v43, 4  ;;  %v10242_v18 = vrot.slane %v10240_v31, 5  ;;  %v10247_v2 = vrot.slane %v10245_v41, 4  ;;  %v10250_v26 = vrot.slane %v10248_v4, 5 }
 0x296   : > { %v7937_v29 = vsel %vm13171_vm4, %v7932_v35, %v7936_v55  ;;  %v10256_v53 = vrot.slane %v10254_v36, 5  ;;  %v10237_v20 = vor.u32 %v10236_v46, %v10233_v22  ;;  %v9094_v10 = vshrl.u32 %v8933_v8, 16  ;;  %v8936_v44 = vld [vmem:[#allocation2 + $0x104] sm:$0x1]  ;;  %v12927_v59 = vld [vmem:[#allocation2 + $0xb8] ss:$8 sps:$4 sm:$0xff]   ;;  %v14867_v22 = vpop.permute.xlu1 %7686 }
 0x297   : > { %8684 = vrot.lane.b32.xlu1 %v12444_v47, %s13041_s12  ;;  %v7951_v56 = vsel %vm13171_vm4, %v7946_v40, %v7950_v37  ;;  %v10251_v52 = vor.u32 %v10250_v26, %v10247_v2  ;;  %v9097_v19 = vshll.u32 %v8933_v8, 16  ;;  %v9103_v25 = vshll.u32 %v8934_v0, 16  ;;  %v6612_v21 = vld [vmem:[#allocation2 + $0x64] sm:$0x1]  ;;  %v6613_v38 = vld [vmem:[#allocation2 + $0x68] sm:$0xf] }
 0x298   : > { %v12396_v32 = vcombine.low %v7937_v29, %v7951_v56  ;;  %v10238_v34 = vrot.slane %v10237_v20, 4  ;;  %v9108_v28 = vshrl.u32 %v8935_v9, 16  ;;  %v9096_v16 = vrot.slane %v9094_v10, 4  ;;  %v6614_v1 = vld [vmem:[#allocation2 + $0x6c] sm:$0x1] }
 0x299   : > { %7515 = vrot.lane.b32.xlu0 %v12364_v17, %s13038_s9  ;;  %v10252_v15 = vrot.slane %v10251_v52, 4  ;;  %v9111_v61 = vshll.u32 %v8935_v9, 16  ;;  %v9117_v5 = vshll.u32 %v8936_v44, 16  ;;  %v9099_v13 = vrot.slane %v9097_v19, 5  ;;  %v6611_v17 = vld [vmem:[#allocation2 + $0x60] sm:$0xf] }
 0x29a   : > { %v10243_v48 = vsel %vm13171_vm4, %v10238_v34, %v10242_v18  ;;  %v9105_v47 = vrot.slane %v9103_v25, 5  ;;  %v9110_v45 = vrot.slane %v9108_v28, 4  ;;  %v6676_v27 = vshrl.u32 %v6611_v17, 16  ;;  %v5462_v26 = vld [vmem:[#allocation2 + $0xb8] sm:$0xf] }
 0x29b   : > { %v10257_v30 = vsel %vm13171_vm4, %v10252_v15, %v10256_v53  ;;  %v9113_v55 = vrot.slane %v9111_v61, 5  ;;  %v9119_v7 = vrot.slane %v9117_v5, 5  ;;  %v9100_v37 = vor.u32 %v9099_v13, %v9096_v16  ;;  %v5463_v20 = vld [vmem:[#allocation2 + $0xbc] sm:$0x1]  ;;  %v5465_v52 = vld [vmem:[#allocation2 + $0xc4] sm:$0x1] }
 0x29c   : > { %v11051_v62 = vld [vmem:[#allocation3 + $0x28] sm:$0xff]  ;;  %v12556_v14 = vcombine.low %v10243_v48, %v10257_v30  ;;  %v6679_v39 = vshll.u32 %v6611_v17, 16  ;;  %v6685_v35 = vshll.u32 %v6612_v21, 16  ;;  %v6690_v12 = vshrl.u32 %v6613_v38, 16  ;;  %v10694_v10 = vld [vmem:[#allocation2 + $0x100] sm:$0xe] }
 0x29d   : > { %8316 = vrot.lane.b32.xlu0 %v12396_v32, %s13040_s11  ;;  %11422 = vmatprep.mubr.bf16.mxu0 %v11051_v62  ;;  %v9114_v57 = vor.u32 %v9113_v55, %v9110_v45  ;;  %v9101_v43 = vrot.slane %v9100_v37, 4  ;;  %v6693_v31 = vshll.u32 %v6613_v38, 16  ;;  %v6699_v40 = vshll.u32 %v6614_v1, 16  ;;  %v10695_v28 = vld [vmem:[#allocation2 + $0x104] sm:$0x1] }
 0x29e   : > { %11423 = vmatmul.mubr.bf16.gmra.mrb[4].mxu0 %v11050_v3  ;;  %10622 = vrot.lane.b32.xlu1 %v12556_v14, %s13038_s9  ;;  %v6678_v4 = vrot.slane %v6676_v27, 4  ;;  %v6681_v36 = vrot.slane %v6679_v39, 5  ;;  %v6687_v29 = vrot.slane %v6685_v35, 5  ;;  %v6692_v18 = vrot.slane %v6690_v12, 4  ;;  %v10696_v62 = vld [vmem:[#allocation2 + $0x108] sm:$0xe]  ;;  %v14874_v14 = vpop.permute.xlu0 %7509 }
 0x29f   : > { %v9115_v60 = vrot.slane %v9114_v57, 4  ;;  %v9106_v41 = vsel %vm13171_vm4, %v9101_v43, %v9105_v47  ;;  %v6695_v56 = vrot.slane %v6693_v31, 5  ;;  %v6701_v2 = vrot.slane %v6699_v40, 5  ;;  %v10697_v3 = vld [vmem:[#allocation2 + $0x10c] sm:$0x1] }
 0x2a0   : > { %v6682_v32 = vor.u32 %v6681_v36, %v6678_v4  ;;  %v5647_v34 = vshrl.u32 %v5462_v26, 16  ;;  %v5650_v0 = vshll.u32 %v5462_v26, 16  ;;  %v5656_v9 = vshll.u32 %v5463_v20, 16  ;;  %v6087_v12 = vld [vmem:[#allocation2 + $0xbc] sm:$0x1] }
 0x2a1   : > { %8861 = vrot.lane.b32.xlu0 %v12923_v6, %s13042_s13  ;;  %v9120_v46 = vsel %vm13171_vm4, %v9115_v60, %v9119_v7  ;;  %v5464_v6 = vld [vmem:[#allocation2 + $0xc0] sm:$0xf]  ;;  %v6696_v8 = vor.u32 %v6695_v56, %v6692_v18  ;;  %v5670_v25 = vshll.u32 %v5465_v52, 16  ;;  %v12576_v37 = vrot.slane %v10694_v10, 9  ;;  %v6086_v60 = vld [vmem:[#allocation2 + $0xb8] sm:$0xe] }
 0x2a2   : > { %v12476_v53 = vcombine.low %v9106_v41, %v9120_v46  ;;  %v6683_v15 = vrot.slane %v6682_v32, 4  ;;  %v5661_v44 = vshrl.u32 %v5464_v6, 16  ;;  %v5664_v19 = vshll.u32 %v5464_v6, 16  ;;  %v14876_v55 = vpop.permute.xlu1 %8678  ;;  %v6088_v41 = vld [vmem:[#allocation2 + $0xc0] sm:$0xe] }
 0x2a3   : > { %v6697_v48 = vrot.slane %v6696_v8, 4  ;;  %v5649_v16 = vrot.slane %v5647_v34, 4  ;;  %v5652_v61 = vrot.slane %v5650_v0, 5  ;;  %v5658_v5 = vrot.slane %v5656_v9, 5  ;;  %v6089_v4 = vld [vmem:[#allocation2 + $0xc4] sm:$0x1] }
 0x2a4   : > { %9485 = vrot.lane.b32.xlu1 %v12476_v53, %s13043_s14  ;;  %v6688_v30 = vsel %vm13171_vm4, %v6683_v15, %v6687_v29  ;;  %v5663_v13 = vrot.slane %v5661_v44, 4  ;;  %v5666_v47 = vrot.slane %v5664_v19, 5  ;;  %v5672_v45 = vrot.slane %v5670_v25, 5  ;;  %v9558_v26 = vld [vmem:[#allocation2 + $0xfc] sm:$0x1] }
 0x2a5   : > { %5388 = vrot.lane.b32.xlu0 %v12927_v59, %s13041_s12  ;;  %v6702_v7 = vsel %vm13171_vm4, %v6697_v48, %v6701_v2  ;;  %v5653_v59 = vor.u32 %v5652_v61, %v5649_v16  ;;  %v10840_v57 = vrot.slane %v10695_v28, 5  ;;  %v12577_v38 = vrot.slane %v10696_v62, 9  ;;  %v9557_v2 = vld [vmem:[#allocation2 + $0xf8] sm:$0xe]  ;;  %v9559_v20 = vld [vmem:[#allocation2 + $0x100] sm:$0xe] }
 0x2a6   : > { %v12312_v17 = vcombine.low %v6688_v30, %v6702_v7  ;;  %v5667_v21 = vor.u32 %v5666_v47, %v5663_v13  ;;  %v10844_v43 = vrot.slane %v10697_v3, 5  ;;  %v12258_v36 = vrot.slane %v6086_v60, 9  ;;  %v9560_v6 = vld [vmem:[#allocation2 + $0x104] sm:$0x1]  ;;  %v12934_v15 = vld [vmem:[#allocation2 + $0xb0] ss:$8 sps:$4 sm:$0xff]  }
 0x2a7   : > { %v5654_v1 = vrot.slane %v5653_v59, 4  ;;  %v10841_v27 = vsel %vm13333_vm7, %v12576_v37, %v10840_v57  ;;  %v6236_v29 = vrot.slane %v6087_v12, 5  ;;  %v12259_v18 = vrot.slane %v6088_v41, 9  ;;  %v7223_v19 = vld [vmem:[#allocation2 + $0xc0] sm:$0xe]  ;;  %10038 = vst.msk [vmem:[#allocation3 + $0x18] sm:$0xff] %vm768_vm8, %v12934_v15 }
 0x2a8   : > { %7187 = vst.msk [vmem:[#allocation3 + $0x10] sm:$0xff] %vm768_vm8, %v12312_v17  ;;  %v5668_v39 = vrot.slane %v5667_v21, 4  ;;  %v10845_v35 = vsel %vm13333_vm7, %v12577_v38, %v10844_v43  ;;  %v6240_v56 = vrot.slane %v6089_v4, 5  ;;  %v12496_v52 = vrot.slane %v9557_v2, 9  ;;  %v7225_v25 = vld [vmem:[#allocation2 + $0xc8] sm:$0xe] }
 0x2a9   : > { %7555 = vst.msk [vmem:[#allocation3 + $0x10] sm:$0xff] %vm1396_vm9, %v14788_v54  ;;  %v5659_v31 = vsel %vm13171_vm4, %v5654_v1, %v5658_v5  ;;  %v12604_v40 = vcombine.low %v10841_v27, %v10845_v35  ;;  %v9703_v8 = vrot.slane %v9558_v26, 5  ;;  %v12497_v0 = vrot.slane %v9559_v20, 9  ;;  %v7226_v16 = vld [vmem:[#allocation2 + $0xcc] sm:$0x1]  ;;  %10662 = vst.msk [vmem:[#allocation3 + $0x18] sm:$0xff] %vm1396_vm9, %v14805_v50 }
 0x2aa   : > { %7732 = vst.msk [vmem:[#allocation3 + $0x10] sm:$0xff] %vm1768_vm10, %v14779_v11  ;;  %v5673_v46 = vsel %vm13171_vm4, %v5668_v39, %v5672_v45  ;;  %v14893_v53 = vpop.permute.xlu0 %8310  ;;  %v6237_v11 = vsel %vm13333_vm7, %v12258_v36, %v6236_v29  ;;  %v6241_v34 = vsel %vm13333_vm7, %v12259_v18, %v6240_v56  ;;  %v9707_v9 = vrot.slane %v9560_v6, 5  ;;  %v12936_v13 = vld [vmem:[#allocation2 + $0xc0] ss:$8 sps:$4 sm:$0xff]   ;;  %11030 = vst.msk [vmem:[#allocation3 + $0x18] sm:$0xff] %vm1768_vm10, %v14820_v24 }
 0x2ab   : > { %v12237_v32 = vcombine.low %v5659_v31, %v5673_v46  ;;  %10990 = vrot.lane.b32.xlu0 %v12604_v40, %s13039_s10  ;;  %8356 = vst.msk [vmem:[#allocation3 + $0x10] sm:$0xff] %vm1946_vm11, %v14799_v58  ;;  %v12285_v10 = vcombine.low %v6237_v11, %v6241_v34  ;;  %v9704_v58 = vsel %vm13333_vm7, %v12496_v52, %v9703_v8  ;;  %v12338_v61 = vrot.slane %v7223_v19, 9  ;;  %v7768_v47 = vld [vmem:[#allocation2 + $0x100] sm:$0xf]  ;;  %v7769_v45 = vld [vmem:[#allocation2 + $0x104] sm:$0x1] }
 0x2ac   : > { %8724 = vst.msk [vmem:[#allocation3 + $0x10] sm:$0xff] %vm2571_vm12, %v14792_v33  ;;  %v9708_v44 = vsel %vm13333_vm7, %v12497_v0, %v9707_v9  ;;  %v7224_v33 = vld [vmem:[#allocation2 + $0xc4] sm:$0x1]  ;;  %v12339_v62 = vrot.slane %v7225_v25, 9  ;;  %v7770_v50 = vld [vmem:[#allocation2 + $0x108] sm:$0xf] }
 0x2ad   : > { %6012 = vrot.lane.b32.xlu1 %v12237_v32, %s13042_s13  ;;  %8901 = vst.msk [vmem:[#allocation3 + $0x10] sm:$0xff] %vm2940_vm13, %v14813_v23  ;;  %v12524_v48 = vcombine.low %v9704_v58, %v9708_v44  ;;  %v7373_v5 = vrot.slane %v7224_v33, 5  ;;  %v7377_v23 = vrot.slane %v7226_v16, 5  ;;  %v7771_v7 = vld [vmem:[#allocation2 + $0x10c] sm:$0x1]  ;;  %v7953_v59 = vshrl.u32 %v7768_v47, 16 }
 0x2ae   : > { %9525 = vst.msk [vmem:[#allocation3 + $0x10] sm:$0xff] %vm3118_vm14, %v14824_v42  ;;  %v14922_v30 = vpop.permute.xlu0 %8855  ;;  %v7956_v37 = vshll.u32 %v7768_v47, 16  ;;  %v7962_v57 = vshll.u32 %v7769_v45, 16  ;;  %v7967_v21 = vshrl.u32 %v7770_v50, 16  ;;  %v7970_v38 = vshll.u32 %v7770_v50, 16 }
 0x2af   : > { %9893 = vst.msk [vmem:[#allocation3 + $0x10] sm:$0xff] %vm3743_vm15, %v14832_v63  ;;  %9853 = vrot.lane.b32.xlu0 %v12524_v48, %s13044_s15  ;;  %v7374_v42 = vsel %vm13333_vm7, %v12338_v61, %v7373_v5  ;;  %v7378_v63 = vsel %vm13333_vm7, %v12339_v62, %v7377_v23  ;;  %v7976_v43 = vshll.u32 %v7771_v7, 16  ;;  %v7955_v24 = vrot.slane %v7953_v59, 4  ;;  %v12938_v60 = vld [vmem:[#allocation2 + $0x100] ss:$8 sps:$4 sm:$0xff]  }
 0x2b0   : > { %v12365_v3 = vcombine.low %v7374_v42, %v7378_v63  ;;  %v7958_v1 = vrot.slane %v7956_v37, 5  ;;  %v7964_v27 = vrot.slane %v7962_v57, 5  ;;  %v7969_v39 = vrot.slane %v7967_v21, 4  ;;  %v8392_v4 = vld [vmem:[#allocation2 + $0x100] sm:$0xe] }
 0x2b1   : > { %6380 = vrot.lane.b32.xlu1 %v12285_v10, %s13043_s14  ;;  %v7972_v35 = vrot.slane %v7970_v38, 5  ;;  %v7978_v41 = vrot.slane %v7976_v43, 5  ;;  %v8393_v46 = vld [vmem:[#allocation2 + $0x104] sm:$0x1]  ;;  %v8394_v18 = vld [vmem:[#allocation2 + $0x108] sm:$0xe] }
 0x2b2   : > { %v7959_v31 = vor.u32 %v7958_v1, %v7955_v24  ;;  %v12418_v56 = vrot.slane %v8392_v4, 9  ;;  %v8395_v32 = vld [vmem:[#allocation2 + $0x10c] sm:$0x1]  ;;  %v8542_v11 = vrot.slane %v8393_v46, 5  ;;  %v12419_v20 = vrot.slane %v8394_v18, 9  ;;  %v11049_v6 = vld [vmem:[#allocation3 + $0x18] sm:$0xff] }
 0x2b3   : > { %6557 = vrot.lane.b32.xlu0 %v12936_v13, %s13044_s15  ;;  %v7973_v40 = vor.u32 %v7972_v35, %v7969_v39  ;;  %v8546_v8 = vrot.slane %v8395_v32, 5  ;;  %12644 = vmatprep.mubr.msk.bf16.mxu1 %vm11333_vm2, %v11049_v6  ;;  %v12940_v58 = vld [vmem:[#allocation2 + $0x108] ss:$8 sps:$4 sm:$0xff]   ;;  %v10075_v19 = vld [vmem:[#allocation2 + $0x114] sm:$0x1] }
 0x2b4   : > { %v7960_v29 = vrot.slane %v7959_v31, 4  ;;  %v8543_v0 = vsel %vm13333_vm7, %v12418_v56, %v8542_v11  ;;  %v10074_v44 = vld [vmem:[#allocation2 + $0x110] sm:$0xf]  ;;  %v10076_v33 = vld [vmem:[#allocation2 + $0x118] sm:$0xf]  ;;  %v10268_v5 = vshll.u32 %v10075_v19, 16 }
 0x2b5   : > { %v14895_v54 = vpop.permute.xlu1 %10616  ;;  %7517 = vrot.lane.b32.xlu1 %v12365_v3, %s13038_s9  ;;  %v7974_v26 = vrot.slane %v7973_v40, 4  ;;  %v8547_v15 = vsel %vm13333_vm7, %v12419_v20, %v8546_v8  ;;  %v10077_v48 = vld [vmem:[#allocation2 + $0x11c] sm:$0x1]  ;;  %v10259_v16 = vshrl.u32 %v10074_v44, 16  ;;  %v10262_v61 = vshll.u32 %v10074_v44, 16 }
 0x2b6   : > { %v11048_v36 = vld [vmem:[#allocation3 + $0x10] sm:$0xff]  ;;  %v7965_v52 = vsel %vm13171_vm4, %v7960_v29, %v7964_v27  ;;  %v12445_v25 = vcombine.low %v8543_v0, %v8547_v15  ;;  %v10273_v62 = vshrl.u32 %v10076_v33, 16  ;;  %v10276_v23 = vshll.u32 %v10076_v33, 16  ;;  %v6617_v43 = vld [vmem:[#allocation2 + $0x78] sm:$0xf] }
 0x2b7   : > { %7694 = vrot.lane.b32.xlu0 %v12938_v60, %s13039_s10  ;;  %v7979_v34 = vsel %vm13171_vm4, %v7974_v26, %v7978_v41  ;;  %11576 = vmatmul.mubr.bf16.vlgmr.msra.gmra.mrb[0].mxu1 %v11048_v36  ;;  %v10282_v42 = vshll.u32 %v10077_v48, 16  ;;  %v6615_v13 = vld [vmem:[#allocation2 + $0x70] sm:$0xf]  ;;  %v10261_v47 = vrot.slane %v10259_v16, 4  ;;  %v10264_v45 = vrot.slane %v10262_v61, 5 }
 0x2b8   : > { %v12397_v10 = vcombine.low %v7965_v52, %v7979_v34  ;;  %v10270_v50 = vrot.slane %v10268_v5, 5  ;;  %v6616_v3 = vld [vmem:[#allocation2 + $0x74] sm:$0x1]  ;;  %v6704_v7 = vshrl.u32 %v6615_v13, 16  ;;  %v12942_v37 = vld [vmem:[#allocation2 + $0xc8] ss:$8 sps:$4 sm:$0xff]  }
 0x2b9   : > { %v14915_v28 = vpop.permute.xlu1 %10984  ;;  %v10275_v57 = vrot.slane %v10273_v62, 4  ;;  %v10278_v21 = vrot.slane %v10276_v23, 5  ;;  %v10284_v38 = vrot.slane %v10282_v42, 5  ;;  %v6707_v24 = vshll.u32 %v6615_v13, 16  ;;  %v6618_v27 = vld [vmem:[#allocation2 + $0x7c] sm:$0x1] }
 0x2ba   : > { %8318 = vrot.lane.b32.xlu1 %v12397_v10, %s13040_s11  ;;  %v10265_v1 = vor.u32 %v10264_v45, %v10261_v47  ;;  %v6706_v39 = vrot.slane %v6704_v7, 4  ;;  %v6713_v35 = vshll.u32 %v6616_v3, 16  ;;  %v6718_v60 = vshrl.u32 %v6617_v43, 16  ;;  %v10698_v36 = vld [vmem:[#allocation2 + $0x110] sm:$0xe] }
 0x2bb   : > { %8686 = vrot.lane.b32.xlu0 %v12445_v25, %s13041_s12  ;;  %v10279_v31 = vor.u32 %v10278_v21, %v10275_v57  ;;  %v6709_v40 = vrot.slane %v6707_v24, 5  ;;  %v6721_v41 = vshll.u32 %v6617_v43, 16  ;;  %v6727_v4 = vshll.u32 %v6618_v27, 16  ;;  %v10699_v56 = vld [vmem:[#allocation2 + $0x114] sm:$0x1] }
 0x2bc   : > { %v10266_v29 = vrot.slane %v10265_v1, 4  ;;  %v6715_v46 = vrot.slane %v6713_v35, 5  ;;  %v6720_v18 = vrot.slane %v6718_v60, 4  ;;  %v12578_v26 = vrot.slane %v10698_v36, 9  ;;  %v10700_v8 = vld [vmem:[#allocation2 + $0x118] sm:$0xe] }
 0x2bd   : > { %v10280_v11 = vrot.slane %v10279_v31, 4  ;;  %v6710_v20 = vor.u32 %v6709_v40, %v6706_v39  ;;  %v6723_v6 = vrot.slane %v6721_v41, 5  ;;  %v6729_v52 = vrot.slane %v6727_v4, 5  ;;  %v10701_v0 = vld [vmem:[#allocation2 + $0x11c] sm:$0x1]  ;;  %v11054_v31 = vld [vmem:[#allocation3 + $0x40] sm:$0xff] }
 0x2be   : > { %v14932_v17 = vpop.permute.xlu1 %9847  ;;  %8863 = vrot.lane.b32.xlu1 %v12940_v58, %s13042_s13  ;;  %v10271_v34 = vsel %vm13171_vm4, %v10266_v29, %v10270_v50  ;;  %v12579_v10 = vrot.slane %v10700_v8, 9  ;;  %v8937_v58 = vld [vmem:[#allocation2 + $0x108] sm:$0xf]  ;;  %v10852_v33 = vrot.slane %v10701_v0, 5  ;;  %v8938_v25 = vld [vmem:[#allocation2 + $0x10c] sm:$0x1] }
 0x2bf   : > { %v10285_v15 = vsel %vm13171_vm4, %v10280_v11, %v10284_v38  ;;  %v6711_v44 = vrot.slane %v6710_v20, 4  ;;  %v6724_v19 = vor.u32 %v6723_v6, %v6720_v18  ;;  %v8939_v48 = vld [vmem:[#allocation2 + $0x110] sm:$0xf]  ;;  %v8940_v5 = vld [vmem:[#allocation2 + $0x114] sm:$0x1]  ;;  %v9122_v62 = vshrl.u32 %v8937_v58, 16 }
 0x2c0   : > { %v14936_v12 = vpop.permute.xlu0 %9479  ;;  %v12557_v16 = vcombine.low %v10271_v34, %v10285_v15  ;;  %v9125_v23 = vshll.u32 %v8937_v58, 16  ;;  %v9561_v42 = vld [vmem:[#allocation2 + $0x108] sm:$0xe]  ;;  %v10853_v50 = vsel %vm13333_vm7, %v12579_v10, %v10852_v33  ;;  %v9131_v3 = vshll.u32 %v8938_v25, 16  ;;  %v9562_v7 = vld [vmem:[#allocation2 + $0x10c] sm:$0x1] }
 0x2c1   : > { %v6716_v47 = vsel %vm13171_vm4, %v6711_v44, %v6715_v46  ;;  %v6725_v45 = vrot.slane %v6724_v19, 4  ;;  %v9124_v57 = vrot.slane %v9122_v62, 4  ;;  %v9136_v38 = vshrl.u32 %v8939_v48, 16  ;;  %v9564_v43 = vld [vmem:[#allocation2 + $0x114] sm:$0x1] }
 0x2c2   : > { %v6552_v2 = vpop.permute.xlu1 %6551  ;;  %5390 = vrot.lane.b32.xlu1 %v12942_v37, %s13041_s12  ;;  %10624 = vrot.lane.b32.xlu0 %v12557_v16, %s13038_s9  ;;  %v9127_v21 = vrot.slane %v9125_v23, 5  ;;  %v14976_v27 = vrot.slane %v9131_v3, 5  ;;  %v9139_v39 = vshll.u32 %v8939_v48, 16  ;;  %v9145_v35 = vshll.u32 %v8940_v5, 16  ;;  %v5466_v60 = vld [vmem:[#allocation2 + $0xc8] sm:$0xf] }
 0x2c3   : > { %v6730_v1 = vsel %vm13171_vm4, %v6725_v45, %v6729_v52  ;;  %v9138_v36 = vrot.slane %v9136_v38, 4  ;;  %v12498_v29 = vrot.slane %v9561_v42, 9  ;;  %v5467_v46 = vld [vmem:[#allocation2 + $0xcc] sm:$0x1]  ;;  %v5468_v18 = vld [vmem:[#allocation2 + $0xd0] sm:$0xf] }
 0x2c4   : > { %v12313_v41 = vcombine.low %v6716_v47, %v6730_v1  ;;  %v9128_v4 = vor.u32 %v9127_v21, %v9124_v57  ;;  %v9147_v11 = vrot.slane %v9145_v35, 5  ;;  %v9711_v20 = vrot.slane %v9562_v7, 5  ;;  %v5469_v52 = vld [vmem:[#allocation2 + $0xd4] sm:$0x1]  ;;  %v12943_v19 = vld [vmem:[#allocation2 + $0xc0] ss:$8 sps:$4 sm:$0xff]  }
 0x2c5   : > { %v9715_v34 = vrot.slane %v9564_v43, 5  ;;  %v5675_v0 = vshrl.u32 %v5466_v60, 16  ;;  %v5684_v15 = vshll.u32 %v5467_v46, 16  ;;  %v5689_v44 = vshrl.u32 %v5468_v18, 16  ;;  %10039 = vst.msk [vmem:[#allocation3 + $0x38] sm:$0xff] %vm768_vm8, %v12943_v19 }
 0x2c6   : > { %v14950_v63 = vpop.permute.xlu1 %7688  ;;  %7188 = vst.msk [vmem:[#allocation3 + $0x30] sm:$0xff] %vm768_vm8, %v12313_v41  ;;  %v9129_v8 = vrot.slane %v9128_v4, 4  ;;  %v9712_v58 = vsel %vm13333_vm7, %v12498_v29, %v9711_v20  ;;  %v5692_v45 = vshll.u32 %v5468_v18, 16  ;;  %v6091_v3 = vld [vmem:[#allocation2 + $0xcc] sm:$0x1] }
 0x2c7   : > { %7556 = vst.msk [vmem:[#allocation3 + $0x30] sm:$0xff] %vm1396_vm9, %v14874_v14  ;;  %v5677_v48 = vrot.slane %v5675_v0, 4  ;;  %v14997_v62 = vrot.slane %v5684_v15, 5  ;;  %v5691_v23 = vrot.slane %v5689_v44, 4  ;;  %10663 = vst.msk [vmem:[#allocation3 + $0x38] sm:$0xff] %vm1396_vm9, %v14895_v54 }
 0x2c8   : > { %v6007_v9 = vpop.permute.xlu0 %6006  ;;  %7733 = vst.msk [vmem:[#allocation3 + $0x30] sm:$0xff] %vm1768_vm10, %v14867_v22  ;;  %v9134_v33 = vsel %vm13171_vm4, %v9129_v8, %v14976_v27  ;;  %v12944_v22 = vld [vmem:[#allocation2 + $0xd0] ss:$8 sps:$4 sm:$0xff]   ;;  %11031 = vst.msk [vmem:[#allocation3 + $0x38] sm:$0xff] %vm1768_vm10, %v14915_v28  ;;  %v5694_v54 = vrot.slane %v5692_v45, 5 }
 0x2c9   : > { %6052 = vst.msk [vmem:[#allocation3 + $0x48] sm:$0xff] %vm2940_vm13, %v6007_v9  ;;  %v10848_v9 = vrot.slane %v10699_v56, 5  ;;  %v7227_v35 = vld [vmem:[#allocation2 + $0xd0] sm:$0xe]  ;;  %v7230_v4 = vld [vmem:[#allocation2 + $0xdc] sm:$0x1] }
 0x2ca   : > { %8357 = vst.msk [vmem:[#allocation3 + $0x30] sm:$0xff] %vm1946_vm11, %v14893_v53  ;;  %v6090_v53 = vld [vmem:[#allocation2 + $0xc8] sm:$0xe]  ;;  %v8397_v20 = vld [vmem:[#allocation2 + $0x114] sm:$0x1] }
 0x2cb   : > { %v10849_v61 = vsel %vm13333_vm7, %v12578_v26, %v10848_v9  ;;  %v9141_v26 = vrot.slane %v9139_v39, 5  ;;  %v5678_v9 = vshll.u32 %v5466_v60, 16  ;;  %8725 = vst.msk [vmem:[#allocation3 + $0x30] sm:$0xff] %vm2571_vm12, %v14876_v55  ;;  %v12260_v57 = vrot.slane %v6090_v53, 9  ;;  %v12945_v39 = vld [vmem:[#allocation2 + $0x110] ss:$8 sps:$4 sm:$0xff]  }
 0x2cc   : > { %v6375_v59 = vpop.permute.xlu0 %6374  ;;  %v12605_v37 = vcombine.low %v10849_v61, %v10853_v50  ;;  %v5698_v50 = vshll.u32 %v5469_v52, 16  ;;  %8902 = vst.msk [vmem:[#allocation3 + $0x30] sm:$0xff] %vm2940_vm13, %v14922_v30  ;;  %v6244_v55 = vrot.slane %v6091_v3, 5  ;;  %v5695_v30 = vor.u32 %v5694_v54, %v5691_v23  ;;  %v7228_v60 = vld [vmem:[#allocation2 + $0xd4] sm:$0x1] }
 0x2cd   : > { %6420 = vst.msk [vmem:[#allocation3 + $0x48] sm:$0xff] %vm3118_vm14, %v6375_v59  ;;  %v9563_v59 = vld [vmem:[#allocation2 + $0x110] sm:$0xe]  ;;  %v9142_v10 = vor.u32 %v9141_v26, %v9138_v36  ;;  %v5680_v16 = vrot.slane %v5678_v9, 5  ;;  %9526 = vst.msk [vmem:[#allocation3 + $0x30] sm:$0xff] %vm3118_vm14, %v14936_v12  ;;  %v12340_v36 = vrot.slane %v7227_v35, 9 }
 0x2ce   : > { %6597 = vst.msk [vmem:[#allocation3 + $0x48] sm:$0xff] %vm3743_vm15, %v6552_v2  ;;  %v14958_v2 = vpop.permute.xlu1 %8680  ;;  %10992 = vrot.lane.b32.xlu1 %v12605_v37, %s13039_s10  ;;  %v12499_v6 = vrot.slane %v9563_v59, 9  ;;  %v6092_v59 = vld [vmem:[#allocation2 + $0xd0] sm:$0xe]  ;;  %v6093_v37 = vld [vmem:[#allocation2 + $0xd4] sm:$0x1]  ;;  %v15023_v28 = vsel %vm13333_vm7, %v12260_v57, %v6244_v55 }
 0x2cf   : > { %v9143_v61 = vrot.slane %v9142_v10, 4  ;;  %v5681_v47 = vor.u32 %v5680_v16, %v5677_v48  ;;  %v5700_v43 = vrot.slane %v5698_v50, 5  ;;  %v12261_v1 = vrot.slane %v6092_v59, 9  ;;  %9894 = vst.msk [vmem:[#allocation3 + $0x30] sm:$0xff] %vm3743_vm15, %v14932_v17  ;;  %v8398_v52 = vld [vmem:[#allocation2 + $0x118] sm:$0xe] }
 0x2d0   : > { %v14956_v32 = vpop.permute.xlu0 %7511  ;;  %v9716_v25 = vsel %vm13333_vm7, %v12499_v6, %v9715_v34  ;;  %v6248_v27 = vrot.slane %v6093_v37, 5  ;;  %v7381_v17 = vrot.slane %v7228_v60, 5  ;;  %v5696_v18 = vrot.slane %v5695_v30, 4  ;;  %v8399_v8 = vld [vmem:[#allocation2 + $0x11c] sm:$0x1] }
 0x2d1   : > { %v12525_v5 = vcombine.low %v9712_v58, %v9716_v25  ;;  %v9148_v7 = vsel %vm13171_vm4, %v9143_v61, %v9147_v11  ;;  %v5682_v38 = vrot.slane %v5681_v47, 4  ;;  %v7385_v26 = vrot.slane %v7230_v4, 5  ;;  %v8396_v11 = vld [vmem:[#allocation2 + $0x110] sm:$0xe]  ;;  %v7774_v61 = vld [vmem:[#allocation2 + $0x118] sm:$0xf] }
 0x2d2   : > { %v12477_v21 = vcombine.low %v9134_v33, %v9148_v7  ;;  %v15028_v12 = vsel %vm13333_vm7, %v12261_v1, %v6248_v27  ;;  %v12420_v34 = vrot.slane %v8396_v11, 9  ;;  %v8550_v0 = vrot.slane %v8397_v20, 5  ;;  %v7772_v19 = vld [vmem:[#allocation2 + $0x110] sm:$0xf]  ;;  %v7773_v33 = vld [vmem:[#allocation2 + $0x114] sm:$0x1] }
 0x2d3   : > { %9855 = vrot.lane.b32.xlu1 %v12525_v5, %s13044_s15  ;;  %v5687_v46 = vsel %vm13171_vm4, %v5682_v38, %v14997_v62  ;;  %v12286_v6 = vcombine.low %v15023_v28, %v15028_v12  ;;  %v5701_v10 = vsel %vm13171_vm4, %v5696_v18, %v5700_v43  ;;  %v15042_v58 = vsel %vm13333_vm7, %v12340_v36, %v7381_v17  ;;  %v7775_v5 = vld [vmem:[#allocation2 + $0x11c] sm:$0x1]  ;;  %v10078_v53 = vld [vmem:[#allocation2 + $0x120] sm:$0xf]  ;;  %v10079_v55 = vld [vmem:[#allocation2 + $0x124] sm:$0x1] }
 0x2d4   : > { %v14967_v13 = vpop.permute.xlu0 %8312  ;;  %9487 = vrot.lane.b32.xlu0 %v12477_v21, %s13043_s14  ;;  %v12421_v15 = vrot.slane %v8398_v52, 9  ;;  %v8554_v44 = vrot.slane %v8399_v8, 5  ;;  %v12238_v48 = vcombine.low %v5687_v46, %v5701_v10  ;;  %v7981_v62 = vshrl.u32 %v7772_v19, 16  ;;  %v11053_v23 = vld [vmem:[#allocation3 + $0x38] sm:$0xff]  ;;  %v10080_v1 = vld [vmem:[#allocation2 + $0x128] sm:$0xf] }
 0x2d5   : > { %v11055_v24 = vld [vmem:[#allocation3 + $0x48] sm:$0xff]  ;;  %v7984_v47 = vshll.u32 %v7772_v19, 16  ;;  %v7990_v45 = vshll.u32 %v7773_v33, 16  ;;  %v7995_v50 = vshrl.u32 %v7774_v61, 16  ;;  %12645 = vmatprep.mubr.msk.bf16.mxu1 %vm11333_vm2, %v11053_v23  ;;  %v7998_v37 = vshll.u32 %v7774_v61, 16 }
 0x2d6   : > { %11430 = vmatprep.mubr.bf16.mxu0 %v11055_v24  ;;  %v11052_v3 = vld [vmem:[#allocation3 + $0x30] sm:$0xff]  ;;  %v7983_v59 = vrot.slane %v7981_v62, 4  ;;  %v8004_v57 = vshll.u32 %v7775_v5, 16  ;;  %v10287_v27 = vshrl.u32 %v10078_v53, 16  ;;  %v10081_v35 = vld [vmem:[#allocation2 + $0x12c] sm:$0x1] }
 0x2d7   : > { %v14978_v40 = vpop.permute.xlu1 %10618  ;;  %11431 = vmatmul.mubr.bf16.gmra.mrb[8].mxu0 %v11054_v31  ;;  %v7229_v31 = vld [vmem:[#allocation2 + $0xd8] sm:$0xe]  ;;  %6559 = vrot.lane.b32.xlu1 %v12944_v22, %s13044_s15  ;;  %v8555_v22 = vsel %vm13333_vm7, %v12421_v15, %v8554_v44  ;;  %v7986_v54 = vrot.slane %v7984_v47, 5  ;;  %v7997_v43 = vrot.slane %v7995_v50, 4  ;;  %v7992_v30 = vrot.slane %v7990_v45, 5 }
 0x2d8   : > { %v14981_v56 = vpop.permute.xlu0 %8857  ;;  %v12341_v29 = vrot.slane %v7229_v31, 9  ;;  %6014 = vrot.lane.b32.xlu0 %v12238_v48, %s13042_s13  ;;  %11584 = vmatmul.mubr.bf16.gmra.mrb[4].mxu1 %v11052_v3  ;;  %v8000_v28 = vrot.slane %v7998_v37, 5  ;;  %v10290_v60 = vshll.u32 %v10078_v53, 16  ;;  %v10296_v31 = vshll.u32 %v10079_v55, 16  ;;  %v6619_v10 = vld [vmem:[#allocation2 + $0x80] sm:$0xf] }
 0x2d9   : > { %v10289_v12 = vrot.slane %v10287_v27, 4  ;;  %v10301_v4 = vshrl.u32 %v10080_v1, 16  ;;  %v10304_v36 = vshll.u32 %v10080_v1, 16  ;;  %v10310_v18 = vshll.u32 %v10081_v35, 16  ;;  %v6622_v33 = vld [vmem:[#allocation2 + $0x8c] sm:$0x1] }
 0x2da   : > { %v7386_v16 = vsel %vm13333_vm7, %v12341_v29, %v7385_v26  ;;  %v8001_v17 = vor.u32 %v8000_v28, %v7997_v43  ;;  %v8006_v29 = vrot.slane %v8004_v57, 5  ;;  %v10292_v46 = vrot.slane %v10290_v60, 5  ;;  %v8941_v23 = vld [vmem:[#allocation2 + $0x118] sm:$0xf]  ;;  %v8942_v3 = vld [vmem:[#allocation2 + $0x11c] sm:$0x1] }
 0x2db   : > { %7696 = vrot.lane.b32.xlu1 %v12945_v39, %s13039_s10  ;;  %v12366_v38 = vcombine.low %v15042_v58, %v7386_v16  ;;  %v10298_v11 = vrot.slane %v10296_v31, 5  ;;  %v10303_v20 = vrot.slane %v10301_v4, 4  ;;  %v10306_v52 = vrot.slane %v10304_v36, 5  ;;  %v6620_v58 = vld [vmem:[#allocation2 + $0x84] sm:$0x1] }
 0x2dc   : > { %v5385_v14 = vpop.permute.xlu0 %5384  ;;  %v15000_v42 = vpop.permute.xlu1 %9481  ;;  %6382 = vrot.lane.b32.xlu0 %v12286_v6, %s13043_s14  ;;  %v8002_v8 = vrot.slane %v8001_v17, 4  ;;  %v6621_v6 = vld [vmem:[#allocation2 + $0x88] sm:$0xf]  ;;  %v6735_v48 = vshll.u32 %v6619_v10, 16  ;;  %v6741_v5 = vshll.u32 %v6620_v58, 16  ;;  %v6755_v1 = vshll.u32 %v6622_v33, 16 }
 0x2dd   : > { %5429 = vst.msk [vmem:[#allocation3 + $0x68] sm:$0xff] %vm2571_vm12, %v5385_v14  ;;  %v8551_v14 = vsel %vm13333_vm7, %v12420_v34, %v8550_v0  ;;  %v10293_v34 = vor.u32 %v10292_v46, %v10289_v12  ;;  %v10312_v0 = vrot.slane %v10310_v18, 5  ;;  %v10307_v19 = vor.u32 %v10306_v52, %v10303_v20  ;;  %v12946_v37 = vld [vmem:[#allocation2 + $0x118] ss:$8 sps:$4 sm:$0xff]   ;;  %v8944_v27 = vld [vmem:[#allocation2 + $0x124] sm:$0x1] }
 0x2de   : > { %v12446_v7 = vcombine.low %v8551_v14, %v8555_v22  ;;  %v8007_v14 = vsel %vm13171_vm4, %v8002_v8, %v8006_v29  ;;  %v6746_v62 = vshrl.u32 %v6621_v6, 16  ;;  %v6737_v53 = vrot.slane %v6735_v48, 5  ;;  %v12947_v20 = vld [vmem:[#allocation2 + $0xd8] ss:$8 sps:$4 sm:$0xff]  }
 0x2df   : > { %v10294_v61 = vrot.slane %v10293_v34, 4  ;;  %v10308_v45 = vrot.slane %v10307_v19, 4  ;;  %v6743_v57 = vrot.slane %v6741_v5, 5  ;;  %v9153_v31 = vshll.u32 %v8941_v23, 16  ;;  %v5470_v52 = vld [vmem:[#allocation2 + $0xd8] sm:$0xf] }
 0x2e0   : > { %v15016_v24 = vpop.permute.xlu0 %10986  ;;  %8688 = vrot.lane.b32.xlu1 %v12446_v7, %s13041_s12  ;;  %7519 = vrot.lane.b32.xlu0 %v12366_v38, %s13038_s9  ;;  %v11058_v7 = vld [vmem:[#allocation3 + $0x60] sm:$0xff]  ;;  %v6748_v55 = vrot.slane %v6746_v62, 4  ;;  %v6757_v36 = vrot.slane %v6755_v1, 5  ;;  %v5703_v48 = vshrl.u32 %v5470_v52, 16 }
 0x2e1   : > { %v6009_v41 = vpop.permute.xlu1 %6008  ;;  %v8943_v38 = vld [vmem:[#allocation2 + $0x120] sm:$0xf]  ;;  %v9155_v18 = vrot.slane %v9153_v31, 5 }
 0x2e2   : > { %6053 = vst.msk [vmem:[#allocation3 + $0x68] sm:$0xff] %vm2940_vm13, %v6009_v41  ;;  %v7987_v41 = vor.u32 %v7986_v54, %v7983_v59  ;;  %v10299_v59 = vsel %vm13171_vm4, %v10294_v61, %v10298_v11  ;;  %v10313_v54 = vsel %vm13171_vm4, %v10308_v45, %v10312_v0  ;;  %v9164_v29 = vshrl.u32 %v8943_v38, 16  ;;  %v5472_v58 = vld [vmem:[#allocation2 + $0xe0] sm:$0xf] }
 0x2e3   : > { %v12558_v35 = vcombine.low %v10299_v59, %v10313_v54  ;;  %v9167_v11 = vshll.u32 %v8943_v38, 16  ;;  %v9173_v0 = vshll.u32 %v8944_v27, 16  ;;  %v5706_v61 = vshll.u32 %v5470_v52, 16 }
 0x2e4   : > { %v15036_v9 = vpop.permute.xlu0 %9849  ;;  %v7988_v26 = vrot.slane %v7987_v41, 4  ;;  %v9159_v41 = vshll.u32 %v8942_v3, 16  ;;  %v9166_v34 = vrot.slane %v9164_v29, 4  ;;  %v5717_v62 = vshrl.u32 %v5472_v58, 16  ;;  %v10704_v3 = vld [vmem:[#allocation2 + $0x128] sm:$0xe] }
 0x2e5   : > { %v6377_v25 = vpop.permute.xlu1 %6376  ;;  %10626 = vrot.lane.b32.xlu1 %v12558_v35, %s13038_s9  ;;  %v9169_v33 = vrot.slane %v9167_v11, 5  ;;  %v5720_v54 = vshll.u32 %v5472_v58, 16  ;;  %v12581_v35 = vrot.slane %v10704_v3, 9  ;;  %v6094_v11 = vld [vmem:[#allocation2 + $0xd8] sm:$0xe] }
 0x2e6   : > { %6421 = vst.msk [vmem:[#allocation3 + $0x68] sm:$0xff] %vm3118_vm14, %v6377_v25  ;;  %v7993_v44 = vsel %vm13171_vm4, %v7988_v26, %v7992_v30  ;;  %v6732_v25 = vshrl.u32 %v6619_v10, 16  ;;  %v9150_v30 = vshrl.u32 %v8941_v23, 16  ;;  %v9161_v26 = vrot.slane %v9159_v41, 5  ;;  %v5471_v10 = vld [vmem:[#allocation2 + $0xdc] sm:$0x1] }
 0x2e7   : > { %v12398_v47 = vcombine.low %v7993_v44, %v8007_v14  ;;  %v9175_v14 = vrot.slane %v9173_v0, 5  ;;  %v5712_v5 = vshll.u32 %v5471_v10, 16  ;;  %v10702_v23 = vld [vmem:[#allocation2 + $0x120] sm:$0xe]  ;;  %v9170_v45 = vor.u32 %v9169_v33, %v9166_v34  ;;  %v6097_v34 = vld [vmem:[#allocation2 + $0xe4] sm:$0x1] }
 0x2e8   : > { %v6554_v21 = vpop.permute.xlu0 %6553  ;;  %v6734_v50 = vrot.slane %v6732_v25, 4  ;;  %v9152_v17 = vrot.slane %v9150_v30, 4  ;;  %v5473_v25 = vld [vmem:[#allocation2 + $0xe4] sm:$0x1]  ;;  %v12580_v27 = vrot.slane %v10702_v23, 9 }
 0x2e9   : > { %v15055_v39 = vpop.permute.xlu1 %7513  ;;  %6598 = vst.msk [vmem:[#allocation3 + $0x68] sm:$0xff] %vm3743_vm15, %v6554_v21  ;;  %v6749_v21 = vshll.u32 %v6621_v6, 16  ;;  %8320 = vrot.lane.b32.xlu0 %v12398_v47, %s13040_s11  ;;  %v9171_v38 = vrot.slane %v9170_v45, 4  ;;  %v5714_v41 = vrot.slane %v5712_v5, 5  ;;  %v7233_v45 = vld [vmem:[#allocation2 + $0xe8] sm:$0xe] }
 0x2ea   : > { %v6738_v43 = vor.u32 %v6737_v53, %v6734_v50  ;;  %v9156_v6 = vor.u32 %v9155_v18, %v9152_v17  ;;  %v5705_v50 = vrot.slane %v5703_v48, 4  ;;  %v10703_v53 = vld [vmem:[#allocation2 + $0x124] sm:$0x1]  ;;  %v12948_v17 = vld [vmem:[#allocation2 + $0xd0] ss:$8 sps:$4 sm:$0xff]  }
 0x2eb   : > { %v6751_v60 = vrot.slane %v6749_v21, 5  ;;  %v10856_v30 = vrot.slane %v10703_v53, 5  ;;  %v9176_v31 = vsel %vm13171_vm4, %v9171_v38, %v9175_v14  ;;  %10040 = vst.msk [vmem:[#allocation3 + $0x58] sm:$0xff] %vm768_vm8, %v12948_v17  ;;  %v9567_v48 = vld [vmem:[#allocation2 + $0x120] sm:$0xe] }
 0x2ec   : > { %v15060_v15 = vpop.permute.xlu0 %7690  ;;  %v6739_v4 = vrot.slane %v6738_v43, 4  ;;  %v9157_v47 = vrot.slane %v9156_v6, 4  ;;  %v5726_v43 = vshll.u32 %v5473_v25, 16  ;;  %10664 = vst.msk [vmem:[#allocation3 + $0x58] sm:$0xff] %vm1396_vm9, %v14978_v40  ;;  %v9566_v6 = vld [vmem:[#allocation2 + $0x11c] sm:$0x1] }
 0x2ed   : > { %v15064_v16 = vpop.permute.xlu1 %8314  ;;  %v6752_v46 = vor.u32 %v6751_v60, %v6748_v55  ;;  %8865 = vrot.lane.b32.xlu0 %v12946_v37, %s13042_s13  ;;  %v5708_v37 = vrot.slane %v5706_v61, 5  ;;  %v10705_v55 = vld [vmem:[#allocation2 + $0x12c] sm:$0x1]  ;;  %v9568_v14 = vld [vmem:[#allocation2 + $0x124] sm:$0x1]  ;;  %11032 = vst.msk [vmem:[#allocation3 + $0x58] sm:$0xff] %vm1768_vm10, %v15016_v24 }
 0x2ee   : > { %v6744_v8 = vsel %vm13171_vm4, %v6739_v4, %v6743_v57  ;;  %v5719_v57 = vrot.slane %v5717_v62, 4  ;;  %v9162_v21 = vsel %vm13171_vm4, %v9157_v47, %v9161_v26  ;;  %v5722_v4 = vrot.slane %v5720_v54, 5  ;;  %v7231_v62 = vld [vmem:[#allocation2 + $0xe0] sm:$0xe]  ;;  %v7232_v47 = vld [vmem:[#allocation2 + $0xe4] sm:$0x1] }
 0x2ef   : > { %v6753_v19 = vrot.slane %v6752_v46, 4  ;;  %v5709_v1 = vor.u32 %v5708_v37, %v5705_v50  ;;  %v12478_v29 = vcombine.low %v9162_v21, %v9176_v31  ;;  %v5728_v18 = vrot.slane %v5726_v43, 5  ;;  %v7234_v50 = vld [vmem:[#allocation2 + $0xec] sm:$0x1]  ;;  %v12949_v38 = vld [vmem:[#allocation2 + $0xe0] ss:$8 sps:$4 sm:$0xff]  }
 0x2f0   : > { %v11059_v22 = vld [vmem:[#allocation3 + $0x68] sm:$0xff]  ;;  %v15076_v12 = vpop.permute.xlu0 %8682  ;;  %v10857_v26 = vsel %vm13333_vm7, %v12580_v27, %v10856_v30  ;;  %v12501_v40 = vrot.slane %v9567_v48, 9  ;;  %v9723_v5 = vrot.slane %v9568_v14, 5  ;;  %v7393_v21 = vrot.slane %v7234_v50, 5  ;;  %v7777_v27 = vld [vmem:[#allocation2 + $0x124] sm:$0x1] }
 0x2f1   : > { %11438 = vmatprep.mubr.bf16.mxu0 %v11059_v22  ;;  %v15073_v28 = vpop.permute.xlu1 %8859  ;;  %v6758_v22 = vsel %vm13171_vm4, %v6753_v19, %v6757_v36  ;;  %5392 = vrot.lane.b32.xlu0 %v12947_v20, %s13041_s12  ;;  %v10860_v36 = vrot.slane %v10705_v55, 5  ;;  %v5710_v46 = vrot.slane %v5709_v1, 4  ;;  %v6095_v20 = vld [vmem:[#allocation2 + $0xdc] sm:$0x1]  ;;  %v9565_v19 = vld [vmem:[#allocation2 + $0x118] sm:$0xe] }
 0x2f2   : > { %11439 = vmatmul.mubr.bf16.gmra.mrb[12].mxu0 %v11058_v7  ;;  %v12314_v59 = vcombine.low %v6744_v8, %v6758_v22  ;;  %v6096_v8 = vld [vmem:[#allocation2 + $0xe0] sm:$0xe]  ;;  %v6252_v0 = vrot.slane %v6095_v20, 5  ;;  %9489 = vrot.lane.b32.xlu1 %v12478_v29, %s13043_s14  ;;  %v12500_v61 = vrot.slane %v9565_v19, 9  ;;  %v9724_v3 = vsel %vm13333_vm7, %v12501_v40, %v9723_v5  ;;  %v7779_v31 = vld [vmem:[#allocation2 + $0x12c] sm:$0x1] }
 0x2f3   : > { %v10861_v52 = vsel %vm13333_vm7, %v12581_v35, %v10860_v36  ;;  %v5715_v33 = vsel %vm13171_vm4, %v5710_v46, %v5714_v41  ;;  %v12343_v55 = vrot.slane %v7233_v45, 9  ;;  %v7776_v1 = vld [vmem:[#allocation2 + $0x120] sm:$0xf]  ;;  %v8018_v36 = vshll.u32 %v7777_v27, 16  ;;  %v8403_v14 = vld [vmem:[#allocation2 + $0x12c] sm:$0x1] }
 0x2f4   : > { %7189 = vst.msk [vmem:[#allocation3 + $0x50] sm:$0xff] %vm768_vm8, %v12314_v59  ;;  %v12606_v58 = vcombine.low %v10857_v26, %v10861_v52  ;;  %v12342_v59 = vrot.slane %v7231_v62, 9  ;;  %v8009_v41 = vshrl.u32 %v7776_v1, 16  ;;  %v11057_v46 = vld [vmem:[#allocation3 + $0x58] sm:$0xff]  ;;  %v8032_v20 = vshll.u32 %v7779_v31, 16 }
 0x2f5   : > { %v5387_v44 = vpop.permute.xlu1 %5386  ;;  %v15085_v7 = vpop.permute.xlu0 %10620  ;;  %7557 = vst.msk [vmem:[#allocation3 + $0x50] sm:$0xff] %vm1396_vm9, %v14956_v32  ;;  %v5723_v32 = vor.u32 %v5722_v4, %v5719_v57  ;;  %v7389_v57 = vrot.slane %v7232_v47, 5  ;;  %v7394_v35 = vsel %vm13333_vm7, %v12343_v55, %v7393_v21  ;;  %v8012_v4 = vshll.u32 %v7776_v1, 16  ;;  %12646 = vmatprep.mubr.msk.bf16.mxu1 %vm11333_vm2, %v11057_v46  ;;  %v6625_v50 = vld [vmem:[#allocation2 + $0x98] sm:$0xf] }
 0x2f6   : > { %5430 = vst.msk [vmem:[#allocation3 + $0x88] sm:$0xff] %vm2571_vm12, %v5387_v44  ;;  %v6256_v44 = vrot.slane %v6097_v34, 5  ;;  %10994 = vrot.lane.b32.xlu0 %v12606_v58, %s13039_s10  ;;  %v8011_v26 = vrot.slane %v8009_v41, 4  ;;  %v8020_v58 = vrot.slane %v8018_v36, 5  ;;  %v6774_v55 = vshrl.u32 %v6625_v50, 16 }
 0x2f7   : > { %7734 = vst.msk [vmem:[#allocation3 + $0x50] sm:$0xff] %vm1768_vm10, %v14950_v63  ;;  %v12262_v63 = vrot.slane %v6094_v11, 9  ;;  %v5724_v25 = vrot.slane %v5723_v32, 4  ;;  %v7390_v30 = vsel %vm13333_vm7, %v12342_v59, %v7389_v57  ;;  %v8014_v11 = vrot.slane %v8012_v4, 5  ;;  %v10082_v27 = vld [vmem:[#allocation2 + $0x130] sm:$0xf] }
 0x2f8   : > { %8358 = vst.msk [vmem:[#allocation3 + $0x50] sm:$0xff] %vm1946_vm11, %v14967_v13  ;;  %v12263_v13 = vrot.slane %v6096_v8, 9  ;;  %v12367_v52 = vcombine.low %v7390_v30, %v7394_v35  ;;  %v6776_v31 = vrot.slane %v6774_v55, 4  ;;  %v6777_v41 = vshll.u32 %v6625_v50, 16  ;;  %v10083_v36 = vld [vmem:[#allocation2 + $0x134] sm:$0x1] }
 0x2f9   : > { %v15091_v60 = vpop.permute.xlu1 %10988  ;;  %8726 = vst.msk [vmem:[#allocation3 + $0x50] sm:$0xff] %vm2571_vm12, %v14958_v2  ;;  %v9719_v2 = vrot.slane %v9566_v6, 5  ;;  %v6253_v22 = vsel %vm13333_vm7, %v12262_v63, %v6252_v0  ;;  %v8015_v0 = vor.u32 %v8014_v11, %v8011_v26  ;;  %v8400_v6 = vld [vmem:[#allocation2 + $0x120] sm:$0xe]  ;;  %v10085_v46 = vld [vmem:[#allocation2 + $0x13c] sm:$0x1] }
 0x2fa   : > { %8903 = vst.msk [vmem:[#allocation3 + $0x50] sm:$0xff] %vm2940_vm13, %v14981_v56  ;;  %v5729_v56 = vsel %vm13171_vm4, %v5724_v25, %v5728_v18  ;;  %v6257_v24 = vsel %vm13333_vm7, %v12263_v13, %v6256_v44  ;;  %v8034_v13 = vrot.slane %v8032_v20, 5  ;;  %v12950_v44 = vld [vmem:[#allocation2 + $0x120] ss:$8 sps:$4 sm:$0xff]   ;;  %v10318_v26 = vshll.u32 %v10082_v27, 16 }
 0x2fb   : > { %9527 = vst.msk [vmem:[#allocation3 + $0x50] sm:$0xff] %vm3118_vm14, %v15000_v42  ;;  %v12239_v53 = vcombine.low %v5715_v33, %v5729_v56  ;;  %v9720_v42 = vsel %vm13333_vm7, %v12500_v61, %v9719_v2  ;;  %v12287_v43 = vcombine.low %v6253_v22, %v6257_v24  ;;  %v8401_v33 = vld [vmem:[#allocation2 + $0x124] sm:$0x1]  ;;  %v8402_v25 = vld [vmem:[#allocation2 + $0x128] sm:$0xe]  ;;  %v8016_v48 = vrot.slane %v8015_v0, 4 }
 0x2fc   : > { %v15106_v10 = vpop.permute.xlu0 %9483  ;;  %9895 = vst.msk [vmem:[#allocation3 + $0x50] sm:$0xff] %vm3743_vm15, %v15036_v9  ;;  %v12526_v37 = vcombine.low %v9720_v42, %v9724_v3  ;;  %v7778_v9 = vld [vmem:[#allocation2 + $0x128] sm:$0xf]  ;;  %v12422_v61 = vrot.slane %v8400_v6, 9  ;;  %v8558_v2 = vrot.slane %v8401_v33, 5  ;;  %v12423_v40 = vrot.slane %v8402_v25, 9 }
 0x2fd   : > { %v15122_v23 = vpop.permute.xlu1 %9851  ;;  %6016 = vrot.lane.b32.xlu1 %v12239_v53, %s13042_s13  ;;  %v8023_v17 = vshrl.u32 %v7778_v9, 16  ;;  %v8026_v29 = vshll.u32 %v7778_v9, 16  ;;  %v8562_v56 = vrot.slane %v8403_v14, 5  ;;  %v6623_v22 = vld [vmem:[#allocation2 + $0x90] sm:$0xf]  ;;  %v8021_v47 = vsel %vm13171_vm4, %v8016_v48, %v8020_v58 }
 0x2fe   : > { %9857 = vrot.lane.b32.xlu0 %v12526_v37, %s13044_s15  ;;  %v6624_v24 = vld [vmem:[#allocation2 + $0x94] sm:$0x1]  ;;  %v8559_v45 = vsel %vm13333_vm7, %v12422_v61, %v8558_v2  ;;  %v6626_v53 = vld [vmem:[#allocation2 + $0x9c] sm:$0x1]  ;;  %v6760_v42 = vshrl.u32 %v6623_v22, 16  ;;  %v6763_v3 = vshll.u32 %v6623_v22, 16 }
 0x2ff   : > { %v8025_v8 = vrot.slane %v8023_v17, 4  ;;  %v8028_v34 = vrot.slane %v8026_v29, 5  ;;  %v8563_v37 = vsel %vm13333_vm7, %v12423_v40, %v8562_v56  ;;  %v6769_v57 = vshll.u32 %v6624_v24, 16  ;;  %v10084_v29 = vld [vmem:[#allocation2 + $0x138] sm:$0xf] }
 0x300   : > { %v6765_v1 = vrot.slane %v6763_v3, 5  ;;  %v6783_v4 = vshll.u32 %v6626_v53, 16  ;;  %v6779_v11 = vrot.slane %v6777_v41, 5  ;;  %v10320_v58 = vrot.slane %v10318_v26, 5  ;;  %v10708_v61 = vld [vmem:[#allocation2 + $0x138] sm:$0xe] }
 0x301   : > { %v6556_v18 = vpop.permute.xlu1 %6555  ;;  %6384 = vrot.lane.b32.xlu1 %v12287_v43, %s13043_s14  ;;  %v8029_v19 = vor.u32 %v8028_v34, %v8025_v8  ;;  %v6762_v43 = vrot.slane %v6760_v42, 4  ;;  %v6771_v35 = vrot.slane %v6769_v57, 5  ;;  %v10706_v8 = vld [vmem:[#allocation2 + $0x130] sm:$0xe]  ;;  %v10338_v14 = vshll.u32 %v10085_v46, 16 }
 0x302   : > { %6561 = vrot.lane.b32.xlu0 %v12949_v38, %s13044_s15  ;;  %v12951_v38 = vld [vmem:[#allocation2 + $0x128] ss:$8 sps:$4 sm:$0xff]   ;;  %v6785_v20 = vrot.slane %v6783_v4, 5  ;;  %v6780_v33 = vor.u32 %v6779_v11, %v6776_v31  ;;  %v10709_v22 = vld [vmem:[#allocation2 + $0x13c] sm:$0x1]  ;;  %v12582_v24 = vrot.slane %v10706_v8, 9 }
 0x303   : > { %v6011_v54 = vpop.permute.xlu0 %6010  ;;  %v11056_v63 = vld [vmem:[#allocation3 + $0x50] sm:$0xff]  ;;  %v8030_v62 = vrot.slane %v8029_v19, 4  ;;  %v6766_v17 = vor.u32 %v6765_v1, %v6762_v43  ;;  %v11062_v19 = vld [vmem:[#allocation3 + $0x80] sm:$0xff]  ;;  %v10340_v53 = vrot.slane %v10338_v14, 5  ;;  %v12583_v3 = vrot.slane %v10708_v61, 9 }
 0x304   : > { %6054 = vst.msk [vmem:[#allocation3 + $0x88] sm:$0xff] %vm2940_vm13, %v6011_v54  ;;  %11592 = vmatmul.mubr.bf16.gmra.mrb[8].mxu1 %v11056_v63  ;;  %v12447_v54 = vcombine.low %v8559_v45, %v8563_v37  ;;  %v12952_v63 = vld [vmem:[#allocation2 + $0xf8] ss:$8 sps:$4 sm:$0xff]   ;;  %v6781_v50 = vrot.slane %v6780_v33, 4  ;;  %v10868_v57 = vrot.slane %v10709_v22, 5 }
 0x305   : > { %7521 = vrot.lane.b32.xlu1 %v12367_v52, %s13038_s9  ;;  %v8035_v59 = vsel %vm13171_vm4, %v8030_v62, %v8034_v13  ;;  %v15160_v9 = vpop.permute.xlu1 %7692  ;;  %v10329_v52 = vshrl.u32 %v10084_v29, 16  ;;  %v6767_v34 = vrot.slane %v6766_v17, 4  ;;  %v10332_v13 = vshll.u32 %v10084_v29, 16  ;;  %v8946_v55 = vld [vmem:[#allocation2 + $0x12c] sm:$0x1] }
 0x306   : > { %7698 = vrot.lane.b32.xlu0 %v12950_v44, %s13039_s10  ;;  %v12399_v21 = vcombine.low %v8021_v47, %v8035_v59  ;;  %v10707_v44 = vld [vmem:[#allocation2 + $0x134] sm:$0x1]  ;;  %v8945_v47 = vld [vmem:[#allocation2 + $0x128] sm:$0xf]  ;;  %v10869_v17 = vsel %vm13333_vm7, %v12583_v3, %v10868_v57  ;;  %v9570_v29 = vld [vmem:[#allocation2 + $0x12c] sm:$0x1] }
 0x307   : > { %v6379_v32 = vpop.permute.xlu0 %6378  ;;  %v10331_v48 = vrot.slane %v10329_v52, 4  ;;  %v6772_v40 = vsel %vm13171_vm4, %v6767_v34, %v6771_v35  ;;  %v10334_v56 = vrot.slane %v10332_v13, 5  ;;  %v10864_v42 = vrot.slane %v10707_v44, 5  ;;  %v8948_v1 = vld [vmem:[#allocation2 + $0x134] sm:$0x1] }
 0x308   : > { %6422 = vst.msk [vmem:[#allocation3 + $0x88] sm:$0xff] %vm3118_vm14, %v6379_v32  ;;  %v10324_v32 = vshll.u32 %v10083_v36, 16  ;;  %v9181_v35 = vshll.u32 %v8945_v47, 16  ;;  %v9569_v31 = vld [vmem:[#allocation2 + $0x128] sm:$0xe] }
 0x309   : > { %6599 = vst.msk [vmem:[#allocation3 + $0x88] sm:$0xff] %vm3743_vm15, %v6556_v18  ;;  %8322 = vrot.lane.b32.xlu1 %v12399_v21, %s13040_s11  ;;  %v10315_v18 = vshrl.u32 %v10082_v27, 16  ;;  %v15171_v45 = vpop.permute.xlu1 %8684  ;;  %v10335_v37 = vor.u32 %v10334_v56, %v10331_v48  ;;  %v8947_v21 = vld [vmem:[#allocation2 + $0x130] sm:$0xf]  ;;  %v10865_v43 = vsel %vm13333_vm7, %v12582_v24, %v10864_v42  ;;  %v9178_v27 = vshrl.u32 %v8945_v47, 16 }
 0x30a   : > { %8690 = vrot.lane.b32.xlu0 %v12447_v54, %s13041_s12  ;;  %v10326_v25 = vrot.slane %v10324_v32, 5  ;;  %v6786_v54 = vsel %vm13171_vm4, %v6781_v50, %v6785_v20  ;;  %v9571_v46 = vld [vmem:[#allocation2 + $0x130] sm:$0xe]  ;;  %v9183_v11 = vrot.slane %v9181_v35, 5  ;;  %v9187_v20 = vshll.u32 %v8946_v55, 16 }
 0x30b   : > { %v15148_v5 = vpop.permute.xlu0 %7515  ;;  %v10317_v0 = vrot.slane %v10315_v18, 4  ;;  %v12315_v41 = vcombine.low %v6772_v40, %v6786_v54  ;;  %v10336_v36 = vrot.slane %v10335_v37, 4  ;;  %v12607_v18 = vcombine.low %v10865_v43, %v10869_v17  ;;  %v9572_v32 = vld [vmem:[#allocation2 + $0x134] sm:$0x1]  ;;  %v5476_v48 = vld [vmem:[#allocation2 + $0x100] sm:$0xf] }
 0x30c   : > { %v9180_v26 = vrot.slane %v9178_v27, 4  ;;  %v9192_v8 = vshrl.u32 %v8947_v21, 16  ;;  %v9195_v34 = vshll.u32 %v8947_v21, 16  ;;  %v12502_v33 = vrot.slane %v9569_v31, 9  ;;  %v12953_v42 = vld [vmem:[#allocation2 + $0xe0] ss:$8 sps:$4 sm:$0xff]  }
 0x30d   : > { %8867 = vrot.lane.b32.xlu1 %v12951_v38, %s13042_s13  ;;  %v10321_v62 = vor.u32 %v10320_v58, %v10317_v0  ;;  %7190 = vst.msk [vmem:[#allocation3 + $0x70] sm:$0xff] %vm768_vm8, %v12315_v41  ;;  %v10341_v52 = vsel %vm13171_vm4, %v10336_v36, %v10340_v53  ;;  %v5474_v0 = vld [vmem:[#allocation2 + $0xf8] sm:$0xf]  ;;  %v9727_v40 = vrot.slane %v9570_v29, 5  ;;  %v12503_v56 = vrot.slane %v9571_v46, 9  ;;  %10041 = vst.msk [vmem:[#allocation3 + $0x78] sm:$0xff] %vm768_vm8, %v12953_v42 }
 0x30e   : > { %7558 = vst.msk [vmem:[#allocation3 + $0x70] sm:$0xff] %vm1396_vm9, %v15055_v39  ;;  %v9184_v44 = vor.u32 %v9183_v11, %v9180_v26  ;;  %v9194_v14 = vrot.slane %v9192_v8, 4  ;;  %v9197_v61 = vrot.slane %v9195_v34, 5  ;;  %v9731_v22 = vrot.slane %v9572_v32, 5  ;;  %v12954_v21 = vld [vmem:[#allocation2 + $0x100] ss:$8 sps:$4 sm:$0xff]  }
 0x30f   : > { %v15162_v30 = vpop.permute.xlu0 %8316  ;;  %v10322_v59 = vrot.slane %v10321_v62, 4  ;;  %7735 = vst.msk [vmem:[#allocation3 + $0x70] sm:$0xff] %vm1768_vm10, %v15060_v15  ;;  %v5477_v62 = vld [vmem:[#allocation2 + $0x104] sm:$0x1]  ;;  %v5731_v24 = vshrl.u32 %v5474_v0, 16  ;;  %v9728_v15 = vsel %vm13333_vm7, %v12502_v33, %v9727_v40  ;;  %v5734_v50 = vshll.u32 %v5474_v0, 16 }
 0x310   : > { %v11063_v2 = vld [vmem:[#allocation3 + $0x88] sm:$0xff]  ;;  %v15186_v58 = vpop.permute.xlu1 %10622  ;;  %8359 = vst.msk [vmem:[#allocation3 + $0x70] sm:$0xff] %vm1946_vm11, %v15064_v16  ;;  %v9185_v39 = vrot.slane %v9184_v44, 4  ;;  %v9198_v47 = vor.u32 %v9197_v61, %v9194_v14  ;;  %v9732_v16 = vsel %vm13333_vm7, %v12503_v56, %v9731_v22  ;;  %v5748_v43 = vshll.u32 %v5476_v48, 16  ;;  %v6099_v27 = vld [vmem:[#allocation2 + $0xfc] sm:$0x1] }
 0x311   : > { %11446 = vmatprep.mubr.bf16.mxu0 %v11063_v2  ;;  %5394 = vrot.lane.b32.xlu1 %v12952_v63, %s13041_s12  ;;  %v10327_v4 = vsel %vm13171_vm4, %v10322_v59, %v10326_v25  ;;  %v9201_v63 = vshll.u32 %v8948_v1, 16  ;;  %v5475_v25 = vld [vmem:[#allocation2 + $0xfc] sm:$0x1]  ;;  %8727 = vst.msk [vmem:[#allocation3 + $0x70] sm:$0xff] %vm2571_vm12, %v15076_v12  ;;  %v5733_v3 = vrot.slane %v5731_v24, 4  ;;  %v5745_v59 = vshrl.u32 %v5476_v48, 16 }
 0x312   : > { %11447 = vmatmul.mubr.bf16.gmra.mrb[16].mxu0 %v11062_v19  ;;  %v12559_v13 = vcombine.low %v10327_v4, %v10341_v52  ;;  %v9189_v19 = vrot.slane %v9187_v20, 5  ;;  %v5740_v53 = vshll.u32 %v5475_v25, 16  ;;  %8904 = vst.msk [vmem:[#allocation3 + $0x70] sm:$0xff] %vm2940_vm13, %v15073_v28  ;;  %v9199_v57 = vrot.slane %v9198_v47, 4  ;;  %v6100_v4 = vld [vmem:[#allocation2 + $0x100] sm:$0xe] }
 0x313   : > { %v15166_v6 = vpop.permute.xlu0 %8861  ;;  %v9203_v2 = vrot.slane %v9201_v63, 5  ;;  %v12527_v55 = vcombine.low %v9728_v15, %v9732_v16  ;;  %v5736_v12 = vrot.slane %v5734_v50, 5  ;;  %9528 = vst.msk [vmem:[#allocation3 + $0x70] sm:$0xff] %vm3118_vm14, %v15106_v10  ;;  %v5747_v28 = vrot.slane %v5745_v59, 4  ;;  %v6101_v36 = vld [vmem:[#allocation2 + $0x104] sm:$0x1] }
 0x314   : > { %10628 = vrot.lane.b32.xlu0 %v12559_v13, %s13038_s9  ;;  %v9190_v37 = vsel %vm13171_vm4, %v9185_v39, %v9189_v19  ;;  %v5754_v1 = vshll.u32 %v5477_v62, 16  ;;  %10665 = vst.msk [vmem:[#allocation3 + $0x78] sm:$0xff] %vm1396_vm9, %v15085_v7  ;;  %v5742_v10 = vrot.slane %v5740_v53, 5  ;;  %v6260_v17 = vrot.slane %v6099_v27, 5  ;;  %v7235_v8 = vld [vmem:[#allocation2 + $0x100] sm:$0xe] }
 0x315   : > { %10996 = vrot.lane.b32.xlu1 %v12607_v18, %s13039_s10  ;;  %9896 = vst.msk [vmem:[#allocation3 + $0x70] sm:$0xff] %vm3743_vm15, %v15122_v23  ;;  %v9204_v31 = vsel %vm13171_vm4, %v9199_v57, %v9203_v2  ;;  %v5737_v41 = vor.u32 %v5736_v12, %v5733_v3  ;;  %v5750_v7 = vrot.slane %v5748_v43, 5  ;;  %v12265_v18 = vrot.slane %v6100_v4, 9  ;;  %v12955_v23 = vld [vmem:[#allocation2 + $0x140] ss:$8 sps:$4 sm:$0xff]  }
 0x316   : > { %v15209_v54 = vpop.permute.xlu1 %9485  ;;  %11033 = vst.msk [vmem:[#allocation3 + $0x78] sm:$0xff] %vm1768_vm10, %v15091_v60  ;;  %v12479_v29 = vcombine.low %v9190_v37, %v9204_v31  ;;  %v5756_v46 = vrot.slane %v5754_v1, 5  ;;  %v6264_v11 = vrot.slane %v6101_v36, 5  ;;  %v7236_v34 = vld [vmem:[#allocation2 + $0x104] sm:$0x1]  ;;  %v12344_v13 = vrot.slane %v7235_v8, 9 }
 0x317   : > { %v5389_v38 = vpop.permute.xlu0 %5388  ;;  %v5738_v26 = vrot.slane %v5737_v41, 4  ;;  %v5751_v32 = vor.u32 %v5750_v7, %v5747_v28  ;;  %v7237_v63 = vld [vmem:[#allocation2 + $0x108] sm:$0xe]  ;;  %v7238_v0 = vld [vmem:[#allocation2 + $0x10c] sm:$0x1]  ;;  %v7397_v44 = vrot.slane %v7236_v34, 5 }
 0x318   : > { %5431 = vst.msk [vmem:[#allocation3 + $0xa8] sm:$0xff] %vm2571_vm12, %v5389_v38  ;;  %v6098_v38 = vld [vmem:[#allocation2 + $0xf8] sm:$0xe]  ;;  %9491 = vrot.lane.b32.xlu0 %v12479_v29, %s13043_s14  ;;  %v15230_v60 = vsel %vm13333_vm7, %v12265_v18, %v6264_v11  ;;  %v8404_v19 = vld [vmem:[#allocation2 + $0x140] sm:$0xe]  ;;  %v12345_v14 = vrot.slane %v7237_v63, 9 }
 0x319   : > { %v12264_v35 = vrot.slane %v6098_v38, 9  ;;  %9859 = vrot.lane.b32.xlu1 %v12527_v55, %s13044_s15  ;;  %v5743_v25 = vsel %vm13171_vm4, %v5738_v26, %v5742_v10  ;;  %v5752_v48 = vrot.slane %v5751_v32, 4  ;;  %v7401_v61 = vrot.slane %v7238_v0, 5  ;;  %v8405_v2 = vld [vmem:[#allocation2 + $0x144] sm:$0x1] }
 0x31a   : > { %v8406_v62 = vld [vmem:[#allocation2 + $0x148] sm:$0xe]  ;;  %v8407_v39 = vld [vmem:[#allocation2 + $0x14c] sm:$0x1]  ;;  %v12424_v56 = vrot.slane %v8404_v19, 9  ;;  %v8566_v22 = vrot.slane %v8405_v2, 5  ;;  %v15241_v47 = vsel %vm13333_vm7, %v12344_v13, %v7397_v44 }
 0x31b   : > { %v15225_v52 = vsel %vm13333_vm7, %v12264_v35, %v6260_v17  ;;  %v5757_v24 = vsel %vm13171_vm4, %v5752_v48, %v5756_v46  ;;  %v12425_v15 = vrot.slane %v8406_v62, 9  ;;  %v8570_v50 = vrot.slane %v8407_v39, 5  ;;  %v7780_v53 = vld [vmem:[#allocation2 + $0x140] sm:$0xf]  ;;  %v7781_v42 = vld [vmem:[#allocation2 + $0x144] sm:$0x1] }
 0x31c   : > { %v12288_v40 = vcombine.low %v15225_v52, %v15230_v60  ;;  %v12240_v16 = vcombine.low %v5743_v25, %v5757_v24  ;;  %v7402_v3 = vsel %vm13333_vm7, %v12345_v14, %v7401_v61  ;;  %v8567_v59 = vsel %vm13333_vm7, %v12424_v56, %v8566_v22  ;;  %v7782_v37 = vld [vmem:[#allocation2 + $0x148] sm:$0xf]  ;;  %v7783_v57 = vld [vmem:[#allocation2 + $0x14c] sm:$0x1]  ;;  %v10086_v35 = vld [vmem:[#allocation2 + $0x150] sm:$0xf] }
 0x31d   : > { %v15220_v20 = vpop.permute.xlu0 %10990  ;;  %6563 = vrot.lane.b32.xlu1 %v12954_v21, %s13044_s15  ;;  %v8037_v55 = vshrl.u32 %v7780_v53, 16  ;;  %v11061_v12 = vld [vmem:[#allocation3 + $0x78] sm:$0xff]  ;;  %v8571_v28 = vsel %vm13333_vm7, %v12425_v15, %v8570_v50  ;;  %v8040_v43 = vshll.u32 %v7780_v53, 16  ;;  %v8046_v1 = vshll.u32 %v7781_v42, 16  ;;  %v11060_v31 = vld [vmem:[#allocation3 + $0x70] sm:$0xff] }
 0x31e   : > { %v8051_v27 = vshrl.u32 %v7782_v37, 16  ;;  %12647 = vmatprep.mubr.msk.bf16.mxu1 %vm11333_vm2, %v11061_v12  ;;  %6018 = vrot.lane.b32.xlu0 %v12240_v16, %s13042_s13  ;;  %v12448_v41 = vcombine.low %v8567_v59, %v8571_v28  ;;  %v8054_v4 = vshll.u32 %v7782_v37, 16  ;;  %v8060_v36 = vshll.u32 %v7783_v57, 16  ;;  %v10087_v17 = vld [vmem:[#allocation2 + $0x154] sm:$0x1] }
 0x31f   : > { %v6013_v33 = vpop.permute.xlu1 %6012  ;;  %v8039_v10 = vrot.slane %v8037_v55, 4  ;;  %11600 = vmatmul.mubr.bf16.gmra.mrb[12].mxu1 %v11060_v31  ;;  %v12368_v29 = vcombine.low %v15241_v47, %v7402_v3  ;;  %v8042_v7 = vrot.slane %v8040_v43, 5  ;;  %v10088_v18 = vld [vmem:[#allocation2 + $0x158] sm:$0xf]  ;;  %v10343_v26 = vshrl.u32 %v10086_v35, 16 }
 0x320   : > { %6055 = vst.msk [vmem:[#allocation3 + $0xa8] sm:$0xff] %vm2940_vm13, %v6013_v33  ;;  %v8053_v46 = vrot.slane %v8051_v27, 4  ;;  %v8048_v11 = vrot.slane %v8046_v1, 5  ;;  %v10089_v32 = vld [vmem:[#allocation2 + $0x15c] sm:$0x1]  ;;  %v10346_v52 = vshll.u32 %v10086_v35, 16 }
 0x321   : > { %7700 = vrot.lane.b32.xlu1 %v12955_v23, %s13039_s10  ;;  %v15248_v38 = vpop.permute.xlu0 %9853  ;;  %v8056_v23 = vrot.slane %v8054_v4, 5  ;;  %v10352_v8 = vshll.u32 %v10087_v17, 16  ;;  %v8043_v63 = vor.u32 %v8042_v7, %v8039_v10  ;;  %v10345_v60 = vrot.slane %v10343_v26, 4  ;;  %v6627_v22 = vld [vmem:[#allocation2 + $0xb0] sm:$0xf]  ;;  %v11066_v27 = vld [vmem:[#allocation3 + $0xa0] sm:$0xff] }
 0x322   : > { %v10357_v0 = vshrl.u32 %v10088_v18, 16  ;;  %v10360_v13 = vshll.u32 %v10088_v18, 16  ;;  %6386 = vrot.lane.b32.xlu0 %v12288_v40, %s13043_s14  ;;  %v8062_v19 = vrot.slane %v8060_v36, 5  ;;  %v10348_v33 = vrot.slane %v10346_v52, 5  ;;  %v6628_v24 = vld [vmem:[#allocation2 + $0xb4] sm:$0x1] }
 0x323   : > { %v6381_v21 = vpop.permute.xlu1 %6380  ;;  %v8057_v44 = vor.u32 %v8056_v23, %v8053_v46  ;;  %v10366_v25 = vshll.u32 %v10089_v32, 16  ;;  %v8044_v48 = vrot.slane %v8043_v63, 4  ;;  %v10354_v14 = vrot.slane %v10352_v8, 5  ;;  %v6629_v40 = vld [vmem:[#allocation2 + $0xb8] sm:$0xf] }
 0x324   : > { %6423 = vst.msk [vmem:[#allocation3 + $0xa8] sm:$0xff] %vm3118_vm14, %v6381_v21  ;;  %v10359_v61 = vrot.slane %v10357_v0, 4  ;;  %v10362_v2 = vrot.slane %v10360_v13, 5  ;;  %v10349_v39 = vor.u32 %v10348_v33, %v10345_v60  ;;  %v6630_v53 = vld [vmem:[#allocation2 + $0xbc] sm:$0x1]  ;;  %v6788_v42 = vshrl.u32 %v6627_v22, 16 }
 0x325   : > { %8692 = vrot.lane.b32.xlu1 %v12448_v41, %s13041_s12  ;;  %v6558_v34 = vpop.permute.xlu0 %6557  ;;  %v8058_v62 = vrot.slane %v8057_v44, 4  ;;  %v10368_v56 = vrot.slane %v10366_v25, 5  ;;  %v8049_v15 = vsel %vm13171_vm4, %v8044_v48, %v8048_v11  ;;  %v6791_v16 = vshll.u32 %v6627_v22, 16  ;;  %v8949_v55 = vld [vmem:[#allocation2 + $0x148] sm:$0xf] }
 0x326   : > { %6600 = vst.msk [vmem:[#allocation3 + $0xa8] sm:$0xff] %vm3743_vm15, %v6558_v34  ;;  %v10363_v50 = vor.u32 %v10362_v2, %v10359_v61  ;;  %7523 = vrot.lane.b32.xlu0 %v12368_v29, %s13038_s9  ;;  %v10350_v59 = vrot.slane %v10349_v39, 4  ;;  %v6797_v37 = vshll.u32 %v6628_v24, 16  ;;  %v6802_v57 = vshrl.u32 %v6629_v40, 16  ;;  %v8950_v1 = vld [vmem:[#allocation2 + $0x14c] sm:$0x1] }
 0x327   : > { %v15259_v47 = vpop.permute.xlu1 %7517  ;;  %v8063_v3 = vsel %vm13171_vm4, %v8058_v62, %v8062_v19  ;;  %v6790_v28 = vrot.slane %v6788_v42, 4  ;;  %v6793_v43 = vrot.slane %v6791_v16, 5  ;;  %v12956_v31 = vld [vmem:[#allocation2 + $0x148] ss:$8 sps:$4 sm:$0xff]   ;;  %v6805_v4 = vshll.u32 %v6629_v40, 16 }
 0x328   : > { %v12400_v12 = vcombine.low %v8049_v15, %v8063_v3  ;;  %v10364_v21 = vrot.slane %v10363_v50, 4  ;;  %v10355_v35 = vsel %vm13171_vm4, %v10350_v59, %v10354_v14  ;;  %v6799_v41 = vrot.slane %v6797_v37, 5  ;;  %v8951_v36 = vld [vmem:[#allocation2 + $0x150] sm:$0xf]  ;;  %v8952_v18 = vld [vmem:[#allocation2 + $0x154] sm:$0x1] }
 0x329   : > { %v6804_v10 = vrot.slane %v6802_v57, 4  ;;  %v6794_v7 = vor.u32 %v6793_v43, %v6790_v28  ;;  %v6811_v46 = vshll.u32 %v6630_v53, 16  ;;  %v9206_v26 = vshrl.u32 %v8949_v55, 16  ;;  %v12957_v25 = vld [vmem:[#allocation2 + $0x108] ss:$8 sps:$4 sm:$0xff]   ;;  %v15281_v43 = vpop.permute.xlu0 %7694 }
 0x32a   : > { %v10369_v29 = vsel %vm13171_vm4, %v10364_v21, %v10368_v56  ;;  %8324 = vrot.lane.b32.xlu0 %v12400_v12, %s13040_s11  ;;  %v6807_v23 = vrot.slane %v6805_v4, 5  ;;  %v9209_v32 = vshll.u32 %v8949_v55, 16  ;;  %v9215_v52 = vshll.u32 %v8950_v1, 16  ;;  %v5478_v48 = vld [vmem:[#allocation2 + $0x108] sm:$0xf] }
 0x32b   : > { %v12560_v11 = vcombine.low %v10355_v35, %v10369_v29  ;;  %v6795_v34 = vrot.slane %v6794_v7, 4  ;;  %v6813_v63 = vrot.slane %v6811_v46, 5  ;;  %v9208_v60 = vrot.slane %v9206_v26, 4  ;;  %v5479_v62 = vld [vmem:[#allocation2 + $0x10c] sm:$0x1] }
 0x32c   : > { %v15271_v8 = vpop.permute.xlu1 %8318  ;;  %v9220_v0 = vshrl.u32 %v8951_v36, 16  ;;  %v6808_v13 = vor.u32 %v6807_v23, %v6804_v10  ;;  %v9211_v44 = vrot.slane %v9209_v32, 5  ;;  %v9217_v19 = vrot.slane %v9215_v52, 5  ;;  %v5480_v39 = vld [vmem:[#allocation2 + $0x110] sm:$0xf] }
 0x32d   : > { %v11067_v17 = vld [vmem:[#allocation3 + $0xa8] sm:$0xff]  ;;  %10630 = vrot.lane.b32.xlu1 %v12560_v11, %s13038_s9  ;;  %v9223_v33 = vshll.u32 %v8951_v36, 16  ;;  %v6800_v14 = vsel %vm13171_vm4, %v6795_v34, %v6799_v41  ;;  %v9229_v2 = vshll.u32 %v8952_v18, 16  ;;  %v5481_v15 = vld [vmem:[#allocation2 + $0x114] sm:$0x1]  ;;  %v5759_v50 = vshrl.u32 %v5478_v48, 16 }
 0x32e   : > { %11454 = vmatprep.mubr.bf16.mxu0 %v11067_v17  ;;  %v9222_v61 = vrot.slane %v9220_v0, 4  ;;  %8869 = vrot.lane.b32.xlu0 %v12956_v31, %s13042_s13  ;;  %v6809_v56 = vrot.slane %v6808_v13, 4  ;;  %v9212_v22 = vor.u32 %v9211_v44, %v9208_v60  ;;  %v5762_v42 = vshll.u32 %v5478_v48, 16  ;;  %v10710_v59 = vld [vmem:[#allocation2 + $0x150] sm:$0xe] }
 0x32f   : > { %11455 = vmatmul.mubr.bf16.gmra.mrb[20].mxu0 %v11066_v27  ;;  %v9225_v24 = vrot.slane %v9223_v33, 5  ;;  %v9231_v53 = vrot.slane %v9229_v2, 5  ;;  %v5768_v16 = vshll.u32 %v5479_v62, 16  ;;  %v5773_v3 = vshrl.u32 %v5480_v39, 16  ;;  %v10711_v21 = vld [vmem:[#allocation2 + $0x154] sm:$0x1] }
 0x330   : > { %v15277_v40 = vpop.permute.xlu1 %8863  ;;  %v6814_v37 = vsel %vm13171_vm4, %v6809_v56, %v6813_v63  ;;  %v9213_v57 = vrot.slane %v9212_v22, 4  ;;  %v5761_v12 = vrot.slane %v5759_v50, 4  ;;  %v10712_v28 = vld [vmem:[#allocation2 + $0x158] sm:$0xe]  ;;  %v5764_v27 = vrot.slane %v5762_v42, 5 }
 0x331   : > { %v9226_v55 = vor.u32 %v9225_v24, %v9222_v61  ;;  %v12316_v1 = vcombine.low %v6800_v14, %v6814_v37  ;;  %v5775_v35 = vrot.slane %v5773_v3, 4  ;;  %v10713_v31 = vld [vmem:[#allocation2 + $0x15c] sm:$0x1]  ;;  %v5776_v4 = vshll.u32 %v5480_v39, 16  ;;  %v12958_v52 = vld [vmem:[#allocation2 + $0x100] ss:$8 sps:$4 sm:$0xff]   ;;  %v15301_v14 = vpop.permute.xlu0 %8686 }
 0x332   : > { %v9218_v41 = vsel %vm13171_vm4, %v9213_v57, %v9217_v19  ;;  %5396 = vrot.lane.b32.xlu0 %v12957_v25, %s13041_s12  ;;  %v5782_v36 = vshll.u32 %v5481_v15, 16  ;;  %v5765_v29 = vor.u32 %v5764_v27, %v5761_v12  ;;  %v12584_v7 = vrot.slane %v10710_v59, 9  ;;  %v6102_v13 = vld [vmem:[#allocation2 + $0x108] sm:$0xe]  ;;  %v6103_v44 = vld [vmem:[#allocation2 + $0x10c] sm:$0x1] }
 0x333   : > { %v9227_v10 = vrot.slane %v9226_v55, 4  ;;  %7191 = vst.msk [vmem:[#allocation3 + $0x90] sm:$0xff] %vm768_vm8, %v12316_v1  ;;  %v10872_v46 = vrot.slane %v10711_v21, 5  ;;  %v12585_v18 = vrot.slane %v10712_v28, 9  ;;  %v5770_v11 = vrot.slane %v5768_v16, 5  ;;  %10042 = vst.msk [vmem:[#allocation3 + $0x98] sm:$0xff] %vm768_vm8, %v12958_v52 }
 0x334   : > { %v5391_v17 = vpop.permute.xlu1 %5390  ;;  %7559 = vst.msk [vmem:[#allocation3 + $0x90] sm:$0xff] %vm1396_vm9, %v15148_v5  ;;  %v5778_v23 = vrot.slane %v5776_v4, 5  ;;  %v10876_v32 = vrot.slane %v10713_v31, 5  ;;  %v5766_v63 = vrot.slane %v5765_v29, 4  ;;  %v5784_v60 = vrot.slane %v5782_v36, 5  ;;  %10666 = vst.msk [vmem:[#allocation3 + $0x98] sm:$0xff] %vm1396_vm9, %v15186_v58 }
 0x335   : > { %5432 = vst.msk [vmem:[#allocation3 + $0xc8] sm:$0xff] %vm2571_vm12, %v5391_v17  ;;  %v9232_v26 = vsel %vm13171_vm4, %v9227_v10, %v9231_v53  ;;  %v10873_v0 = vsel %vm13333_vm7, %v12584_v7, %v10872_v46  ;;  %v6104_v33 = vld [vmem:[#allocation2 + $0x110] sm:$0xe]  ;;  %v6105_v25 = vld [vmem:[#allocation2 + $0x114] sm:$0x1]  ;;  %v6268_v48 = vrot.slane %v6103_v44, 5  ;;  %v15329_v31 = vpop.permute.xlu0 %10624 }
 0x336   : > { %7736 = vst.msk [vmem:[#allocation3 + $0x90] sm:$0xff] %vm1768_vm10, %v15160_v9  ;;  %v12480_v34 = vcombine.low %v9218_v41, %v9232_v26  ;;  %v5779_v5 = vor.u32 %v5778_v23, %v5775_v35  ;;  %v10877_v19 = vsel %vm13333_vm7, %v12585_v18, %v10876_v32  ;;  %v12266_v9 = vrot.slane %v6102_v13, 9  ;;  %v9573_v62 = vld [vmem:[#allocation2 + $0x148] sm:$0xe]  ;;  %v9574_v39 = vld [vmem:[#allocation2 + $0x14c] sm:$0x1] }
 0x337   : > { %8360 = vst.msk [vmem:[#allocation3 + $0x90] sm:$0xff] %vm1946_vm11, %v15162_v30  ;;  %v12608_v61 = vcombine.low %v10873_v0, %v10877_v19  ;;  %v12267_v30 = vrot.slane %v6104_v33, 9  ;;  %v6272_v2 = vrot.slane %v6105_v25, 5  ;;  %v5771_v56 = vsel %vm13171_vm4, %v5766_v63, %v5770_v11  ;;  %v9575_v24 = vld [vmem:[#allocation2 + $0x150] sm:$0xe] }
 0x338   : > { %9493 = vrot.lane.b32.xlu1 %v12480_v34, %s13043_s14  ;;  %8728 = vst.msk [vmem:[#allocation3 + $0x90] sm:$0xff] %vm2571_vm12, %v15171_v45  ;;  %v5780_v22 = vrot.slane %v5779_v5, 4  ;;  %v9576_v15 = vld [vmem:[#allocation2 + $0x154] sm:$0x1]  ;;  %v12504_v50 = vrot.slane %v9573_v62, 9  ;;  %v9735_v45 = vrot.slane %v9574_v39, 5 }
 0x339   : > { %8905 = vst.msk [vmem:[#allocation3 + $0x90] sm:$0xff] %vm2940_vm13, %v15166_v6  ;;  %10998 = vrot.lane.b32.xlu0 %v12608_v61, %s13039_s10  ;;  %v12505_v58 = vrot.slane %v9575_v24, 9  ;;  %v9739_v53 = vrot.slane %v9576_v15, 5  ;;  %v7239_v42 = vld [vmem:[#allocation2 + $0x110] sm:$0xe]  ;;  %v6269_v6 = vsel %vm13333_vm7, %v12266_v9, %v6268_v48  ;;  %v6273_v3 = vsel %vm13333_vm7, %v12267_v30, %v6272_v2 }
 0x33a   : > { %11034 = vst.msk [vmem:[#allocation3 + $0x98] sm:$0xff] %vm1768_vm10, %v15220_v20  ;;  %v5785_v16 = vsel %vm13171_vm4, %v5780_v22, %v5784_v60  ;;  %v7240_v59 = vld [vmem:[#allocation2 + $0x114] sm:$0x1]  ;;  %v7241_v20 = vld [vmem:[#allocation2 + $0x118] sm:$0xe]  ;;  %v12346_v12 = vrot.slane %v7239_v42, 9  ;;  %v12289_v41 = vcombine.low %v6269_v6, %v6273_v3 }
 0x33b   : > { %9529 = vst.msk [vmem:[#allocation3 + $0x90] sm:$0xff] %vm3118_vm14, %v15209_v54  ;;  %v7242_v37 = vld [vmem:[#allocation2 + $0x11c] sm:$0x1]  ;;  %v12241_v57 = vcombine.low %v5771_v56, %v5785_v16  ;;  %v9736_v54 = vsel %vm13333_vm7, %v12504_v50, %v9735_v45  ;;  %v9740_v55 = vsel %vm13333_vm7, %v12505_v58, %v9739_v53  ;;  %v7405_v28 = vrot.slane %v7240_v59, 5  ;;  %v12959_v35 = vld [vmem:[#allocation2 + $0x110] ss:$8 sps:$4 sm:$0xff]  }
 0x33c   : > { %9897 = vst.msk [vmem:[#allocation3 + $0x90] sm:$0xff] %vm3743_vm15, %v15248_v38  ;;  %v12528_v21 = vcombine.low %v9736_v54, %v9740_v55  ;;  %v12347_v1 = vrot.slane %v7241_v20, 9  ;;  %v7409_v27 = vrot.slane %v7242_v37, 5  ;;  %v7784_v10 = vld [vmem:[#allocation2 + $0x150] sm:$0xf] }
 0x33d   : > { %6020 = vrot.lane.b32.xlu1 %v12241_v57, %s13042_s13  ;;  %v7785_v38 = vld [vmem:[#allocation2 + $0x154] sm:$0x1]  ;;  %v7786_v4 = vld [vmem:[#allocation2 + $0x158] sm:$0xf]  ;;  %v7406_v17 = vsel %vm13333_vm7, %v12346_v12, %v7405_v28  ;;  %v7787_v7 = vld [vmem:[#allocation2 + $0x15c] sm:$0x1] }
 0x33e   : > { %9861 = vrot.lane.b32.xlu0 %v12528_v21, %s13044_s15  ;;  %v7410_v29 = vsel %vm13333_vm7, %v12347_v1, %v7409_v27  ;;  %v8065_v46 = vshrl.u32 %v7784_v10, 16  ;;  %v8068_v18 = vshll.u32 %v7784_v10, 16  ;;  %v8074_v26 = vshll.u32 %v7785_v38, 16  ;;  %v12960_v25 = vld [vmem:[#allocation2 + $0x150] ss:$8 sps:$4 sm:$0xff]  }
 0x33f   : > { %v8079_v11 = vshrl.u32 %v7786_v4, 16  ;;  %v8082_v23 = vshll.u32 %v7786_v4, 16  ;;  %v8088_v63 = vshll.u32 %v7787_v7, 16  ;;  %v12369_v60 = vcombine.low %v7406_v17, %v7410_v29  ;;  %v8408_v61 = vld [vmem:[#allocation2 + $0x150] sm:$0xe] }
 0x340   : > { %v15332_v36 = vpop.permute.xlu1 %10992  ;;  %v8067_v52 = vrot.slane %v8065_v46, 4  ;;  %v8070_v34 = vrot.slane %v8068_v18, 5  ;;  %v8076_v19 = vrot.slane %v8074_v26, 5  ;;  %v8409_v30 = vld [vmem:[#allocation2 + $0x154] sm:$0x1]  ;;  %v12426_v22 = vrot.slane %v8408_v61, 9 }
 0x341   : > { %v11065_v32 = vld [vmem:[#allocation3 + $0x98] sm:$0xff]  ;;  %6388 = vrot.lane.b32.xlu1 %v12289_v41, %s13043_s14  ;;  %v8081_v0 = vrot.slane %v8079_v11, 4  ;;  %v8084_v13 = vrot.slane %v8082_v23, 5  ;;  %v8090_v33 = vrot.slane %v8088_v63, 5  ;;  %v8574_v24 = vrot.slane %v8409_v30, 5 }
 0x342   : > { %12648 = vmatprep.mubr.msk.bf16.mxu1 %vm11333_vm2, %v11065_v32  ;;  %6565 = vrot.lane.b32.xlu0 %v12959_v35, %s13044_s15  ;;  %v8071_v5 = vor.u32 %v8070_v34, %v8067_v52  ;;  %v8410_v2 = vld [vmem:[#allocation2 + $0x158] sm:$0xe]  ;;  %v8411_v56 = vld [vmem:[#allocation2 + $0x15c] sm:$0x1]  ;;  %v6631_v58 = vld [vmem:[#allocation2 + $0xc0] sm:$0xf] }
 0x343   : > { %v11064_v44 = vld [vmem:[#allocation3 + $0x90] sm:$0xff]  ;;  %v8085_v48 = vor.u32 %v8084_v13, %v8081_v0  ;;  %v12427_v15 = vrot.slane %v8410_v2, 9  ;;  %v8578_v45 = vrot.slane %v8411_v56, 5  ;;  %v6632_v53 = vld [vmem:[#allocation2 + $0xc4] sm:$0x1]  ;;  %v8575_v16 = vsel %vm13333_vm7, %v12426_v22, %v8574_v24 }
 0x344   : > { %11608 = vmatmul.mubr.bf16.gmra.mrb[16].mxu1 %v11064_v44  ;;  %v8072_v39 = vrot.slane %v8071_v5, 4  ;;  %v6633_v6 = vld [vmem:[#allocation2 + $0xc8] sm:$0xf]  ;;  %v6634_v3 = vld [vmem:[#allocation2 + $0xcc] sm:$0x1]  ;;  %v6816_v59 = vshrl.u32 %v6631_v58, 16 }
 0x345   : > { %v15344_v62 = vpop.permute.xlu1 %9855  ;;  %7525 = vrot.lane.b32.xlu1 %v12369_v60, %s13038_s9  ;;  %v8086_v50 = vrot.slane %v8085_v48, 4  ;;  %v6819_v20 = vshll.u32 %v6631_v58, 16  ;;  %v8579_v57 = vsel %vm13333_vm7, %v12427_v15, %v8578_v45  ;;  %v6825_v54 = vshll.u32 %v6632_v53, 16  ;;  %v12961_v21 = vld [vmem:[#allocation2 + $0x158] ss:$8 sps:$4 sm:$0xff]  }
 0x346   : > { %v15342_v9 = vpop.permute.xlu0 %9487  ;;  %v8077_v42 = vsel %vm13171_vm4, %v8072_v39, %v8076_v19  ;;  %7702 = vrot.lane.b32.xlu0 %v12960_v25, %s13039_s10  ;;  %v6830_v55 = vshrl.u32 %v6633_v6, 16  ;;  %v12449_v28 = vcombine.low %v8575_v16, %v8579_v57  ;;  %v6818_v1 = vrot.slane %v6816_v59, 4  ;;  %v10090_v35 = vld [vmem:[#allocation2 + $0x160] sm:$0xf]  ;;  %v10091_v29 = vld [vmem:[#allocation2 + $0x164] sm:$0x1] }
 0x347   : > { %v8091_v37 = vsel %vm13171_vm4, %v8086_v50, %v8090_v33  ;;  %v6821_v27 = vrot.slane %v6819_v20, 5  ;;  %v6827_v10 = vrot.slane %v6825_v54, 5  ;;  %v6833_v4 = vshll.u32 %v6633_v6, 16  ;;  %v10092_v18 = vld [vmem:[#allocation2 + $0x168] sm:$0xf] }
 0x348   : > { %v12401_v12 = vcombine.low %v8077_v42, %v8091_v37  ;;  %v6832_v38 = vrot.slane %v6830_v55, 4  ;;  %v6839_v17 = vshll.u32 %v6634_v3, 16  ;;  %v10093_v26 = vld [vmem:[#allocation2 + $0x16c] sm:$0x1]  ;;  %v10371_v11 = vshrl.u32 %v10090_v35, 16 }
 0x349   : > { %v6560_v7 = vpop.permute.xlu1 %6559  ;;  %v6822_v46 = vor.u32 %v6821_v27, %v6818_v1  ;;  %v10374_v23 = vshll.u32 %v10090_v35, 16  ;;  %v6835_v32 = vrot.slane %v6833_v4, 5  ;;  %v10380_v34 = vshll.u32 %v10091_v29, 16  ;;  %v10714_v60 = vld [vmem:[#allocation2 + $0x160] sm:$0xe] }
 0x34a   : > { %v6015_v41 = vpop.permute.xlu0 %6014  ;;  %8326 = vrot.lane.b32.xlu1 %v12401_v12, %s13040_s11  ;;  %8694 = vrot.lane.b32.xlu0 %v12449_v28, %s13041_s12  ;;  %v6841_v52 = vrot.slane %v6839_v17, 5  ;;  %v10385_v63 = vshrl.u32 %v10092_v18, 16  ;;  %v12962_v13 = vld [vmem:[#allocation2 + $0x118] ss:$8 sps:$4 sm:$0xff]   ;;  %v10373_v44 = vrot.slane %v10371_v11, 4  ;;  %v10388_v19 = vshll.u32 %v10092_v18, 16 }
 0x34b   : > { %6056 = vst.msk [vmem:[#allocation3 + $0xc8] sm:$0xff] %vm2940_vm13, %v6015_v41  ;;  %v6823_v0 = vrot.slane %v6822_v46, 4  ;;  %v10376_v5 = vrot.slane %v10374_v23, 5  ;;  %v10715_v33 = vld [vmem:[#allocation2 + $0x164] sm:$0x1]  ;;  %v6836_v48 = vor.u32 %v6835_v32, %v6832_v38  ;;  %v10382_v61 = vrot.slane %v10380_v34, 5 }
 0x34c   : > { %v10387_v30 = vrot.slane %v10385_v63, 4  ;;  %v10394_v2 = vshll.u32 %v10093_v26, 16  ;;  %v10716_v39 = vld [vmem:[#allocation2 + $0x168] sm:$0xe]  ;;  %v10390_v24 = vrot.slane %v10388_v19, 5  ;;  %v12586_v50 = vrot.slane %v10714_v60, 9 }
 0x34d   : > { %v6828_v56 = vsel %vm13171_vm4, %v6823_v0, %v6827_v10  ;;  %v10377_v22 = vor.u32 %v10376_v5, %v10373_v44  ;;  %v10717_v15 = vld [vmem:[#allocation2 + $0x16c] sm:$0x1]  ;;  %v8953_v45 = vld [vmem:[#allocation2 + $0x158] sm:$0xf]  ;;  %v6837_v58 = vrot.slane %v6836_v48, 4  ;;  %v10880_v42 = vrot.slane %v10715_v33, 5  ;;  %v15364_v6 = vpop.permute.xlu1 %7696 }
 0x34e   : > { %v6383_v25 = vpop.permute.xlu0 %6382  ;;  %8871 = vrot.lane.b32.xlu1 %v12961_v21, %s13042_s13  ;;  %v10396_v53 = vrot.slane %v10394_v2, 5  ;;  %v12587_v16 = vrot.slane %v10716_v39, 9  ;;  %v10391_v59 = vor.u32 %v10390_v24, %v10387_v30  ;;  %v10884_v20 = vrot.slane %v10717_v15, 5  ;;  %v8954_v37 = vld [vmem:[#allocation2 + $0x15c] sm:$0x1] }
 0x34f   : > { %6424 = vst.msk [vmem:[#allocation3 + $0xc8] sm:$0xff] %vm3118_vm14, %v6383_v25  ;;  %v10378_v3 = vrot.slane %v10377_v22, 4  ;;  %v8955_v57 = vld [vmem:[#allocation2 + $0x160] sm:$0xf]  ;;  %v6842_v55 = vsel %vm13171_vm4, %v6837_v58, %v6841_v52  ;;  %v10881_v12 = vsel %vm13333_vm7, %v12586_v50, %v10880_v42  ;;  %v8956_v21 = vld [vmem:[#allocation2 + $0x164] sm:$0x1] }
 0x350   : > { %6601 = vst.msk [vmem:[#allocation3 + $0xc8] sm:$0xff] %vm3743_vm15, %v6560_v7  ;;  %v9234_v28 = vshrl.u32 %v8953_v45, 16  ;;  %v9237_v1 = vshll.u32 %v8953_v45, 16  ;;  %v9577_v27 = vld [vmem:[#allocation2 + $0x158] sm:$0xe]  ;;  %v12317_v35 = vcombine.low %v6828_v56, %v6842_v55  ;;  %v10392_v10 = vrot.slane %v10391_v59, 4 }
 0x351   : > { %v10383_v41 = vsel %vm13171_vm4, %v10378_v3, %v10382_v61  ;;  %v10885_v38 = vsel %vm13333_vm7, %v12587_v16, %v10884_v20  ;;  %v9578_v4 = vld [vmem:[#allocation2 + $0x15c] sm:$0x1]  ;;  %v9579_v17 = vld [vmem:[#allocation2 + $0x160] sm:$0xe]  ;;  %v9243_v18 = vshll.u32 %v8954_v37, 16  ;;  %v9248_v23 = vshrl.u32 %v8955_v57, 16 }
 0x352   : > { %v15366_v54 = vpop.permute.xlu0 %7519  ;;  %5398 = vrot.lane.b32.xlu1 %v12962_v13, %s13041_s12  ;;  %v12609_v29 = vcombine.low %v10881_v12, %v10885_v38  ;;  %v9236_v7 = vrot.slane %v9234_v28, 4  ;;  %v9239_v46 = vrot.slane %v9237_v1, 5  ;;  %v9580_v26 = vld [vmem:[#allocation2 + $0x164] sm:$0x1]  ;;  %7192 = vst.msk [vmem:[#allocation3 + $0xb0] sm:$0xff] %vm768_vm8, %v12317_v35  ;;  %v10397_v11 = vsel %vm13171_vm4, %v10392_v10, %v10396_v53  ;;  %v15384_v33 = vpop.permute.xlu1 %8688 }
 0x353   : > { %v9251_v32 = vshll.u32 %v8955_v57, 16  ;;  %v9257_v52 = vshll.u32 %v8956_v21, 16  ;;  %v5482_v34 = vld [vmem:[#allocation2 + $0x118] sm:$0xf]  ;;  %7560 = vst.msk [vmem:[#allocation3 + $0xb0] sm:$0xff] %vm1396_vm9, %v15259_v47  ;;  %v12561_v60 = vcombine.low %v10383_v41, %v10397_v11  ;;  %v9245_v13 = vrot.slane %v9243_v18, 5 }
 0x354   : > { %v9240_v0 = vor.u32 %v9239_v46, %v9236_v7  ;;  %v12506_v44 = vrot.slane %v9577_v27, 9  ;;  %v5483_v5 = vld [vmem:[#allocation2 + $0x11c] sm:$0x1]  ;;  %v5484_v19 = vld [vmem:[#allocation2 + $0x120] sm:$0xf]  ;;  %7737 = vst.msk [vmem:[#allocation3 + $0xb0] sm:$0xff] %vm1768_vm10, %v15281_v43 }
 0x355   : > { %v9250_v25 = vrot.slane %v9248_v23, 4  ;;  %v9253_v48 = vrot.slane %v9251_v32, 5  ;;  %v9259_v61 = vrot.slane %v9257_v52, 5  ;;  %v9743_v30 = vrot.slane %v9578_v4, 5  ;;  %v5485_v2 = vld [vmem:[#allocation2 + $0x124] sm:$0x1]  ;;  %10632 = vrot.lane.b32.xlu0 %v12561_v60, %s13038_s9 }
 0x356   : > { %11000 = vrot.lane.b32.xlu1 %v12609_v29, %s13039_s10  ;;  %8361 = vst.msk [vmem:[#allocation3 + $0xb0] sm:$0xff] %vm1946_vm11, %v15271_v8  ;;  %v9241_v47 = vrot.slane %v9240_v0, 4  ;;  %v12507_v39 = vrot.slane %v9579_v17, 9  ;;  %v9747_v56 = vrot.slane %v9580_v26, 5  ;;  %v5787_v22 = vshrl.u32 %v5482_v34, 16  ;;  %v12678_v17 = vpop.f32.mrb[0].mxu0 }
 0x357   : > { %v9254_v24 = vor.u32 %v9253_v48, %v9250_v25  ;;  %8729 = vst.msk [vmem:[#allocation3 + $0xb0] sm:$0xff] %vm2571_vm12, %v15301_v14  ;;  %v9744_v43 = vsel %vm13333_vm7, %v12506_v44, %v9743_v30  ;;  %v5790_v15 = vshll.u32 %v5482_v34, 16  ;;  %v5796_v50 = vshll.u32 %v5483_v5, 16  ;;  %v12963_v45 = vld [vmem:[#allocation2 + $0x110] ss:$8 sps:$4 sm:$0xff]   ;;  %v11070_v14 = vld [vmem:[#allocation3 + $0xc0] sm:$0xff]  ;;  %v15413_v35 = vpop.permute.xlu1 %10626 }
 0x358   : > { %v9246_v53 = vsel %vm13171_vm4, %v9241_v47, %v9245_v13  ;;  %8906 = vst.msk [vmem:[#allocation3 + $0xb0] sm:$0xff] %vm2940_vm13, %v15277_v40  ;;  %v9748_v8 = vsel %vm13333_vm7, %v12507_v39, %v9747_v56  ;;  %v5789_v42 = vrot.slane %v5787_v22, 4  ;;  %v5801_v16 = vshrl.u32 %v5484_v19, 16  ;;  %v12964_v57 = vld [vmem:[#allocation2 + $0x120] ss:$8 sps:$4 sm:$0xff]   ;;  %v12679_v18 = vpop.f32.mrb[1].mxu0 }
 0x359   : > { %v9255_v3 = vrot.slane %v9254_v24, 4  ;;  %v12529_v59 = vcombine.low %v9744_v43, %v9748_v8  ;;  %v5792_v20 = vrot.slane %v5790_v15, 5  ;;  %v15404_v37 = vrot.slane %v5796_v50, 5  ;;  %10043 = vst.msk [vmem:[#allocation3 + $0xb8] sm:$0xff] %vm768_vm8, %v12963_v45  ;;  %v6106_v55 = vld [vmem:[#allocation2 + $0x118] sm:$0xe] }
 0x35a   : > { %9530 = vst.msk [vmem:[#allocation3 + $0xb0] sm:$0xff] %vm3118_vm14, %v15342_v9  ;;  %v11071_v12 = vld [vmem:[#allocation3 + $0xc8] sm:$0xff]  ;;  %v5803_v40 = vrot.slane %v5801_v16, 4  ;;  %v5804_v21 = vshll.u32 %v5484_v19, 16  ;;  %v5810_v28 = vshll.u32 %v5485_v2, 16  ;;  %v12268_v27 = vrot.slane %v6106_v55, 9 }
 0x35b   : > { %v15380_v63 = vpop.permute.xlu0 %8320  ;;  %10667 = vst.msk [vmem:[#allocation3 + $0xb8] sm:$0xff] %vm1396_vm9, %v15329_v31  ;;  %v6107_v1 = vld [vmem:[#allocation2 + $0x11c] sm:$0x1]  ;;  %11462 = vmatprep.mubr.bf16.mxu0 %v11071_v12  ;;  %v9260_v41 = vsel %vm13171_vm4, %v9255_v3, %v9259_v61  ;;  %9863 = vrot.lane.b32.xlu1 %v12529_v59, %s13044_s15  ;;  %v5793_v9 = vor.u32 %v5792_v20, %v5789_v42  ;;  %v6108_v10 = vld [vmem:[#allocation2 + $0x120] sm:$0xe]  ;;  %v15438_v56 = vpop.f32.mrb[2].mxu0 }
 0x35c   : > { %9898 = vst.msk [vmem:[#allocation3 + $0xb0] sm:$0xff] %vm3743_vm15, %v15344_v62  ;;  %v6109_v38 = vld [vmem:[#allocation2 + $0x124] sm:$0x1]  ;;  %v6276_v4 = vrot.slane %v6107_v1, 5  ;;  %11463 = vmatmul.mubr.bf16.gmra.mrb[24].mxu0 %v11070_v14  ;;  %v12481_v29 = vcombine.low %v9246_v53, %v9260_v41  ;;  %v5806_v62 = vrot.slane %v5804_v21, 5  ;;  %v5812_v7 = vrot.slane %v5810_v28, 5 }
 0x35d   : > { %11035 = vst.msk [vmem:[#allocation3 + $0xb8] sm:$0xff] %vm1768_vm10, %v15332_v36  ;;  %v12269_v46 = vrot.slane %v6108_v10, 9  ;;  %v5794_v26 = vrot.slane %v5793_v9, 4  ;;  %v6280_v11 = vrot.slane %v6109_v38, 5  ;;  %v12965_v23 = vld [vmem:[#allocation2 + $0x160] ss:$8 sps:$4 sm:$0xff]   ;;  %v15421_v32 = vadd.f32 %v12679_v18, %v12678_v17 }
 0x35e   : > { %9495 = vrot.lane.b32.xlu0 %v12481_v29, %s13043_s14  ;;  %v5807_v52 = vor.u32 %v5806_v62, %v5803_v40  ;;  %v15426_v36 = vsel %vm13333_vm7, %v12268_v27, %v6276_v4  ;;  %v7243_v34 = vld [vmem:[#allocation2 + $0x120] sm:$0xe]  ;;  %v7244_v60 = vld [vmem:[#allocation2 + $0x124] sm:$0x1]  ;;  %v7245_v0 = vld [vmem:[#allocation2 + $0x128] sm:$0xe] }
 0x35f   : > { %v15396_v58 = vpop.permute.xlu0 %8865  ;;  %6567 = vrot.lane.b32.xlu1 %v12964_v57, %s13044_s15  ;;  %v15431_v13 = vsel %vm13333_vm7, %v12269_v46, %v6280_v11  ;;  %v7246_v44 = vld [vmem:[#allocation2 + $0x12c] sm:$0x1]  ;;  %v12348_v5 = vrot.slane %v7243_v34, 9  ;;  %v7413_v19 = vrot.slane %v7244_v60, 5  ;;  %v8412_v25 = vld [vmem:[#allocation2 + $0x160] sm:$0xe]  ;;  %v5799_v48 = vsel %vm13171_vm4, %v5794_v26, %v15404_v37 }
 0x360   : > { %v5808_v61 = vrot.slane %v5807_v52, 4  ;;  %v12349_v30 = vrot.slane %v7245_v0, 9  ;;  %v7417_v2 = vrot.slane %v7246_v44, 5  ;;  %v8413_v47 = vld [vmem:[#allocation2 + $0x164] sm:$0x1]  ;;  %v12290_v22 = vcombine.low %v15426_v36, %v15431_v13  ;;  %v12682_v62 = vpop.f32.mrb[3].mxu0 }
 0x361   : > { %v15444_v24 = vsel %vm13333_vm7, %v12348_v5, %v7413_v19  ;;  %v8414_v43 = vld [vmem:[#allocation2 + $0x168] sm:$0xe]  ;;  %v8415_v15 = vld [vmem:[#allocation2 + $0x16c] sm:$0x1]  ;;  %v12428_v50 = vrot.slane %v8412_v25, 9  ;;  %v8582_v45 = vrot.slane %v8413_v47, 5 }
 0x362   : > { %v5813_v53 = vsel %vm13171_vm4, %v5808_v61, %v5812_v7  ;;  %v15450_v8 = vsel %vm13333_vm7, %v12349_v30, %v7417_v2  ;;  %v12429_v42 = vrot.slane %v8414_v43, 9  ;;  %v8586_v16 = vrot.slane %v8415_v15, 5  ;;  %v7788_v14 = vld [vmem:[#allocation2 + $0x160] sm:$0xf]  ;;  %v7789_v3 = vld [vmem:[#allocation2 + $0x164] sm:$0x1] }
 0x363   : > { %v5393_v31 = vpop.permute.xlu0 %5392  ;;  %v12242_v20 = vcombine.low %v5799_v48, %v5813_v53  ;;  %7704 = vrot.lane.b32.xlu1 %v12965_v23, %s13039_s10  ;;  %v12370_v37 = vcombine.low %v15444_v24, %v15450_v8  ;;  %v8583_v57 = vsel %vm13333_vm7, %v12428_v50, %v8582_v45  ;;  %v7790_v55 = vld [vmem:[#allocation2 + $0x168] sm:$0xf]  ;;  %v7791_v12 = vld [vmem:[#allocation2 + $0x16c] sm:$0x1]  ;;  %v8093_v40 = vshrl.u32 %v7788_v14, 16  ;;  %v11068_v10 = vld [vmem:[#allocation3 + $0xb0] sm:$0xff] }
 0x364   : > { %5433 = vst.msk [vmem:[#allocation3 + $0xe8] sm:$0xff] %vm2571_vm12, %v5393_v31  ;;  %v15436_v39 = vpop.permute.xlu1 %9489  ;;  %v11069_v21 = vld [vmem:[#allocation3 + $0xb8] sm:$0xff]  ;;  %v8587_v28 = vsel %vm13333_vm7, %v12429_v42, %v8586_v16  ;;  %v8096_v1 = vshll.u32 %v7788_v14, 16  ;;  %v8102_v27 = vshll.u32 %v7789_v3, 16  ;;  %v8107_v41 = vshrl.u32 %v7790_v55, 16 }
 0x365   : > { %v10094_v9 = vld [vmem:[#allocation2 + $0x170] sm:$0xf]  ;;  %12649 = vmatprep.mubr.msk.bf16.mxu1 %vm11333_vm2, %v11069_v21  ;;  %6022 = vrot.lane.b32.xlu0 %v12242_v20, %s13042_s13  ;;  %v12450_v38 = vcombine.low %v8583_v57, %v8587_v28  ;;  %v8095_v4 = vrot.slane %v8093_v40, 4  ;;  %v8110_v31 = vshll.u32 %v7790_v55, 16  ;;  %v8116_v17 = vshll.u32 %v7791_v12, 16 }
 0x366   : > { %v10095_v29 = vld [vmem:[#allocation2 + $0x174] sm:$0x1]  ;;  %11616 = vmatmul.mubr.bf16.gmra.mrb[20].mxu1 %v11068_v10  ;;  %v8098_v7 = vrot.slane %v8096_v1, 5  ;;  %v8104_v46 = vrot.slane %v8102_v27, 5  ;;  %v8109_v18 = vrot.slane %v8107_v41, 4  ;;  %v10399_v11 = vshrl.u32 %v10094_v9, 16 }
 0x367   : > { %v10096_v26 = vld [vmem:[#allocation2 + $0x178] sm:$0xf]  ;;  %8696 = vrot.lane.b32.xlu1 %v12450_v38, %s13041_s12  ;;  %v8112_v52 = vrot.slane %v8110_v31, 5  ;;  %v8118_v36 = vrot.slane %v8116_v17, 5  ;;  %v10097_v34 = vld [vmem:[#allocation2 + $0x17c] sm:$0x1]  ;;  %v15469_v45 = vadd.f32 %v12682_v62, %v15438_v56 }
 0x368   : > { %v15452_v59 = vpop.permute.xlu0 %10994  ;;  %v10402_v60 = vshll.u32 %v10094_v9, 16  ;;  %v10408_v0 = vshll.u32 %v10095_v29, 16  ;;  %v8099_v44 = vor.u32 %v8098_v7, %v8095_v4  ;;  %v10401_v5 = vrot.slane %v10399_v11, 4  ;;  %v6635_v14 = vld [vmem:[#allocation2 + $0xd0] sm:$0xf] }
 0x369   : > { %v10413_v19 = vshrl.u32 %v10096_v26, 16  ;;  %v10416_v25 = vshll.u32 %v10096_v26, 16  ;;  %6390 = vrot.lane.b32.xlu0 %v12290_v22, %s13043_s14  ;;  %v8113_v48 = vor.u32 %v8112_v52, %v8109_v18  ;;  %v10422_v2 = vshll.u32 %v10097_v34, 16  ;;  %v6636_v3 = vld [vmem:[#allocation2 + $0xd4] sm:$0x1] }
 0x36a   : > { %v10404_v61 = vrot.slane %v10402_v60, 5  ;;  %v10410_v30 = vrot.slane %v10408_v0, 5  ;;  %v8100_v47 = vrot.slane %v8099_v44, 4  ;;  %v6637_v55 = vld [vmem:[#allocation2 + $0xd8] sm:$0xf]  ;;  %v6844_v40 = vshrl.u32 %v6635_v14, 16 }
 0x36b   : > { %v10415_v43 = vrot.slane %v10413_v19, 4  ;;  %v10418_v15 = vrot.slane %v10416_v25, 5  ;;  %v8114_v53 = vrot.slane %v8113_v48, 4  ;;  %v10424_v16 = vrot.slane %v10422_v2, 5  ;;  %v6638_v12 = vld [vmem:[#allocation2 + $0xdc] sm:$0x1] }
 0x36c   : > { %v10405_v42 = vor.u32 %v10404_v61, %v10401_v5  ;;  %v8105_v22 = vsel %vm13171_vm4, %v8100_v47, %v8104_v46  ;;  %v6847_v21 = vshll.u32 %v6635_v14, 16  ;;  %v6853_v1 = vshll.u32 %v6636_v3, 16  ;;  %v8957_v41 = vld [vmem:[#allocation2 + $0x168] sm:$0xf]  ;;  %v8958_v31 = vld [vmem:[#allocation2 + $0x16c] sm:$0x1] }
 0x36d   : > { %v10419_v57 = vor.u32 %v10418_v15, %v10415_v43  ;;  %7527 = vrot.lane.b32.xlu0 %v12370_v37, %s13038_s9  ;;  %v8119_v56 = vsel %vm13171_vm4, %v8114_v53, %v8118_v36  ;;  %v6858_v27 = vshrl.u32 %v6637_v55, 16  ;;  %v6846_v38 = vrot.slane %v6844_v40, 4  ;;  %v12966_v62 = vld [vmem:[#allocation2 + $0x168] ss:$8 sps:$4 sm:$0xff]   ;;  %v8960_v11 = vld [vmem:[#allocation2 + $0x174] sm:$0x1] }
 0x36e   : > { %v10406_v28 = vrot.slane %v10405_v42, 4  ;;  %v12402_v9 = vcombine.low %v8105_v22, %v8119_v56  ;;  %v6849_v4 = vrot.slane %v6847_v21, 5  ;;  %v6855_v24 = vrot.slane %v6853_v1, 5  ;;  %v8959_v7 = vld [vmem:[#allocation2 + $0x170] sm:$0xf]  ;;  %v11074_v25 = vld [vmem:[#allocation3 + $0xe0] sm:$0xff] }
 0x36f   : > { %v6017_v23 = vpop.permute.xlu1 %6016  ;;  %v10420_v10 = vrot.slane %v10419_v57, 4  ;;  %v6860_v8 = vrot.slane %v6858_v27, 4  ;;  %v6861_v37 = vshll.u32 %v6637_v55, 16  ;;  %v6867_v26 = vshll.u32 %v6638_v12, 16  ;;  %v12967_v47 = vld [vmem:[#allocation2 + $0x128] ss:$8 sps:$4 sm:$0xff]  }
 0x370   : > { %6057 = vst.msk [vmem:[#allocation3 + $0xe8] sm:$0xff] %vm2940_vm13, %v6017_v23  ;;  %v15465_v13 = vpop.permute.xlu0 %9857  ;;  %v10411_v29 = vsel %vm13171_vm4, %v10406_v28, %v10410_v30  ;;  %v6850_v18 = vor.u32 %v6849_v4, %v6846_v38  ;;  %v9262_v23 = vshrl.u32 %v8957_v41, 16  ;;  %v9265_v34 = vshll.u32 %v8957_v41, 16  ;;  %v5486_v43 = vld [vmem:[#allocation2 + $0x128] sm:$0xf] }
 0x371   : > { %v10425_v46 = vsel %vm13171_vm4, %v10420_v10, %v10424_v16  ;;  %8328 = vrot.lane.b32.xlu0 %v12402_v9, %s13040_s11  ;;  %v6863_v36 = vrot.slane %v6861_v37, 5  ;;  %v9271_v60 = vshll.u32 %v8958_v31, 16  ;;  %v6869_v44 = vrot.slane %v6867_v26, 5  ;;  %v5487_v14 = vld [vmem:[#allocation2 + $0x12c] sm:$0x1] }
 0x372   : > { %v12562_v52 = vcombine.low %v10411_v29, %v10425_v46  ;;  %v6851_v0 = vrot.slane %v6850_v18, 4  ;;  %v9264_v5 = vrot.slane %v9262_v23, 4  ;;  %v9276_v19 = vshrl.u32 %v8959_v7, 16  ;;  %v5488_v3 = vld [vmem:[#allocation2 + $0x130] sm:$0xf] }
 0x373   : > { %v6385_v50 = vpop.permute.xlu1 %6384  ;;  %v6864_v48 = vor.u32 %v6863_v36, %v6860_v8  ;;  %v9267_v61 = vrot.slane %v9265_v34, 5  ;;  %v9273_v30 = vrot.slane %v9271_v60, 5  ;;  %v9279_v2 = vshll.u32 %v8959_v7, 16  ;;  %v5489_v55 = vld [vmem:[#allocation2 + $0x134] sm:$0x1] }
 0x374   : > { %6425 = vst.msk [vmem:[#allocation3 + $0xe8] sm:$0xff] %vm3118_vm14, %v6385_v50  ;;  %v6562_v20 = vpop.permute.xlu0 %6561  ;;  %10634 = vrot.lane.b32.xlu1 %v12562_v52, %s13038_s9  ;;  %v6856_v53 = vsel %vm13171_vm4, %v6851_v0, %v6855_v24  ;;  %v9278_v42 = vrot.slane %v9276_v19, 4  ;;  %v9285_v16 = vshll.u32 %v8960_v11, 16  ;;  %v5815_v12 = vshrl.u32 %v5486_v43, 16  ;;  %v10718_v1 = vld [vmem:[#allocation2 + $0x170] sm:$0xe] }
 0x375   : > { %6602 = vst.msk [vmem:[#allocation3 + $0xe8] sm:$0xff] %vm3743_vm15, %v6562_v20  ;;  %8873 = vrot.lane.b32.xlu0 %v12966_v62, %s13042_s13  ;;  %v6865_v20 = vrot.slane %v6864_v48, 4  ;;  %v9268_v22 = vor.u32 %v9267_v61, %v9264_v5  ;;  %v9281_v57 = vrot.slane %v9279_v2, 5  ;;  %v5818_v21 = vshll.u32 %v5486_v43, 16  ;;  %v10719_v38 = vld [vmem:[#allocation2 + $0x174] sm:$0x1] }
 0x376   : > { %v9287_v40 = vrot.slane %v9285_v16, 5  ;;  %v5824_v56 = vshll.u32 %v5487_v14, 16  ;;  %v5829_v28 = vshrl.u32 %v5488_v3, 16  ;;  %v5817_v10 = vrot.slane %v5815_v12, 4  ;;  %v10720_v4 = vld [vmem:[#allocation2 + $0x178] sm:$0xe] }
 0x377   : > { %v15481_v17 = vpop.permute.xlu1 %7521  ;;  %v6870_v27 = vsel %vm13171_vm4, %v6865_v20, %v6869_v44  ;;  %v9269_v41 = vrot.slane %v9268_v22, 4  ;;  %v9282_v9 = vor.u32 %v9281_v57, %v9278_v42  ;;  %v5820_v24 = vrot.slane %v5818_v21, 5  ;;  %v10721_v37 = vld [vmem:[#allocation2 + $0x17c] sm:$0x1]  ;;  %v12968_v5 = vld [vmem:[#allocation2 + $0x120] ss:$8 sps:$4 sm:$0xff]  }
 0x378   : > { %v15503_v31 = vpop.permute.xlu0 %7698  ;;  %v12318_v62 = vcombine.low %v6856_v53, %v6870_v27  ;;  %v5831_v8 = vrot.slane %v5829_v28, 4  ;;  %v5832_v18 = vshll.u32 %v5488_v3, 16  ;;  %v5838_v26 = vshll.u32 %v5489_v55, 16  ;;  %v6111_v2 = vld [vmem:[#allocation2 + $0x12c] sm:$0x1]  ;;  %10044 = vst.msk [vmem:[#allocation3 + $0xd8] sm:$0xff] %vm768_vm8, %v12968_v5 }
 0x379   : > { %v9274_v7 = vsel %vm13171_vm4, %v9269_v41, %v9273_v30  ;;  %v9283_v46 = vrot.slane %v9282_v9, 4  ;;  %5400 = vrot.lane.b32.xlu0 %v12967_v47, %s13041_s12  ;;  %v5821_v11 = vor.u32 %v5820_v24, %v5817_v10  ;;  %v12588_v23 = vrot.slane %v10718_v1, 9  ;;  %v6110_v30 = vld [vmem:[#allocation2 + $0x128] sm:$0xe]  ;;  %10668 = vst.msk [vmem:[#allocation3 + $0xd8] sm:$0xff] %vm1396_vm9, %v15413_v35  ;;  %v12684_v1 = vpop.f32.mrb[4].mxu0 }
 0x37a   : > { %7193 = vst.msk [vmem:[#allocation3 + $0xd0] sm:$0xff] %vm768_vm8, %v12318_v62  ;;  %v10888_v52 = vrot.slane %v10719_v38, 5  ;;  %v12589_v36 = vrot.slane %v10720_v4, 9  ;;  %v5826_v60 = vrot.slane %v5824_v56, 5  ;;  %v5834_v0 = vrot.slane %v5832_v18, 5  ;;  %v12685_v24 = vpop.f32.mrb[5].mxu0 }
 0x37b   : > { %v15490_v15 = vpop.permute.xlu1 %8322  ;;  %7561 = vst.msk [vmem:[#allocation3 + $0xd0] sm:$0xff] %vm1396_vm9, %v15366_v54  ;;  %v9288_v34 = vsel %vm13171_vm4, %v9283_v46, %v9287_v40  ;;  %v10892_v44 = vrot.slane %v10721_v37, 5  ;;  %v5822_v48 = vrot.slane %v5821_v11, 4  ;;  %v5840_v61 = vrot.slane %v5838_v26, 5  ;;  %v9581_v20 = vld [vmem:[#allocation2 + $0x168] sm:$0xe] }
 0x37c   : > { %v11075_v50 = vld [vmem:[#allocation3 + $0xe8] sm:$0xff]  ;;  %7738 = vst.msk [vmem:[#allocation3 + $0xd0] sm:$0xff] %vm1768_vm10, %v15364_v6  ;;  %v10889_v54 = vsel %vm13333_vm7, %v12588_v23, %v10888_v52  ;;  %v5835_v47 = vor.u32 %v5834_v0, %v5831_v8  ;;  %v6112_v6 = vld [vmem:[#allocation2 + $0x130] sm:$0xe]  ;;  %v12270_v53 = vrot.slane %v6110_v30, 9  ;;  %v6284_v42 = vrot.slane %v6111_v2, 5  ;;  %v15531_v16 = vpop.permute.xlu0 %8690 }
 0x37d   : > { %11470 = vmatprep.mubr.bf16.mxu0 %v11075_v50  ;;  %8362 = vst.msk [vmem:[#allocation3 + $0xd0] sm:$0xff] %vm1946_vm11, %v15380_v63  ;;  %v10893_v43 = vsel %vm13333_vm7, %v12589_v36, %v10892_v44  ;;  %v6113_v50 = vld [vmem:[#allocation2 + $0x134] sm:$0x1]  ;;  %v12271_v63 = vrot.slane %v6112_v6, 9  ;;  %v9582_v22 = vld [vmem:[#allocation2 + $0x16c] sm:$0x1]  ;;  %v5827_v57 = vsel %vm13171_vm4, %v5822_v48, %v5826_v60  ;;  %v15566_v60 = vadd.f32 %v12685_v24, %v12684_v1 }
 0x37e   : > { %11471 = vmatmul.mubr.bf16.gmra.mrb[28].mxu0 %v11074_v25  ;;  %v12482_v25 = vcombine.low %v9274_v7, %v9288_v34  ;;  %8730 = vst.msk [vmem:[#allocation3 + $0xd0] sm:$0xff] %vm2571_vm12, %v15384_v33  ;;  %v12610_v14 = vcombine.low %v10889_v54, %v10893_v43  ;;  %v6288_v3 = vrot.slane %v6113_v50, 5  ;;  %v5836_v55 = vrot.slane %v5835_v47, 4  ;;  %v9583_v12 = vld [vmem:[#allocation2 + $0x170] sm:$0xe]  ;;  %v15561_v11 = vpop.f32.mrb[6].mxu0 }
 0x37f   : > { %v15505_v29 = vpop.permute.xlu1 %8867  ;;  %8907 = vst.msk [vmem:[#allocation3 + $0xd0] sm:$0xff] %vm2940_vm13, %v15396_v58  ;;  %v9584_v40 = vld [vmem:[#allocation2 + $0x174] sm:$0x1]  ;;  %v12508_v21 = vrot.slane %v9581_v20, 9  ;;  %v9751_v33 = vrot.slane %v9582_v22, 5  ;;  %v12509_v35 = vrot.slane %v9583_v12, 9  ;;  %v6285_v58 = vsel %vm13333_vm7, %v12270_v53, %v6284_v42 }
 0x380   : > { %9497 = vrot.lane.b32.xlu1 %v12482_v25, %s13043_s14  ;;  %11036 = vst.msk [vmem:[#allocation3 + $0xd8] sm:$0xff] %vm1768_vm10, %v15452_v59  ;;  %11002 = vrot.lane.b32.xlu0 %v12610_v14, %s13039_s10  ;;  %v9755_v56 = vrot.slane %v9584_v40, 5  ;;  %v7247_v28 = vld [vmem:[#allocation2 + $0x130] sm:$0xe]  ;;  %v5841_v27 = vsel %vm13171_vm4, %v5836_v55, %v5840_v61  ;;  %v6289_v41 = vsel %vm13333_vm7, %v12271_v63, %v6288_v3  ;;  %v7248_v59 = vld [vmem:[#allocation2 + $0x134] sm:$0x1] }
 0x381   : > { %9531 = vst.msk [vmem:[#allocation3 + $0xd0] sm:$0xff] %vm3118_vm14, %v15436_v39  ;;  %v7249_v9 = vld [vmem:[#allocation2 + $0x138] sm:$0xe]  ;;  %v7250_v10 = vld [vmem:[#allocation2 + $0x13c] sm:$0x1]  ;;  %v12243_v38 = vcombine.low %v5827_v57, %v5841_v27  ;;  %v9752_v39 = vsel %vm13333_vm7, %v12508_v21, %v9751_v33  ;;  %v12350_v62 = vrot.slane %v7247_v28, 9 }
 0x382   : > { %9899 = vst.msk [vmem:[#allocation3 + $0xd0] sm:$0xff] %vm3743_vm15, %v15465_v13  ;;  %v9756_v4 = vsel %vm13333_vm7, %v12509_v35, %v9755_v56  ;;  %v7421_v37 = vrot.slane %v7248_v59, 5  ;;  %v12351_v7 = vrot.slane %v7249_v9, 9  ;;  %v7425_v46 = vrot.slane %v7250_v10, 5  ;;  %v12969_v18 = vld [vmem:[#allocation2 + $0x130] ss:$8 sps:$4 sm:$0xff]  }
 0x383   : > { %v5395_v19 = vpop.permute.xlu1 %5394  ;;  %v12530_v8 = vcombine.low %v9752_v39, %v9756_v4  ;;  %v12291_v13 = vcombine.low %v6285_v58, %v6289_v41  ;;  %v7792_v23 = vld [vmem:[#allocation2 + $0x170] sm:$0xf]  ;;  %v7793_v52 = vld [vmem:[#allocation2 + $0x174] sm:$0x1]  ;;  %v7794_v36 = vld [vmem:[#allocation2 + $0x178] sm:$0xf] }
 0x384   : > { %5434 = vst.msk [vmem:[#allocation3 + $0x108] sm:$0xff] %vm2571_vm12, %v5395_v19  ;;  %6024 = vrot.lane.b32.xlu1 %v12243_v38, %s13042_s13  ;;  %v7422_v0 = vsel %vm13333_vm7, %v12350_v62, %v7421_v37  ;;  %v7426_v44 = vsel %vm13333_vm7, %v12351_v7, %v7425_v46  ;;  %v7795_v5 = vld [vmem:[#allocation2 + $0x17c] sm:$0x1]  ;;  %v8121_v19 = vshrl.u32 %v7792_v23, 16  ;;  %v8124_v25 = vshll.u32 %v7792_v23, 16 }
 0x385   : > { %9865 = vrot.lane.b32.xlu0 %v12530_v8, %s13044_s15  ;;  %v8130_v48 = vshll.u32 %v7793_v52, 16  ;;  %v8135_v61 = vshrl.u32 %v7794_v36, 16  ;;  %v8138_v54 = vshll.u32 %v7794_v36, 16  ;;  %v8144_v43 = vshll.u32 %v7795_v5, 16  ;;  %v12970_v6 = vld [vmem:[#allocation2 + $0x170] ss:$8 sps:$4 sm:$0xff]  }
 0x386   : > { %v15559_v26 = vpop.permute.xlu0 %10628  ;;  %v8123_v2 = vrot.slane %v8121_v19, 4  ;;  %v8126_v47 = vrot.slane %v8124_v25, 5  ;;  %v12371_v53 = vcombine.low %v7422_v0, %v7426_v44  ;;  %v574_v3 = vld [vmem:[%s13924_s6 + $0x40] sm:$0xf]  ;;  %v8416_v55 = vld [vmem:[#allocation2 + $0x170] sm:$0xe] }
 0x387   : > { %v15564_v34 = vpop.permute.xlu1 %10996  ;;  %v11073_v30 = vld [vmem:[#allocation3 + $0xd8] sm:$0xff]  ;;  %v8132_v42 = vrot.slane %v8130_v48, 5  ;;  %v8137_v14 = vrot.slane %v8135_v61, 4  ;;  %v8140_v63 = vrot.slane %v8138_v54, 5  ;;  %v8146_v57 = vrot.slane %v8144_v43, 5 }
 0x388   : > { %12650 = vmatprep.mubr.msk.bf16.mxu1 %vm11333_vm2, %v11073_v30  ;;  %6392 = vrot.lane.b32.xlu1 %v12291_v13, %s13043_s14  ;;  %v8127_v22 = vor.u32 %v8126_v47, %v8123_v2  ;;  %595 = vst.msk [vmem:[#allocation2 + $0x180] sm:$0xf] %vm476_vm0, %v574_v3  ;;  %v8417_v33 = vld [vmem:[#allocation2 + $0x174] sm:$0x1]  ;;  %v8418_v35 = vld [vmem:[#allocation2 + $0x178] sm:$0xe] }
 0x389   : > { %v11072_v20 = vld [vmem:[#allocation3 + $0xd0] sm:$0xff]  ;;  %6569 = vrot.lane.b32.xlu0 %v12969_v18, %s13044_s15  ;;  %v8141_v21 = vor.u32 %v8140_v63, %v8137_v14  ;;  %v8419_v56 = vld [vmem:[#allocation2 + $0x17c] sm:$0x1]  ;;  %v12430_v27 = vrot.slane %v8416_v55, 9  ;;  %v8590_v58 = vrot.slane %v8417_v33, 5  ;;  %v12431_v41 = vrot.slane %v8418_v35, 9 }
 0x38a   : > { %v15574_v50 = vpop.f32.mrb[0].mxu1  ;;  %11624 = vmatmul.mubr.bf16.gmra.mrb[24].mxu1 %v11072_v20  ;;  %v15580_v12 = vpop.permute.xlu0 %9491  ;;  %v8128_v1 = vrot.slane %v8127_v22, 4  ;;  %v6639_v59 = vld [vmem:[#allocation2 + $0xe0] sm:$0xf]  ;;  %v8594_v10 = vrot.slane %v8419_v56, 5 }
 0x38b   : > { %v11579_v40 = vpop.f32.mrb[1].mxu1  ;;  %v15582_v28 = vpop.permute.xlu1 %9859  ;;  %v8142_v9 = vrot.slane %v8141_v21, 4  ;;  %v6640_v38 = vld [vmem:[#allocation2 + $0xe4] sm:$0x1]  ;;  %v6641_v39 = vld [vmem:[#allocation2 + $0xe8] sm:$0xf]  ;;  %v8591_v62 = vsel %vm13333_vm7, %v12430_v27, %v8590_v58 }
 0x38c   : > { %7529 = vrot.lane.b32.xlu1 %v12371_v53, %s13038_s9  ;;  %v8133_v4 = vsel %vm13171_vm4, %v8128_v1, %v8132_v42  ;;  %v6872_v24 = vshrl.u32 %v6639_v59, 16  ;;  %v6875_v8 = vshll.u32 %v6639_v59, 16  ;;  %v8595_v7 = vsel %vm13333_vm7, %v12431_v41, %v8594_v10  ;;  %v6642_v46 = vld [vmem:[#allocation2 + $0xec] sm:$0x1]  ;;  %v575_v44 = vld [vmem:[%s13924_s6 + $0x44] sm:$0x1] }
 0x38d   : > { %7706 = vrot.lane.b32.xlu0 %v12970_v6, %s13039_s10  ;;  %v8147_v37 = vsel %vm13171_vm4, %v8142_v9, %v8146_v57  ;;  %v6881_v18 = vshll.u32 %v6640_v38, 16  ;;  %v6886_v13 = vshrl.u32 %v6641_v39, 16  ;;  %v12451_v52 = vcombine.low %v8591_v62, %v8595_v7  ;;  %v576_v5 = vld [vmem:[%s13924_s6 + $0x48] sm:$0xf]  ;;  %596 = vst.msk [vmem:[#allocation2 + $0x184] sm:$0x1] %vm478_vm1, %v575_v44 }
 0x38e   : > { %v12403_v23 = vcombine.low %v8133_v4, %v8147_v37  ;;  %v6874_v36 = vrot.slane %v6872_v24, 4  ;;  %v6877_v0 = vrot.slane %v6875_v8, 5  ;;  %597 = vst.msk [vmem:[#allocation2 + $0x188] sm:$0xf] %vm476_vm0, %v576_v5  ;;  %v6889_v30 = vshll.u32 %v6641_v39, 16  ;;  %v15618_v62 = vpop.f32.mrb[2].mxu1 }
 0x38f   : > { %v12971_v25 = vld [vmem:[#allocation2 + $0x178] ss:$8 sps:$4 sm:$0xff]   ;;  %v6888_v48 = vrot.slane %v6886_v13, 4  ;;  %v6564_v61 = vpop.permute.xlu1 %6563  ;;  %v6895_v2 = vshll.u32 %v6642_v46, 16  ;;  %v577_v47 = vld [vmem:[%s13924_s6 + $0x4c] sm:$0x1] }
 0x390   : > { %v6019_v19 = vpop.permute.xlu0 %6018  ;;  %8330 = vrot.lane.b32.xlu1 %v12403_v23, %s13040_s11  ;;  %v6878_v54 = vor.u32 %v6877_v0, %v6874_v36  ;;  %v10098_v43 = vld [vmem:[#allocation2 + $0x180] sm:$0xf]  ;;  %598 = vst.msk [vmem:[#allocation2 + $0x18c] sm:$0x1] %vm478_vm1, %v577_v47  ;;  %v8961_v14 = vld [vmem:[#allocation2 + $0x178] sm:$0xf] }
 0x391   : > { %6058 = vst.msk [vmem:[#allocation3 + $0x108] sm:$0xff] %vm2940_vm13, %v6019_v19  ;;  %8698 = vrot.lane.b32.xlu0 %v12451_v52, %s13041_s12  ;;  %v10427_v6 = vshrl.u32 %v10098_v43, 16  ;;  %v10430_v53 = vshll.u32 %v10098_v43, 16  ;;  %v15604_v42 = vld [vmem:[#allocation2 + $0x180] sm:$0xe]  ;;  %v6883_v3 = vrot.slane %v6881_v18, 5 }
 0x392   : > { %v6879_v63 = vrot.slane %v6878_v54, 4  ;;  %v6891_v20 = vrot.slane %v6889_v30, 5  ;;  %v6897_v22 = vrot.slane %v6895_v2, 5  ;;  %v8962_v57 = vld [vmem:[#allocation2 + $0x17c] sm:$0x1]  ;;  %v9290_v35 = vshrl.u32 %v8961_v14, 16 }
 0x393   : > { %v10429_v40 = vrot.slane %v10427_v6, 4  ;;  %v10432_v21 = vrot.slane %v10430_v53, 5  ;;  %v8963_v33 = vld [vmem:[#allocation2 + $0x180] sm:$0xf]  ;;  %v9293_v56 = vshll.u32 %v8961_v14, 16  ;;  %v12590_v58 = vrot.slane %v15604_v42, 9  ;;  %v15616_v4 = vpop.permute.xlu1 %7700 }
 0x394   : > { %v6387_v55 = vpop.permute.xlu0 %6386  ;;  %8875 = vrot.lane.b32.xlu1 %v12971_v25, %s13042_s13  ;;  %v6892_v1 = vor.u32 %v6891_v20, %v6888_v48  ;;  %v12972_v27 = vld [vmem:[#allocation2 + $0x148] ss:$8 sps:$4 sm:$0xff]   ;;  %v9299_v41 = vshll.u32 %v8962_v57, 16  ;;  %v9304_v59 = vshrl.u32 %v8963_v33, 16  ;;  %v9292_v10 = vrot.slane %v9290_v35, 4  ;;  %v11582_v53 = vpop.f32.mrb[3].mxu1 }
 0x395   : > { %6426 = vst.msk [vmem:[#allocation3 + $0x108] sm:$0xff] %vm3118_vm14, %v6387_v55  ;;  %v10433_v9 = vor.u32 %v10432_v21, %v10429_v40  ;;  %v9295_v38 = vrot.slane %v9293_v56, 5  ;;  %v9307_v39 = vshll.u32 %v8963_v33, 16  ;;  %v6884_v24 = vsel %vm13171_vm4, %v6879_v63, %v6883_v3  ;;  %v10099_v37 = vld [vmem:[#allocation2 + $0x184] sm:$0x1] }
 0x396   : > { %6603 = vst.msk [vmem:[#allocation3 + $0x108] sm:$0xff] %vm3743_vm15, %v6564_v61  ;;  %v6893_v8 = vrot.slane %v6892_v1, 4  ;;  %v10100_v7 = vld [vmem:[#allocation2 + $0x188] sm:$0xf]  ;;  %v15622_v46 = vrot.slane %v9299_v41, 5  ;;  %v10436_v23 = vshll.u32 %v10099_v37, 16 }
 0x397   : > { %v15626_v13 = vrot.slane %v10433_v9, 4  ;;  %v10441_v52 = vshrl.u32 %v10100_v7, 16  ;;  %v10444_v36 = vshll.u32 %v10100_v7, 16  ;;  %v10723_v0 = vld [vmem:[#allocation2 + $0x184] sm:$0x1]  ;;  %v9296_v48 = vor.u32 %v9295_v38, %v9292_v10  ;;  %v15639_v56 = vpop.permute.xlu1 %8692 }
 0x398   : > { %v15624_v18 = vpop.permute.xlu0 %7523  ;;  %v6898_v44 = vsel %vm13171_vm4, %v6893_v8, %v6897_v22  ;;  %5402 = vrot.lane.b32.xlu1 %v12972_v27, %s13041_s12  ;;  %v10101_v5 = vld [vmem:[#allocation2 + $0x18c] sm:$0x1]  ;;  %v10724_v19 = vld [vmem:[#allocation2 + $0x188] sm:$0xe]  ;;  %v10438_v54 = vrot.slane %v10436_v23, 5  ;;  %v10896_v14 = vrot.slane %v10723_v0, 5 }
 0x399   : > { %v10725_v25 = vld [vmem:[#allocation2 + $0x18c] sm:$0x1]  ;;  %v12319_v61 = vcombine.low %v6884_v24, %v6898_v44  ;;  %v10443_v30 = vrot.slane %v10441_v52, 4  ;;  %v10446_v2 = vrot.slane %v10444_v36, 5  ;;  %v9585_v47 = vld [vmem:[#allocation2 + $0x178] sm:$0xe] }
 0x39a   : > { %v9586_v43 = vld [vmem:[#allocation2 + $0x17c] sm:$0x1]  ;;  %v9587_v6 = vld [vmem:[#allocation2 + $0x180] sm:$0xe]  ;;  %v10450_v42 = vshll.u32 %v10101_v5, 16  ;;  %v12591_v63 = vrot.slane %v10724_v19, 9  ;;  %v10439_v57 = vsel %vm13171_vm4, %v15626_v13, %v10438_v54  ;;  %v10897_v27 = vsel %vm13333_vm7, %v12590_v58, %v10896_v14 }
 0x39b   : > { %v10900_v3 = vrot.slane %v10725_v25, 5  ;;  %v8964_v20 = vld [vmem:[#allocation2 + $0x184] sm:$0x1]  ;;  %7194 = vst.msk [vmem:[#allocation3 + $0xf0] sm:$0xff] %vm768_vm8, %v12319_v61  ;;  %v10447_v55 = vor.u32 %v10446_v2, %v10443_v30  ;;  %v15637_v40 = vrot.slane %v9296_v48, 4  ;;  %v9306_v21 = vrot.slane %v9304_v59, 4 }
 0x39c   : > { %v15631_v22 = vpop.permute.xlu0 %8324  ;;  %v9588_v33 = vld [vmem:[#allocation2 + $0x184] sm:$0x1]  ;;  %v5490_v35 = vld [vmem:[#allocation2 + $0x148] sm:$0xf]  ;;  %7562 = vst.msk [vmem:[#allocation3 + $0xf0] sm:$0xff] %vm1396_vm9, %v15481_v17  ;;  %v10452_v1 = vrot.slane %v10450_v42, 5 }
 0x39d   : > { %v10901_v41 = vsel %vm13333_vm7, %v12591_v63, %v10900_v3  ;;  %v9309_v9 = vrot.slane %v9307_v39, 5  ;;  %v5491_v10 = vld [vmem:[#allocation2 + $0x14c] sm:$0x1]  ;;  %v5492_v38 = vld [vmem:[#allocation2 + $0x150] sm:$0xf]  ;;  %v10448_v24 = vrot.slane %v10447_v55, 4  ;;  %v9302_v17 = vsel %vm13171_vm4, %v15637_v40, %v15622_v46 }
 0x39e   : > { %7739 = vst.msk [vmem:[#allocation3 + $0xf0] sm:$0xff] %vm1768_vm10, %v15503_v31  ;;  %v12611_v59 = vcombine.low %v10897_v27, %v10901_v41  ;;  %v9313_v8 = vshll.u32 %v8964_v20, 16  ;;  %v11078_v37 = vld [vmem:[#allocation3 + $0x100] sm:$0xff]  ;;  %v12510_v7 = vrot.slane %v9585_v47, 9  ;;  %v9759_v39 = vrot.slane %v9586_v43, 5  ;;  %v11079_v52 = vld [vmem:[#allocation3 + $0x108] sm:$0xff] }
 0x39f   : > { %8363 = vst.msk [vmem:[#allocation3 + $0xf0] sm:$0xff] %vm1946_vm11, %v15490_v15  ;;  %v9310_v58 = vor.u32 %v9309_v9, %v9306_v21  ;;  %v12511_v13 = vrot.slane %v9587_v6, 9  ;;  %v12973_v23 = vld [vmem:[#allocation2 + $0x130] ss:$8 sps:$4 sm:$0xff]   ;;  %v10453_v31 = vsel %vm13171_vm4, %v10448_v24, %v10452_v1  ;;  %v9763_v46 = vrot.slane %v9588_v33, 5  ;;  %11478 = vmatprep.mubr.bf16.mxu0 %v11079_v52  ;;  %v12688_v15 = vpop.f32.mrb[7].mxu0 }
 0x3a0   : > { %v15655_v36 = vpop.permute.xlu0 %8869  ;;  %11004 = vrot.lane.b32.xlu1 %v12611_v59, %s13039_s10  ;;  %v9315_v0 = vrot.slane %v9313_v8, 5  ;;  %8731 = vst.msk [vmem:[#allocation3 + $0xf0] sm:$0xff] %vm2571_vm12, %v15531_v16  ;;  %v5843_v44 = vshrl.u32 %v5490_v35, 16  ;;  %v12563_v5 = vcombine.low %v10439_v57, %v10453_v31  ;;  %v9760_v25 = vsel %vm13333_vm7, %v12510_v7, %v9759_v39  ;;  %v5493_v48 = vld [vmem:[#allocation2 + $0x154] sm:$0x1]  ;;  %11479 = vmatmul.mubr.bf16.gmra.mrb[32].mxu0 %v11078_v37 }
 0x3a1   : > { %v9311_v19 = vrot.slane %v9310_v58, 4  ;;  %8908 = vst.msk [vmem:[#allocation3 + $0xf0] sm:$0xff] %vm2940_vm13, %v15505_v29  ;;  %v5846_v61 = vshll.u32 %v5490_v35, 16  ;;  %v9764_v16 = vsel %vm13333_vm7, %v12511_v13, %v9763_v46  ;;  %v5852_v30 = vshll.u32 %v5491_v10, 16  ;;  %v15671_v47 = vld [vmem:[#allocation2 + $0x148] sm:$0xe]  ;;  %v15682_v29 = vpop.permute.xlu1 %10630 }
 0x3a2   : > { %10045 = vst.msk [vmem:[#allocation3 + $0xf8] sm:$0xff] %vm768_vm8, %v12973_v23  ;;  %v5845_v54 = vrot.slane %v5843_v44, 4  ;;  %v5857_v2 = vshrl.u32 %v5492_v38, 16  ;;  %10636 = vrot.lane.b32.xlu0 %v12563_v5, %s13038_s9  ;;  %v5860_v42 = vshll.u32 %v5492_v38, 16  ;;  %v12974_v14 = vld [vmem:[#allocation2 + $0x150] ss:$8 sps:$4 sm:$0xff]   ;;  %v15698_v24 = vadd.f32 %v12688_v15, %v15561_v11 }
 0x3a3   : > { %10669 = vst.msk [vmem:[#allocation3 + $0xf8] sm:$0xff] %vm1396_vm9, %v15559_v26  ;;  %v9316_v6 = vsel %vm13171_vm4, %v9311_v19, %v9315_v0  ;;  %v12531_v26 = vcombine.low %v9760_v25, %v9764_v16  ;;  %v5848_v53 = vrot.slane %v5846_v61, 5  ;;  %v6115_v63 = vld [vmem:[#allocation2 + $0x14c] sm:$0x1]  ;;  %v5866_v55 = vshll.u32 %v5493_v48, 16 }
 0x3a4   : > { %9532 = vst.msk [vmem:[#allocation3 + $0xf0] sm:$0xff] %vm3118_vm14, %v15580_v12  ;;  %v6116_v12 = vld [vmem:[#allocation2 + $0x150] sm:$0xe]  ;;  %v5397_v3 = vpop.permute.xlu0 %5396  ;;  %v12483_v20 = vcombine.low %v9302_v17, %v9316_v6  ;;  %v5859_v57 = vrot.slane %v5857_v2, 4  ;;  %v6117_v40 = vld [vmem:[#allocation2 + $0x154] sm:$0x1] }
 0x3a5   : > { %11037 = vst.msk [vmem:[#allocation3 + $0xf8] sm:$0xff] %vm1768_vm10, %v15564_v34  ;;  %9867 = vrot.lane.b32.xlu1 %v12531_v26, %s13044_s15  ;;  %v5849_v33 = vor.u32 %v5848_v53, %v5845_v54  ;;  %v5854_v35 = vrot.slane %v5852_v30, 5  ;;  %v5862_v1 = vrot.slane %v5860_v42, 5  ;;  %v12272_v27 = vrot.slane %v15671_v47, 9  ;;  %v599_v34 = vld [vmem:[%s15680_s26] sm:$0xf] }
 0x3a6   : > { %9900 = vst.msk [vmem:[#allocation3 + $0xf0] sm:$0xff] %vm3743_vm15, %v15582_v28  ;;  %v5868_v9 = vrot.slane %v5866_v55, 5  ;;  %v6292_v28 = vrot.slane %v6115_v63, 5  ;;  %v12273_v10 = vrot.slane %v6116_v12, 9  ;;  %v601_v38 = vld [vmem:[%s15680_s26 + $0x8] sm:$0xf]  ;;  %9499 = vrot.lane.b32.xlu0 %v12483_v20, %s13043_s14 }
 0x3a7   : > { %5435 = vst.msk [vmem:[#allocation3 + $0x128] sm:$0xff] %vm2571_vm12, %v5397_v3  ;;  %v5850_v17 = vrot.slane %v5849_v33, 4  ;;  %v5863_v8 = vor.u32 %v5862_v1, %v5859_v57  ;;  %v6296_v37 = vrot.slane %v6117_v40, 5  ;;  %v7251_v58 = vld [vmem:[#allocation2 + $0x150] sm:$0xe] }
 0x3a8   : > { %620 = vst.msk [vmem:[#allocation2 + $0x190] sm:$0xf] %vm476_vm0, %v599_v34  ;;  %622 = vst.msk [vmem:[#allocation2 + $0x198] sm:$0xf] %vm476_vm0, %v601_v38  ;;  %v7252_v7 = vld [vmem:[#allocation2 + $0x154] sm:$0x1]  ;;  %v6293_v2 = vsel %vm13333_vm7, %v12272_v27, %v6292_v28 }
 0x3a9   : > { %v7253_v13 = vld [vmem:[#allocation2 + $0x158] sm:$0xe]  ;;  %v7254_v23 = vld [vmem:[#allocation2 + $0x15c] sm:$0x1]  ;;  %v12352_v11 = vrot.slane %v7251_v58, 9  ;;  %v7429_v52 = vrot.slane %v7252_v7, 5  ;;  %v5855_v46 = vsel %vm13171_vm4, %v5850_v17, %v5854_v35  ;;  %6571 = vrot.lane.b32.xlu1 %v12974_v14, %s13044_s15  ;;  %v6297_v47 = vsel %vm13333_vm7, %v12273_v10, %v6296_v37 }
 0x3aa   : > { %v12690_v43 = vpop.f32.mrb[8].mxu0  ;;  %v15704_v31 = vpop.permute.xlu1 %9493  ;;  %v5864_v44 = vrot.slane %v5863_v8, 4  ;;  %v12353_v15 = vrot.slane %v7253_v13, 9  ;;  %v600_v5 = vld [vmem:[%s15680_s26 + $0x4] sm:$0x1]  ;;  %v7433_v25 = vrot.slane %v7254_v23, 5  ;;  %v12292_v63 = vcombine.low %v6293_v2, %v6297_v47 }
 0x3ab   : > { %v12691_v21 = vpop.f32.mrb[9].mxu0  ;;  %v602_v19 = vld [vmem:[%s15680_s26 + $0xc] sm:$0x1]  ;;  %621 = vst.msk [vmem:[#allocation2 + $0x194] sm:$0x1] %vm478_vm1, %v600_v5  ;;  %v15717_v54 = vpop.permute.xlu0 %10998  ;;  %v7430_v3 = vsel %vm13333_vm7, %v12352_v11, %v7429_v52 }
 0x3ac   : > { %v12693_v41 = vpop.f32.mrb[10].mxu0  ;;  %v15702_v39 = vadd.f32 %v12691_v21, %v12690_v43  ;;  %623 = vst.msk [vmem:[#allocation2 + $0x19c] sm:$0x1] %vm478_vm1, %v602_v19  ;;  %v603_v48 = vld [vmem:[%s15680_s26 + $0x10] sm:$0xf]  ;;  %v11077_v16 = vld [vmem:[#allocation3 + $0xf8] sm:$0xff]  ;;  %v5869_v30 = vsel %vm13171_vm4, %v5864_v44, %v5868_v9  ;;  %v7434_v20 = vsel %vm13333_vm7, %v12353_v15, %v7433_v25 }
 0x3ad   : > { %v12694_v59 = vpop.f32.mrb[11].mxu0  ;;  %v604_v61 = vld [vmem:[%s15680_s26 + $0x14] sm:$0x1]  ;;  %v605_v43 = vld [vmem:[%s15680_s26 + $0x18] sm:$0xf]  ;;  %12651 = vmatprep.mubr.msk.bf16.mxu1 %vm11333_vm2, %v11077_v16  ;;  %v12244_v26 = vcombine.low %v5855_v46, %v5869_v30  ;;  %v12372_v10 = vcombine.low %v7430_v3, %v7434_v20  ;;  %v15755_v20 = vpop.f32.mrb[4].mxu1 }
 0x3ae   : > { %v15706_v0 = vadd.f32 %v12694_v59, %v12693_v41  ;;  %v606_v6 = vld [vmem:[%s15680_s26 + $0x1c] sm:$0x1]  ;;  %624 = vst.msk [vmem:[#allocation2 + $0x1a0] sm:$0xf] %vm476_vm0, %v603_v48  ;;  %626 = vst.msk [vmem:[#allocation2 + $0x1a8] sm:$0xf] %vm476_vm0, %v605_v43 }
 0x3af   : > { %625 = vst.msk [vmem:[#allocation2 + $0x1a4] sm:$0x1] %vm478_vm1, %v604_v61  ;;  %627 = vst.msk [vmem:[#allocation2 + $0x1ac] sm:$0x1] %vm478_vm1, %v606_v6  ;;  %v15732_v53 = vld [vmem:[#allocation2 + $0x100] sm:$0xf]  ;;  %6026 = vrot.lane.b32.xlu0 %v12244_v26, %s13042_s13  ;;  %v6021_v55 = vpop.permute.xlu1 %6020 }
 0x3b0   : > { %v8420_v42 = vld [vmem:[#allocation2 + $0x190] sm:$0xe]  ;;  %v8422_v57 = vld [vmem:[#allocation2 + $0x198] sm:$0xe]  ;;  %6059 = vst.msk [vmem:[#allocation3 + $0x128] sm:$0xff] %vm2940_vm13, %v6021_v55  ;;  %v15740_v27 = vpop.permute.xlu0 %9861  ;;  %v6900_v9 = vshrl.u32 %v15732_v53, 16 }
 0x3b1   : > { %v7796_v14 = vld [vmem:[#allocation2 + $0x190] sm:$0xf]  ;;  %v12432_v40 = vrot.slane %v8420_v42, 9  ;;  %v12433_v21 = vrot.slane %v8422_v57, 9  ;;  %v7798_v33 = vld [vmem:[#allocation2 + $0x198] sm:$0xf] }
 0x3b2   : > { %v12975_v12 = vld [vmem:[#allocation2 + $0x190] ss:$8 sps:$4 sm:$0xff]   ;;  %v8149_v35 = vshrl.u32 %v7796_v14, 16  ;;  %v8152_v1 = vshll.u32 %v7796_v14, 16  ;;  %v8163_v34 = vshrl.u32 %v7798_v33, 16  ;;  %v8166_v41 = vshll.u32 %v7798_v33, 16 }
 0x3b3   : > { %7708 = vrot.lane.b32.xlu1 %v12975_v12, %s13039_s10  ;;  %v6903_v28 = vshll.u32 %v15732_v53, 16  ;;  %v8421_v38 = vld [vmem:[#allocation2 + $0x194] sm:$0x1]  ;;  %v8423_v59 = vld [vmem:[#allocation2 + $0x19c] sm:$0x1]  ;;  %6394 = vrot.lane.b32.xlu0 %v12292_v63, %s13043_s14  ;;  %v6389_v23 = vpop.permute.xlu1 %6388 }
 0x3b4   : > { %v7797_v17 = vld [vmem:[#allocation2 + $0x194] sm:$0x1]  ;;  %v8598_v8 = vrot.slane %v8421_v38, 5  ;;  %v8602_v37 = vrot.slane %v8423_v59, 5  ;;  %v7799_v58 = vld [vmem:[#allocation2 + $0x19c] sm:$0x1]  ;;  %v6566_v5 = vpop.permute.xlu0 %6565 }
 0x3b5   : > { %v8151_v7 = vrot.slane %v8149_v35, 4  ;;  %v8154_v13 = vrot.slane %v8152_v1, 5  ;;  %v8158_v11 = vshll.u32 %v7797_v17, 16  ;;  %v8165_v52 = vrot.slane %v8163_v34, 4  ;;  %v10102_v15 = vld [vmem:[#allocation2 + $0x1a0] sm:$0xf] }
 0x3b6   : > { %v8168_v46 = vrot.slane %v8166_v41, 5  ;;  %v8172_v44 = vshll.u32 %v7799_v58, 16  ;;  %6427 = vst.msk [vmem:[#allocation3 + $0x128] sm:$0xff] %vm3118_vm14, %v6389_v23  ;;  %v8599_v19 = vsel %vm13333_vm7, %v12432_v40, %v8598_v8  ;;  %v8603_v25 = vsel %vm13333_vm7, %v12433_v21, %v8602_v37  ;;  %v10103_v61 = vld [vmem:[#allocation2 + $0x1a4] sm:$0x1]  ;;  %v11076_v12 = vld [vmem:[#allocation3 + $0xf0] sm:$0xff] }
 0x3b7   : > { %v8155_v48 = vor.u32 %v8154_v13, %v8151_v7  ;;  %v10104_v16 = vld [vmem:[#allocation2 + $0x1a8] sm:$0xf]  ;;  %v10105_v30 = vld [vmem:[#allocation2 + $0x1ac] sm:$0x1]  ;;  %6604 = vst.msk [vmem:[#allocation3 + $0x128] sm:$0xff] %vm3743_vm15, %v6566_v5  ;;  %v12452_v2 = vcombine.low %v8599_v19, %v8603_v25  ;;  %v8160_v47 = vrot.slane %v8158_v11, 5  ;;  %7531 = vrot.lane.b32.xlu0 %v12372_v10, %s13038_s9  ;;  %v15753_v3 = vpop.permute.xlu1 %7525  ;;  %11632 = vmatmul.mubr.bf16.gmra.mrb[28].mxu1 %v11076_v12 }
 0x3b8   : > { %v8169_v43 = vor.u32 %v8168_v46, %v8165_v52  ;;  %v8174_v6 = vrot.slane %v8172_v44, 5  ;;  %v10455_v53 = vshrl.u32 %v10102_v15, 16  ;;  %v10458_v42 = vshll.u32 %v10102_v15, 16  ;;  %v6644_v63 = vld [vmem:[#allocation2 + $0x104] sm:$0x1]  ;;  %v11587_v38 = vpop.f32.mrb[5].mxu1 }
 0x3b9   : > { %v8156_v26 = vrot.slane %v8155_v48, 4  ;;  %v10464_v14 = vshll.u32 %v10103_v61, 16  ;;  %8700 = vrot.lane.b32.xlu1 %v12452_v2, %s13041_s12  ;;  %v10469_v55 = vshrl.u32 %v10104_v16, 16  ;;  %v10472_v40 = vshll.u32 %v10104_v16, 16  ;;  %v6645_v33 = vld [vmem:[#allocation2 + $0x108] sm:$0xf]  ;;  %v15773_v38 = vpop.permute.xlu0 %7702 }
 0x3ba   : > { %v8170_v57 = vrot.slane %v8169_v43, 4  ;;  %v10478_v21 = vshll.u32 %v10105_v30, 16  ;;  %v10457_v1 = vrot.slane %v10455_v53, 4  ;;  %v10460_v34 = vrot.slane %v10458_v42, 5  ;;  %v6646_v10 = vld [vmem:[#allocation2 + $0x10c] sm:$0x1] }
 0x3bb   : > { %v8161_v35 = vsel %vm13171_vm4, %v8156_v26, %v8160_v47  ;;  %v10466_v41 = vrot.slane %v10464_v14, 5  ;;  %v10471_v17 = vrot.slane %v10469_v55, 4  ;;  %v10474_v8 = vrot.slane %v10472_v40, 5  ;;  %v8965_v58 = vld [vmem:[#allocation2 + $0x198] sm:$0xf]  ;;  %v15762_v7 = vpop.f32.mrb[6].mxu1 }
 0x3bc   : > { %v8175_v59 = vsel %vm13171_vm4, %v8170_v57, %v8174_v6  ;;  %v10480_v37 = vrot.slane %v10478_v21, 5  ;;  %v10461_v23 = vor.u32 %v10460_v34, %v10457_v1  ;;  %v12976_v11 = vld [vmem:[#allocation2 + $0x198] ss:$8 sps:$4 sm:$0xff]   ;;  %v6902_v52 = vrot.slane %v6900_v9, 4  ;;  %v15764_v48 = vpop.permute.xlu1 %8326  ;;  %v8966_v47 = vld [vmem:[#allocation2 + $0x19c] sm:$0x1] }
 0x3bd   : > { %v12404_v13 = vcombine.low %v8161_v35, %v8175_v59  ;;  %v6905_v46 = vrot.slane %v6903_v28, 5  ;;  %v11082_v44 = vld [vmem:[#allocation3 + $0x120] sm:$0xff]  ;;  %v10475_v15 = vor.u32 %v10474_v8, %v10471_v17  ;;  %v6909_v5 = vshll.u32 %v6644_v63, 16  ;;  %v11590_v6 = vpop.f32.mrb[7].mxu1 }
 0x3be   : > { %v6914_v19 = vshrl.u32 %v6645_v33, 16  ;;  %v6917_v25 = vshll.u32 %v6645_v33, 16  ;;  %v11083_v61 = vld [vmem:[#allocation3 + $0x128] sm:$0xff]  ;;  %v10462_v16 = vrot.slane %v10461_v23, 4  ;;  %v6923_v2 = vshll.u32 %v6646_v10, 16 }
 0x3bf   : > { %8332 = vrot.lane.b32.xlu0 %v12404_v13, %s13040_s11  ;;  %v6906_v30 = vor.u32 %v6905_v46, %v6902_v52  ;;  %v9318_v43 = vshrl.u32 %v8965_v58, 16  ;;  %11486 = vmatprep.mubr.bf16.mxu0 %v11083_v61  ;;  %v10476_v26 = vrot.slane %v10475_v15, 4  ;;  %v6911_v9 = vrot.slane %v6909_v5, 5  ;;  %v8967_v42 = vld [vmem:[#allocation2 + $0x1a0] sm:$0xf] }
 0x3c0   : > { %v6916_v28 = vrot.slane %v6914_v19, 4  ;;  %v6919_v53 = vrot.slane %v6917_v25, 5  ;;  %11487 = vmatmul.mubr.bf16.gmra.mrb[36].mxu0 %v11082_v44  ;;  %v10467_v14 = vsel %vm13171_vm4, %v10462_v16, %v10466_v41  ;;  %v6925_v12 = vrot.slane %v6923_v2, 5  ;;  %v8968_v57 = vld [vmem:[#allocation2 + $0x1a4] sm:$0x1]  ;;  %v15775_v59 = vpop.permute.xlu1 %8871 }
 0x3c1   : > { %v6907_v63 = vrot.slane %v6906_v30, 4  ;;  %v9320_v55 = vrot.slane %v9318_v43, 4  ;;  %v10481_v21 = vsel %vm13171_vm4, %v10476_v26, %v10480_v37  ;;  %v9321_v35 = vshll.u32 %v8965_v58, 16  ;;  %v12977_v34 = vld [vmem:[#allocation2 + $0x158] ss:$8 sps:$4 sm:$0xff]  }
 0x3c2   : > { %v6920_v33 = vor.u32 %v6919_v53, %v6916_v28  ;;  %v9327_v1 = vshll.u32 %v8966_v47, 16  ;;  %v5494_v10 = vld [vmem:[#allocation2 + $0x158] sm:$0xf]  ;;  %v12564_v17 = vcombine.low %v10467_v14, %v10481_v21  ;;  %v9332_v8 = vshrl.u32 %v8967_v42, 16  ;;  %v5495_v23 = vld [vmem:[#allocation2 + $0x15c] sm:$0x1] }
 0x3c3   : > { %8877 = vrot.lane.b32.xlu0 %v12976_v11, %s13042_s13  ;;  %v6912_v41 = vsel %vm13171_vm4, %v6907_v63, %v6911_v9  ;;  %v9335_v13 = vshll.u32 %v8967_v42, 16  ;;  %v5496_v52 = vld [vmem:[#allocation2 + $0x160] sm:$0xf]  ;;  %v9323_v46 = vrot.slane %v9321_v35, 5  ;;  %v9341_v44 = vshll.u32 %v8968_v57, 16 }
 0x3c4   : > { %v6921_v37 = vrot.slane %v6920_v33, 4  ;;  %v9329_v58 = vrot.slane %v9327_v1, 5  ;;  %v5497_v15 = vld [vmem:[#allocation2 + $0x164] sm:$0x1]  ;;  %v10726_v5 = vld [vmem:[#allocation2 + $0x1a0] sm:$0xe]  ;;  %10638 = vrot.lane.b32.xlu1 %v12564_v17, %s13038_s9  ;;  %v5399_v26 = vpop.permute.xlu1 %5398  ;;  %v15787_v1 = vpop.permute.xlu0 %8694 }
 0x3c5   : > { %v15769_v40 = vpop.f32.mrb[12].mxu0  ;;  %v9334_v19 = vrot.slane %v9332_v8, 4  ;;  %v9337_v25 = vrot.slane %v9335_v13, 5  ;;  %v5871_v61 = vshrl.u32 %v5494_v10, 16  ;;  %v5874_v16 = vshll.u32 %v5494_v10, 16  ;;  %5436 = vst.msk [vmem:[#allocation3 + $0x148] sm:$0xff] %vm2571_vm12, %v5399_v26 }
 0x3c6   : > { %v10727_v11 = vld [vmem:[#allocation2 + $0x1a4] sm:$0x1]  ;;  %v6926_v30 = vsel %vm13171_vm4, %v6921_v37, %v6925_v12  ;;  %v9324_v2 = vor.u32 %v9323_v46, %v9320_v55  ;;  %v9343_v47 = vrot.slane %v9341_v44, 5  ;;  %v5880_v43 = vshll.u32 %v5495_v23, 16  ;;  %v10728_v6 = vld [vmem:[#allocation2 + $0x1a8] sm:$0xe] }
 0x3c7   : > { %v12320_v9 = vcombine.low %v6912_v41, %v6926_v30  ;;  %v9338_v28 = vor.u32 %v9337_v25, %v9334_v19  ;;  %5404 = vrot.lane.b32.xlu0 %v12977_v34, %s13041_s12  ;;  %v5873_v53 = vrot.slane %v5871_v61, 4  ;;  %v5876_v42 = vrot.slane %v5874_v16, 5  ;;  %v10729_v14 = vld [vmem:[#allocation2 + $0x1ac] sm:$0x1]  ;;  %v12978_v63 = vld [vmem:[#allocation2 + $0x150] ss:$8 sps:$4 sm:$0xff]  }
 0x3c8   : > { %v9325_v57 = vrot.slane %v9324_v2, 4  ;;  %v15785_v21 = vrot.slane %v5880_v43, 5  ;;  %v5885_v33 = vshrl.u32 %v5496_v52, 16  ;;  %v5888_v12 = vshll.u32 %v5496_v52, 16  ;;  %v6118_v55 = vld [vmem:[#allocation2 + $0x158] sm:$0xe] }
 0x3c9   : > { %v6119_v35 = vld [vmem:[#allocation2 + $0x15c] sm:$0x1]  ;;  %7195 = vst.msk [vmem:[#allocation3 + $0x110] sm:$0xff] %vm768_vm8, %v12320_v9  ;;  %v9339_v10 = vrot.slane %v9338_v28, 4  ;;  %v5877_v17 = vor.u32 %v5876_v42, %v5873_v53  ;;  %v5894_v34 = vshll.u32 %v5497_v15, 16  ;;  %v12592_v41 = vrot.slane %v10726_v5, 9  ;;  %v15823_v42 = vpop.permute.xlu0 %10632 }
 0x3ca   : > { %10046 = vst.msk [vmem:[#allocation3 + $0x118] sm:$0xff] %vm768_vm8, %v12978_v63  ;;  %v6120_v8 = vld [vmem:[#allocation2 + $0x160] sm:$0xe]  ;;  %v15791_v13 = vpop.f32.mrb[13].mxu0  ;;  %v9330_v23 = vsel %vm13171_vm4, %v9325_v57, %v9329_v58  ;;  %v5887_v52 = vrot.slane %v5885_v33, 4  ;;  %v5890_v37 = vrot.slane %v5888_v12, 5 }
 0x3cb   : > { %7563 = vst.msk [vmem:[#allocation3 + $0x110] sm:$0xff] %vm1396_vm9, %v15624_v18  ;;  %v10904_v46 = vrot.slane %v10727_v11, 5  ;;  %10670 = vst.msk [vmem:[#allocation3 + $0x118] sm:$0xff] %vm1396_vm9, %v15682_v29  ;;  %v6121_v44 = vld [vmem:[#allocation2 + $0x164] sm:$0x1]  ;;  %v15799_v15 = vpop.f32.mrb[14].mxu0  ;;  %v9344_v5 = vsel %vm13171_vm4, %v9339_v10, %v9343_v47 }
 0x3cc   : > { %7740 = vst.msk [vmem:[#allocation3 + $0x110] sm:$0xff] %vm1768_vm10, %v15616_v4  ;;  %v5878_v19 = vrot.slane %v5877_v17, 4  ;;  %v5896_v18 = vrot.slane %v5894_v34, 5  ;;  %v12593_v25 = vrot.slane %v10728_v6, 9  ;;  %v9589_v61 = vld [vmem:[#allocation2 + $0x198] sm:$0xe]  ;;  %v12484_v16 = vcombine.low %v9330_v23, %v9344_v5 }
 0x3cd   : > { %11038 = vst.msk [vmem:[#allocation3 + $0x118] sm:$0xff] %vm1768_vm10, %v15717_v54  ;;  %v15807_v58 = vpop.f32.mrb[15].mxu0  ;;  %v5891_v29 = vor.u32 %v5890_v37, %v5887_v52  ;;  %v10905_v4 = vsel %vm13333_vm7, %v12592_v41, %v10904_v46  ;;  %v10908_v11 = vrot.slane %v10729_v14, 5  ;;  %v9590_v30 = vld [vmem:[#allocation2 + $0x19c] sm:$0x1]  ;;  %v12274_v47 = vrot.slane %v6118_v55, 9  ;;  %v15829_v55 = vpop.permute.xlu1 %11000 }
 0x3ce   : > { %8364 = vst.msk [vmem:[#allocation3 + $0x110] sm:$0xff] %vm1946_vm11, %v15631_v22  ;;  %v9591_v2 = vld [vmem:[#allocation2 + $0x1a0] sm:$0xe]  ;;  %v5883_v54 = vsel %vm13171_vm4, %v5878_v19, %v15785_v21  ;;  %v6300_v43 = vrot.slane %v6119_v35, 5  ;;  %v12275_v6 = vrot.slane %v6120_v8, 9  ;;  %9501 = vrot.lane.b32.xlu1 %v12484_v16, %s13043_s14  ;;  %v6304_v28 = vrot.slane %v6121_v44, 5 }
 0x3cf   : > { %8732 = vst.msk [vmem:[#allocation3 + $0x110] sm:$0xff] %vm2571_vm12, %v15639_v56  ;;  %v9592_v26 = vld [vmem:[#allocation2 + $0x1a4] sm:$0x1]  ;;  %v5892_v22 = vrot.slane %v5891_v29, 4  ;;  %v10909_v9 = vsel %vm13333_vm7, %v12593_v25, %v10908_v11  ;;  %v12512_v53 = vrot.slane %v9589_v61, 9  ;;  %v9767_v57 = vrot.slane %v9590_v30, 5 }
 0x3d0   : > { %8909 = vst.msk [vmem:[#allocation3 + $0x110] sm:$0xff] %vm2940_vm13, %v15655_v36  ;;  %v7255_v56 = vld [vmem:[#allocation2 + $0x160] sm:$0xe]  ;;  %v12612_v14 = vcombine.low %v10905_v4, %v10909_v9  ;;  %v6301_v63 = vsel %vm13333_vm7, %v12274_v47, %v6300_v43  ;;  %v12513_v21 = vrot.slane %v9591_v2, 9  ;;  %v7256_v33 = vld [vmem:[#allocation2 + $0x164] sm:$0x1]  ;;  %v6305_v35 = vsel %vm13333_vm7, %v12275_v6, %v6304_v28  ;;  %v15854_v47 = vpop.permute.xlu0 %9495 }
 0x3d1   : > { %9533 = vst.msk [vmem:[#allocation3 + $0x110] sm:$0xff] %vm3118_vm14, %v15704_v31  ;;  %v7257_v12 = vld [vmem:[#allocation2 + $0x168] sm:$0xe]  ;;  %v5897_v36 = vsel %vm13171_vm4, %v5892_v22, %v5896_v18  ;;  %v9771_v10 = vrot.slane %v9592_v26, 5  ;;  %v7258_v17 = vld [vmem:[#allocation2 + $0x16c] sm:$0x1]  ;;  %v12293_v31 = vcombine.low %v6301_v63, %v6305_v35  ;;  %v9768_v8 = vsel %vm13333_vm7, %v12512_v53, %v9767_v57  ;;  %v15858_v22 = vpop.permute.xlu1 %9863 }
 0x3d2   : > { %v12354_v34 = vrot.slane %v7255_v56, 9  ;;  %9901 = vst.msk [vmem:[#allocation3 + $0x110] sm:$0xff] %vm3743_vm15, %v15740_v27  ;;  %v12245_v41 = vcombine.low %v5883_v54, %v5897_v36  ;;  %11006 = vrot.lane.b32.xlu0 %v12612_v14, %s13039_s10  ;;  %v7437_v23 = vrot.slane %v7256_v33, 5  ;;  %v12355_v46 = vrot.slane %v7257_v12, 9  ;;  %v7800_v5 = vld [vmem:[#allocation2 + $0x1a0] sm:$0xf] }
 0x3d3   : > { %v9772_v37 = vsel %vm13333_vm7, %v12513_v21, %v9771_v10  ;;  %v7441_v44 = vrot.slane %v7258_v17, 5  ;;  %v7801_v19 = vld [vmem:[#allocation2 + $0x1a4] sm:$0x1]  ;;  %v15847_v27 = vadd.f32 %v15791_v13, %v15769_v40  ;;  %v12979_v61 = vld [vmem:[#allocation2 + $0x160] ss:$8 sps:$4 sm:$0xff]   ;;  %v8177_v4 = vshrl.u32 %v7800_v5, 16 }
 0x3d4   : > { %6028 = vrot.lane.b32.xlu1 %v12245_v41, %s13042_s13  ;;  %v12532_v18 = vcombine.low %v9768_v8, %v9772_v37  ;;  %v7438_v25 = vsel %vm13333_vm7, %v12354_v34, %v7437_v23  ;;  %v7802_v16 = vld [vmem:[#allocation2 + $0x1a8] sm:$0xf]  ;;  %v7803_v29 = vld [vmem:[#allocation2 + $0x1ac] sm:$0x1]  ;;  %v8180_v11 = vshll.u32 %v7800_v5, 16  ;;  %v8186_v2 = vshll.u32 %v7801_v19, 16 }
 0x3d5   : > { %v7442_v30 = vsel %vm13333_vm7, %v12355_v46, %v7441_v44  ;;  %v8191_v54 = vshrl.u32 %v7802_v16, 16  ;;  %v8194_v40 = vshll.u32 %v7802_v16, 16  ;;  %v11081_v13 = vld [vmem:[#allocation3 + $0x118] sm:$0xff]  ;;  %v8179_v43 = vrot.slane %v8177_v4, 4  ;;  %v12980_v12 = vld [vmem:[#allocation2 + $0x1a0] ss:$8 sps:$4 sm:$0xff]  }
 0x3d6   : > { %9869 = vrot.lane.b32.xlu0 %v12532_v18, %s13044_s15  ;;  %v8182_v6 = vrot.slane %v8180_v11, 5  ;;  %v8200_v26 = vshll.u32 %v7803_v29, 16  ;;  %12652 = vmatprep.mubr.msk.bf16.mxu1 %vm11333_vm2, %v11081_v13  ;;  %v8188_v28 = vrot.slane %v8186_v2, 5  ;;  %v15869_v63 = vadd.f32 %v15807_v58, %v15799_v15  ;;  %v607_v36 = vld [vmem:[%s15680_s26 + $0x20] sm:$0xf]  ;;  %v6568_v11 = vpop.permute.xlu1 %6567 }
 0x3d7   : > { %v15841_v52 = vpop.f32.mrb[8].mxu1  ;;  %v8193_v53 = vrot.slane %v8191_v54, 4  ;;  %v8196_v56 = vrot.slane %v8194_v40, 5  ;;  %v12373_v57 = vcombine.low %v7438_v25, %v7442_v30  ;;  %628 = vst.msk [vmem:[#allocation2 + $0x1b0] sm:$0xf] %vm476_vm0, %v607_v36  ;;  %v6023_v19 = vpop.permute.xlu0 %6022 }
 0x3d8   : > { %v11595_v9 = vpop.f32.mrb[9].mxu1  ;;  %6396 = vrot.lane.b32.xlu1 %v12293_v31, %s13043_s14  ;;  %v8183_v21 = vor.u32 %v8182_v6, %v8179_v43  ;;  %v8202_v33 = vrot.slane %v8200_v26, 5  ;;  %v8424_v17 = vld [vmem:[#allocation2 + $0x1a0] sm:$0xe]  ;;  %v8425_v34 = vld [vmem:[#allocation2 + $0x1a4] sm:$0x1] }
 0x3d9   : > { %v15865_v14 = vpop.f32.mrb[10].mxu1  ;;  %v11080_v35 = vld [vmem:[#allocation3 + $0x110] sm:$0xff]  ;;  %v8197_v10 = vor.u32 %v8196_v56, %v8193_v53  ;;  %v8426_v41 = vld [vmem:[#allocation2 + $0x1a8] sm:$0xe]  ;;  %v8427_v15 = vld [vmem:[#allocation2 + $0x1ac] sm:$0x1] }
 0x3da   : > { %11640 = vmatmul.mubr.bf16.gmra.mrb[32].mxu1 %v11080_v35  ;;  %6573 = vrot.lane.b32.xlu0 %v12979_v61, %s13044_s15  ;;  %v8184_v8 = vrot.slane %v8183_v21, 4  ;;  %v12434_v58 = vrot.slane %v8424_v17, 9  ;;  %v8606_v23 = vrot.slane %v8425_v34, 5  ;;  %v12435_v31 = vrot.slane %v8426_v41, 9  ;;  %v6647_v44 = vld [vmem:[#allocation2 + $0x110] sm:$0xf] }
 0x3db   : > { %v8198_v37 = vrot.slane %v8197_v10, 4  ;;  %v8610_v46 = vrot.slane %v8427_v15, 5  ;;  %v6648_v5 = vld [vmem:[#allocation2 + $0x114] sm:$0x1]  ;;  %v6649_v61 = vld [vmem:[#allocation2 + $0x118] sm:$0xf] }
 0x3dc   : > { %7533 = vrot.lane.b32.xlu1 %v12373_v57, %s13038_s9  ;;  %v8189_v18 = vsel %vm13171_vm4, %v8184_v8, %v8188_v28  ;;  %v8607_v25 = vsel %vm13333_vm7, %v12434_v58, %v8606_v23  ;;  %v6650_v16 = vld [vmem:[#allocation2 + $0x11c] sm:$0x1]  ;;  %v6928_v29 = vshrl.u32 %v6647_v44, 16  ;;  %v6931_v4 = vshll.u32 %v6647_v44, 16  ;;  %6060 = vst.msk [vmem:[#allocation3 + $0x148] sm:$0xff] %vm2940_vm13, %v6023_v19 }
 0x3dd   : > { %v8203_v30 = vsel %vm13171_vm4, %v8198_v37, %v8202_v33  ;;  %v8611_v2 = vsel %vm13333_vm7, %v12435_v31, %v8610_v46  ;;  %v6937_v54 = vshll.u32 %v6648_v5, 16  ;;  %v6942_v40 = vshrl.u32 %v6649_v61, 16  ;;  %v608_v9 = vld [vmem:[%s15680_s26 + $0x24] sm:$0x1]  ;;  %v609_v21 = vld [vmem:[%s15680_s26 + $0x28] sm:$0xf]  ;;  %v6391_v33 = vpop.permute.xlu0 %6390  ;;  %v15898_v46 = vpop.permute.xlu1 %7704 }
 0x3de   : > { %v12405_v13 = vcombine.low %v8189_v18, %v8203_v30  ;;  %7710 = vrot.lane.b32.xlu0 %v12980_v12, %s13039_s10  ;;  %v12453_v43 = vcombine.low %v8607_v25, %v8611_v2  ;;  %v6930_v6 = vrot.slane %v6928_v29, 4  ;;  %v6933_v26 = vrot.slane %v6931_v4, 5  ;;  %629 = vst.msk [vmem:[#allocation2 + $0x1b4] sm:$0x1] %vm478_vm1, %v608_v9  ;;  %v12981_v36 = vld [vmem:[#allocation2 + $0x1a8] ss:$8 sps:$4 sm:$0xff]  }
 0x3df   : > { %v6939_v28 = vrot.slane %v6937_v54, 5  ;;  %v6944_v53 = vrot.slane %v6942_v40, 4  ;;  %v6945_v56 = vshll.u32 %v6649_v61, 16  ;;  %v6951_v57 = vshll.u32 %v6650_v16, 16  ;;  %v610_v12 = vld [vmem:[%s15680_s26 + $0x2c] sm:$0x1] }
 0x3e0   : > { %8334 = vrot.lane.b32.xlu1 %v12405_v13, %s13040_s11  ;;  %v6934_v35 = vor.u32 %v6933_v26, %v6930_v6  ;;  %630 = vst.msk [vmem:[#allocation2 + $0x1b8] sm:$0xf] %vm476_vm0, %v609_v21  ;;  %v10106_v34 = vld [vmem:[#allocation2 + $0x1b0] sm:$0xf]  ;;  %v8969_v37 = vld [vmem:[#allocation2 + $0x1a8] sm:$0xf] }
 0x3e1   : > { %6428 = vst.msk [vmem:[#allocation3 + $0x148] sm:$0xff] %vm3118_vm14, %v6391_v33  ;;  %v6947_v10 = vrot.slane %v6945_v56, 5  ;;  %v6953_v17 = vrot.slane %v6951_v57, 5  ;;  %v10730_v41 = vld [vmem:[#allocation2 + $0x1b0] sm:$0xe]  ;;  %v10483_v58 = vshrl.u32 %v10106_v34, 16  ;;  %v15908_v61 = vpop.permute.xlu0 %7527 }
 0x3e2   : > { %631 = vst.msk [vmem:[#allocation2 + $0x1bc] sm:$0x1] %vm478_vm1, %v610_v12  ;;  %8702 = vrot.lane.b32.xlu0 %v12453_v43, %s13041_s12  ;;  %v6935_v8 = vrot.slane %v6934_v35, 4  ;;  %v12982_v15 = vld [vmem:[#allocation2 + $0x168] ss:$8 sps:$4 sm:$0xff]   ;;  %v10486_v23 = vshll.u32 %v10106_v34, 16 }
 0x3e3   : > { %6605 = vst.msk [vmem:[#allocation3 + $0x148] sm:$0xff] %vm3743_vm15, %v6568_v11  ;;  %v12594_v31 = vrot.slane %v10730_v41, 9  ;;  %v6948_v44 = vor.u32 %v6947_v10, %v6944_v53  ;;  %v8970_v5 = vld [vmem:[#allocation2 + $0x1ac] sm:$0x1]  ;;  %v15900_v19 = vld [vmem:[#allocation2 + $0x1b0] sm:$0xf] }
 0x3e4   : > { %v9346_v18 = vshrl.u32 %v8969_v37, 16  ;;  %v9349_v25 = vshll.u32 %v8969_v37, 16  ;;  %8879 = vrot.lane.b32.xlu1 %v12981_v36, %s13042_s13  ;;  %v6940_v16 = vsel %vm13171_vm4, %v6935_v8, %v6939_v28  ;;  %v10485_v29 = vrot.slane %v10483_v58, 4  ;;  %v15916_v30 = vld [vmem:[%s16470_s4] ss:$0 sm:$0xff]  ;;  %v11598_v2 = vpop.f32.mrb[11].mxu1  ;;  %v15937_v37 = vpop.permute.xlu1 %8696 }
 0x3e5   : > { %v10488_v4 = vrot.slane %v10486_v23, 5  ;;  %v9355_v11 = vshll.u32 %v8970_v5, 16  ;;  %v6949_v54 = vrot.slane %v6948_v44, 4  ;;  %v9360_v43 = vshrl.u32 %v15900_v19, 16  ;;  %v10107_v6 = vld [vmem:[#allocation2 + $0x1b4] sm:$0x1]  ;;  %v15932_v34 = vpop.permute.xlu0 %8328 }
 0x3e6   : > { %v9348_v40 = vrot.slane %v9346_v18, 4  ;;  %v9351_v13 = vrot.slane %v9349_v25, 5  ;;  %v10731_v9 = vld [vmem:[#allocation2 + $0x1b4] sm:$0x1]  ;;  %v11417_v28 = vadd.f32 %v15421_v32, %v15916_v30  ;;  %v15924_v53 = vadd.f32 %v15469_v45, %v15916_v30  ;;  %v11086_v32 = vld [vmem:[#allocation3 + $0x140] sm:$0xff] }
 0x3e7   : > { %v10489_v26 = vor.u32 %v10488_v4, %v10485_v29  ;;  %v15928_v56 = vadd.f32 %v15566_v60, %v15916_v30  ;;  %v6954_v57 = vsel %vm13171_vm4, %v6949_v54, %v6953_v17  ;;  %v10108_v21 = vld [vmem:[#allocation2 + $0x1b8] sm:$0xf]  ;;  %v10492_v33 = vshll.u32 %v10107_v6, 16  ;;  %v8972_v12 = vld [vmem:[#allocation2 + $0x1b4] sm:$0x1] }
 0x3e8   : > { %v10732_v36 = vld [vmem:[#allocation2 + $0x1b8] sm:$0xe]  ;;  %v10912_v35 = vrot.slane %v10731_v9, 5  ;;  %v9352_v10 = vor.u32 %v9351_v13, %v9348_v40  ;;  %v12321_v41 = vcombine.low %v6940_v16, %v6954_v57  ;;  %5406 = vrot.lane.b32.xlu1 %v12982_v15, %s13041_s12  ;;  %v10497_v60 = vshrl.u32 %v10108_v21, 16  ;;  %v9593_v23 = vld [vmem:[#allocation2 + $0x1a8] sm:$0xe] }
 0x3e9   : > { %v10109_v45 = vld [vmem:[#allocation2 + $0x1bc] sm:$0x1]  ;;  %v15935_v8 = vrot.slane %v10489_v26, 4  ;;  %v10500_v58 = vshll.u32 %v10108_v21, 16  ;;  %v10494_v44 = vrot.slane %v10492_v33, 5  ;;  %v12595_v29 = vrot.slane %v10732_v36, 9  ;;  %v15953_v57 = vpop.permute.xlu0 %8873 }
 0x3ea   : > { %v11087_v17 = vld [vmem:[#allocation3 + $0x148] sm:$0xff]  ;;  %v10506_v5 = vshll.u32 %v10109_v45, 16  ;;  %v10733_v18 = vld [vmem:[#allocation2 + $0x1bc] sm:$0x1]  ;;  %v10913_v25 = vsel %vm13333_vm7, %v12594_v31, %v10912_v35  ;;  %v15941_v16 = vpop.f32.mrb[16].mxu0  ;;  %7196 = vst.msk [vmem:[#allocation3 + $0x130] sm:$0xff] %vm768_vm8, %v12321_v41 }
 0x3eb   : > { %11494 = vmatprep.mubr.bf16.mxu0 %v11087_v17  ;;  %v10499_v15 = vrot.slane %v10497_v60, 4  ;;  %v10502_v4 = vrot.slane %v10500_v58, 5  ;;  %v10916_v2 = vrot.slane %v10733_v18, 5  ;;  %v15944_v54 = vrot.slane %v9352_v10, 4  ;;  %v9594_v40 = vld [vmem:[#allocation2 + $0x1ac] sm:$0x1] }
 0x3ec   : > { %11495 = vmatmul.mubr.bf16.gmra.mrb[40].mxu0 %v11086_v32  ;;  %7564 = vst.msk [vmem:[#allocation3 + $0x130] sm:$0xff] %vm1396_vm9, %v15753_v3  ;;  %v10495_v31 = vsel %vm13171_vm4, %v15935_v8, %v10494_v44  ;;  %v10508_v13 = vrot.slane %v10506_v5, 5  ;;  %v15951_v6 = vrot.slane %v9355_v11, 5  ;;  %v9362_v26 = vrot.slane %v9360_v43, 4  ;;  %v9595_v9 = vld [vmem:[#allocation2 + $0x1b0] sm:$0xe]  ;;  %v15980_v44 = vpop.permute.xlu1 %10634 }
 0x3ed   : > { %v15955_v21 = vpop.f32.mrb[17].mxu0  ;;  %v10503_v33 = vor.u32 %v10502_v4, %v10499_v15  ;;  %7741 = vst.msk [vmem:[#allocation3 + $0x130] sm:$0xff] %vm1768_vm10, %v15773_v38  ;;  %v10917_v3 = vsel %vm13333_vm7, %v12595_v29, %v10916_v2  ;;  %v9363_v36 = vshll.u32 %v15900_v19, 16  ;;  %v9369_v35 = vshll.u32 %v8972_v12, 16  ;;  %v9596_v11 = vld [vmem:[#allocation2 + $0x1b4] sm:$0x1]  ;;  %v5401_v18 = vpop.permute.xlu0 %5400 }
 0x3ee   : > { %v5498_v43 = vld [vmem:[#allocation2 + $0x168] sm:$0xf]  ;;  %8365 = vst.msk [vmem:[#allocation3 + $0x130] sm:$0xff] %vm1946_vm11, %v15764_v48  ;;  %v12613_v10 = vcombine.low %v10913_v25, %v10917_v3  ;;  %v9358_v38 = vsel %vm13171_vm4, %v15944_v54, %v15951_v6  ;;  %v11578_v19 = vadd.f32 %v15574_v50, %v11417_v28  ;;  %v12514_v12 = vrot.slane %v9593_v23, 9  ;;  %v5499_v32 = vld [vmem:[#allocation2 + $0x16c] sm:$0x1] }
 0x3ef   : > { %v5500_v41 = vld [vmem:[#allocation2 + $0x170] sm:$0xf]  ;;  %v15976_v45 = vpop.f32.mrb[18].mxu0  ;;  %v10504_v8 = vrot.slane %v10503_v33, 4  ;;  %v9365_v60 = vrot.slane %v9363_v36, 5  ;;  %v9371_v58 = vrot.slane %v9369_v35, 5  ;;  %v11581_v23 = vadd.f32 %v15618_v62, %v15924_v53 }
 0x3f0   : > { %8733 = vst.msk [vmem:[#allocation3 + $0x130] sm:$0xff] %vm2571_vm12, %v15787_v1  ;;  %v9775_v48 = vrot.slane %v9594_v40, 5  ;;  %v5501_v17 = vld [vmem:[#allocation2 + $0x174] sm:$0x1]  ;;  %11008 = vrot.lane.b32.xlu1 %v12613_v10, %s13039_s10  ;;  %11704 = vst [vmem:[%s15967_s17] sm:$0xff] %v11578_v19  ;;  %v12515_v50 = vrot.slane %v9595_v9, 9  ;;  %v9779_v28 = vrot.slane %v9596_v11, 5 }
 0x3f1   : > { %8910 = vst.msk [vmem:[#allocation3 + $0x130] sm:$0xff] %vm2940_vm13, %v15775_v59  ;;  %v5899_v5 = vshrl.u32 %v5498_v43, 16  ;;  %v15988_v25 = vpop.f32.mrb[19].mxu0  ;;  %v10509_v1 = vsel %vm13171_vm4, %v10504_v8, %v10508_v13  ;;  %v9366_v29 = vor.u32 %v9365_v60, %v9362_v26  ;;  %v5902_v4 = vshll.u32 %v5498_v43, 16  ;;  %v12983_v2 = vld [vmem:[#allocation2 + $0x160] ss:$8 sps:$4 sm:$0xff]  }
 0x3f2   : > { %v9776_v15 = vsel %vm13333_vm7, %v12514_v12, %v9775_v48  ;;  %9534 = vst.msk [vmem:[#allocation3 + $0x130] sm:$0xff] %vm3118_vm14, %v15854_v47  ;;  %v12565_v59 = vcombine.low %v10495_v31, %v10509_v1  ;;  %v9780_v62 = vsel %vm13333_vm7, %v12515_v50, %v9779_v28  ;;  %11705 = vst [vmem:[%s15967_s17 + $0x8] sm:$0xff] %v11581_v23  ;;  %v5908_v54 = vshll.u32 %v5499_v32, 16  ;;  %v6122_v40 = vld [vmem:[#allocation2 + $0x168] sm:$0xe]  ;;  %v16013_v12 = vpop.permute.xlu1 %9497  ;;  %v16015_v48 = vpop.f32.mrb[12].mxu1 }
 0x3f3   : > { %5437 = vst.msk [vmem:[#allocation3 + $0x168] sm:$0xff] %vm2571_vm12, %v5401_v18  ;;  %v5901_v53 = vrot.slane %v5899_v5, 4  ;;  %v6123_v13 = vld [vmem:[#allocation2 + $0x16c] sm:$0x1]  ;;  %v9367_v6 = vrot.slane %v9366_v29, 4  ;;  %v12533_v26 = vcombine.low %v9776_v15, %v9780_v62  ;;  %v5904_v9 = vrot.slane %v5902_v4, 5  ;;  %v16023_v5 = vpop.permute.xlu0 %11002 }
 0x3f4   : > { %9902 = vst.msk [vmem:[#allocation3 + $0x130] sm:$0xff] %vm3743_vm15, %v15858_v22  ;;  %v5913_v33 = vshrl.u32 %v5500_v41, 16  ;;  %v6124_v47 = vld [vmem:[#allocation2 + $0x170] sm:$0xe]  ;;  %10640 = vrot.lane.b32.xlu0 %v12565_v59, %s13038_s9  ;;  %v16004_v31 = vrot.slane %v5908_v54, 5  ;;  %v5916_v3 = vshll.u32 %v5500_v41, 16  ;;  %v11428_v4 = vadd.f32 %v15698_v24, %v15916_v30 }
 0x3f5   : > { %10047 = vst.msk [vmem:[#allocation3 + $0x138] sm:$0xff] %vm768_vm8, %v12983_v2  ;;  %v5922_v36 = vshll.u32 %v5501_v17, 16  ;;  %v6125_v35 = vld [vmem:[#allocation2 + $0x174] sm:$0x1]  ;;  %v12276_v11 = vrot.slane %v6122_v40, 9  ;;  %v9372_v22 = vsel %vm13171_vm4, %v9367_v6, %v9371_v58  ;;  %9871 = vrot.lane.b32.xlu1 %v12533_v26, %s13044_s15  ;;  %v5905_v43 = vor.u32 %v5904_v9, %v5901_v53 }
 0x3f6   : > { %10671 = vst.msk [vmem:[#allocation3 + $0x138] sm:$0xff] %vm1396_vm9, %v15823_v42  ;;  %v5915_v10 = vrot.slane %v5913_v33, 4  ;;  %v6308_v19 = vrot.slane %v6123_v13, 5  ;;  %v12485_v32 = vcombine.low %v9358_v38, %v9372_v22  ;;  %v5918_v41 = vrot.slane %v5916_v3, 5  ;;  %v12984_v42 = vld [vmem:[#allocation2 + $0x170] ss:$8 sps:$4 sm:$0xff]  }
 0x3f7   : > { %11039 = vst.msk [vmem:[#allocation3 + $0x138] sm:$0xff] %vm1768_vm10, %v15829_v55  ;;  %v5924_v8 = vrot.slane %v5922_v36, 5  ;;  %v12277_v60 = vrot.slane %v6124_v47, 9  ;;  %v5906_v17 = vrot.slane %v5905_v43, 4  ;;  %v6312_v50 = vrot.slane %v6125_v35, 5 }
 0x3f8   : > { %v16019_v58 = vsel %vm13333_vm7, %v12276_v11, %v6308_v19  ;;  %v7259_v28 = vld [vmem:[#allocation2 + $0x170] sm:$0xe]  ;;  %v7260_v23 = vld [vmem:[#allocation2 + $0x174] sm:$0x1]  ;;  %v11586_v55 = vadd.f32 %v15755_v20, %v15928_v56  ;;  %9503 = vrot.lane.b32.xlu0 %v12485_v32, %s13043_s14  ;;  %v5919_v38 = vor.u32 %v5918_v41, %v5915_v10  ;;  %v7261_v18 = vld [vmem:[#allocation2 + $0x178] sm:$0xe]  ;;  %v11589_v13 = vadd.f32 %v15762_v7, %v11428_v4  ;;  %v16056_v10 = vpop.permute.xlu0 %9865 }
 0x3f9   : > { %v7262_v1 = vld [vmem:[#allocation2 + $0x17c] sm:$0x1]  ;;  %v12356_v29 = vrot.slane %v7259_v28, 9  ;;  %v7445_v15 = vrot.slane %v7260_v23, 5  ;;  %v16030_v2 = vsel %vm13333_vm7, %v12277_v60, %v6312_v50  ;;  %6575 = vrot.lane.b32.xlu1 %v12984_v42, %s13044_s15  ;;  %v12357_v59 = vrot.slane %v7261_v18, 9 }
 0x3fa   : > { %v7449_v20 = vrot.slane %v7262_v1, 5  ;;  %11706 = vst [vmem:[%s15967_s17 + $0x10] sm:$0xff] %v11586_v55  ;;  %v5911_v56 = vsel %vm13171_vm4, %v5906_v17, %v16004_v31  ;;  %v5920_v62 = vrot.slane %v5919_v38, 4  ;;  %v12294_v53 = vcombine.low %v16019_v58, %v16030_v2  ;;  %v12985_v54 = vld [vmem:[#allocation2 + $0x1b0] ss:$8 sps:$4 sm:$0xff]   ;;  %v6025_v31 = vpop.permute.xlu1 %6024  ;;  %11707 = vst [vmem:[%s15967_s17 + $0x18] sm:$0xff] %v11589_v13 }
 0x3fb   : > { %v7804_v40 = vld [vmem:[#allocation2 + $0x1b0] sm:$0xf]  ;;  %v16042_v6 = vsel %vm13333_vm7, %v12356_v29, %v7445_v15  ;;  %v7805_v9 = vld [vmem:[#allocation2 + $0x1b4] sm:$0x1]  ;;  %v7806_v33 = vld [vmem:[#allocation2 + $0x1b8] sm:$0xf]  ;;  %v11433_v3 = vadd.f32 %v15702_v39, %v15916_v30  ;;  %v11436_v36 = vadd.f32 %v15706_v0, %v15916_v30  ;;  %v11441_v19 = vadd.f32 %v15847_v27, %v15916_v30 }
 0x3fc   : > { %v11084_v24 = vld [vmem:[#allocation3 + $0x130] sm:$0xff]  ;;  %v16046_v26 = vsel %vm13333_vm7, %v12357_v59, %v7449_v20  ;;  %v7807_v47 = vld [vmem:[#allocation2 + $0x1bc] sm:$0x1]  ;;  %v5925_v7 = vsel %vm13171_vm4, %v5920_v62, %v5924_v8  ;;  %v8205_v35 = vshrl.u32 %v7804_v40, 16  ;;  %v8208_v11 = vshll.u32 %v7804_v40, 16  ;;  %6061 = vst.msk [vmem:[#allocation3 + $0x168] sm:$0xff] %vm2940_vm13, %v6025_v31 }
 0x3fd   : > { %v8428_v22 = vld [vmem:[#allocation2 + $0x1b0] sm:$0xe]  ;;  %v8429_v43 = vld [vmem:[#allocation2 + $0x1b4] sm:$0x1]  ;;  %v12246_v32 = vcombine.low %v5911_v56, %v5925_v7  ;;  %7712 = vrot.lane.b32.xlu1 %v12985_v54, %s13039_s10  ;;  %v8214_v39 = vshll.u32 %v7805_v9, 16  ;;  %v8219_v0 = vshrl.u32 %v7806_v33, 16  ;;  %v6570_v56 = vpop.permute.xlu0 %6569  ;;  %v12374_v31 = vcombine.low %v16042_v6, %v16046_v26 }
 0x3fe   : > { %v8222_v41 = vshll.u32 %v7806_v33, 16  ;;  %v8430_v8 = vld [vmem:[#allocation2 + $0x1b8] sm:$0xe]  ;;  %v8207_v42 = vrot.slane %v8205_v35, 4  ;;  %v8210_v17 = vrot.slane %v8208_v11, 5  ;;  %v8228_v50 = vshll.u32 %v7807_v47, 16  ;;  %v6393_v29 = vpop.permute.xlu1 %6392 }
 0x3ff   : > { %v11085_v60 = vld [vmem:[#allocation3 + $0x138] sm:$0xff]  ;;  %v12436_v23 = vrot.slane %v8428_v22, 9  ;;  %6030 = vrot.lane.b32.xlu0 %v12246_v32, %s13042_s13  ;;  %v8216_v55 = vrot.slane %v8214_v39, 5  ;;  %v8221_v27 = vrot.slane %v8219_v0, 4  ;;  %v8614_v18 = vrot.slane %v8429_v43, 5  ;;  %6429 = vst.msk [vmem:[#allocation3 + $0x168] sm:$0xff] %vm3118_vm14, %v6393_v29 }
 0x400   : > { %v8431_v28 = vld [vmem:[#allocation2 + $0x1bc] sm:$0x1]  ;;  %12653 = vmatprep.mubr.msk.bf16.mxu1 %vm11333_vm2, %v11085_v60  ;;  %v8224_v38 = vrot.slane %v8222_v41, 5  ;;  %v611_v1 = vld [vmem:[%s15680_s26 + $0x30] sm:$0xf]  ;;  %v8211_v15 = vor.u32 %v8210_v17, %v8207_v42  ;;  %v8230_v4 = vrot.slane %v8228_v50, 5  ;;  %v11597_v47 = vadd.f32 %v15865_v14, %v11436_v36 }
 0x401   : > { %11648 = vmatmul.mubr.bf16.gmra.mrb[36].mxu1 %v11084_v24  ;;  %v12437_v59 = vrot.slane %v8430_v8, 9  ;;  %v8618_v20 = vrot.slane %v8431_v28, 5  ;;  %632 = vst.msk [vmem:[#allocation2 + $0x1c0] sm:$0xf] %vm476_vm0, %v611_v1  ;;  %v11603_v62 = vpop.f32.mrb[13].mxu1  ;;  %v8615_v40 = vsel %vm13333_vm7, %v12436_v23, %v8614_v18  ;;  %v11594_v24 = vadd.f32 %v15841_v52, %v11433_v3 }
 0x402   : > { %v8225_v54 = vor.u32 %v8224_v38, %v8221_v27  ;;  %v612_v13 = vld [vmem:[%s15680_s26 + $0x34] sm:$0x1]  ;;  %v613_v9 = vld [vmem:[%s15680_s26 + $0x38] sm:$0xf]  ;;  %v614_v33 = vld [vmem:[%s15680_s26 + $0x3c] sm:$0x1]  ;;  %v11602_v52 = vadd.f32 %v16015_v48, %v11441_v19  ;;  %v16086_v32 = vpop.permute.xlu1 %7529  ;;  %v12704_v39 = vadd.f32 %v15955_v21, %v15941_v16  ;;  %v11444_v60 = vadd.f32 %v15869_v63, %v15916_v30 }
 0x403   : > { %6606 = vst.msk [vmem:[#allocation3 + $0x168] sm:$0xff] %vm3743_vm15, %v6570_v56  ;;  %v8212_v7 = vrot.slane %v8211_v15, 4  ;;  %v8619_v35 = vsel %vm13333_vm7, %v12437_v59, %v8618_v20  ;;  %v6651_v11 = vld [vmem:[#allocation2 + $0x120] sm:$0xf]  ;;  %v6652_v22 = vld [vmem:[#allocation2 + $0x124] sm:$0x1]  ;;  %6398 = vrot.lane.b32.xlu0 %v12294_v53, %s13043_s14  ;;  %v12707_v38 = vadd.f32 %v15988_v25, %v15976_v45 }
 0x404   : > { %633 = vst.msk [vmem:[#allocation2 + $0x1c4] sm:$0x1] %vm478_vm1, %v612_v13  ;;  %635 = vst.msk [vmem:[#allocation2 + $0x1cc] sm:$0x1] %vm478_vm1, %v614_v33  ;;  %v11604_v14 = vpop.f32.mrb[14].mxu1  ;;  %v8226_v6 = vrot.slane %v8225_v54, 4  ;;  %v12454_v26 = vcombine.low %v8615_v40, %v8619_v35  ;;  %v16111_v13 = vadd.f32 %v12704_v39, %v15916_v30 }
 0x405   : > { %634 = vst.msk [vmem:[#allocation2 + $0x1c8] sm:$0xf] %vm476_vm0, %v613_v9  ;;  %v6653_v3 = vld [vmem:[#allocation2 + $0x128] sm:$0xf]  ;;  %v6654_v36 = vld [vmem:[#allocation2 + $0x12c] sm:$0x1]  ;;  %v8217_v48 = vsel %vm13171_vm4, %v8212_v7, %v8216_v55  ;;  %v11605_v27 = vadd.f32 %v11604_v14, %v11444_v60  ;;  %v16114_v45 = vadd.f32 %v12707_v38, %v15916_v30 }
 0x406   : > { %v6956_v43 = vshrl.u32 %v6651_v11, 16  ;;  %11708 = vst [vmem:[%s15967_s17 + $0x20] sm:$0xff] %v11594_v24  ;;  %11709 = vst [vmem:[%s15967_s17 + $0x28] sm:$0xff] %v11597_v47  ;;  %v6959_v19 = vshll.u32 %v6651_v11, 16  ;;  %v6965_v0 = vshll.u32 %v6652_v22, 16  ;;  %v6970_v41 = vshrl.u32 %v6653_v3, 16  ;;  %8704 = vrot.lane.b32.xlu1 %v12454_v26, %s13041_s12 }
 0x407   : > { %11710 = vst [vmem:[%s15967_s17 + $0x30] sm:$0xff] %v11602_v52  ;;  %v11606_v58 = vpop.f32.mrb[15].mxu1  ;;  %v8231_v2 = vsel %vm13171_vm4, %v8226_v6, %v8230_v4  ;;  %v6973_v8 = vshll.u32 %v6653_v3, 16  ;;  %v12708_v42 = vpop.f32.mrb[20].mxu0  ;;  %v6979_v50 = vshll.u32 %v6654_v36, 16  ;;  %7535 = vrot.lane.b32.xlu0 %v12374_v31, %s13038_s9  ;;  %v11090_v20 = vld [vmem:[#allocation3 + $0x160] sm:$0xff] }
 0x408   : > { %v6958_v53 = vrot.slane %v6956_v43, 4  ;;  %v12406_v16 = vcombine.low %v8217_v48, %v8231_v2  ;;  %v6961_v21 = vrot.slane %v6959_v19, 5  ;;  %v16100_v17 = vrot.slane %v6965_v0, 5  ;;  %v12709_v28 = vpop.f32.mrb[21].mxu0  ;;  %v10110_v23 = vld [vmem:[#allocation2 + $0x1c0] sm:$0xf]  ;;  %v16107_v4 = vpop.permute.xlu1 %8330 }
 0x409   : > { %v6972_v55 = vrot.slane %v6970_v41, 4  ;;  %v16105_v18 = vadd.f32 %v12709_v28, %v12708_v42  ;;  %v10511_v1 = vshrl.u32 %v10110_v23, 16  ;;  %v10514_v63 = vshll.u32 %v10110_v23, 16  ;;  %v12986_v56 = vld [vmem:[#allocation2 + $0x1b8] ss:$8 sps:$4 sm:$0xff]   ;;  %11711 = vst [vmem:[%s15967_s17 + $0x38] sm:$0xff] %v11605_v27 }
 0x40a   : > { %v6962_v29 = vor.u32 %v6961_v21, %v6958_v53  ;;  %v6975_v15 = vrot.slane %v6973_v8, 5  ;;  %v11091_v59 = vld [vmem:[#allocation3 + $0x168] sm:$0xff]  ;;  %v8973_v47 = vld [vmem:[#allocation2 + $0x1b8] sm:$0xf]  ;;  %v8974_v22 = vld [vmem:[#allocation2 + $0x1bc] sm:$0x1] }
 0x40b   : > { %v10111_v62 = vld [vmem:[#allocation2 + $0x1c4] sm:$0x1]  ;;  %v10113_v40 = vld [vmem:[#allocation2 + $0x1cc] sm:$0x1]  ;;  %11502 = vmatprep.mubr.bf16.mxu0 %v11091_v59  ;;  %v10513_v25 = vrot.slane %v10511_v1, 4  ;;  %v10516_v9 = vrot.slane %v10514_v63, 5  ;;  %8336 = vrot.lane.b32.xlu0 %v12406_v16, %s13040_s11  ;;  %v16126_v16 = vpop.permute.xlu0 %7706 }
 0x40c   : > { %v10112_v54 = vld [vmem:[#allocation2 + $0x1c8] sm:$0xf]  ;;  %v10520_v33 = vshll.u32 %v10111_v62, 16  ;;  %11503 = vmatmul.mubr.bf16.gmra.mrb[44].mxu0 %v11090_v20  ;;  %v10534_v7 = vshll.u32 %v10113_v40, 16  ;;  %v6963_v35 = vrot.slane %v6962_v29, 4  ;;  %v6976_v11 = vor.u32 %v6975_v15, %v6972_v55  ;;  %v16117_v52 = vpop.f32.mrb[22].mxu0  ;;  %v16119_v36 = vpop.permute.xlu1 %8875 }
 0x40d   : > { %v10525_v24 = vshrl.u32 %v10112_v54, 16  ;;  %v10528_v31 = vshll.u32 %v10112_v54, 16  ;;  %v10517_v14 = vor.u32 %v10516_v9, %v10513_v25  ;;  %v6981_v30 = vrot.slane %v6979_v50, 5  ;;  %v8975_v3 = vld [vmem:[#allocation2 + $0x1c0] sm:$0xf]  ;;  %v16121_v43 = vpop.f32.mrb[23].mxu0 }
 0x40e   : > { %v10522_v6 = vrot.slane %v10520_v33, 5  ;;  %v10536_v48 = vrot.slane %v10534_v7, 5  ;;  %v6968_v19 = vsel %vm13171_vm4, %v6963_v35, %v16100_v17  ;;  %v6977_v0 = vrot.slane %v6976_v11, 4  ;;  %v12987_v41 = vld [vmem:[#allocation2 + $0x178] ss:$8 sps:$4 sm:$0xff]  }
 0x40f   : > { %v10527_v26 = vrot.slane %v10525_v24, 4  ;;  %v10530_v39 = vrot.slane %v10528_v31, 5  ;;  %v8976_v58 = vld [vmem:[#allocation2 + $0x1c4] sm:$0x1]  ;;  %v10518_v2 = vrot.slane %v10517_v14, 4  ;;  %v9374_v53 = vshrl.u32 %v8973_v47, 16  ;;  %8881 = vrot.lane.b32.xlu0 %v12986_v56, %s13042_s13 }
 0x410   : > { %v9377_v8 = vshll.u32 %v8973_v47, 16  ;;  %v9383_v60 = vshll.u32 %v8974_v22, 16  ;;  %v10734_v42 = vld [vmem:[#allocation2 + $0x1c0] sm:$0xe]  ;;  %v6982_v50 = vsel %vm13171_vm4, %v6977_v0, %v6981_v30  ;;  %v9388_v28 = vshrl.u32 %v8975_v3, 16  ;;  %v5403_v59 = vpop.permute.xlu1 %5402 }
 0x411   : > { %v10531_v21 = vor.u32 %v10530_v39, %v10527_v26  ;;  %v9391_v23 = vshll.u32 %v8975_v3, 16  ;;  %v10735_v55 = vld [vmem:[#allocation2 + $0x1c4] sm:$0x1]  ;;  %v10736_v17 = vld [vmem:[#allocation2 + $0x1c8] sm:$0xe]  ;;  %v10523_v27 = vsel %vm13171_vm4, %v10518_v2, %v10522_v6  ;;  %v12322_v38 = vcombine.low %v6968_v19, %v6982_v50  ;;  %5438 = vst.msk [vmem:[#allocation3 + $0x188] sm:$0xff] %vm2571_vm12, %v5403_v59 }
 0x412   : > { %v9376_v1 = vrot.slane %v9374_v53, 4  ;;  %v9379_v63 = vrot.slane %v9377_v8, 5  ;;  %v10737_v29 = vld [vmem:[#allocation2 + $0x1cc] sm:$0x1]  ;;  %v5502_v15 = vld [vmem:[#allocation2 + $0x178] sm:$0xf] }
 0x413   : > { %v10532_v20 = vrot.slane %v10531_v21, 4  ;;  %v9385_v62 = vrot.slane %v9383_v60, 5  ;;  %v9390_v56 = vrot.slane %v9388_v28, 4  ;;  %v9393_v54 = vrot.slane %v9391_v23, 5  ;;  %v5503_v40 = vld [vmem:[#allocation2 + $0x17c] sm:$0x1]  ;;  %5408 = vrot.lane.b32.xlu0 %v12987_v41, %s13041_s12 }
 0x414   : > { %7197 = vst.msk [vmem:[#allocation3 + $0x150] sm:$0xff] %vm768_vm8, %v12322_v38  ;;  %v9380_v25 = vor.u32 %v9379_v63, %v9376_v1  ;;  %v9397_v9 = vshll.u32 %v8976_v58, 16  ;;  %v12596_v33 = vrot.slane %v10734_v42, 9  ;;  %v10920_v24 = vrot.slane %v10735_v55, 5  ;;  %v5504_v47 = vld [vmem:[#allocation2 + $0x180] sm:$0xf] }
 0x415   : > { %v10537_v31 = vsel %vm13171_vm4, %v10532_v20, %v10536_v48  ;;  %7565 = vst.msk [vmem:[#allocation3 + $0x150] sm:$0xff] %vm1396_vm9, %v15908_v61  ;;  %v9394_v7 = vor.u32 %v9393_v54, %v9390_v56  ;;  %v12597_v35 = vrot.slane %v10736_v17, 9  ;;  %v10924_v11 = vrot.slane %v10737_v29, 5  ;;  %v5505_v22 = vld [vmem:[#allocation2 + $0x184] sm:$0x1]  ;;  %v16144_v48 = vpop.permute.xlu0 %8698 }
 0x416   : > { %v12566_v14 = vcombine.low %v10523_v27, %v10537_v31  ;;  %7742 = vst.msk [vmem:[#allocation3 + $0x150] sm:$0xff] %vm1768_vm10, %v15898_v46  ;;  %v9381_v6 = vrot.slane %v9380_v25, 4  ;;  %v9399_v26 = vrot.slane %v9397_v9, 5  ;;  %v10921_v30 = vsel %vm13333_vm7, %v12596_v33, %v10920_v24  ;;  %v12988_v3 = vld [vmem:[#allocation2 + $0x170] ss:$8 sps:$4 sm:$0xff]   ;;  %v16176_v31 = vpop.permute.xlu1 %11004 }
 0x417   : > { %v9597_v39 = vld [vmem:[#allocation2 + $0x1b8] sm:$0xe]  ;;  %v9395_v61 = vrot.slane %v9394_v7, 4  ;;  %8366 = vst.msk [vmem:[#allocation3 + $0x150] sm:$0xff] %vm1946_vm11, %v15932_v34  ;;  %v10925_v19 = vsel %vm13333_vm7, %v12597_v35, %v10924_v11  ;;  %v5927_v0 = vshrl.u32 %v5502_v15, 16  ;;  %v5930_v41 = vshll.u32 %v5502_v15, 16 }
 0x418   : > { %v9598_v58 = vld [vmem:[#allocation2 + $0x1bc] sm:$0x1]  ;;  %10642 = vrot.lane.b32.xlu1 %v12566_v14, %s13038_s9  ;;  %v9386_v46 = vsel %vm13171_vm4, %v9381_v6, %v9385_v62  ;;  %8734 = vst.msk [vmem:[#allocation3 + $0x150] sm:$0xff] %vm2571_vm12, %v15937_v37  ;;  %v12614_v2 = vcombine.low %v10921_v30, %v10925_v19  ;;  %v5936_v53 = vshll.u32 %v5503_v40, 16  ;;  %v5941_v8 = vshrl.u32 %v5504_v47, 16 }
 0x419   : > { %10048 = vst.msk [vmem:[#allocation3 + $0x158] sm:$0xff] %vm768_vm8, %v12988_v3  ;;  %v9599_v34 = vld [vmem:[#allocation2 + $0x1c0] sm:$0xe]  ;;  %v9600_v60 = vld [vmem:[#allocation2 + $0x1c4] sm:$0x1]  ;;  %v9400_v42 = vsel %vm13171_vm4, %v9395_v61, %v9399_v26  ;;  %v5929_v21 = vrot.slane %v5927_v0, 4 }
 0x41a   : > { %v5932_v50 = vrot.slane %v5930_v41, 5  ;;  %v5944_v28 = vshll.u32 %v5504_v47, 16  ;;  %10672 = vst.msk [vmem:[#allocation3 + $0x158] sm:$0xff] %vm1396_vm9, %v15980_v44  ;;  %v6126_v37 = vld [vmem:[#allocation2 + $0x178] sm:$0xe]  ;;  %v12486_v23 = vcombine.low %v9386_v46, %v9400_v42  ;;  %11010 = vrot.lane.b32.xlu0 %v12614_v2, %s13039_s10  ;;  %v5938_v55 = vrot.slane %v5936_v53, 5 }
 0x41b   : > { %8911 = vst.msk [vmem:[#allocation3 + $0x150] sm:$0xff] %vm2940_vm13, %v15953_v57  ;;  %v5943_v17 = vrot.slane %v5941_v8, 4  ;;  %v5950_v27 = vshll.u32 %v5505_v22, 16  ;;  %v6127_v38 = vld [vmem:[#allocation2 + $0x17c] sm:$0x1]  ;;  %v12516_v44 = vrot.slane %v9597_v39, 9 }
 0x41c   : > { %9535 = vst.msk [vmem:[#allocation3 + $0x150] sm:$0xff] %vm3118_vm14, %v16013_v12  ;;  %v5933_v1 = vor.u32 %v5932_v50, %v5929_v21  ;;  %v5946_v63 = vrot.slane %v5944_v28, 5  ;;  %v9783_v29 = vrot.slane %v9598_v58, 5  ;;  %v6128_v15 = vld [vmem:[#allocation2 + $0x180] sm:$0xe]  ;;  %v11609_v57 = vpop.f32.mrb[16].mxu1  ;;  %9505 = vrot.lane.b32.xlu1 %v12486_v23, %s13043_s14  ;;  %v16170_v12 = vpop.permute.xlu0 %10636  ;;  %v16195_v21 = vadd.f32 %v16121_v43, %v16117_v52 }
 0x41d   : > { %11040 = vst.msk [vmem:[#allocation3 + $0x158] sm:$0xff] %vm1768_vm10, %v16023_v5  ;;  %v5952_v59 = vrot.slane %v5950_v27, 5  ;;  %v12517_v20 = vrot.slane %v9599_v34, 9  ;;  %v9787_v62 = vrot.slane %v9600_v60, 5  ;;  %v6129_v56 = vld [vmem:[#allocation2 + $0x184] sm:$0x1]  ;;  %v11610_v7 = vadd.f32 %v11609_v57, %v16111_v13 }
 0x41e   : > { %9903 = vst.msk [vmem:[#allocation3 + $0x150] sm:$0xff] %vm3743_vm15, %v16056_v10  ;;  %v12278_v54 = vrot.slane %v6126_v37, 9  ;;  %v5934_v40 = vrot.slane %v5933_v1, 4  ;;  %v5947_v5 = vor.u32 %v5946_v63, %v5943_v17  ;;  %v9784_v25 = vsel %vm13333_vm7, %v12516_v44, %v9783_v29  ;;  %v7263_v47 = vld [vmem:[#allocation2 + $0x180] sm:$0xe]  ;;  %v11611_v3 = vpop.f32.mrb[17].mxu1  ;;  %v16203_v44 = vpop.permute.xlu1 %9867 }
 0x41f   : > { %v6316_v9 = vrot.slane %v6127_v38, 5  ;;  %v9788_v33 = vsel %vm13333_vm7, %v12517_v20, %v9787_v62  ;;  %v12279_v10 = vrot.slane %v6128_v15, 9  ;;  %v6320_v24 = vrot.slane %v6129_v56, 5  ;;  %v12989_v6 = vld [vmem:[#allocation2 + $0x180] ss:$8 sps:$4 sm:$0xff]   ;;  %11712 = vst [vmem:[%s15967_s17 + $0x40] sm:$0xff] %v11610_v7 }
 0x420   : > { %v5939_v35 = vsel %vm13171_vm4, %v5934_v40, %v5938_v55  ;;  %v5948_v11 = vrot.slane %v5947_v5, 4  ;;  %v12534_v22 = vcombine.low %v9784_v25, %v9788_v33  ;;  %v7264_v26 = vld [vmem:[#allocation2 + $0x184] sm:$0x1]  ;;  %v7265_v30 = vld [vmem:[#allocation2 + $0x188] sm:$0xe]  ;;  %v12358_v19 = vrot.slane %v7263_v47, 9  ;;  %v16189_v53 = vpop.permute.xlu0 %9499 }
 0x421   : > { %v6317_v14 = vsel %vm13333_vm7, %v12278_v54, %v6316_v9  ;;  %v6321_v39 = vsel %vm13333_vm7, %v12279_v10, %v6320_v24  ;;  %v7266_v61 = vld [vmem:[#allocation2 + $0x18c] sm:$0x1]  ;;  %v7453_v0 = vrot.slane %v7264_v26, 5  ;;  %v12359_v41 = vrot.slane %v7265_v30, 9  ;;  %v11612_v13 = vpop.f32.mrb[18].mxu1 }
 0x422   : > { %v5953_v58 = vsel %vm13171_vm4, %v5948_v11, %v5952_v59  ;;  %9873 = vrot.lane.b32.xlu0 %v12534_v22, %s13044_s15  ;;  %v7457_v46 = vrot.slane %v7266_v61, 5  ;;  %v11613_v8 = vadd.f32 %v11612_v13, %v16114_v45  ;;  %v7808_v60 = vld [vmem:[#allocation2 + $0x1c0] sm:$0xf]  ;;  %v7809_v42 = vld [vmem:[#allocation2 + $0x1c4] sm:$0x1]  ;;  %v12295_v50 = vcombine.low %v6317_v14, %v6321_v39 }
 0x423   : > { %v12247_v34 = vcombine.low %v5939_v35, %v5953_v58  ;;  %v7454_v28 = vsel %vm13333_vm7, %v12358_v19, %v7453_v0  ;;  %v12990_v37 = vld [vmem:[#allocation2 + $0x1c0] ss:$8 sps:$4 sm:$0xff]   ;;  %v7811_v55 = vld [vmem:[#allocation2 + $0x1cc] sm:$0x1]  ;;  %v8233_v17 = vshrl.u32 %v7808_v60, 16  ;;  %v8236_v27 = vshll.u32 %v7808_v60, 16  ;;  %v6572_v58 = vpop.permute.xlu1 %6571 }
 0x424   : > { %v11089_v2 = vld [vmem:[#allocation3 + $0x158] sm:$0xff]  ;;  %v7810_v23 = vld [vmem:[#allocation2 + $0x1c8] sm:$0xf]  ;;  %11713 = vst [vmem:[%s15967_s17 + $0x48] sm:$0xff] %v11613_v8  ;;  %v7458_v45 = vsel %vm13333_vm7, %v12359_v41, %v7457_v46  ;;  %v8242_v38 = vshll.u32 %v7809_v42, 16  ;;  %v8256_v57 = vshll.u32 %v7811_v55, 16  ;;  %v6027_v47 = vpop.permute.xlu0 %6026 }
 0x425   : > { %12654 = vmatprep.mubr.msk.bf16.mxu1 %vm11333_vm2, %v11089_v2  ;;  %6032 = vrot.lane.b32.xlu1 %v12247_v34, %s13042_s13  ;;  %v8247_v1 = vshrl.u32 %v7810_v23, 16  ;;  %v8250_v63 = vshll.u32 %v7810_v23, 16  ;;  %v8432_v52 = vld [vmem:[#allocation2 + $0x1c0] sm:$0xe]  ;;  %v11088_v43 = vld [vmem:[#allocation3 + $0x150] sm:$0xff]  ;;  %v8235_v29 = vrot.slane %v8233_v17, 4  ;;  %v12375_v7 = vcombine.low %v7454_v28, %v7458_v45 }
 0x426   : > { %6577 = vrot.lane.b32.xlu0 %v12989_v6, %s13044_s15  ;;  %v8238_v15 = vrot.slane %v8236_v27, 5  ;;  %v8433_v59 = vld [vmem:[#allocation2 + $0x1c4] sm:$0x1]  ;;  %v12438_v20 = vrot.slane %v8432_v52, 9  ;;  %11656 = vmatmul.mubr.bf16.gmra.mrb[40].mxu1 %v11088_v43  ;;  %v8244_v62 = vrot.slane %v8242_v38, 5  ;;  %v8258_v9 = vrot.slane %v8256_v57, 5 }
 0x427   : > { %v8249_v56 = vrot.slane %v8247_v1, 4  ;;  %v8252_v54 = vrot.slane %v8250_v63, 5  ;;  %v8434_v40 = vld [vmem:[#allocation2 + $0x1c8] sm:$0xe]  ;;  %v8622_v5 = vrot.slane %v8433_v59, 5  ;;  %6062 = vst.msk [vmem:[#allocation3 + $0x188] sm:$0xff] %vm2940_vm13, %v6027_v47 }
 0x428   : > { %v8239_v25 = vor.u32 %v8238_v15, %v8235_v29  ;;  %v8435_v33 = vld [vmem:[#allocation2 + $0x1cc] sm:$0x1]  ;;  %v12439_v10 = vrot.slane %v8434_v40, 9  ;;  %v615_v24 = vld [vmem:[%s15680_s26 + $0x40] sm:$0xf]  ;;  %v11614_v6 = vpop.f32.mrb[19].mxu1 }
 0x429   : > { %6400 = vrot.lane.b32.xlu1 %v12295_v50, %s13043_s14  ;;  %v8253_v35 = vor.u32 %v8252_v54, %v8249_v56  ;;  %v8623_v11 = vsel %vm13333_vm7, %v12438_v20, %v8622_v5  ;;  %v8626_v22 = vrot.slane %v8435_v33, 5  ;;  %636 = vst.msk [vmem:[#allocation2 + $0x1d0] sm:$0xf] %vm476_vm0, %v615_v24  ;;  %v6655_v14 = vld [vmem:[#allocation2 + $0x130] sm:$0xf]  ;;  %v6395_v50 = vpop.permute.xlu0 %6394 }
 0x42a   : > { %7714 = vrot.lane.b32.xlu0 %v12990_v37, %s13039_s10  ;;  %v8240_v26 = vrot.slane %v8239_v25, 4  ;;  %v6656_v30 = vld [vmem:[#allocation2 + $0x134] sm:$0x1]  ;;  %v6657_v3 = vld [vmem:[#allocation2 + $0x138] sm:$0xf]  ;;  %v6984_v39 = vshrl.u32 %v6655_v14, 16 }
 0x42b   : > { %v8254_v61 = vrot.slane %v8253_v35, 4  ;;  %v8627_v19 = vsel %vm13333_vm7, %v12439_v10, %v8626_v22  ;;  %v6658_v0 = vld [vmem:[#allocation2 + $0x13c] sm:$0x1]  ;;  %v6987_v41 = vshll.u32 %v6655_v14, 16  ;;  %v6993_v13 = vshll.u32 %v6656_v30, 16  ;;  %6430 = vst.msk [vmem:[#allocation3 + $0x188] sm:$0xff] %vm3118_vm14, %v6395_v50  ;;  %v16236_v22 = vpop.permute.xlu1 %7708 }
 0x42c   : > { %v8245_v46 = vsel %vm13171_vm4, %v8240_v26, %v8244_v62  ;;  %v12455_v2 = vcombine.low %v8623_v11, %v8627_v19  ;;  %v6986_v8 = vrot.slane %v6984_v39, 4  ;;  %v6998_v34 = vshrl.u32 %v6657_v3, 16  ;;  %v616_v60 = vld [vmem:[%s15680_s26 + $0x44] sm:$0x1]  ;;  %v617_v42 = vld [vmem:[%s15680_s26 + $0x48] sm:$0xf] }
 0x42d   : > { %7537 = vrot.lane.b32.xlu1 %v12375_v7, %s13038_s9  ;;  %v8259_v28 = vsel %vm13171_vm4, %v8254_v61, %v8258_v9  ;;  %v6989_v37 = vrot.slane %v6987_v41, 5  ;;  %v6995_v23 = vrot.slane %v6993_v13, 5  ;;  %v7001_v55 = vshll.u32 %v6657_v3, 16  ;;  %v618_v17 = vld [vmem:[%s15680_s26 + $0x4c] sm:$0x1]  ;;  %6607 = vst.msk [vmem:[#allocation3 + $0x188] sm:$0xff] %vm3743_vm15, %v6572_v58  ;;  %v16229_v62 = vpop.permute.xlu0 %7531 }
 0x42e   : > { %637 = vst.msk [vmem:[#allocation2 + $0x1d4] sm:$0x1] %vm478_vm1, %v616_v60  ;;  %v12407_v27 = vcombine.low %v8245_v46, %v8259_v28  ;;  %8706 = vrot.lane.b32.xlu0 %v12455_v2, %s13041_s12  ;;  %v7000_v45 = vrot.slane %v6998_v34, 4  ;;  %v7007_v38 = vshll.u32 %v6658_v0, 16  ;;  %639 = vst.msk [vmem:[#allocation2 + $0x1dc] sm:$0x1] %vm478_vm1, %v618_v17 }
 0x42f   : > { %638 = vst.msk [vmem:[#allocation2 + $0x1d8] sm:$0xf] %vm476_vm0, %v617_v42  ;;  %v8977_v1 = vld [vmem:[#allocation2 + $0x1c8] sm:$0xf]  ;;  %v8978_v63 = vld [vmem:[#allocation2 + $0x1cc] sm:$0x1]  ;;  %v6990_v52 = vor.u32 %v6989_v37, %v6986_v8 }
 0x430   : > { %v7003_v43 = vrot.slane %v7001_v55, 5  ;;  %v9402_v29 = vshrl.u32 %v8977_v1, 16  ;;  %v9405_v15 = vshll.u32 %v8977_v1, 16  ;;  %v12991_v57 = vld [vmem:[#allocation2 + $0x1c8] ss:$8 sps:$4 sm:$0xff]   ;;  %v7009_v59 = vrot.slane %v7007_v38, 5 }
 0x431   : > { %v9411_v20 = vshll.u32 %v8978_v63, 16  ;;  %8338 = vrot.lane.b32.xlu1 %v12407_v27, %s13040_s11  ;;  %v6991_v56 = vrot.slane %v6990_v52, 4  ;;  %v10114_v40 = vld [vmem:[#allocation2 + $0x1d0] sm:$0xf]  ;;  %v11094_v61 = vld [vmem:[#allocation3 + $0x180] sm:$0xff] }
 0x432   : > { %v7004_v54 = vor.u32 %v7003_v43, %v7000_v45  ;;  %v8979_v5 = vld [vmem:[#allocation2 + $0x1d0] sm:$0xf]  ;;  %v9404_v25 = vrot.slane %v9402_v29, 4  ;;  %v10539_v9 = vshrl.u32 %v10114_v40, 16  ;;  %v10542_v33 = vshll.u32 %v10114_v40, 16 }
 0x433   : > { %v9407_v10 = vrot.slane %v9405_v15, 5  ;;  %v16232_v24 = vrot.slane %v9411_v20, 5  ;;  %v6996_v47 = vsel %vm13171_vm4, %v6991_v56, %v6995_v23  ;;  %v9416_v35 = vshrl.u32 %v8979_v5, 16  ;;  %v10738_v39 = vld [vmem:[#allocation2 + $0x1d0] sm:$0xe] }
 0x434   : > { %v7005_v7 = vrot.slane %v7004_v54, 4  ;;  %v9419_v11 = vshll.u32 %v8979_v5, 16  ;;  %v10541_v26 = vrot.slane %v10539_v9, 4  ;;  %v10544_v30 = vrot.slane %v10542_v33, 5  ;;  %v16241_v19 = vld [vmem:[%s16470_s4] ss:$0 sm:$0xff]  ;;  %v16261_v5 = vpop.permute.xlu1 %8700 }
 0x435   : > { %v10115_v14 = vld [vmem:[#allocation2 + $0x1d4] sm:$0x1]  ;;  %v9408_v3 = vor.u32 %v9407_v10, %v9404_v25  ;;  %v16245_v0 = vadd.f32 %v16241_v19, %v16105_v18  ;;  %8883 = vrot.lane.b32.xlu1 %v12991_v57, %s13042_s13  ;;  %v10117_v13 = vld [vmem:[#allocation2 + $0x1dc] sm:$0x1]  ;;  %v11095_v8 = vld [vmem:[#allocation3 + $0x188] sm:$0xff]  ;;  %v16252_v18 = vpop.permute.xlu0 %8332  ;;  %v9418_v45 = vrot.slane %v9416_v35, 4 }
 0x436   : > { %v10116_v6 = vld [vmem:[#allocation2 + $0x1d8] sm:$0xf]  ;;  %v7010_v41 = vsel %vm13171_vm4, %v7005_v7, %v7009_v59  ;;  %v10548_v58 = vshll.u32 %v10115_v14, 16  ;;  %v10545_v60 = vor.u32 %v10544_v30, %v10541_v26  ;;  %v10562_v42 = vshll.u32 %v10117_v13, 16  ;;  %v8980_v50 = vld [vmem:[#allocation2 + $0x1d4] sm:$0x1]  ;;  %11510 = vmatprep.mubr.bf16.mxu0 %v11095_v8 }
 0x437   : > { %v10553_v46 = vshrl.u32 %v10116_v6, 16  ;;  %v10556_v2 = vshll.u32 %v10116_v6, 16  ;;  %v12323_v34 = vcombine.low %v6996_v47, %v7010_v41  ;;  %v16250_v28 = vrot.slane %v9408_v3, 4  ;;  %v10739_v37 = vld [vmem:[#allocation2 + $0x1d4] sm:$0x1]  ;;  %11511 = vmatmul.mubr.bf16.gmra.mrb[48].mxu0 %v11094_v61  ;;  %v12714_v57 = vpop.f32.mrb[24].mxu0 }
 0x438   : > { %v9601_v23 = vld [vmem:[#allocation2 + $0x1c8] sm:$0xe]  ;;  %v10550_v55 = vrot.slane %v10548_v58, 5  ;;  %v10740_v38 = vld [vmem:[#allocation2 + $0x1d8] sm:$0xe]  ;;  %v10546_v63 = vrot.slane %v10545_v60, 4 }
 0x439   : > { %v10555_v17 = vrot.slane %v10553_v46, 4  ;;  %v10558_v27 = vrot.slane %v10556_v2, 5  ;;  %v9602_v1 = vld [vmem:[#allocation2 + $0x1cc] sm:$0x1]  ;;  %7198 = vst.msk [vmem:[#allocation3 + $0x170] sm:$0xff] %vm768_vm8, %v12323_v34  ;;  %v10564_v52 = vrot.slane %v10562_v42, 5  ;;  %v9414_v43 = vsel %vm13171_vm4, %v16250_v28, %v16232_v24  ;;  %v16267_v7 = vpop.permute.xlu0 %8877 }
 0x43a   : > { %v9421_v29 = vrot.slane %v9419_v11, 5  ;;  %v10741_v15 = vld [vmem:[#allocation2 + $0x1dc] sm:$0x1]  ;;  %7566 = vst.msk [vmem:[#allocation3 + $0x170] sm:$0xff] %vm1396_vm9, %v16086_v32  ;;  %v9425_v20 = vshll.u32 %v8980_v50, 16  ;;  %v12598_v56 = vrot.slane %v10738_v39, 9  ;;  %v10551_v9 = vsel %vm13171_vm4, %v10546_v63, %v10550_v55 }
 0x43b   : > { %v10559_v59 = vor.u32 %v10558_v27, %v10555_v17  ;;  %v10928_v54 = vrot.slane %v10739_v37, 5  ;;  %v9603_v40 = vld [vmem:[#allocation2 + $0x1d0] sm:$0xe]  ;;  %v12715_v25 = vpop.f32.mrb[25].mxu0  ;;  %7743 = vst.msk [vmem:[#allocation3 + $0x170] sm:$0xff] %vm1768_vm10, %v16126_v16  ;;  %v12599_v10 = vrot.slane %v10740_v38, 9  ;;  %v10639_v17 = vpop.permute.xlu1 %10638 }
 0x43c   : > { %v9422_v33 = vor.u32 %v9421_v29, %v9418_v45  ;;  %v10932_v24 = vrot.slane %v10741_v15, 5  ;;  %v9604_v47 = vld [vmem:[#allocation2 + $0x1d4] sm:$0x1]  ;;  %v9427_v35 = vrot.slane %v9425_v20, 5  ;;  %8367 = vst.msk [vmem:[#allocation3 + $0x170] sm:$0xff] %vm1946_vm11, %v16107_v4  ;;  %v12518_v14 = vrot.slane %v9601_v23, 9 }
 0x43d   : > { %v10560_v32 = vrot.slane %v10559_v59, 4  ;;  %v16273_v11 = vsel %vm13333_vm7, %v12598_v56, %v10928_v54  ;;  %v12717_v6 = vpop.f32.mrb[26].mxu0  ;;  %v9791_v30 = vrot.slane %v9602_v1, 5  ;;  %v12519_v3 = vrot.slane %v9603_v40, 9  ;;  %8735 = vst.msk [vmem:[#allocation3 + $0x170] sm:$0xff] %vm2571_vm12, %v16144_v48  ;;  %v11617_v1 = vpop.f32.mrb[20].mxu1 }
 0x43e   : > { %v9423_v26 = vrot.slane %v9422_v33, 4  ;;  %v10933_v16 = vsel %vm13333_vm7, %v12599_v10, %v10932_v24  ;;  %v12992_v39 = vld [vmem:[#allocation2 + $0x180] ss:$8 sps:$4 sm:$0xff]   ;;  %v12718_v61 = vpop.f32.mrb[27].mxu0  ;;  %v9795_v13 = vrot.slane %v9604_v47, 5  ;;  %8912 = vst.msk [vmem:[#allocation3 + $0x170] sm:$0xff] %vm2940_vm13, %v16119_v36  ;;  %v16284_v2 = vadd.f32 %v12715_v25, %v12714_v57  ;;  %v5405_v36 = vpop.permute.xlu0 %5404 }
 0x43f   : > { %v10565_v4 = vsel %vm13171_vm4, %v10560_v32, %v10564_v52  ;;  %v12615_v41 = vcombine.low %v16273_v11, %v10933_v16  ;;  %v6659_v58 = vld [vmem:[#allocation2 + $0x150] sm:$0xf]  ;;  %v6660_v46 = vld [vmem:[#allocation2 + $0x154] sm:$0x1]  ;;  %v9792_v48 = vsel %vm13333_vm7, %v12518_v14, %v9791_v30  ;;  %10049 = vst.msk [vmem:[#allocation3 + $0x178] sm:$0xff] %vm768_vm8, %v12992_v39  ;;  %v11619_v29 = vpop.f32.mrb[21].mxu1  ;;  %v11460_v20 = vadd.f32 %v16241_v19, %v16195_v21 }
 0x440   : > { %v12567_v8 = vcombine.low %v10551_v9, %v10565_v4  ;;  %v9428_v34 = vsel %vm13171_vm4, %v9423_v26, %v9427_v35  ;;  %9536 = vst.msk [vmem:[#allocation3 + $0x170] sm:$0xff] %vm3118_vm14, %v16189_v53  ;;  %v6661_v60 = vld [vmem:[#allocation2 + $0x158] sm:$0xf]  ;;  %v6662_v42 = vld [vmem:[#allocation2 + $0x15c] sm:$0x1]  ;;  %v7012_v50 = vshrl.u32 %v6659_v58, 16  ;;  %v9796_v37 = vsel %vm13333_vm7, %v12519_v3, %v9795_v13  ;;  %v16314_v11 = vpop.permute.xlu1 %9501 }
 0x441   : > { %v12487_v28 = vcombine.low %v9414_v43, %v9428_v34  ;;  %10673 = vst.msk [vmem:[#allocation3 + $0x178] sm:$0xff] %vm1396_vm9, %v16170_v12  ;;  %v7015_v23 = vshll.u32 %v6659_v58, 16  ;;  %v7021_v55 = vshll.u32 %v6660_v46, 16  ;;  %v12535_v53 = vcombine.low %v9792_v48, %v9796_v37  ;;  %v12993_v38 = vld [vmem:[#allocation2 + $0x1a0] ss:$8 sps:$4 sm:$0xff]  }
 0x442   : > { %9904 = vst.msk [vmem:[#allocation3 + $0x170] sm:$0xff] %vm3743_vm15, %v16203_v44  ;;  %10644 = vrot.lane.b32.xlu0 %v12567_v8, %s13038_s9  ;;  %v7014_v27 = vrot.slane %v7012_v50, 4  ;;  %v7026_v49 = vshrl.u32 %v6661_v60, 16  ;;  %v7029_v45 = vshll.u32 %v6661_v60, 16  ;;  %v7035_v63 = vshll.u32 %v6662_v42, 16 }
 0x443   : > { %5439 = vst.msk [vmem:[#allocation3 + $0x1a8] sm:$0xff] %vm2571_vm12, %v5405_v36  ;;  %9507 = vrot.lane.b32.xlu1 %v12487_v28, %s13043_s14  ;;  %v7017_v12 = vrot.slane %v7015_v23, 5  ;;  %v7023_v44 = vrot.slane %v7021_v55, 5  ;;  %v6663_v52 = vld [vmem:[#allocation2 + $0x160] sm:$0xf]  ;;  %v11618_v43 = vadd.f32 %v11617_v1, %v16245_v0  ;;  %v16308_v56 = vadd.f32 %v12718_v61, %v12717_v6  ;;  %v11620_v0 = vpop.f32.mrb[22].mxu1 }
 0x444   : > { %11041 = vst.msk [vmem:[#allocation3 + $0x178] sm:$0xff] %vm1768_vm10, %v16176_v31  ;;  %v7028_v15 = vrot.slane %v7026_v49, 4  ;;  %v7031_v57 = vrot.slane %v7029_v45, 5  ;;  %v6664_v31 = vld [vmem:[#allocation2 + $0x164] sm:$0x1]  ;;  %v7037_v40 = vrot.slane %v7035_v63, 5  ;;  %v11621_v34 = vadd.f32 %v11620_v0, %v11460_v20  ;;  %v11007_v60 = vpop.permute.xlu0 %11006 }
 0x445   : > { %10050 = vst.msk [vmem:[#allocation3 + $0x198] sm:$0xff] %vm768_vm8, %v12993_v38  ;;  %v6665_v59 = vld [vmem:[#allocation2 + $0x168] sm:$0xf]  ;;  %v7018_v54 = vor.u32 %v7017_v12, %v7014_v27  ;;  %v6666_v25 = vld [vmem:[#allocation2 + $0x16c] sm:$0x1]  ;;  %v7040_v9 = vshrl.u32 %v6663_v52, 16  ;;  %v11465_v51 = vadd.f32 %v16241_v19, %v16284_v2 }
 0x446   : > { %10674 = vst.msk [vmem:[#allocation3 + $0x198] sm:$0xff] %vm1396_vm9, %v10639_v17  ;;  %v7043_v33 = vshll.u32 %v6663_v52, 16  ;;  %11714 = vst [vmem:[%s15967_s17 + $0x50] sm:$0xff] %v11618_v43  ;;  %11012 = vrot.lane.b32.xlu0 %v12615_v41, %s13039_s10  ;;  %v7032_v10 = vor.u32 %v7031_v57, %v7028_v15  ;;  %v7049_v24 = vshll.u32 %v6664_v31, 16  ;;  %v7054_v47 = vshrl.u32 %v6665_v59, 16  ;;  %v11622_v35 = vpop.f32.mrb[23].mxu1 }
 0x447   : > { %v7057_v32 = vshll.u32 %v6665_v59, 16  ;;  %9875 = vrot.lane.b32.xlu1 %v12535_v53, %s13044_s15  ;;  %v7019_v21 = vrot.slane %v7018_v54, 4  ;;  %v7042_v14 = vrot.slane %v7040_v9, 4  ;;  %v7063_v26 = vshll.u32 %v6666_v25, 16  ;;  %v12994_v46 = vld [vmem:[#allocation2 + $0x1b0] ss:$8 sps:$4 sm:$0xff]   ;;  %v6029_v53 = vpop.permute.xlu1 %6028 }
 0x448   : > { %v7045_v6 = vrot.slane %v7043_v33, 5  ;;  %v7033_v16 = vrot.slane %v7032_v10, 4  ;;  %v7051_v3 = vrot.slane %v7049_v24, 5  ;;  %v7056_v39 = vrot.slane %v7054_v47, 4  ;;  %v6667_v8 = vld [vmem:[#allocation2 + $0x170] sm:$0xf]  ;;  %v9870_v43 = vpop.permute.xlu0 %9869 }
 0x449   : > { %v11092_v30 = vld [vmem:[#allocation3 + $0x170] sm:$0xff]  ;;  %v7059_v61 = vrot.slane %v7057_v32, 5  ;;  %v7024_v41 = vsel %vm13171_vm4, %v7019_v21, %v7023_v44  ;;  %v7065_v58 = vrot.slane %v7063_v26, 5  ;;  %v6669_v36 = vld [vmem:[#allocation2 + $0x178] sm:$0xf]  ;;  %11042 = vst.msk [vmem:[#allocation3 + $0x198] sm:$0xff] %vm1768_vm10, %v11007_v60 }
 0x44a   : > { %v7046_v13 = vor.u32 %v7045_v6, %v7042_v14  ;;  %v7038_v48 = vsel %vm13171_vm4, %v7033_v16, %v7037_v40  ;;  %v6668_v50 = vld [vmem:[#allocation2 + $0x174] sm:$0x1]  ;;  %v6670_v28 = vld [vmem:[#allocation2 + $0x17c] sm:$0x1]  ;;  %10051 = vst.msk [vmem:[#allocation3 + $0x1b8] sm:$0xff] %vm768_vm8, %v12994_v46  ;;  %v7068_v55 = vshrl.u32 %v6667_v8, 16 }
 0x44b   : > { %v11093_v4 = vld [vmem:[#allocation3 + $0x178] sm:$0xff]  ;;  %v7060_v42 = vor.u32 %v7059_v61, %v7056_v39  ;;  %v12324_v37 = vcombine.low %v7024_v41, %v7038_v48  ;;  %v7071_v17 = vshll.u32 %v6667_v8, 16  ;;  %11715 = vst [vmem:[%s15967_s17 + $0x58] sm:$0xff] %v11621_v34  ;;  %v7077_v49 = vshll.u32 %v6668_v50, 16  ;;  %6063 = vst.msk [vmem:[#allocation3 + $0x1a8] sm:$0xff] %vm2940_vm13, %v6029_v53 }
 0x44c   : > { %12655 = vmatprep.mubr.msk.bf16.mxu1 %vm11333_vm2, %v11093_v4  ;;  %v7047_v23 = vrot.slane %v7046_v13, 4  ;;  %v7082_v45 = vshrl.u32 %v6669_v36, 16  ;;  %v7085_v38 = vshll.u32 %v6669_v36, 16  ;;  %v7070_v12 = vrot.slane %v7068_v55, 4  ;;  %v12995_v52 = vld [vmem:[#allocation2 + $0x1c0] ss:$8 sps:$4 sm:$0xff]  }
 0x44d   : > { %11664 = vmatmul.mubr.bf16.gmra.mrb[44].mxu1 %v11092_v30  ;;  %v7061_v27 = vrot.slane %v7060_v42, 4  ;;  %7199 = vst.msk [vmem:[#allocation3 + $0x190] sm:$0xff] %vm768_vm8, %v12324_v37  ;;  %v7073_v44 = vrot.slane %v7071_v17, 5  ;;  %v7091_v63 = vshll.u32 %v6670_v28, 16  ;;  %v7079_v15 = vrot.slane %v7077_v49, 5  ;;  %10052 = vst.msk [vmem:[#allocation3 + $0x1d8] sm:$0xff] %vm768_vm8, %v12995_v52 }
 0x44e   : > { %v7052_v1 = vsel %vm13171_vm4, %v7047_v23, %v7051_v3  ;;  %7567 = vst.msk [vmem:[#allocation3 + $0x190] sm:$0xff] %vm1396_vm9, %v16229_v62  ;;  %v7084_v57 = vrot.slane %v7082_v45, 4  ;;  %v7087_v31 = vrot.slane %v7085_v38, 5  ;;  %v6671_v59 = vld [vmem:[#allocation2 + $0x180] sm:$0xf]  ;;  %v6397_v62 = vpop.permute.xlu1 %6396  ;;  %v11468_v52 = vadd.f32 %v16241_v19, %v16308_v56 }
 0x44f   : > { %v7066_v29 = vsel %vm13171_vm4, %v7061_v27, %v7065_v58  ;;  %7744 = vst.msk [vmem:[#allocation3 + $0x190] sm:$0xff] %vm1768_vm10, %v16236_v22  ;;  %v7074_v54 = vor.u32 %v7073_v44, %v7070_v12  ;;  %v7093_v40 = vrot.slane %v7091_v63, 5  ;;  %v6672_v25 = vld [vmem:[#allocation2 + $0x184] sm:$0x1]  ;;  %v6673_v9 = vld [vmem:[#allocation2 + $0x188] sm:$0xf] }
 0x450   : > { %v12325_v20 = vcombine.low %v7052_v1, %v7066_v29  ;;  %v7096_v33 = vshrl.u32 %v6671_v59, 16  ;;  %8368 = vst.msk [vmem:[#allocation3 + $0x190] sm:$0xff] %vm1946_vm11, %v16252_v18  ;;  %v7088_v0 = vor.u32 %v7087_v31, %v7084_v57  ;;  %v6674_v10 = vld [vmem:[#allocation2 + $0x18c] sm:$0x1]  ;;  %v7099_v24 = vshll.u32 %v6671_v59, 16  ;;  %v6574_v18 = vpop.permute.xlu0 %6573  ;;  %v11097_v6 = vld [vmem:[#allocation3 + $0x198] sm:$0xff] }
 0x451   : > { %v7105_v47 = vshll.u32 %v6672_v25, 16  ;;  %v7110_v32 = vshrl.u32 %v6673_v9, 16  ;;  %8736 = vst.msk [vmem:[#allocation3 + $0x190] sm:$0xff] %vm2571_vm12, %v16261_v5  ;;  %v7075_v22 = vrot.slane %v7074_v54, 4  ;;  %v7113_v21 = vshll.u32 %v6673_v9, 16  ;;  %v12720_v3 = vpop.f32.mrb[28].mxu0  ;;  %12656 = vmatprep.mubr.msk.bf16.mxu1 %vm11333_vm2, %v11097_v6 }
 0x452   : > { %6431 = vst.msk [vmem:[#allocation3 + $0x1a8] sm:$0xff] %vm3118_vm14, %v6397_v62  ;;  %v7098_v35 = vrot.slane %v7096_v33, 4  ;;  %v7119_v14 = vshll.u32 %v6674_v10, 16  ;;  %v7089_v26 = vrot.slane %v7088_v0, 4  ;;  %v7101_v16 = vrot.slane %v7099_v24, 5  ;;  %v12721_v58 = vpop.f32.mrb[29].mxu0 }
 0x453   : > { %7200 = vst.msk [vmem:[#allocation3 + $0x1b0] sm:$0xff] %vm768_vm8, %v12325_v20  ;;  %v7112_v30 = vrot.slane %v7110_v32, 4  ;;  %v7080_v5 = vsel %vm13171_vm4, %v7075_v22, %v7079_v15  ;;  %v7115_v39 = vrot.slane %v7113_v21, 5  ;;  %v12996_v61 = vld [vmem:[#allocation2 + $0x1d0] ss:$8 sps:$4 sm:$0xff]   ;;  %v7107_v13 = vrot.slane %v7105_v47, 5 }
 0x454   : > { %8913 = vst.msk [vmem:[#allocation3 + $0x190] sm:$0xff] %vm2940_vm13, %v16267_v7  ;;  %v7534_v7 = vpop.permute.xlu1 %7533  ;;  %v7094_v4 = vsel %vm13171_vm4, %v7089_v26, %v7093_v40  ;;  %v7102_v41 = vor.u32 %v7101_v16, %v7098_v35  ;;  %v7121_v8 = vrot.slane %v7119_v14, 5  ;;  %v16354_v34 = vadd.f32 %v12721_v58, %v12720_v3  ;;  %v12723_v48 = vpop.f32.mrb[30].mxu0  ;;  %v11098_v45 = vld [vmem:[#allocation3 + $0x1a0] sm:$0xff] }
 0x455   : > { %9537 = vst.msk [vmem:[#allocation3 + $0x190] sm:$0xff] %vm3118_vm14, %v16314_v11  ;;  %v12326_v11 = vcombine.low %v7080_v5, %v7094_v4  ;;  %v7116_v46 = vor.u32 %v7115_v39, %v7112_v30  ;;  %v7711_v60 = vpop.permute.xlu0 %7710  ;;  %v12724_v50 = vpop.f32.mrb[31].mxu0  ;;  %v11102_v14 = vld [vmem:[#allocation3 + $0x1c0] sm:$0xff] }
 0x456   : > { %6608 = vst.msk [vmem:[#allocation3 + $0x1a8] sm:$0xff] %vm3743_vm15, %v6574_v18  ;;  %9905 = vst.msk [vmem:[#allocation3 + $0x190] sm:$0xff] %vm3743_vm15, %v9870_v43  ;;  %v7103_v42 = vrot.slane %v7102_v41, 4  ;;  %v16358_v28 = vadd.f32 %v12724_v50, %v12723_v48  ;;  %v11473_v3 = vadd.f32 %v16241_v19, %v16354_v34 }
 0x457   : > { %7568 = vst.msk [vmem:[#allocation3 + $0x1b0] sm:$0xff] %vm1396_vm9, %v7534_v7  ;;  %v7117_v36 = vrot.slane %v7116_v46, 4 }
 0x458   : > { %10053 = vst.msk [vmem:[#allocation3 + $0x1f8] sm:$0xff] %vm768_vm8, %v12996_v61  ;;  %7201 = vst.msk [vmem:[#allocation3 + $0x1d0] sm:$0xff] %vm768_vm8, %v12326_v11  ;;  %v8335_v37 = vpop.permute.xlu1 %8334  ;;  %v7108_v23 = vsel %vm13171_vm4, %v7103_v42, %v7107_v13  ;;  %v11476_v7 = vadd.f32 %v16241_v19, %v16358_v28 }
 0x459   : > { %7745 = vst.msk [vmem:[#allocation3 + $0x1b0] sm:$0xff] %vm1768_vm10, %v7711_v60  ;;  %v7122_v55 = vsel %vm13171_vm4, %v7117_v36, %v7121_v8  ;;  %v8703_v17 = vpop.permute.xlu0 %8702 }
 0x45a   : > { %8369 = vst.msk [vmem:[#allocation3 + $0x1b0] sm:$0xff] %vm1946_vm11, %v8335_v37  ;;  %v12327_v27 = vcombine.low %v7108_v23, %v7122_v55 }
 0x45b   : > { %8737 = vst.msk [vmem:[#allocation3 + $0x1b0] sm:$0xff] %vm2571_vm12, %v8703_v17 }
 0x45c   : > { %v8880_v38 = vpop.permute.xlu1 %8879  ;;  %7202 = vst.msk [vmem:[#allocation3 + $0x1f0] sm:$0xff] %vm768_vm8, %v12327_v27 }
 0x45d   : > { %v11099_v53 = vld [vmem:[#allocation3 + $0x1a8] sm:$0xff]  ;;  %v11096_v49 = vld [vmem:[#allocation3 + $0x190] sm:$0xff]  ;;  %8914 = vst.msk [vmem:[#allocation3 + $0x1b0] sm:$0xff] %vm2940_vm13, %v8880_v38  ;;  %v11625_v12 = vpop.f32.mrb[24].mxu1 }
 0x45e   : > { %11518 = vmatprep.mubr.bf16.mxu0 %v11099_v53  ;;  %11672 = vmatmul.mubr.bf16.gmra.mrb[48].mxu1 %v11096_v49  ;;  %v11626_v44 = vadd.f32 %v11625_v12, %v11465_v51  ;;  %v11627_v63 = vpop.f32.mrb[25].mxu1  ;;  %v11106_v49 = vld [vmem:[#allocation3 + $0x1e0] sm:$0xff] }
 0x45f   : > { %11519 = vmatmul.mubr.bf16.gmra.mrb[52].mxu0 %v11098_v45  ;;  %v11628_v29 = vpop.f32.mrb[26].mxu1 }
 0x460   : > { %v5407_v1 = vpop.permute.xlu1 %5406  ;;  %11716 = vst [vmem:[%s15967_s17 + $0x60] sm:$0xff] %v11626_v44  ;;  %v11629_v15 = vadd.f32 %v11628_v29, %v11468_v52  ;;  %v11630_v57 = vpop.f32.mrb[27].mxu1 }
 0x461   : > { %5440 = vst.msk [vmem:[#allocation3 + $0x1c8] sm:$0xff] %vm2571_vm12, %v5407_v1 }
 0x462   : > { %11717 = vst [vmem:[%s15967_s17 + $0x68] sm:$0xff] %v11629_v15 }
 0x464   : > { %v11009_v43 = vpop.permute.xlu1 %11008 }
 0x466   : > { %v10641_v31 = vpop.permute.xlu0 %10640 }
 0x467   : > { %10675 = vst.msk [vmem:[#allocation3 + $0x1b8] sm:$0xff] %vm1396_vm9, %v10641_v31 }
 0x468   : > { %11043 = vst.msk [vmem:[#allocation3 + $0x1b8] sm:$0xff] %vm1768_vm10, %v11009_v43  ;;  %v9872_v59 = vpop.permute.xlu1 %9871 }
 0x46a   : > { %v9504_v20 = vpop.permute.xlu0 %9503 }
 0x46b   : > { %9538 = vst.msk [vmem:[#allocation3 + $0x1b0] sm:$0xff] %vm3118_vm14, %v9504_v20 }
 0x46c   : > { %9906 = vst.msk [vmem:[#allocation3 + $0x1b0] sm:$0xff] %vm3743_vm15, %v9872_v59  ;;  %v6576_v54 = vpop.permute.xlu1 %6575 }
 0x46f   : > { %v11101_v2 = vld [vmem:[#allocation3 + $0x1b8] sm:$0xff] }
 0x470   : > { %12657 = vmatprep.mubr.msk.bf16.mxu1 %vm11333_vm2, %v11101_v2  ;;  %v7713_v9 = vpop.permute.xlu1 %7712 }
 0x471   : > { %v6031_v56 = vpop.permute.xlu0 %6030 }
 0x472   : > { %6064 = vst.msk [vmem:[#allocation3 + $0x1c8] sm:$0xff] %vm2940_vm13, %v6031_v56 }
 0x473   : > { %v11100_v40 = vld [vmem:[#allocation3 + $0x1b0] sm:$0xff]  ;;  %v12726_v62 = vpop.f32.mrb[32].mxu0 }
 0x474   : > { %11680 = vmatmul.mubr.bf16.gmra.mrb[52].mxu1 %v11100_v40  ;;  %v12727_v0 = vpop.f32.mrb[33].mxu0 }
 0x475   : > { %v6399_v25 = vpop.permute.xlu0 %6398  ;;  %v16385_v10 = vadd.f32 %v12727_v0, %v12726_v62  ;;  %v12729_v24 = vpop.f32.mrb[34].mxu0 }
 0x476   : > { %6432 = vst.msk [vmem:[#allocation3 + $0x1c8] sm:$0xff] %vm3118_vm14, %v6399_v25  ;;  %v12730_v32 = vpop.f32.mrb[35].mxu0 }
 0x477   : > { %6609 = vst.msk [vmem:[#allocation3 + $0x1c8] sm:$0xff] %vm3743_vm15, %v6576_v54  ;;  %v16387_v35 = vadd.f32 %v12730_v32, %v12729_v24  ;;  %v11481_v38 = vadd.f32 %v16241_v19, %v16385_v10 }
 0x478   : > { %v8705_v47 = vpop.permute.xlu1 %8704 }
 0x479   : > { %v7536_v33 = vpop.permute.xlu0 %7535  ;;  %v11484_v44 = vadd.f32 %v16241_v19, %v16387_v35 }
 0x47a   : > { %7569 = vst.msk [vmem:[#allocation3 + $0x1d0] sm:$0xff] %vm1396_vm9, %v7536_v33 }
 0x47b   : > { %7746 = vst.msk [vmem:[#allocation3 + $0x1d0] sm:$0xff] %vm1768_vm10, %v7713_v9 }
 0x47d   : > { %v8337_v22 = vpop.permute.xlu0 %8336 }
 0x47e   : > { %8370 = vst.msk [vmem:[#allocation3 + $0x1d0] sm:$0xff] %vm1946_vm11, %v8337_v22  ;;  %v11103_v21 = vld [vmem:[#allocation3 + $0x1c8] sm:$0xff] }
 0x47f   : > { %8738 = vst.msk [vmem:[#allocation3 + $0x1d0] sm:$0xff] %vm2571_vm12, %v8705_v47  ;;  %11526 = vmatprep.mubr.bf16.mxu0 %v11103_v21 }
 0x480   : > { %11527 = vmatmul.mubr.bf16.gmra.mrb[56].mxu0 %v11102_v14 }
 0x481   : > { %v8882_v18 = vpop.permute.xlu0 %8881 }
 0x482   : > { %8915 = vst.msk [vmem:[#allocation3 + $0x1d0] sm:$0xff] %vm2940_vm13, %v8882_v18 }
 0x485   : > { %v5409_v6 = vpop.permute.xlu0 %5408 }
 0x486   : > { %5441 = vst.msk [vmem:[#allocation3 + $0x1e8] sm:$0xff] %vm2571_vm12, %v5409_v6 }
 0x48a   : > { %v10643_v26 = vpop.permute.xlu1 %10642  ;;  %v11633_v5 = vpop.f32.mrb[28].mxu1 }
 0x48b   : > { %10676 = vst.msk [vmem:[#allocation3 + $0x1d8] sm:$0xff] %vm1396_vm9, %v10643_v26  ;;  %v11634_v39 = vadd.f32 %v11633_v5, %v11473_v3  ;;  %v11635_v61 = vpop.f32.mrb[29].mxu1 }
 0x48c   : > { %v11011_v16 = vpop.permute.xlu0 %11010  ;;  %v11636_v41 = vpop.f32.mrb[30].mxu1 }
 0x48d   : > { %11044 = vst.msk [vmem:[#allocation3 + $0x1d8] sm:$0xff] %vm1768_vm10, %v11011_v16  ;;  %11718 = vst [vmem:[%s15967_s17 + $0x70] sm:$0xff] %v11634_v39  ;;  %v11637_v58 = vadd.f32 %v11636_v41, %v11476_v7  ;;  %v11638_v11 = vpop.f32.mrb[31].mxu1 }
 0x48e   : > { %v9506_v30 = vpop.permute.xlu1 %9505 }
 0x48f   : > { %9539 = vst.msk [vmem:[#allocation3 + $0x1d0] sm:$0xff] %vm3118_vm14, %v9506_v30  ;;  %11719 = vst [vmem:[%s15967_s17 + $0x78] sm:$0xff] %v11637_v58 }
 0x493   : > { %v12732_v34 = vpop.f32.mrb[36].mxu0 }
 0x494   : > { %v9874_v4 = vpop.permute.xlu0 %9873  ;;  %v11105_v13 = vld [vmem:[#allocation3 + $0x1d8] sm:$0xff]  ;;  %v12733_v48 = vpop.f32.mrb[37].mxu0 }
 0x495   : > { %9907 = vst.msk [vmem:[#allocation3 + $0x1d0] sm:$0xff] %vm3743_vm15, %v9874_v4  ;;  %12658 = vmatprep.mubr.msk.bf16.mxu1 %vm11333_vm2, %v11105_v13  ;;  %v12734_v60 = vadd.f32 %v12733_v48, %v12732_v34  ;;  %v12735_v42 = vpop.f32.mrb[38].mxu0 }
 0x496   : > { %v12736_v36 = vpop.f32.mrb[39].mxu0 }
 0x497   : > { %v6033_v46 = vpop.permute.xlu1 %6032  ;;  %v12737_v23 = vadd.f32 %v12736_v36, %v12735_v42  ;;  %v11489_v33 = vadd.f32 %v16241_v19, %v12734_v60 }
 0x498   : > { %6065 = vst.msk [vmem:[#allocation3 + $0x1e8] sm:$0xff] %vm2940_vm13, %v6033_v46  ;;  %v6578_v8 = vpop.permute.xlu0 %6577 }
 0x499   : > { %v11492_v24 = vadd.f32 %v16241_v19, %v12737_v23 }
 0x49b   : > { %v6401_v50 = vpop.permute.xlu1 %6400 }
 0x49c   : > { %6433 = vst.msk [vmem:[#allocation3 + $0x1e8] sm:$0xff] %vm3118_vm14, %v6401_v50  ;;  %v7715_v28 = vpop.permute.xlu0 %7714  ;;  %v11104_v37 = vld [vmem:[#allocation3 + $0x1d0] sm:$0xff] }
 0x49d   : > { %6610 = vst.msk [vmem:[#allocation3 + $0x1e8] sm:$0xff] %vm3743_vm15, %v6578_v8  ;;  %11688 = vmatmul.mubr.bf16.gmra.mrb[56].mxu1 %v11104_v37 }
 0x49f   : > { %v7538_v55 = vpop.permute.xlu1 %7537 }
 0x4a0   : > { %7570 = vst.msk [vmem:[#allocation3 + $0x1f0] sm:$0xff] %vm1396_vm9, %v7538_v55  ;;  %v8707_v17 = vpop.permute.xlu0 %8706 }
 0x4a1   : > { %7747 = vst.msk [vmem:[#allocation3 + $0x1f0] sm:$0xff] %vm1768_vm10, %v7715_v28 }
 0x4a3   : > { %v8339_v53 = vpop.permute.xlu1 %8338 }
 0x4a4   : > { %8371 = vst.msk [vmem:[#allocation3 + $0x1f0] sm:$0xff] %vm1946_vm11, %v8339_v53  ;;  %v11107_v27 = vld [vmem:[#allocation3 + $0x1e8] sm:$0xff] }
 0x4a5   : > { %8739 = vst.msk [vmem:[#allocation3 + $0x1f0] sm:$0xff] %vm2571_vm12, %v8707_v17  ;;  %11534 = vmatprep.mubr.bf16.mxu0 %v11107_v27 }
 0x4a6   : > { %11535 = vmatmul.mubr.bf16.gmra.mrb[60].mxu0 %v11106_v49 }
 0x4a7   : > { %v8884_v45 = vpop.permute.xlu1 %8883 }
 0x4a8   : > { %8916 = vst.msk [vmem:[#allocation3 + $0x1f0] sm:$0xff] %vm2940_vm13, %v8884_v45 }
 0x4ad   : > { %v11641_v1 = vpop.f32.mrb[32].mxu1 }
 0x4ae   : > { %v11642_v51 = vadd.f32 %v11641_v1, %v11481_v38  ;;  %v11643_v12 = vpop.f32.mrb[33].mxu1 }
 0x4af   : > { %v11644_v52 = vpop.f32.mrb[34].mxu1 }
 0x4b0   : > { %11720 = vst [vmem:[%s15967_s17 + $0x80] sm:$0xff] %v11642_v51  ;;  %v11645_v29 = vadd.f32 %v11644_v52, %v11484_v44  ;;  %v11646_v15 = vpop.f32.mrb[35].mxu1 }
 0x4b2   : > { %11721 = vst [vmem:[%s15967_s17 + $0x88] sm:$0xff] %v11645_v29 }
 0x4b4   : > { %v10645_v63 = vpop.permute.xlu0 %10644 }
 0x4b5   : > { %10677 = vst.msk [vmem:[#allocation3 + $0x1f8] sm:$0xff] %vm1396_vm9, %v10645_v63  ;;  %v9508_v43 = vpop.permute.xlu1 %9507 }
 0x4b6   : > { %9540 = vst.msk [vmem:[#allocation3 + $0x1f0] sm:$0xff] %vm3118_vm14, %v9508_v43 }
 0x4b8   : > { %v11013_v57 = vpop.permute.xlu0 %11012 }
 0x4b9   : > { %11045 = vst.msk [vmem:[#allocation3 + $0x1f8] sm:$0xff] %vm1768_vm10, %v11013_v57  ;;  %v9876_v31 = vpop.permute.xlu1 %9875 }
 0x4ba   : > { %9908 = vst.msk [vmem:[#allocation3 + $0x1f0] sm:$0xff] %vm3743_vm15, %v9876_v31 }
 0x4bf   : > { %v12738_v2 = vpop.f32.mrb[40].mxu0 }
 0x4c0   : > { %v11109_v59 = vld [vmem:[#allocation3 + $0x1f8] sm:$0xff]  ;;  %v12739_v54 = vpop.f32.mrb[41].mxu0 }
 0x4c1   : > { %12659 = vmatprep.mubr.msk.bf16.mxu1 %vm11333_vm2, %v11109_v59  ;;  %v11108_v20 = vld [vmem:[#allocation3 + $0x1f0] sm:$0xff]  ;;  %v12740_v56 = vadd.f32 %v12739_v54, %v12738_v2  ;;  %v12741_v40 = vpop.f32.mrb[42].mxu0 }
 0x4c2   : > { %11696 = vmatmul.mubr.bf16.gmra.mrb[60].mxu1 %v11108_v20  ;;  %v12742_v25 = vpop.f32.mrb[43].mxu0 }
 0x4c3   : > { %v12743_v9 = vadd.f32 %v12742_v25, %v12741_v40  ;;  %v11497_v16 = vadd.f32 %v16241_v19, %v12740_v56 }
 0x4c5   : > { %v11500_v39 = vadd.f32 %v16241_v19, %v12743_v9 }
 0x4d4   : > { %v11649_v62 = vpop.f32.mrb[36].mxu1 }
 0x4d5   : > { %v11650_v0 = vadd.f32 %v11649_v62, %v11489_v33  ;;  %v11651_v10 = vpop.f32.mrb[37].mxu1 }
 0x4d6   : > { %v11652_v47 = vpop.f32.mrb[38].mxu1 }
 0x4d7   : > { %11722 = vst [vmem:[%s15967_s17 + $0x90] sm:$0xff] %v11650_v0  ;;  %v11653_v32 = vadd.f32 %v11652_v47, %v11492_v24  ;;  %v11654_v22 = vpop.f32.mrb[39].mxu1 }
 0x4d9   : > { %11723 = vst [vmem:[%s15967_s17 + $0x98] sm:$0xff] %v11653_v32 }
 0x4df   : > { %v12744_v35 = vpop.f32.mrb[44].mxu0 }
 0x4e0   : > { %v12745_v21 = vpop.f32.mrb[45].mxu0 }
 0x4e1   : > { %v12746_v14 = vadd.f32 %v12745_v21, %v12744_v35  ;;  %v12747_v18 = vpop.f32.mrb[46].mxu0 }
 0x4e2   : > { %v12748_v6 = vpop.f32.mrb[47].mxu0 }
 0x4e3   : > { %v12749_v26 = vadd.f32 %v12748_v6, %v12747_v18  ;;  %v11505_v34 = vadd.f32 %v16241_v19, %v12746_v14 }
 0x4e5   : > { %v11508_v50 = vadd.f32 %v16241_v19, %v12749_v26 }
 0x4f9   : > { %v11657_v30 = vpop.f32.mrb[40].mxu1 }
 0x4fa   : > { %v11658_v3 = vadd.f32 %v11657_v30, %v11497_v16  ;;  %v11659_v5 = vpop.f32.mrb[41].mxu1 }
 0x4fb   : > { %v11660_v61 = vpop.f32.mrb[42].mxu1 }
 0x4fc   : > { %11724 = vst [vmem:[%s15967_s17 + $0xa0] sm:$0xff] %v11658_v3  ;;  %v11661_v7 = vadd.f32 %v11660_v61, %v11500_v39  ;;  %v11662_v4 = vpop.f32.mrb[43].mxu1 }
 0x4fe   : > { %11725 = vst [vmem:[%s15967_s17 + $0xa8] sm:$0xff] %v11661_v7 }
 0x50a   : > { %v12750_v41 = vpop.f32.mrb[48].mxu0 }
 0x50b   : > { %v12751_v13 = vpop.f32.mrb[49].mxu0 }
 0x50c   : > { %v12752_v58 = vadd.f32 %v12751_v13, %v12750_v41  ;;  %v12753_v11 = vpop.f32.mrb[50].mxu0 }
 0x50d   : > { %v12754_v46 = vpop.f32.mrb[51].mxu0 }
 0x50e   : > { %v12755_v8 = vadd.f32 %v12754_v46, %v12753_v11  ;;  %v11513_v23 = vadd.f32 %v16241_v19, %v12752_v58 }
 0x510   : > { %v11516_v49 = vadd.f32 %v16241_v19, %v12755_v8 }
 0x520   : > { %v11665_v48 = vpop.f32.mrb[44].mxu1 }
 0x521   : > { %v11666_v60 = vadd.f32 %v11665_v48, %v11505_v34  ;;  %v11667_v42 = vpop.f32.mrb[45].mxu1 }
 0x522   : > { %v11668_v36 = vpop.f32.mrb[46].mxu1 }
 0x523   : > { %11726 = vst [vmem:[%s15967_s17 + $0xb0] sm:$0xff] %v11666_v60  ;;  %v11669_v28 = vadd.f32 %v11668_v36, %v11508_v50  ;;  %v11670_v37 = vpop.f32.mrb[47].mxu1 }
 0x525   : > { %11727 = vst [vmem:[%s15967_s17 + $0xb8] sm:$0xff] %v11669_v28 }
 0x531   : > { %v11673_v55 = vpop.f32.mrb[48].mxu1 }
 0x532   : > { %v12756_v17 = vpop.f32.mrb[52].mxu0  ;;  %v11674_v53 = vadd.f32 %v11673_v55, %v11513_v23  ;;  %v11675_v27 = vpop.f32.mrb[49].mxu1 }
 0x533   : > { %v12757_v45 = vpop.f32.mrb[53].mxu0  ;;  %v11676_v38 = vpop.f32.mrb[50].mxu1 }
 0x534   : > { %v12758_v1 = vadd.f32 %v12757_v45, %v12756_v17  ;;  %v12759_v51 = vpop.f32.mrb[54].mxu0  ;;  %11728 = vst [vmem:[%s15967_s17 + $0xc0] sm:$0xff] %v11674_v53  ;;  %v11677_v12 = vadd.f32 %v11676_v38, %v11516_v49  ;;  %v11678_v44 = vpop.f32.mrb[51].mxu1 }
 0x535   : > { %v12760_v63 = vpop.f32.mrb[55].mxu0 }
 0x536   : > { %v12761_v52 = vadd.f32 %v12760_v63, %v12759_v51  ;;  %11729 = vst [vmem:[%s15967_s17 + $0xc8] sm:$0xff] %v11677_v12  ;;  %v11521_v43 = vadd.f32 %v16241_v19, %v12758_v1 }
 0x538   : > { %v11524_v31 = vadd.f32 %v16241_v19, %v12761_v52 }
 0x547   : > { %v11681_v29 = vpop.f32.mrb[52].mxu1 }
 0x548   : > { %v11682_v15 = vadd.f32 %v11681_v29, %v11521_v43  ;;  %v11683_v57 = vpop.f32.mrb[53].mxu1 }
 0x549   : > { %v11684_v59 = vpop.f32.mrb[54].mxu1 }
 0x54a   : > { %11730 = vst [vmem:[%s15967_s17 + $0xd0] sm:$0xff] %v11682_v15  ;;  %v11685_v20 = vadd.f32 %v11684_v59, %v11524_v31  ;;  %v11686_v2 = vpop.f32.mrb[55].mxu1 }
 0x54c   : > { %11731 = vst [vmem:[%s15967_s17 + $0xd8] sm:$0xff] %v11685_v20 }
 0x553   : > { %v12762_v54 = vpop.f32.mrb[56].mxu0 }
 0x554   : > { %v12763_v56 = vpop.f32.mrb[57].mxu0 }
 0x555   : > { %v12764_v40 = vadd.f32 %v12763_v56, %v12762_v54  ;;  %v12765_v25 = vpop.f32.mrb[58].mxu0 }
 0x556   : > { %v12766_v9 = vpop.f32.mrb[59].mxu0 }
 0x557   : > { %v12767_v33 = vadd.f32 %v12766_v9, %v12765_v25  ;;  %v11529_v62 = vadd.f32 %v16241_v19, %v12764_v40 }
 0x559   : > { %v11532_v47 = vadd.f32 %v16241_v19, %v12767_v33 }
 0x570   : > { %v11689_v0 = vpop.f32.mrb[56].mxu1 }
 0x571   : > { %v11690_v10 = vadd.f32 %v11689_v0, %v11529_v62  ;;  %v11691_v24 = vpop.f32.mrb[57].mxu1 }
 0x572   : > { %v11692_v32 = vpop.f32.mrb[58].mxu1 }
 0x573   : > { %11732 = vst [vmem:[%s15967_s17 + $0xe0] sm:$0xff] %v11690_v10  ;;  %v11693_v22 = vadd.f32 %v11692_v32, %v11532_v47  ;;  %v11694_v35 = vpop.f32.mrb[59].mxu1 }
 0x575   : > { %11733 = vst [vmem:[%s15967_s17 + $0xe8] sm:$0xff] %v11693_v22 }
 0x579   : > { %v12768_v21 = vpop.f32.mrb[60].mxu0 }
 0x57a   : > { %v12769_v14 = vpop.f32.mrb[61].mxu0 }
 0x57b   : > { %v12770_v18 = vadd.f32 %v12769_v14, %v12768_v21  ;;  %v12771_v6 = vpop.f32.mrb[62].mxu0 }
 0x57c   : > { %v12772_v26 = vpop.f32.mrb[63].mxu0 }
 0x57d   : > { %v12773_v16 = vadd.f32 %v12772_v26, %v12771_v6  ;;  %v11537_v30 = vadd.f32 %v16241_v19, %v12770_v18 }
 0x57f   : > { %v11540_v61 = vadd.f32 %v16241_v19, %v12773_v16 }
 0x595   : > { %v11697_v3 = vpop.f32.mrb[60].mxu1 }
 0x596   : > { %v11698_v5 = vadd.f32 %v11697_v3, %v11537_v30  ;;  %v11699_v39 = vpop.f32.mrb[61].mxu1 }
 0x597   : > { %v11700_v7 = vpop.f32.mrb[62].mxu1 }
 0x598   : > { %11734 = vst [vmem:[%s15967_s17 + $0xf0] sm:$0xff] %v11698_v5  ;;  %v11701_v4 = vadd.f32 %v11700_v7, %v11540_v61  ;;  %v11702_v41 = vpop.f32.mrb[63].mxu1 }
 0x59a   : > { %11735 = vst [vmem:[%s15967_s17 + $0xf8] sm:$0xff] %v11701_v4 }
 0x59b PF: > { %s15_s22 = sadd.s32 1, %s13036_s22   ;;  %s16478_s18 = smov %s13028_s20 }
 0x59c   : > { %p12_p10 = scmp.ge.s32.totalorder %s15_s22, 6   ;;  %s16479_s19 = smov %s13032_s21 }
 0x59d   : > { %s16480_s20 = smov %s16483_s23  ;;  %s16481_s21 = smov %s16487_s24 }
 0x59e   :  { %14 = sbr.rel (!%p12_p10) target bundleno = 3 (0x3), region = 86 }

</bundles_post_ra>
